<compile_context>
chip_gen: v5e
topology: v5e:2x2
jax: 0.10.0
libtpu: 0.0.40
codegen_flags: <defaults>
</compile_context>

<pallas_src>
import numpy as np

import jax
import jax.numpy as jnp
from jax import lax
from jax.experimental import pallas as pl
from jax.experimental.pallas import tpu as pltpu

NUM_GROUPS = 8
GN_EPS = 1e-5
PADL = 8          # left/right column padding of the scratch buffers -> aligned interior stores


def _silu(x):
    return x * jax.nn.sigmoid(x)


# ---------------------------------------------------------------------------
# Fused kernel: one grid step per batch element.
# ---------------------------------------------------------------------------
def fused_simple_block_kernel(
        xcol_ref,   # (1, H*W, 9*Cin)   bf16  conv1 im2col patches for this sample
        t_ref,      # (1, 1, Tdim)      f32   timestep features
        w1_ref,     # (9*Cin, C)        bf16  conv1 weight (im2col layout)
        mlpw_ref,   # (Tdim, C)         bf16  time-MLP weight
        w2_ref,     # (9, C, C)         bf16  conv2 weight, per tap
        perm_ref,   # (H*W, H*W)        bf16  0/1 permutation: natural -> parity-block row order
        wt_ref,     # (16, C, C)        bf16  4x4 stride-2 conv weight, per tap
        vec_ref,    # (8, C)            f32   [b1, gn1_g, gn1_b, mlp_b, b2, gn2_g, gn2_b, bt]
        ind_ref,    # (C, G)            f32   channel -> group indicator (hoisted constant)
        indt_ref,   # (G, C)            f32   group -> channel indicator (hoisted constant)
        o_ref,      # (1, Ho*Wo, C)     f32   downsampled output, natural row-major order
        hpad_ref,   # scratch (H+2, W+2*PADL, C)            bf16  zero-padded conv2 input
        pp_ref):    # scratch (2, 2, Ho+1, Wo+2*PADL, C)    bf16  zero-padded parity planes
    Hp2, Wpad, C = hpad_ref.shape
    H, W = Hp2 - 2, Wpad - 2 * PADL
    HW = H * W
    Ho, Wo = H // 2, W // 2
    G = ind_ref.shape[1]
    cpg = C // G
    f32, bf16 = jnp.float32, jnp.bfloat16

    b1, g1, be1 = vec_ref[0:1, :], vec_ref[1:2, :], vec_ref[2:3, :]
    mlp_b = vec_ref[3:4, :]
    b2, g2, be2 = vec_ref[4:5, :], vec_ref[5:6, :], vec_ref[6:7, :]
    bt = vec_ref[7:8, :]

    def group_norm(h, gamma, beta):
        # h: (N, C) f32.  PyTorch GroupNorm(G, C): biased variance, per-sample stats.
        n = float(h.shape[0] * cpg)
        s = jnp.sum(h, axis=0, keepdims=True)                        # (1, C)
        ss = jnp.sum(h * h, axis=0, keepdims=True)                   # (1, C)
        s_g = jnp.dot(s, ind_ref[...], preferred_element_type=f32)   # (1, G)
        ss_g = jnp.dot(ss, ind_ref[...], preferred_element_type=f32)
        mean_g = s_g / n
        var_g = jnp.maximum(ss_g / n - mean_g * mean_g, 0.0)         # clamp >= 0
        inv_g = lax.rsqrt(var_g + GN_EPS)
        mean_c = jnp.dot(mean_g, indt_ref[...], preferred_element_type=f32)  # (1, C)
        inv_c = jnp.dot(inv_g, indt_ref[...], preferred_element_type=f32)
        return (h - mean_c) * inv_c * gamma + beta

    # ---- time embedding: silu(t @ Wmlp + b) ---------------------------------
    emb = jnp.dot(t_ref[0].astype(bf16), mlpw_ref[...],
                  preferred_element_type=f32) + mlp_b                # (1, C)
    emb = _silu(emb)

    # ---- conv1: single big-K im2col matmul, + SiLU + GroupNorm + emb --------
    h1 = jnp.dot(xcol_ref[0], w1_ref[...], preferred_element_type=f32)  # (HW, C)
    h1 = group_norm(_silu(h1 + b1), g1, be1) + emb

    # ---- conv2: zero-padded VMEM scratch, 9 per-tap matmuls -----------------
    # padded col p lives at physical col p + (PADL - 1); interior store is aligned.
    hpad_ref[...] = jnp.zeros_like(hpad_ref)
    hpad_ref[1:H + 1, PADL:PADL + W, :] = h1.reshape(H, W, C).astype(bf16)
    acc2 = jnp.zeros((HW, C), f32)
    for k in range(9):
        ky, kx = k // 3, k % 3
        win = hpad_ref[ky:ky + H, (PADL - 1) + kx:(PADL - 1) + kx + W, :]
        acc2 = acc2 + jnp.dot(win.reshape(HW, C), w2_ref[k],
                              preferred_element_type=f32)
    h2 = group_norm(_silu(acc2 + b2), g2, be2)                       # (HW, C)

    # ---- reorder rows into (row-parity, col-parity) blocks via 0/1 matmul ---
    h2b = jnp.dot(perm_ref[...], h2.astype(bf16),
                  preferred_element_type=f32).astype(bf16)           # (HW, C)

    # ---- scatter parity blocks into zero-padded parity scratch --------------
    # plane (pr, pc)[u, v] == h2pad[2u + pr, 2v + pc]; interior stored at col PADL.
    pp_ref[...] = jnp.zeros_like(pp_ref)
    for ey in range(2):
        for ex in range(2):
            blk = h2b[(ey * 2 + ex) * Ho * Wo:(ey * 2 + ex + 1) * Ho * Wo, :]
            pp_ref[1 - ey, 1 - ex, ey:ey + Ho, PADL:PADL + Wo, :] = blk.reshape(Ho, Wo, C)

    # ---- 4x4 stride-2 conv: 16 per-tap matmuls on contiguous parity slices --
    acc3 = jnp.zeros((Ho * Wo, C), f32)
    for ky in range(4):
        for kx in range(4):
            c0 = kx // 2 + (PADL - 1) + (kx % 2)
            win = pp_ref[ky % 2, kx % 2, ky // 2:ky // 2 + Ho, c0:c0 + Wo, :]
            acc3 = acc3 + jnp.dot(win.reshape(Ho * Wo, C), wt_ref[4 * ky + kx],
                                  preferred_element_type=f32)
    o_ref[0] = (acc3 + bt).astype(o_ref.dtype)


# ---------------------------------------------------------------------------
# Wrapper-side (one-time XLA) input prep + constants, then the single pallas_call.
# ---------------------------------------------------------------------------
def _build_conv1_im2col(x_nchw):
    B, Cin, H, W = x_nchw.shape
    x = jnp.transpose(x_nchw, (0, 2, 3, 1))                      # NHWC
    xp = jnp.pad(x, ((0, 0), (1, 1), (1, 1), (0, 0)))
    cols = [xp[:, ky:ky + H, kx:kx + W, :] for ky in range(3) for kx in range(3)]
    return jnp.concatenate(cols, axis=-1).reshape(B, H * W, 9 * Cin)


def _parity_permutation(H, W):
    Ho, Wo = H // 2, W // 2
    order = []
    for ey in range(2):
        for ex in range(2):
            a = np.arange(Ho)[:, None]
            b = np.arange(Wo)[None, :]
            order.append(((2 * a + ey) * W + (2 * b + ex)).reshape(-1))
    order = np.concatenate(order)
    perm = np.zeros((H * W, H * W), np.float32)
    perm[np.arange(H * W), order] = 1.0
    return perm


def _group_indicators(C, G):
    cpg = C // G
    ind = (np.arange(C)[:, None] // cpg == np.arange(G)[None, :]).astype(np.float32)
    return ind, np.ascontiguousarray(ind.T)


def simple_block_forward(x_nchw, timestep, p):
    B, Cin, H, W = x_nchw.shape
    C = p["conv1_w"].shape[-1]
    Ho, Wo = H // 2, W // 2
    Tdim = p["mlp_w"].shape[0]
    bf16 = jnp.bfloat16

    xcol = _build_conv1_im2col(x_nchw).astype(bf16)               # (B, H*W, 9*Cin)
    t3 = timestep.astype(jnp.float32).reshape(B, 1, Tdim)

    w1 = p["conv1_w"].reshape(9 * Cin, C).astype(bf16)
    mlpw = p["mlp_w"].astype(bf16)
    w2 = p["conv2_w"].astype(bf16)
    wt = p["tr_w"].astype(bf16)
    perm = jnp.asarray(_parity_permutation(H, W), bf16)
    ind_np, indt_np = _group_indicators(C, NUM_GROUPS)
    ind, indt = jnp.asarray(ind_np), jnp.asarray(indt_np)
    vecs = jnp.stack([p["conv1_b"], p["gn1_g"], p["gn1_b"], p["mlp_b"],
                      p["conv2_b"], p["gn2_g"], p["gn2_b"], p["tr_b"]],
                     axis=0).astype(jnp.float32)                  # (8, C)

    out = pl.pallas_call(
        fused_simple_block_kernel,
        out_shape=jax.ShapeDtypeStruct((B, Ho * Wo, C), jnp.float32),
        grid=(B,),
        in_specs=[
            pl.BlockSpec((1, H * W, 9 * Cin), lambda b: (b, 0, 0)),   # xcol
            pl.BlockSpec((1, 1, Tdim), lambda b: (b, 0, 0)),          # t
            pl.BlockSpec((9 * Cin, C), lambda b: (0, 0)),             # w1
            pl.BlockSpec((Tdim, C), lambda b: (0, 0)),                # mlp_w
            pl.BlockSpec((9, C, C), lambda b: (0, 0, 0)),             # w2
            pl.BlockSpec((H * W, H * W), lambda b: (0, 0)),           # perm
            pl.BlockSpec((16, C, C), lambda b: (0, 0, 0)),            # wt
            pl.BlockSpec((8, C), lambda b: (0, 0)),                   # biases / gn affine
            pl.BlockSpec((C, NUM_GROUPS), lambda b: (0, 0)),          # ind
            pl.BlockSpec((NUM_GROUPS, C), lambda b: (0, 0)),          # ind^T
        ],
        out_specs=pl.BlockSpec((1, Ho * Wo, C), lambda b: (b, 0, 0)),
        scratch_shapes=[
            pltpu.VMEM((H + 2, W + 2 * PADL, C), bf16),
            pltpu.VMEM((2, 2, Ho + 1, Wo + 2 * PADL, C), bf16),
        ],
        compiler_params=pltpu.CompilerParams(
            dimension_semantics=("parallel",)),
    )(xcol, t3, w1, mlpw, w2, perm, wt, vecs, ind, indt)

    return jnp.transpose(out.reshape(B, Ho, Wo, C), (0, 3, 1, 2))   # -> NCHW


def init_params(key, in_ch, out_ch, t_dim):
    # Deterministic synthetic init; shapes mirror the PyTorch module (up=False).
    # conv weights are stored as (kh*kw, Cin, Cout)  == torch (Cout, Cin, kh, kw) transposed;
    # linear weight as (in, out) == torch (out, in) transposed.
    ks = jax.random.split(key, 8)
    return {
        "mlp_w": jax.random.normal(ks[0], (t_dim, out_ch), jnp.float32) * 0.1,
        "mlp_b": jax.random.normal(ks[1], (out_ch,), jnp.float32) * 0.1,
        "conv1_w": jax.random.normal(ks[2], (9, in_ch, out_ch), jnp.float32) * 0.1,
        "conv1_b": jax.random.normal(ks[3], (out_ch,), jnp.float32) * 0.1,
        "conv2_w": jax.random.normal(ks[4], (9, out_ch, out_ch), jnp.float32) * 0.1,
        "conv2_b": jax.random.normal(ks[5], (out_ch,), jnp.float32) * 0.1,
        "tr_w": jax.random.normal(ks[6], (16, out_ch, out_ch), jnp.float32) * 0.1,
        "tr_b": jax.random.normal(ks[7], (out_ch,), jnp.float32) * 0.1,
        "gn1_g": jnp.ones((out_ch,), jnp.float32),
        "gn1_b": jnp.zeros((out_ch,), jnp.float32),
        "gn2_g": jnp.ones((out_ch,), jnp.float32),
        "gn2_b": jnp.zeros((out_ch,), jnp.float32),
    }


if __name__ == "__main__":
    B, Cin, Cout, H, W, Tdim = 2, 8, 16, 16, 16, 32
    key = jax.random.PRNGKey(0)
    kx_, kt_, kp_ = jax.random.split(key, 3)
    x = jax.random.normal(kx_, (B, Cin, H, W), jnp.float32)   # NCHW like torch
    t = jax.random.normal(kt_, (B, Tdim), jnp.float32)
    params = init_params(kp_, Cin, Cout, Tdim)

    out = jax.jit(simple_block_forward)(x, t, params)
    out = jax.block_until_ready(out)
    assert out.shape == (B, Cout, H // 2, W // 2), out.shape
    print("KERNEL_OK")
</pallas_src>

<mosaic_0001>
module attributes {stable_mosaic.version = 11 : i64} {
  func.func @fused_simple_block_kernel(%arg0: i32, %arg1: memref<1x256x72xbf16, #tpu.memory_space<vmem>>, %arg2: memref<1x1x32xf32, #tpu.memory_space<vmem>>, %arg3: memref<72x16xbf16, #tpu.memory_space<vmem>>, %arg4: memref<32x16xbf16, #tpu.memory_space<vmem>>, %arg5: memref<9x16x16xbf16, #tpu.memory_space<vmem>>, %arg6: memref<256x256xbf16, #tpu.memory_space<vmem>>, %arg7: memref<16x16x16xbf16, #tpu.memory_space<vmem>>, %arg8: memref<8x16xf32, #tpu.memory_space<vmem>>, %arg9: memref<16x8xf32, #tpu.memory_space<vmem>>, %arg10: memref<8x16xf32, #tpu.memory_space<vmem>>, %arg11: memref<1x64x16xf32, #tpu.memory_space<vmem>>, %arg12: memref<18x32x16xbf16, #tpu.memory_space<vmem>>, %arg13: memref<2x2x9x24x16xbf16, #tpu.memory_space<vmem>>) attributes {dimension_semantics = [#tpu.dimension_semantics<parallel>], iteration_bounds = array<i64: 2>, scalar_prefetch = 0 : i64, scratch_operands = 2 : i64, tpu.core_type = #tpu.core_type<tc>, window_params = [{transform_indices = @transform_0, window_bounds = array<i64: 1, 256, 72>}, {transform_indices = @transform_1, window_bounds = array<i64: 1, 1, 32>}, {pipeline_mode = #tpu.pipeline_mode<synchronous>, transform_indices = @transform_2, window_bounds = array<i64: 72, 16>}, {pipeline_mode = #tpu.pipeline_mode<synchronous>, transform_indices = @transform_3, window_bounds = array<i64: 32, 16>}, {pipeline_mode = #tpu.pipeline_mode<synchronous>, transform_indices = @transform_4, window_bounds = array<i64: 9, 16, 16>}, {pipeline_mode = #tpu.pipeline_mode<synchronous>, transform_indices = @transform_5, window_bounds = array<i64: 256, 256>}, {pipeline_mode = #tpu.pipeline_mode<synchronous>, transform_indices = @transform_6, window_bounds = array<i64: 16, 16, 16>}, {pipeline_mode = #tpu.pipeline_mode<synchronous>, transform_indices = @transform_7, window_bounds = array<i64: 8, 16>}, {pipeline_mode = #tpu.pipeline_mode<synchronous>, transform_indices = @transform_8, window_bounds = array<i64: 16, 8>}, {pipeline_mode = #tpu.pipeline_mode<synchronous>, transform_indices = @transform_9, window_bounds = array<i64: 8, 16>}, {transform_indices = @transform_10, window_bounds = array<i64: 1, 64, 16>}]} {
    %c0 = arith.constant 0 : index
    %c0_0 = arith.constant 0 : index
    %0 = vector.load %arg8[%c0, %c0_0] : memref<8x16xf32, #tpu.memory_space<vmem>>, vector<1x16xf32>
    %c1 = arith.constant 1 : index
    %c0_1 = arith.constant 0 : index
    %1 = vector.load %arg8[%c1, %c0_1] : memref<8x16xf32, #tpu.memory_space<vmem>>, vector<1x16xf32>
    %c2 = arith.constant 2 : index
    %c0_2 = arith.constant 0 : index
    %2 = vector.load %arg8[%c2, %c0_2] : memref<8x16xf32, #tpu.memory_space<vmem>>, vector<1x16xf32>
    %c3 = arith.constant 3 : index
    %c0_3 = arith.constant 0 : index
    %3 = vector.load %arg8[%c3, %c0_3] : memref<8x16xf32, #tpu.memory_space<vmem>>, vector<1x16xf32>
    %c4 = arith.constant 4 : index
    %c0_4 = arith.constant 0 : index
    %4 = vector.load %arg8[%c4, %c0_4] : memref<8x16xf32, #tpu.memory_space<vmem>>, vector<1x16xf32>
    %c5 = arith.constant 5 : index
    %c0_5 = arith.constant 0 : index
    %5 = vector.load %arg8[%c5, %c0_5] : memref<8x16xf32, #tpu.memory_space<vmem>>, vector<1x16xf32>
    %c6 = arith.constant 6 : index
    %c0_6 = arith.constant 0 : index
    %6 = vector.load %arg8[%c6, %c0_6] : memref<8x16xf32, #tpu.memory_space<vmem>>, vector<1x16xf32>
    %c7 = arith.constant 7 : index
    %c0_7 = arith.constant 0 : index
    %7 = vector.load %arg8[%c7, %c0_7] : memref<8x16xf32, #tpu.memory_space<vmem>>, vector<1x16xf32>
    %c0_8 = arith.constant 0 : index
    %c0_9 = arith.constant 0 : index
    %c0_10 = arith.constant 0 : index
    %8 = vector.load %arg2[%c0_8, %c0_9, %c0_10] : memref<1x1x32xf32, #tpu.memory_space<vmem>>, vector<1x1x32xf32>
    %9 = vector.shape_cast %8 : vector<1x1x32xf32> to vector<1x32xf32>
    %10 = arith.truncf %9 : vector<1x32xf32> to vector<1x32xbf16>
    %c0_11 = arith.constant 0 : index
    %c0_12 = arith.constant 0 : index
    %11 = vector.load %arg4[%c0_11, %c0_12] : memref<32x16xbf16, #tpu.memory_space<vmem>>, vector<32x16xbf16>
    %cst = arith.constant dense<0.000000e+00> : vector<1x16xf32>
    %12 = tpu.matmul %10, %11, %cst {dimension_numbers = #tpu.dot_dimension_numbers<[1], [0], [0], [1], [0, 0, 1, 1], [], []>} : vector<1x32xbf16>, vector<32x16xbf16>, vector<1x16xf32> -> vector<1x16xf32>
    %13 = arith.addf %12, %3 : vector<1x16xf32>
    %14 = arith.negf %13 : vector<1x16xf32>
    %15 = math.exp %14 : vector<1x16xf32>
    %cst_13 = arith.constant 1.000000e+00 : f32
    %16 = vector.broadcast %cst_13 : f32 to vector<1x16xf32>
    %17 = arith.addf %16, %15 : vector<1x16xf32>
    %18 = arith.divf %16, %17 : vector<1x16xf32>
    %19 = arith.mulf %13, %18 : vector<1x16xf32>
    %c0_14 = arith.constant 0 : index
    %c0_15 = arith.constant 0 : index
    %c0_16 = arith.constant 0 : index
    %20 = vector.load %arg1[%c0_14, %c0_15, %c0_16] : memref<1x256x72xbf16, #tpu.memory_space<vmem>>, vector<1x256x72xbf16>
    %21 = vector.shape_cast %20 : vector<1x256x72xbf16> to vector<256x72xbf16>
    %c0_17 = arith.constant 0 : index
    %c0_18 = arith.constant 0 : index
    %22 = vector.load %arg3[%c0_17, %c0_18] : memref<72x16xbf16, #tpu.memory_space<vmem>>, vector<72x16xbf16>
    %cst_19 = arith.constant dense<0.000000e+00> : vector<256x16xf32>
    %23 = tpu.matmul %21, %22, %cst_19 {dimension_numbers = #tpu.dot_dimension_numbers<[1], [0], [0], [1], [0, 0, 1, 1], [], []>} : vector<256x72xbf16>, vector<72x16xbf16>, vector<256x16xf32> -> vector<256x16xf32>
    %24 = vector.broadcast %0 : vector<1x16xf32> to vector<256x16xf32>
    %25 = arith.addf %23, %24 : vector<256x16xf32>
    %26 = arith.negf %25 : vector<256x16xf32>
    %27 = math.exp %26 : vector<256x16xf32>
    %cst_20 = arith.constant 1.000000e+00 : f32
    %28 = vector.broadcast %cst_20 : f32 to vector<256x16xf32>
    %29 = arith.addf %28, %27 : vector<256x16xf32>
    %30 = arith.divf %28, %29 : vector<256x16xf32>
    %31 = arith.mulf %25, %30 : vector<256x16xf32>
    %cst_21 = arith.constant dense<0.000000e+00> : vector<16xf32>
    %32 = vector.multi_reduction <add>, %31, %cst_21 [0] : vector<256x16xf32> to vector<16xf32>
    %33 = vector.shape_cast %32 : vector<16xf32> to vector<1x16xf32>
    %34 = arith.mulf %31, %31 : vector<256x16xf32>
    %cst_22 = arith.constant dense<0.000000e+00> : vector<16xf32>
    %35 = vector.multi_reduction <add>, %34, %cst_22 [0] : vector<256x16xf32> to vector<16xf32>
    %36 = vector.shape_cast %35 : vector<16xf32> to vector<1x16xf32>
    %c0_23 = arith.constant 0 : index
    %c0_24 = arith.constant 0 : index
    %37 = vector.load %arg9[%c0_23, %c0_24] : memref<16x8xf32, #tpu.memory_space<vmem>>, vector<16x8xf32>
    %cst_25 = arith.constant dense<0.000000e+00> : vector<1x8xf32>
    %38 = tpu.matmul %33, %37, %cst_25 {dimension_numbers = #tpu.dot_dimension_numbers<[1], [0], [0], [1], [0, 0, 1, 1], [], []>} : vector<1x16xf32>, vector<16x8xf32>, vector<1x8xf32> -> vector<1x8xf32>
    %c0_26 = arith.constant 0 : index
    %c0_27 = arith.constant 0 : index
    %39 = vector.load %arg9[%c0_26, %c0_27] : memref<16x8xf32, #tpu.memory_space<vmem>>, vector<16x8xf32>
    %cst_28 = arith.constant dense<0.000000e+00> : vector<1x8xf32>
    %40 = tpu.matmul %36, %39, %cst_28 {dimension_numbers = #tpu.dot_dimension_numbers<[1], [0], [0], [1], [0, 0, 1, 1], [], []>} : vector<1x16xf32>, vector<16x8xf32>, vector<1x8xf32> -> vector<1x8xf32>
    %cst_29 = arith.constant 5.120000e+02 : f32
    %41 = vector.broadcast %cst_29 : f32 to vector<1x8xf32>
    %42 = arith.divf %38, %41 : vector<1x8xf32>
    %cst_30 = arith.constant 5.120000e+02 : f32
    %43 = vector.broadcast %cst_30 : f32 to vector<1x8xf32>
    %44 = arith.divf %40, %43 : vector<1x8xf32>
    %45 = arith.mulf %42, %42 : vector<1x8xf32>
    %46 = arith.subf %44, %45 : vector<1x8xf32>
    %cst_31 = arith.constant 0.000000e+00 : f32
    %47 = vector.broadcast %cst_31 : f32 to vector<1x8xf32>
    %48 = arith.maximumf %46, %47 : vector<1x8xf32>
    %cst_32 = arith.constant 9.99999974E-6 : f32
    %49 = vector.broadcast %cst_32 : f32 to vector<1x8xf32>
    %50 = arith.addf %48, %49 : vector<1x8xf32>
    %51 = math.rsqrt %50 : vector<1x8xf32>
    %c0_33 = arith.constant 0 : index
    %c0_34 = arith.constant 0 : index
    %52 = vector.load %arg10[%c0_33, %c0_34] : memref<8x16xf32, #tpu.memory_space<vmem>>, vector<8x16xf32>
    %cst_35 = arith.constant dense<0.000000e+00> : vector<1x16xf32>
    %53 = tpu.matmul %42, %52, %cst_35 {dimension_numbers = #tpu.dot_dimension_numbers<[1], [0], [0], [1], [0, 0, 1, 1], [], []>} : vector<1x8xf32>, vector<8x16xf32>, vector<1x16xf32> -> vector<1x16xf32>
    %c0_36 = arith.constant 0 : index
    %c0_37 = arith.constant 0 : index
    %54 = vector.load %arg10[%c0_36, %c0_37] : memref<8x16xf32, #tpu.memory_space<vmem>>, vector<8x16xf32>
    %cst_38 = arith.constant dense<0.000000e+00> : vector<1x16xf32>
    %55 = tpu.matmul %51, %54, %cst_38 {dimension_numbers = #tpu.dot_dimension_numbers<[1], [0], [0], [1], [0, 0, 1, 1], [], []>} : vector<1x8xf32>, vector<8x16xf32>, vector<1x16xf32> -> vector<1x16xf32>
    %56 = vector.broadcast %53 : vector<1x16xf32> to vector<256x16xf32>
    %57 = arith.subf %31, %56 : vector<256x16xf32>
    %58 = vector.broadcast %55 : vector<1x16xf32> to vector<256x16xf32>
    %59 = arith.mulf %57, %58 : vector<256x16xf32>
    %60 = vector.broadcast %1 : vector<1x16xf32> to vector<256x16xf32>
    %61 = arith.mulf %59, %60 : vector<256x16xf32>
    %62 = vector.broadcast %2 : vector<1x16xf32> to vector<256x16xf32>
    %63 = arith.addf %61, %62 : vector<256x16xf32>
    %64 = vector.broadcast %19 : vector<1x16xf32> to vector<256x16xf32>
    %65 = arith.addf %63, %64 : vector<256x16xf32>
    %cst_39 = arith.constant 0.000000e+00 : bf16
    %66 = vector.broadcast %cst_39 : bf16 to vector<18x32x16xbf16>
    %c0_40 = arith.constant 0 : index
    %c0_41 = arith.constant 0 : index
    %c0_42 = arith.constant 0 : index
    %67 = vector.load %arg12[%c0_40, %c0_41, %c0_42] : memref<18x32x16xbf16, #tpu.memory_space<vmem>>, vector<18x32x16xbf16>
    tpu.vector_store %arg12[%c0_40, %c0_41, %c0_42], %66 {strides = array<i32>} : memref<18x32x16xbf16, #tpu.memory_space<vmem>>, vector<18x32x16xbf16>,
    %68 = vector.shape_cast %65 : vector<256x16xf32> to vector<16x16x16xf32>
    %69 = arith.truncf %68 : vector<16x16x16xf32> to vector<16x16x16xbf16>
    %c1_43 = arith.constant 1 : index
    %c8 = arith.constant 8 : index
    %c0_44 = arith.constant 0 : index
    %70 = vector.load %arg12[%c1_43, %c8, %c0_44] : memref<18x32x16xbf16, #tpu.memory_space<vmem>>, vector<16x16x16xbf16>
    tpu.vector_store %arg12[%c1_43, %c8, %c0_44], %69 {strides = array<i32>} : memref<18x32x16xbf16, #tpu.memory_space<vmem>>, vector<16x16x16xbf16>,
    %cst_45 = arith.constant 0.000000e+00 : f32
    %71 = vector.broadcast %cst_45 : f32 to vector<256x16xf32>
    %c0_46 = arith.constant 0 : index
    %c7_47 = arith.constant 7 : index
    %c0_48 = arith.constant 0 : index
    %72 = vector.load %arg12[%c0_46, %c7_47, %c0_48] : memref<18x32x16xbf16, #tpu.memory_space<vmem>>, vector<16x16x16xbf16>
    %73 = vector.shape_cast %72 : vector<16x16x16xbf16> to vector<256x16xbf16>
    %c0_49 = arith.constant 0 : index
    %c0_50 = arith.constant 0 : index
    %c0_51 = arith.constant 0 : index
    %74 = vector.load %arg5[%c0_49, %c0_50, %c0_51] : memref<9x16x16xbf16, #tpu.memory_space<vmem>>, vector<1x16x16xbf16>
    %75 = vector.shape_cast %74 : vector<1x16x16xbf16> to vector<16x16xbf16>
    %cst_52 = arith.constant dense<0.000000e+00> : vector<256x16xf32>
    %76 = tpu.matmul %73, %75, %cst_52 {dimension_numbers = #tpu.dot_dimension_numbers<[1], [0], [0], [1], [0, 0, 1, 1], [], []>} : vector<256x16xbf16>, vector<16x16xbf16>, vector<256x16xf32> -> vector<256x16xf32>
    %77 = arith.addf %71, %76 : vector<256x16xf32>
    %c0_53 = arith.constant 0 : index
    %c8_54 = arith.constant 8 : index
    %c0_55 = arith.constant 0 : index
    %78 = vector.load %arg12[%c0_53, %c8_54, %c0_55] : memref<18x32x16xbf16, #tpu.memory_space<vmem>>, vector<16x16x16xbf16>
    %79 = vector.shape_cast %78 : vector<16x16x16xbf16> to vector<256x16xbf16>
    %c1_56 = arith.constant 1 : index
    %c0_57 = arith.constant 0 : index
    %c0_58 = arith.constant 0 : index
    %80 = vector.load %arg5[%c1_56, %c0_57, %c0_58] : memref<9x16x16xbf16, #tpu.memory_space<vmem>>, vector<1x16x16xbf16>
    %81 = vector.shape_cast %80 : vector<1x16x16xbf16> to vector<16x16xbf16>
    %cst_59 = arith.constant dense<0.000000e+00> : vector<256x16xf32>
    %82 = tpu.matmul %79, %81, %cst_59 {dimension_numbers = #tpu.dot_dimension_numbers<[1], [0], [0], [1], [0, 0, 1, 1], [], []>} : vector<256x16xbf16>, vector<16x16xbf16>, vector<256x16xf32> -> vector<256x16xf32>
    %83 = arith.addf %77, %82 : vector<256x16xf32>
    %c0_60 = arith.constant 0 : index
    %c9 = arith.constant 9 : index
    %c0_61 = arith.constant 0 : index
    %84 = vector.load %arg12[%c0_60, %c9, %c0_61] : memref<18x32x16xbf16, #tpu.memory_space<vmem>>, vector<16x16x16xbf16>
    %85 = vector.shape_cast %84 : vector<16x16x16xbf16> to vector<256x16xbf16>
    %c2_62 = arith.constant 2 : index
    %c0_63 = arith.constant 0 : index
    %c0_64 = arith.constant 0 : index
    %86 = vector.load %arg5[%c2_62, %c0_63, %c0_64] : memref<9x16x16xbf16, #tpu.memory_space<vmem>>, vector<1x16x16xbf16>
    %87 = vector.shape_cast %86 : vector<1x16x16xbf16> to vector<16x16xbf16>
    %cst_65 = arith.constant dense<0.000000e+00> : vector<256x16xf32>
    %88 = tpu.matmul %85, %87, %cst_65 {dimension_numbers = #tpu.dot_dimension_numbers<[1], [0], [0], [1], [0, 0, 1, 1], [], []>} : vector<256x16xbf16>, vector<16x16xbf16>, vector<256x16xf32> -> vector<256x16xf32>
    %89 = arith.addf %83, %88 : vector<256x16xf32>
    %c1_66 = arith.constant 1 : index
    %c7_67 = arith.constant 7 : index
    %c0_68 = arith.constant 0 : index
    %90 = vector.load %arg12[%c1_66, %c7_67, %c0_68] : memref<18x32x16xbf16, #tpu.memory_space<vmem>>, vector<16x16x16xbf16>
    %91 = vector.shape_cast %90 : vector<16x16x16xbf16> to vector<256x16xbf16>
    %c3_69 = arith.constant 3 : index
    %c0_70 = arith.constant 0 : index
    %c0_71 = arith.constant 0 : index
    %92 = vector.load %arg5[%c3_69, %c0_70, %c0_71] : memref<9x16x16xbf16, #tpu.memory_space<vmem>>, vector<1x16x16xbf16>
    %93 = vector.shape_cast %92 : vector<1x16x16xbf16> to vector<16x16xbf16>
    %cst_72 = arith.constant dense<0.000000e+00> : vector<256x16xf32>
    %94 = tpu.matmul %91, %93, %cst_72 {dimension_numbers = #tpu.dot_dimension_numbers<[1], [0], [0], [1], [0, 0, 1, 1], [], []>} : vector<256x16xbf16>, vector<16x16xbf16>, vector<256x16xf32> -> vector<256x16xf32>
    %95 = arith.addf %89, %94 : vector<256x16xf32>
    %c1_73 = arith.constant 1 : index
    %c8_74 = arith.constant 8 : index
    %c0_75 = arith.constant 0 : index
    %96 = vector.load %arg12[%c1_73, %c8_74, %c0_75] : memref<18x32x16xbf16, #tpu.memory_space<vmem>>, vector<16x16x16xbf16>
    %97 = vector.shape_cast %96 : vector<16x16x16xbf16> to vector<256x16xbf16>
    %c4_76 = arith.constant 4 : index
    %c0_77 = arith.constant 0 : index
    %c0_78 = arith.constant 0 : index
    %98 = vector.load %arg5[%c4_76, %c0_77, %c0_78] : memref<9x16x16xbf16, #tpu.memory_space<vmem>>, vector<1x16x16xbf16>
    %99 = vector.shape_cast %98 : vector<1x16x16xbf16> to vector<16x16xbf16>
    %cst_79 = arith.constant dense<0.000000e+00> : vector<256x16xf32>
    %100 = tpu.matmul %97, %99, %cst_79 {dimension_numbers = #tpu.dot_dimension_numbers<[1], [0], [0], [1], [0, 0, 1, 1], [], []>} : vector<256x16xbf16>, vector<16x16xbf16>, vector<256x16xf32> -> vector<256x16xf32>
    %101 = arith.addf %95, %100 : vector<256x16xf32>
    %c1_80 = arith.constant 1 : index
    %c9_81 = arith.constant 9 : index
    %c0_82 = arith.constant 0 : index
    %102 = vector.load %arg12[%c1_80, %c9_81, %c0_82] : memref<18x32x16xbf16, #tpu.memory_space<vmem>>, vector<16x16x16xbf16>
    %103 = vector.shape_cast %102 : vector<16x16x16xbf16> to vector<256x16xbf16>
    %c5_83 = arith.constant 5 : index
    %c0_84 = arith.constant 0 : index
    %c0_85 = arith.constant 0 : index
    %104 = vector.load %arg5[%c5_83, %c0_84, %c0_85] : memref<9x16x16xbf16, #tpu.memory_space<vmem>>, vector<1x16x16xbf16>
    %105 = vector.shape_cast %104 : vector<1x16x16xbf16> to vector<16x16xbf16>
    %cst_86 = arith.constant dense<0.000000e+00> : vector<256x16xf32>
    %106 = tpu.matmul %103, %105, %cst_86 {dimension_numbers = #tpu.dot_dimension_numbers<[1], [0], [0], [1], [0, 0, 1, 1], [], []>} : vector<256x16xbf16>, vector<16x16xbf16>, vector<256x16xf32> -> vector<256x16xf32>
    %107 = arith.addf %101, %106 : vector<256x16xf32>
    %c2_87 = arith.constant 2 : index
    %c7_88 = arith.constant 7 : index
    %c0_89 = arith.constant 0 : index
    %108 = vector.load %arg12[%c2_87, %c7_88, %c0_89] : memref<18x32x16xbf16, #tpu.memory_space<vmem>>, vector<16x16x16xbf16>
    %109 = vector.shape_cast %108 : vector<16x16x16xbf16> to vector<256x16xbf16>
    %c6_90 = arith.constant 6 : index
    %c0_91 = arith.constant 0 : index
    %c0_92 = arith.constant 0 : index
    %110 = vector.load %arg5[%c6_90, %c0_91, %c0_92] : memref<9x16x16xbf16, #tpu.memory_space<vmem>>, vector<1x16x16xbf16>
    %111 = vector.shape_cast %110 : vector<1x16x16xbf16> to vector<16x16xbf16>
    %cst_93 = arith.constant dense<0.000000e+00> : vector<256x16xf32>
    %112 = tpu.matmul %109, %111, %cst_93 {dimension_numbers = #tpu.dot_dimension_numbers<[1], [0], [0], [1], [0, 0, 1, 1], [], []>} : vector<256x16xbf16>, vector<16x16xbf16>, vector<256x16xf32> -> vector<256x16xf32>
    %113 = arith.addf %107, %112 : vector<256x16xf32>
    %c2_94 = arith.constant 2 : index
    %c8_95 = arith.constant 8 : index
    %c0_96 = arith.constant 0 : index
    %114 = vector.load %arg12[%c2_94, %c8_95, %c0_96] : memref<18x32x16xbf16, #tpu.memory_space<vmem>>, vector<16x16x16xbf16>
    %115 = vector.shape_cast %114 : vector<16x16x16xbf16> to vector<256x16xbf16>
    %c7_97 = arith.constant 7 : index
    %c0_98 = arith.constant 0 : index
    %c0_99 = arith.constant 0 : index
    %116 = vector.load %arg5[%c7_97, %c0_98, %c0_99] : memref<9x16x16xbf16, #tpu.memory_space<vmem>>, vector<1x16x16xbf16>
    %117 = vector.shape_cast %116 : vector<1x16x16xbf16> to vector<16x16xbf16>
    %cst_100 = arith.constant dense<0.000000e+00> : vector<256x16xf32>
    %118 = tpu.matmul %115, %117, %cst_100 {dimension_numbers = #tpu.dot_dimension_numbers<[1], [0], [0], [1], [0, 0, 1, 1], [], []>} : vector<256x16xbf16>, vector<16x16xbf16>, vector<256x16xf32> -> vector<256x16xf32>
    %119 = arith.addf %113, %118 : vector<256x16xf32>
    %c2_101 = arith.constant 2 : index
    %c9_102 = arith.constant 9 : index
    %c0_103 = arith.constant 0 : index
    %120 = vector.load %arg12[%c2_101, %c9_102, %c0_103] : memref<18x32x16xbf16, #tpu.memory_space<vmem>>, vector<16x16x16xbf16>
    %121 = vector.shape_cast %120 : vector<16x16x16xbf16> to vector<256x16xbf16>
    %c8_104 = arith.constant 8 : index
    %c0_105 = arith.constant 0 : index
    %c0_106 = arith.constant 0 : index
    %122 = vector.load %arg5[%c8_104, %c0_105, %c0_106] : memref<9x16x16xbf16, #tpu.memory_space<vmem>>, vector<1x16x16xbf16>
    %123 = vector.shape_cast %122 : vector<1x16x16xbf16> to vector<16x16xbf16>
    %cst_107 = arith.constant dense<0.000000e+00> : vector<256x16xf32>
    %124 = tpu.matmul %121, %123, %cst_107 {dimension_numbers = #tpu.dot_dimension_numbers<[1], [0], [0], [1], [0, 0, 1, 1], [], []>} : vector<256x16xbf16>, vector<16x16xbf16>, vector<256x16xf32> -> vector<256x16xf32>
    %125 = arith.addf %119, %124 : vector<256x16xf32>
    %126 = vector.broadcast %4 : vector<1x16xf32> to vector<256x16xf32>
    %127 = arith.addf %125, %126 : vector<256x16xf32>
    %128 = arith.negf %127 : vector<256x16xf32>
    %129 = math.exp %128 : vector<256x16xf32>
    %cst_108 = arith.constant 1.000000e+00 : f32
    %130 = vector.broadcast %cst_108 : f32 to vector<256x16xf32>
    %131 = arith.addf %130, %129 : vector<256x16xf32>
    %132 = arith.divf %130, %131 : vector<256x16xf32>
    %133 = arith.mulf %127, %132 : vector<256x16xf32>
    %cst_109 = arith.constant dense<0.000000e+00> : vector<16xf32>
    %134 = vector.multi_reduction <add>, %133, %cst_109 [0] : vector<256x16xf32> to vector<16xf32>
    %135 = vector.shape_cast %134 : vector<16xf32> to vector<1x16xf32>
    %136 = arith.mulf %133, %133 : vector<256x16xf32>
    %cst_110 = arith.constant dense<0.000000e+00> : vector<16xf32>
    %137 = vector.multi_reduction <add>, %136, %cst_110 [0] : vector<256x16xf32> to vector<16xf32>
    %138 = vector.shape_cast %137 : vector<16xf32> to vector<1x16xf32>
    %c0_111 = arith.constant 0 : index
    %c0_112 = arith.constant 0 : index
    %139 = vector.load %arg9[%c0_111, %c0_112] : memref<16x8xf32, #tpu.memory_space<vmem>>, vector<16x8xf32>
    %cst_113 = arith.constant dense<0.000000e+00> : vector<1x8xf32>
    %140 = tpu.matmul %135, %139, %cst_113 {dimension_numbers = #tpu.dot_dimension_numbers<[1], [0], [0], [1], [0, 0, 1, 1], [], []>} : vector<1x16xf32>, vector<16x8xf32>, vector<1x8xf32> -> vector<1x8xf32>
    %c0_114 = arith.constant 0 : index
    %c0_115 = arith.constant 0 : index
    %141 = vector.load %arg9[%c0_114, %c0_115] : memref<16x8xf32, #tpu.memory_space<vmem>>, vector<16x8xf32>
    %cst_116 = arith.constant dense<0.000000e+00> : vector<1x8xf32>
    %142 = tpu.matmul %138, %141, %cst_116 {dimension_numbers = #tpu.dot_dimension_numbers<[1], [0], [0], [1], [0, 0, 1, 1], [], []>} : vector<1x16xf32>, vector<16x8xf32>, vector<1x8xf32> -> vector<1x8xf32>
    %cst_117 = arith.constant 5.120000e+02 : f32
    %143 = vector.broadcast %cst_117 : f32 to vector<1x8xf32>
    %144 = arith.divf %140, %143 : vector<1x8xf32>
    %cst_118 = arith.constant 5.120000e+02 : f32
    %145 = vector.broadcast %cst_118 : f32 to vector<1x8xf32>
    %146 = arith.divf %142, %145 : vector<1x8xf32>
    %147 = arith.mulf %144, %144 : vector<1x8xf32>
    %148 = arith.subf %146, %147 : vector<1x8xf32>
    %cst_119 = arith.constant 0.000000e+00 : f32
    %149 = vector.broadcast %cst_119 : f32 to vector<1x8xf32>
    %150 = arith.maximumf %148, %149 : vector<1x8xf32>
    %cst_120 = arith.constant 9.99999974E-6 : f32
    %151 = vector.broadcast %cst_120 : f32 to vector<1x8xf32>
    %152 = arith.addf %150, %151 : vector<1x8xf32>
    %153 = math.rsqrt %152 : vector<1x8xf32>
    %c0_121 = arith.constant 0 : index
    %c0_122 = arith.constant 0 : index
    %154 = vector.load %arg10[%c0_121, %c0_122] : memref<8x16xf32, #tpu.memory_space<vmem>>, vector<8x16xf32>
    %cst_123 = arith.constant dense<0.000000e+00> : vector<1x16xf32>
    %155 = tpu.matmul %144, %154, %cst_123 {dimension_numbers = #tpu.dot_dimension_numbers<[1], [0], [0], [1], [0, 0, 1, 1], [], []>} : vector<1x8xf32>, vector<8x16xf32>, vector<1x16xf32> -> vector<1x16xf32>
    %c0_124 = arith.constant 0 : index
    %c0_125 = arith.constant 0 : index
    %156 = vector.load %arg10[%c0_124, %c0_125] : memref<8x16xf32, #tpu.memory_space<vmem>>, vector<8x16xf32>
    %cst_126 = arith.constant dense<0.000000e+00> : vector<1x16xf32>
    %157 = tpu.matmul %153, %156, %cst_126 {dimension_numbers = #tpu.dot_dimension_numbers<[1], [0], [0], [1], [0, 0, 1, 1], [], []>} : vector<1x8xf32>, vector<8x16xf32>, vector<1x16xf32> -> vector<1x16xf32>
    %158 = vector.broadcast %155 : vector<1x16xf32> to vector<256x16xf32>
    %159 = arith.subf %133, %158 : vector<256x16xf32>
    %160 = vector.broadcast %157 : vector<1x16xf32> to vector<256x16xf32>
    %161 = arith.mulf %159, %160 : vector<256x16xf32>
    %162 = vector.broadcast %5 : vector<1x16xf32> to vector<256x16xf32>
    %163 = arith.mulf %161, %162 : vector<256x16xf32>
    %164 = vector.broadcast %6 : vector<1x16xf32> to vector<256x16xf32>
    %165 = arith.addf %163, %164 : vector<256x16xf32>
    %c0_127 = arith.constant 0 : index
    %c0_128 = arith.constant 0 : index
    %166 = vector.load %arg6[%c0_127, %c0_128] : memref<256x256xbf16, #tpu.memory_space<vmem>>, vector<256x256xbf16>
    %167 = arith.truncf %165 : vector<256x16xf32> to vector<256x16xbf16>
    %cst_129 = arith.constant dense<0.000000e+00> : vector<256x16xf32>
    %168 = tpu.matmul %166, %167, %cst_129 {dimension_numbers = #tpu.dot_dimension_numbers<[1], [0], [0], [1], [0, 0, 1, 1], [], []>} : vector<256x256xbf16>, vector<256x16xbf16>, vector<256x16xf32> -> vector<256x16xf32>
    %169 = arith.truncf %168 : vector<256x16xf32> to vector<256x16xbf16>
    %cst_130 = arith.constant 0.000000e+00 : bf16
    %170 = vector.broadcast %cst_130 : bf16 to vector<2x2x9x24x16xbf16>
    %c0_131 = arith.constant 0 : index
    %c0_132 = arith.constant 0 : index
    %c0_133 = arith.constant 0 : index
    %c0_134 = arith.constant 0 : index
    %c0_135 = arith.constant 0 : index
    %171 = vector.load %arg13[%c0_131, %c0_132, %c0_133, %c0_134, %c0_135] : memref<2x2x9x24x16xbf16, #tpu.memory_space<vmem>>, vector<2x2x9x24x16xbf16>
    tpu.vector_store %arg13[%c0_131, %c0_132, %c0_133, %c0_134, %c0_135], %170 {strides = array<i32>} : memref<2x2x9x24x16xbf16, #tpu.memory_space<vmem>>, vector<2x2x9x24x16xbf16>,
    %172 = vector.extract_strided_slice %169 {offsets = [0, 0], sizes = [64, 16], strides = [1, 1]} : vector<256x16xbf16> to vector<64x16xbf16>
    %173 = vector.shape_cast %172 : vector<64x16xbf16> to vector<8x8x16xbf16>
    %c1_136 = arith.constant 1 : index
    %c1_137 = arith.constant 1 : index
    %c0_138 = arith.constant 0 : index
    %c8_139 = arith.constant 8 : index
    %c0_140 = arith.constant 0 : index
    %174 = vector.load %arg13[%c1_136, %c1_137, %c0_138, %c8_139, %c0_140] : memref<2x2x9x24x16xbf16, #tpu.memory_space<vmem>>, vector<1x1x8x8x16xbf16>
    %175 = vector.shape_cast %174 : vector<1x1x8x8x16xbf16> to vector<8x8x16xbf16>
    %176 = vector.shape_cast %173 : vector<8x8x16xbf16> to vector<1x1x8x8x16xbf16>
    tpu.vector_store %arg13[%c1_136, %c1_137, %c0_138, %c8_139, %c0_140], %176 {strides = array<i32>} : memref<2x2x9x24x16xbf16, #tpu.memory_space<vmem>>, vector<1x1x8x8x16xbf16>,
    %177 = vector.extract_strided_slice %169 {offsets = [64, 0], sizes = [64, 16], strides = [1, 1]} : vector<256x16xbf16> to vector<64x16xbf16>
    %178 = vector.shape_cast %177 : vector<64x16xbf16> to vector<8x8x16xbf16>
    %c1_141 = arith.constant 1 : index
    %c0_142 = arith.constant 0 : index
    %c0_143 = arith.constant 0 : index
    %c8_144 = arith.constant 8 : index
    %c0_145 = arith.constant 0 : index
    %179 = vector.load %arg13[%c1_141, %c0_142, %c0_143, %c8_144, %c0_145] : memref<2x2x9x24x16xbf16, #tpu.memory_space<vmem>>, vector<1x1x8x8x16xbf16>
    %180 = vector.shape_cast %179 : vector<1x1x8x8x16xbf16> to vector<8x8x16xbf16>
    %181 = vector.shape_cast %178 : vector<8x8x16xbf16> to vector<1x1x8x8x16xbf16>
    tpu.vector_store %arg13[%c1_141, %c0_142, %c0_143, %c8_144, %c0_145], %181 {strides = array<i32>} : memref<2x2x9x24x16xbf16, #tpu.memory_space<vmem>>, vector<1x1x8x8x16xbf16>,
    %182 = vector.extract_strided_slice %169 {offsets = [128, 0], sizes = [64, 16], strides = [1, 1]} : vector<256x16xbf16> to vector<64x16xbf16>
    %183 = vector.shape_cast %182 : vector<64x16xbf16> to vector<8x8x16xbf16>
    %c0_146 = arith.constant 0 : index
    %c1_147 = arith.constant 1 : index
    %c1_148 = arith.constant 1 : index
    %c8_149 = arith.constant 8 : index
    %c0_150 = arith.constant 0 : index
    %184 = vector.load %arg13[%c0_146, %c1_147, %c1_148, %c8_149, %c0_150] : memref<2x2x9x24x16xbf16, #tpu.memory_space<vmem>>, vector<1x1x8x8x16xbf16>
    %185 = vector.shape_cast %184 : vector<1x1x8x8x16xbf16> to vector<8x8x16xbf16>
    %186 = vector.shape_cast %183 : vector<8x8x16xbf16> to vector<1x1x8x8x16xbf16>
    tpu.vector_store %arg13[%c0_146, %c1_147, %c1_148, %c8_149, %c0_150], %186 {strides = array<i32>} : memref<2x2x9x24x16xbf16, #tpu.memory_space<vmem>>, vector<1x1x8x8x16xbf16>,
    %187 = vector.extract_strided_slice %169 {offsets = [192, 0], sizes = [64, 16], strides = [1, 1]} : vector<256x16xbf16> to vector<64x16xbf16>
    %188 = vector.shape_cast %187 : vector<64x16xbf16> to vector<8x8x16xbf16>
    %c0_151 = arith.constant 0 : index
    %c0_152 = arith.constant 0 : index
    %c1_153 = arith.constant 1 : index
    %c8_154 = arith.constant 8 : index
    %c0_155 = arith.constant 0 : index
    %189 = vector.load %arg13[%c0_151, %c0_152, %c1_153, %c8_154, %c0_155] : memref<2x2x9x24x16xbf16, #tpu.memory_space<vmem>>, vector<1x1x8x8x16xbf16>
    %190 = vector.shape_cast %189 : vector<1x1x8x8x16xbf16> to vector<8x8x16xbf16>
    %191 = vector.shape_cast %188 : vector<8x8x16xbf16> to vector<1x1x8x8x16xbf16>
    tpu.vector_store %arg13[%c0_151, %c0_152, %c1_153, %c8_154, %c0_155], %191 {strides = array<i32>} : memref<2x2x9x24x16xbf16, #tpu.memory_space<vmem>>, vector<1x1x8x8x16xbf16>,
    %cst_156 = arith.constant 0.000000e+00 : f32
    %192 = vector.broadcast %cst_156 : f32 to vector<64x16xf32>
    %c0_157 = arith.constant 0 : index
    %c0_158 = arith.constant 0 : index
    %c0_159 = arith.constant 0 : index
    %c7_160 = arith.constant 7 : index
    %c0_161 = arith.constant 0 : index
    %193 = vector.load %arg13[%c0_157, %c0_158, %c0_159, %c7_160, %c0_161] : memref<2x2x9x24x16xbf16, #tpu.memory_space<vmem>>, vector<1x1x8x8x16xbf16>
    %194 = vector.shape_cast %193 : vector<1x1x8x8x16xbf16> to vector<8x8x16xbf16>
    %195 = vector.shape_cast %194 : vector<8x8x16xbf16> to vector<64x16xbf16>
    %c0_162 = arith.constant 0 : index
    %c0_163 = arith.constant 0 : index
    %c0_164 = arith.constant 0 : index
    %196 = vector.load %arg7[%c0_162, %c0_163, %c0_164] : memref<16x16x16xbf16, #tpu.memory_space<vmem>>, vector<1x16x16xbf16>
    %197 = vector.shape_cast %196 : vector<1x16x16xbf16> to vector<16x16xbf16>
    %cst_165 = arith.constant dense<0.000000e+00> : vector<64x16xf32>
    %198 = tpu.matmul %195, %197, %cst_165 {dimension_numbers = #tpu.dot_dimension_numbers<[1], [0], [0], [1], [0, 0, 1, 1], [], []>} : vector<64x16xbf16>, vector<16x16xbf16>, vector<64x16xf32> -> vector<64x16xf32>
    %199 = arith.addf %192, %198 : vector<64x16xf32>
    %c0_166 = arith.constant 0 : index
    %c1_167 = arith.constant 1 : index
    %c0_168 = arith.constant 0 : index
    %c8_169 = arith.constant 8 : index
    %c0_170 = arith.constant 0 : index
    %200 = vector.load %arg13[%c0_166, %c1_167, %c0_168, %c8_169, %c0_170] : memref<2x2x9x24x16xbf16, #tpu.memory_space<vmem>>, vector<1x1x8x8x16xbf16>
    %201 = vector.shape_cast %200 : vector<1x1x8x8x16xbf16> to vector<8x8x16xbf16>
    %202 = vector.shape_cast %201 : vector<8x8x16xbf16> to vector<64x16xbf16>
    %c1_171 = arith.constant 1 : index
    %c0_172 = arith.constant 0 : index
    %c0_173 = arith.constant 0 : index
    %203 = vector.load %arg7[%c1_171, %c0_172, %c0_173] : memref<16x16x16xbf16, #tpu.memory_space<vmem>>, vector<1x16x16xbf16>
    %204 = vector.shape_cast %203 : vector<1x16x16xbf16> to vector<16x16xbf16>
    %cst_174 = arith.constant dense<0.000000e+00> : vector<64x16xf32>
    %205 = tpu.matmul %202, %204, %cst_174 {dimension_numbers = #tpu.dot_dimension_numbers<[1], [0], [0], [1], [0, 0, 1, 1], [], []>} : vector<64x16xbf16>, vector<16x16xbf16>, vector<64x16xf32> -> vector<64x16xf32>
    %206 = arith.addf %199, %205 : vector<64x16xf32>
    %c0_175 = arith.constant 0 : index
    %c0_176 = arith.constant 0 : index
    %c0_177 = arith.constant 0 : index
    %c8_178 = arith.constant 8 : index
    %c0_179 = arith.constant 0 : index
    %207 = vector.load %arg13[%c0_175, %c0_176, %c0_177, %c8_178, %c0_179] : memref<2x2x9x24x16xbf16, #tpu.memory_space<vmem>>, vector<1x1x8x8x16xbf16>
    %208 = vector.shape_cast %207 : vector<1x1x8x8x16xbf16> to vector<8x8x16xbf16>
    %209 = vector.shape_cast %208 : vector<8x8x16xbf16> to vector<64x16xbf16>
    %c2_180 = arith.constant 2 : index
    %c0_181 = arith.constant 0 : index
    %c0_182 = arith.constant 0 : index
    %210 = vector.load %arg7[%c2_180, %c0_181, %c0_182] : memref<16x16x16xbf16, #tpu.memory_space<vmem>>, vector<1x16x16xbf16>
    %211 = vector.shape_cast %210 : vector<1x16x16xbf16> to vector<16x16xbf16>
    %cst_183 = arith.constant dense<0.000000e+00> : vector<64x16xf32>
    %212 = tpu.matmul %209, %211, %cst_183 {dimension_numbers = #tpu.dot_dimension_numbers<[1], [0], [0], [1], [0, 0, 1, 1], [], []>} : vector<64x16xbf16>, vector<16x16xbf16>, vector<64x16xf32> -> vector<64x16xf32>
    %213 = arith.addf %206, %212 : vector<64x16xf32>
    %c0_184 = arith.constant 0 : index
    %c1_185 = arith.constant 1 : index
    %c0_186 = arith.constant 0 : index
    %c9_187 = arith.constant 9 : index
    %c0_188 = arith.constant 0 : index
    %214 = vector.load %arg13[%c0_184, %c1_185, %c0_186, %c9_187, %c0_188] : memref<2x2x9x24x16xbf16, #tpu.memory_space<vmem>>, vector<1x1x8x8x16xbf16>
    %215 = vector.shape_cast %214 : vector<1x1x8x8x16xbf16> to vector<8x8x16xbf16>
    %216 = vector.shape_cast %215 : vector<8x8x16xbf16> to vector<64x16xbf16>
    %c3_189 = arith.constant 3 : index
    %c0_190 = arith.constant 0 : index
    %c0_191 = arith.constant 0 : index
    %217 = vector.load %arg7[%c3_189, %c0_190, %c0_191] : memref<16x16x16xbf16, #tpu.memory_space<vmem>>, vector<1x16x16xbf16>
    %218 = vector.shape_cast %217 : vector<1x16x16xbf16> to vector<16x16xbf16>
    %cst_192 = arith.constant dense<0.000000e+00> : vector<64x16xf32>
    %219 = tpu.matmul %216, %218, %cst_192 {dimension_numbers = #tpu.dot_dimension_numbers<[1], [0], [0], [1], [0, 0, 1, 1], [], []>} : vector<64x16xbf16>, vector<16x16xbf16>, vector<64x16xf32> -> vector<64x16xf32>
    %220 = arith.addf %213, %219 : vector<64x16xf32>
    %c1_193 = arith.constant 1 : index
    %c0_194 = arith.constant 0 : index
    %c0_195 = arith.constant 0 : index
    %c7_196 = arith.constant 7 : index
    %c0_197 = arith.constant 0 : index
    %221 = vector.load %arg13[%c1_193, %c0_194, %c0_195, %c7_196, %c0_197] : memref<2x2x9x24x16xbf16, #tpu.memory_space<vmem>>, vector<1x1x8x8x16xbf16>
    %222 = vector.shape_cast %221 : vector<1x1x8x8x16xbf16> to vector<8x8x16xbf16>
    %223 = vector.shape_cast %222 : vector<8x8x16xbf16> to vector<64x16xbf16>
    %c4_198 = arith.constant 4 : index
    %c0_199 = arith.constant 0 : index
    %c0_200 = arith.constant 0 : index
    %224 = vector.load %arg7[%c4_198, %c0_199, %c0_200] : memref<16x16x16xbf16, #tpu.memory_space<vmem>>, vector<1x16x16xbf16>
    %225 = vector.shape_cast %224 : vector<1x16x16xbf16> to vector<16x16xbf16>
    %cst_201 = arith.constant dense<0.000000e+00> : vector<64x16xf32>
    %226 = tpu.matmul %223, %225, %cst_201 {dimension_numbers = #tpu.dot_dimension_numbers<[1], [0], [0], [1], [0, 0, 1, 1], [], []>} : vector<64x16xbf16>, vector<16x16xbf16>, vector<64x16xf32> -> vector<64x16xf32>
    %227 = arith.addf %220, %226 : vector<64x16xf32>
    %c1_202 = arith.constant 1 : index
    %c1_203 = arith.constant 1 : index
    %c0_204 = arith.constant 0 : index
    %c8_205 = arith.constant 8 : index
    %c0_206 = arith.constant 0 : index
    %228 = vector.load %arg13[%c1_202, %c1_203, %c0_204, %c8_205, %c0_206] : memref<2x2x9x24x16xbf16, #tpu.memory_space<vmem>>, vector<1x1x8x8x16xbf16>
    %229 = vector.shape_cast %228 : vector<1x1x8x8x16xbf16> to vector<8x8x16xbf16>
    %230 = vector.shape_cast %229 : vector<8x8x16xbf16> to vector<64x16xbf16>
    %c5_207 = arith.constant 5 : index
    %c0_208 = arith.constant 0 : index
    %c0_209 = arith.constant 0 : index
    %231 = vector.load %arg7[%c5_207, %c0_208, %c0_209] : memref<16x16x16xbf16, #tpu.memory_space<vmem>>, vector<1x16x16xbf16>
    %232 = vector.shape_cast %231 : vector<1x16x16xbf16> to vector<16x16xbf16>
    %cst_210 = arith.constant dense<0.000000e+00> : vector<64x16xf32>
    %233 = tpu.matmul %230, %232, %cst_210 {dimension_numbers = #tpu.dot_dimension_numbers<[1], [0], [0], [1], [0, 0, 1, 1], [], []>} : vector<64x16xbf16>, vector<16x16xbf16>, vector<64x16xf32> -> vector<64x16xf32>
    %234 = arith.addf %227, %233 : vector<64x16xf32>
    %c1_211 = arith.constant 1 : index
    %c0_212 = arith.constant 0 : index
    %c0_213 = arith.constant 0 : index
    %c8_214 = arith.constant 8 : index
    %c0_215 = arith.constant 0 : index
    %235 = vector.load %arg13[%c1_211, %c0_212, %c0_213, %c8_214, %c0_215] : memref<2x2x9x24x16xbf16, #tpu.memory_space<vmem>>, vector<1x1x8x8x16xbf16>
    %236 = vector.shape_cast %235 : vector<1x1x8x8x16xbf16> to vector<8x8x16xbf16>
    %237 = vector.shape_cast %236 : vector<8x8x16xbf16> to vector<64x16xbf16>
    %c6_216 = arith.constant 6 : index
    %c0_217 = arith.constant 0 : index
    %c0_218 = arith.constant 0 : index
    %238 = vector.load %arg7[%c6_216, %c0_217, %c0_218] : memref<16x16x16xbf16, #tpu.memory_space<vmem>>, vector<1x16x16xbf16>
    %239 = vector.shape_cast %238 : vector<1x16x16xbf16> to vector<16x16xbf16>
    %cst_219 = arith.constant dense<0.000000e+00> : vector<64x16xf32>
    %240 = tpu.matmul %237, %239, %cst_219 {dimension_numbers = #tpu.dot_dimension_numbers<[1], [0], [0], [1], [0, 0, 1, 1], [], []>} : vector<64x16xbf16>, vector<16x16xbf16>, vector<64x16xf32> -> vector<64x16xf32>
    %241 = arith.addf %234, %240 : vector<64x16xf32>
    %c1_220 = arith.constant 1 : index
    %c1_221 = arith.constant 1 : index
    %c0_222 = arith.constant 0 : index
    %c9_223 = arith.constant 9 : index
    %c0_224 = arith.constant 0 : index
    %242 = vector.load %arg13[%c1_220, %c1_221, %c0_222, %c9_223, %c0_224] : memref<2x2x9x24x16xbf16, #tpu.memory_space<vmem>>, vector<1x1x8x8x16xbf16>
    %243 = vector.shape_cast %242 : vector<1x1x8x8x16xbf16> to vector<8x8x16xbf16>
    %244 = vector.shape_cast %243 : vector<8x8x16xbf16> to vector<64x16xbf16>
    %c7_225 = arith.constant 7 : index
    %c0_226 = arith.constant 0 : index
    %c0_227 = arith.constant 0 : index
    %245 = vector.load %arg7[%c7_225, %c0_226, %c0_227] : memref<16x16x16xbf16, #tpu.memory_space<vmem>>, vector<1x16x16xbf16>
    %246 = vector.shape_cast %245 : vector<1x16x16xbf16> to vector<16x16xbf16>
    %cst_228 = arith.constant dense<0.000000e+00> : vector<64x16xf32>
    %247 = tpu.matmul %244, %246, %cst_228 {dimension_numbers = #tpu.dot_dimension_numbers<[1], [0], [0], [1], [0, 0, 1, 1], [], []>} : vector<64x16xbf16>, vector<16x16xbf16>, vector<64x16xf32> -> vector<64x16xf32>
    %248 = arith.addf %241, %247 : vector<64x16xf32>
    %c0_229 = arith.constant 0 : index
    %c0_230 = arith.constant 0 : index
    %c1_231 = arith.constant 1 : index
    %c7_232 = arith.constant 7 : index
    %c0_233 = arith.constant 0 : index
    %249 = vector.load %arg13[%c0_229, %c0_230, %c1_231, %c7_232, %c0_233] : memref<2x2x9x24x16xbf16, #tpu.memory_space<vmem>>, vector<1x1x8x8x16xbf16>
    %250 = vector.shape_cast %249 : vector<1x1x8x8x16xbf16> to vector<8x8x16xbf16>
    %251 = vector.shape_cast %250 : vector<8x8x16xbf16> to vector<64x16xbf16>
    %c8_234 = arith.constant 8 : index
    %c0_235 = arith.constant 0 : index
    %c0_236 = arith.constant 0 : index
    %252 = vector.load %arg7[%c8_234, %c0_235, %c0_236] : memref<16x16x16xbf16, #tpu.memory_space<vmem>>, vector<1x16x16xbf16>
    %253 = vector.shape_cast %252 : vector<1x16x16xbf16> to vector<16x16xbf16>
    %cst_237 = arith.constant dense<0.000000e+00> : vector<64x16xf32>
    %254 = tpu.matmul %251, %253, %cst_237 {dimension_numbers = #tpu.dot_dimension_numbers<[1], [0], [0], [1], [0, 0, 1, 1], [], []>} : vector<64x16xbf16>, vector<16x16xbf16>, vector<64x16xf32> -> vector<64x16xf32>
    %255 = arith.addf %248, %254 : vector<64x16xf32>
    %c0_238 = arith.constant 0 : index
    %c1_239 = arith.constant 1 : index
    %c1_240 = arith.constant 1 : index
    %c8_241 = arith.constant 8 : index
    %c0_242 = arith.constant 0 : index
    %256 = vector.load %arg13[%c0_238, %c1_239, %c1_240, %c8_241, %c0_242] : memref<2x2x9x24x16xbf16, #tpu.memory_space<vmem>>, vector<1x1x8x8x16xbf16>
    %257 = vector.shape_cast %256 : vector<1x1x8x8x16xbf16> to vector<8x8x16xbf16>
    %258 = vector.shape_cast %257 : vector<8x8x16xbf16> to vector<64x16xbf16>
    %c9_243 = arith.constant 9 : index
    %c0_244 = arith.constant 0 : index
    %c0_245 = arith.constant 0 : index
    %259 = vector.load %arg7[%c9_243, %c0_244, %c0_245] : memref<16x16x16xbf16, #tpu.memory_space<vmem>>, vector<1x16x16xbf16>
    %260 = vector.shape_cast %259 : vector<1x16x16xbf16> to vector<16x16xbf16>
    %cst_246 = arith.constant dense<0.000000e+00> : vector<64x16xf32>
    %261 = tpu.matmul %258, %260, %cst_246 {dimension_numbers = #tpu.dot_dimension_numbers<[1], [0], [0], [1], [0, 0, 1, 1], [], []>} : vector<64x16xbf16>, vector<16x16xbf16>, vector<64x16xf32> -> vector<64x16xf32>
    %262 = arith.addf %255, %261 : vector<64x16xf32>
    %c0_247 = arith.constant 0 : index
    %c0_248 = arith.constant 0 : index
    %c1_249 = arith.constant 1 : index
    %c8_250 = arith.constant 8 : index
    %c0_251 = arith.constant 0 : index
    %263 = vector.load %arg13[%c0_247, %c0_248, %c1_249, %c8_250, %c0_251] : memref<2x2x9x24x16xbf16, #tpu.memory_space<vmem>>, vector<1x1x8x8x16xbf16>
    %264 = vector.shape_cast %263 : vector<1x1x8x8x16xbf16> to vector<8x8x16xbf16>
    %265 = vector.shape_cast %264 : vector<8x8x16xbf16> to vector<64x16xbf16>
    %c10 = arith.constant 10 : index
    %c0_252 = arith.constant 0 : index
    %c0_253 = arith.constant 0 : index
    %266 = vector.load %arg7[%c10, %c0_252, %c0_253] : memref<16x16x16xbf16, #tpu.memory_space<vmem>>, vector<1x16x16xbf16>
    %267 = vector.shape_cast %266 : vector<1x16x16xbf16> to vector<16x16xbf16>
    %cst_254 = arith.constant dense<0.000000e+00> : vector<64x16xf32>
    %268 = tpu.matmul %265, %267, %cst_254 {dimension_numbers = #tpu.dot_dimension_numbers<[1], [0], [0], [1], [0, 0, 1, 1], [], []>} : vector<64x16xbf16>, vector<16x16xbf16>, vector<64x16xf32> -> vector<64x16xf32>
    %269 = arith.addf %262, %268 : vector<64x16xf32>
    %c0_255 = arith.constant 0 : index
    %c1_256 = arith.constant 1 : index
    %c1_257 = arith.constant 1 : index
    %c9_258 = arith.constant 9 : index
    %c0_259 = arith.constant 0 : index
    %270 = vector.load %arg13[%c0_255, %c1_256, %c1_257, %c9_258, %c0_259] : memref<2x2x9x24x16xbf16, #tpu.memory_space<vmem>>, vector<1x1x8x8x16xbf16>
    %271 = vector.shape_cast %270 : vector<1x1x8x8x16xbf16> to vector<8x8x16xbf16>
    %272 = vector.shape_cast %271 : vector<8x8x16xbf16> to vector<64x16xbf16>
    %c11 = arith.constant 11 : index
    %c0_260 = arith.constant 0 : index
    %c0_261 = arith.constant 0 : index
    %273 = vector.load %arg7[%c11, %c0_260, %c0_261] : memref<16x16x16xbf16, #tpu.memory_space<vmem>>, vector<1x16x16xbf16>
    %274 = vector.shape_cast %273 : vector<1x16x16xbf16> to vector<16x16xbf16>
    %cst_262 = arith.constant dense<0.000000e+00> : vector<64x16xf32>
    %275 = tpu.matmul %272, %274, %cst_262 {dimension_numbers = #tpu.dot_dimension_numbers<[1], [0], [0], [1], [0, 0, 1, 1], [], []>} : vector<64x16xbf16>, vector<16x16xbf16>, vector<64x16xf32> -> vector<64x16xf32>
    %276 = arith.addf %269, %275 : vector<64x16xf32>
    %c1_263 = arith.constant 1 : index
    %c0_264 = arith.constant 0 : index
    %c1_265 = arith.constant 1 : index
    %c7_266 = arith.constant 7 : index
    %c0_267 = arith.constant 0 : index
    %277 = vector.load %arg13[%c1_263, %c0_264, %c1_265, %c7_266, %c0_267] : memref<2x2x9x24x16xbf16, #tpu.memory_space<vmem>>, vector<1x1x8x8x16xbf16>
    %278 = vector.shape_cast %277 : vector<1x1x8x8x16xbf16> to vector<8x8x16xbf16>
    %279 = vector.shape_cast %278 : vector<8x8x16xbf16> to vector<64x16xbf16>
    %c12 = arith.constant 12 : index
    %c0_268 = arith.constant 0 : index
    %c0_269 = arith.constant 0 : index
    %280 = vector.load %arg7[%c12, %c0_268, %c0_269] : memref<16x16x16xbf16, #tpu.memory_space<vmem>>, vector<1x16x16xbf16>
    %281 = vector.shape_cast %280 : vector<1x16x16xbf16> to vector<16x16xbf16>
    %cst_270 = arith.constant dense<0.000000e+00> : vector<64x16xf32>
    %282 = tpu.matmul %279, %281, %cst_270 {dimension_numbers = #tpu.dot_dimension_numbers<[1], [0], [0], [1], [0, 0, 1, 1], [], []>} : vector<64x16xbf16>, vector<16x16xbf16>, vector<64x16xf32> -> vector<64x16xf32>
    %283 = arith.addf %276, %282 : vector<64x16xf32>
    %c1_271 = arith.constant 1 : index
    %c1_272 = arith.constant 1 : index
    %c1_273 = arith.constant 1 : index
    %c8_274 = arith.constant 8 : index
    %c0_275 = arith.constant 0 : index
    %284 = vector.load %arg13[%c1_271, %c1_272, %c1_273, %c8_274, %c0_275] : memref<2x2x9x24x16xbf16, #tpu.memory_space<vmem>>, vector<1x1x8x8x16xbf16>
    %285 = vector.shape_cast %284 : vector<1x1x8x8x16xbf16> to vector<8x8x16xbf16>
    %286 = vector.shape_cast %285 : vector<8x8x16xbf16> to vector<64x16xbf16>
    %c13 = arith.constant 13 : index
    %c0_276 = arith.constant 0 : index
    %c0_277 = arith.constant 0 : index
    %287 = vector.load %arg7[%c13, %c0_276, %c0_277] : memref<16x16x16xbf16, #tpu.memory_space<vmem>>, vector<1x16x16xbf16>
    %288 = vector.shape_cast %287 : vector<1x16x16xbf16> to vector<16x16xbf16>
    %cst_278 = arith.constant dense<0.000000e+00> : vector<64x16xf32>
    %289 = tpu.matmul %286, %288, %cst_278 {dimension_numbers = #tpu.dot_dimension_numbers<[1], [0], [0], [1], [0, 0, 1, 1], [], []>} : vector<64x16xbf16>, vector<16x16xbf16>, vector<64x16xf32> -> vector<64x16xf32>
    %290 = arith.addf %283, %289 : vector<64x16xf32>
    %c1_279 = arith.constant 1 : index
    %c0_280 = arith.constant 0 : index
    %c1_281 = arith.constant 1 : index
    %c8_282 = arith.constant 8 : index
    %c0_283 = arith.constant 0 : index
    %291 = vector.load %arg13[%c1_279, %c0_280, %c1_281, %c8_282, %c0_283] : memref<2x2x9x24x16xbf16, #tpu.memory_space<vmem>>, vector<1x1x8x8x16xbf16>
    %292 = vector.shape_cast %291 : vector<1x1x8x8x16xbf16> to vector<8x8x16xbf16>
    %293 = vector.shape_cast %292 : vector<8x8x16xbf16> to vector<64x16xbf16>
    %c14 = arith.constant 14 : index
    %c0_284 = arith.constant 0 : index
    %c0_285 = arith.constant 0 : index
    %294 = vector.load %arg7[%c14, %c0_284, %c0_285] : memref<16x16x16xbf16, #tpu.memory_space<vmem>>, vector<1x16x16xbf16>
    %295 = vector.shape_cast %294 : vector<1x16x16xbf16> to vector<16x16xbf16>
    %cst_286 = arith.constant dense<0.000000e+00> : vector<64x16xf32>
    %296 = tpu.matmul %293, %295, %cst_286 {dimension_numbers = #tpu.dot_dimension_numbers<[1], [0], [0], [1], [0, 0, 1, 1], [], []>} : vector<64x16xbf16>, vector<16x16xbf16>, vector<64x16xf32> -> vector<64x16xf32>
    %297 = arith.addf %290, %296 : vector<64x16xf32>
    %c1_287 = arith.constant 1 : index
    %c1_288 = arith.constant 1 : index
    %c1_289 = arith.constant 1 : index
    %c9_290 = arith.constant 9 : index
    %c0_291 = arith.constant 0 : index
    %298 = vector.load %arg13[%c1_287, %c1_288, %c1_289, %c9_290, %c0_291] : memref<2x2x9x24x16xbf16, #tpu.memory_space<vmem>>, vector<1x1x8x8x16xbf16>
    %299 = vector.shape_cast %298 : vector<1x1x8x8x16xbf16> to vector<8x8x16xbf16>
    %300 = vector.shape_cast %299 : vector<8x8x16xbf16> to vector<64x16xbf16>
    %c15 = arith.constant 15 : index
    %c0_292 = arith.constant 0 : index
    %c0_293 = arith.constant 0 : index
    %301 = vector.load %arg7[%c15, %c0_292, %c0_293] : memref<16x16x16xbf16, #tpu.memory_space<vmem>>, vector<1x16x16xbf16>
    %302 = vector.shape_cast %301 : vector<1x16x16xbf16> to vector<16x16xbf16>
    %cst_294 = arith.constant dense<0.000000e+00> : vector<64x16xf32>
    %303 = tpu.matmul %300, %302, %cst_294 {dimension_numbers = #tpu.dot_dimension_numbers<[1], [0], [0], [1], [0, 0, 1, 1], [], []>} : vector<64x16xbf16>, vector<16x16xbf16>, vector<64x16xf32> -> vector<64x16xf32>
    %304 = arith.addf %297, %303 : vector<64x16xf32>
    %305 = vector.broadcast %7 : vector<1x16xf32> to vector<64x16xf32>
    %306 = arith.addf %304, %305 : vector<64x16xf32>
    %c0_295 = arith.constant 0 : index
    %c0_296 = arith.constant 0 : index
    %c0_297 = arith.constant 0 : index
    %307 = vector.load %arg11[%c0_295, %c0_296, %c0_297] : memref<1x64x16xf32, #tpu.memory_space<vmem>>, vector<1x64x16xf32>
    %308 = vector.shape_cast %307 : vector<1x64x16xf32> to vector<64x16xf32>
    %309 = vector.shape_cast %306 : vector<64x16xf32> to vector<1x64x16xf32>
    tpu.vector_store %arg11[%c0_295, %c0_296, %c0_297], %309 {strides = array<i32>} : memref<1x64x16xf32, #tpu.memory_space<vmem>>, vector<1x64x16xf32>,
    return
  }
  func.func @transform_0(%arg0: i32) -> (i32, i32, i32) {
    %c0_i32 = arith.constant 0 : i32
    %c0_i32_0 = arith.constant 0 : i32
    %c0_i32_1 = arith.constant 0 : i32
    return %arg0, %c0_i32, %c0_i32_0 : i32, i32, i32
  }
  func.func @transform_1(%arg0: i32) -> (i32, i32, i32) {
    %c0_i32 = arith.constant 0 : i32
    %c0_i32_0 = arith.constant 0 : i32
    %c0_i32_1 = arith.constant 0 : i32
    return %arg0, %c0_i32, %c0_i32_0 : i32, i32, i32
  }
  func.func @transform_2(%arg0: i32) -> (i32, i32) {
    %c0_i32 = arith.constant 0 : i32
    %c0_i32_0 = arith.constant 0 : i32
    %c0_i32_1 = arith.constant 0 : i32
    return %c0_i32, %c0_i32_0 : i32, i32
  }
  func.func @transform_3(%arg0: i32) -> (i32, i32) {
    %c0_i32 = arith.constant 0 : i32
    %c0_i32_0 = arith.constant 0 : i32
    %c0_i32_1 = arith.constant 0 : i32
    return %c0_i32, %c0_i32_0 : i32, i32
  }
  func.func @transform_4(%arg0: i32) -> (i32, i32, i32) {
    %c0_i32 = arith.constant 0 : i32
    %c0_i32_0 = arith.constant 0 : i32
    %c0_i32_1 = arith.constant 0 : i32
    %c0_i32_2 = arith.constant 0 : i32
    return %c0_i32, %c0_i32_0, %c0_i32_1 : i32, i32, i32
  }
  func.func @transform_5(%arg0: i32) -> (i32, i32) {
    %c0_i32 = arith.constant 0 : i32
    %c0_i32_0 = arith.constant 0 : i32
    %c0_i32_1 = arith.constant 0 : i32
    return %c0_i32, %c0_i32_0 : i32, i32
  }
  func.func @transform_6(%arg0: i32) -> (i32, i32, i32) {
    %c0_i32 = arith.constant 0 : i32
    %c0_i32_0 = arith.constant 0 : i32
    %c0_i32_1 = arith.constant 0 : i32
    %c0_i32_2 = arith.constant 0 : i32
    return %c0_i32, %c0_i32_0, %c0_i32_1 : i32, i32, i32
  }
  func.func @transform_7(%arg0: i32) -> (i32, i32) {
    %c0_i32 = arith.constant 0 : i32
    %c0_i32_0 = arith.constant 0 : i32
    %c0_i32_1 = arith.constant 0 : i32
    return %c0_i32, %c0_i32_0 : i32, i32
  }
  func.func @transform_8(%arg0: i32) -> (i32, i32) {
    %c0_i32 = arith.constant 0 : i32
    %c0_i32_0 = arith.constant 0 : i32
    %c0_i32_1 = arith.constant 0 : i32
    return %c0_i32, %c0_i32_0 : i32, i32
  }
  func.func @transform_9(%arg0: i32) -> (i32, i32) {
    %c0_i32 = arith.constant 0 : i32
    %c0_i32_0 = arith.constant 0 : i32
    %c0_i32_1 = arith.constant 0 : i32
    return %c0_i32, %c0_i32_0 : i32, i32
  }
  func.func @transform_10(%arg0: i32) -> (i32, i32, i32) {
    %c0_i32 = arith.constant 0 : i32
    %c0_i32_0 = arith.constant 0 : i32
    %c0_i32_1 = arith.constant 0 : i32
    return %arg0, %c0_i32, %c0_i32_0 : i32, i32, i32
  }
}

</mosaic_0001>

<bundles_post_ra>
// kernel: simple_block_forward.1
= control target key start
LH: loop header
LB: loop body
LE: loop exit
PB: predicated region body
PF: predicated region fallthrough
CT: control target
= control target key end

     0   :  { %15 = vsyncpa [#allocation5], 0  ;;  %s17108_s0 = inlined_call_operand.vmem [shape: bf16[2,256,72], index: 0, kind: input, shape index: {}]   ;;  %s17109_s1 = inlined_call_operand.vmem [shape: f32[2,1,32], index: 1, kind: input, shape index: {}]   ;;  %s17110_s2 = inlined_call_operand.vmem [shape: bf16[72,16], index: 2, kind: input, shape index: {}]   ;;  %s17111_s3 = inlined_call_operand.vmem [shape: bf16[32,16], index: 3, kind: input, shape index: {}]   ;;  %s17112_s4 = inlined_call_operand.vmem [shape: bf16[9,16,16], index: 4, kind: input, shape index: {}]   ;;  %s17113_s5 = inlined_call_operand.vmem [shape: bf16[256,256], index: 5, kind: input, shape index: {}]   ;;  %s17114_s6 = inlined_call_operand.vmem [shape: bf16[16,16,16], index: 6, kind: input, shape index: {}]   ;;  %s17115_s7 = inlined_call_operand.vmem [shape: f32[8,16], index: 7, kind: input, shape index: {}]   ;;  %s17116_s8 = inlined_call_operand.vmem [shape: f32[16,8], index: 8, kind: input, shape index: {}]   ;;  %s17117_s9 = inlined_call_operand.vmem [shape: f32[8,16], index: 9, kind: input, shape index: {}]   ;;  %s17118_s10 = inlined_call_operand.hbm [shape: f32[2,64,16], index: 10, kind: output, shape index: {}]  }
   0x1   :  { %17 = vsyncpa [#allocation5 + $0x1], 0  ;;  %s12149_s13 = smov 0   ;;  %s12151_s14 = smov 0  }
   0x2   :  { %s12153_s15 = smov 0   ;;  %s12155_s16 = smov 0  }
   0x3 LB: > { %s12170_s17 = sadd.s32 4294967295, %s12088_s16   ;;  %s10474_s18 = sadd.s32 4294967294, %s12088_s16   ;;  %s12088_s16 = sphi %s12155_s16, %s17345_s16   ;;  %s12084_s15 = sphi %s12153_s15, %s17344_s15   ;;  %s12080_s14 = sphi %s12151_s14, %s17343_s14   ;;  %s12076_s13 = sphi %s12149_s13, %s17342_s13  }
   0x4   : > { %s12174_s19 = sadd.s32 1, %s12088_s16   ;;  %s250_s20 = sadd.s32 1, %s12084_s15 }
   0x5   : > { %s247_s21 = ssub.s32 %s12088_s16, %s12174_s19  ;;  %p260_p0 = scmp.ne.s32.totalorder %s12084_s15, %s12080_s14 }
   0x6   : > { %p248_p1 = scmp.eq.s32.totalorder %s247_s21, 0  ;;  %p261_p2 = scmp.eq.s32.totalorder %s12170_s17, 1 }
   0x7   : > { %p266_p3 = scmp.ne.s32.totalorder %s12080_s14, %s12076_s13  ;;  %p267_p4 = scmp.eq.s32.totalorder %s10474_s18, 1 }
   0x8   : > { %s12185_s22 = scalar_select %p248_p1, %s12084_s15, %s250_s20  }
   0x9   : > { %p12187_p5 = por %p261_p2, %p260_p0  ;;  %p12191_p6 = por %p267_p4, %p266_p3 }
   0xa   : > { %p10477_p7 = scmp.ge.s32.totalorder %s12088_s16, 1  ;;  %p323_p8 = scmp.lt.s32.totalorder %s12088_s16, 3 }
   0xc   : > { %p324_p9 = pnand %p10477_p7, %p323_p8 }
   0xe   : > { %327 = sbr.rel (%p324_p9) target bundleno = 2815 (0xaff), region = 60 }
  0x13   : > { %v11548_v0 = vld [vmem:[%s17111_s3 + $0x8] sm:$0xff]  ;;  %v476_v1 = vld [vmem:[%s17110_s2 + $0x20] sm:$0xf]  ;;  %p364_p10 = scmp.lt.s32.totalorder %s12170_s17, 1  ;;  %vm634_vm0 = vcmask 1043456   ;;  %vm399_vm1 = vcmask 261120  }
  0x14   : > { %v11547_v2 = vld [vmem:[%s17111_s3] sm:$0xff]  ;;  %v575_v3 = vunpack.c.l.b16 %v476_v1  ;;  %409 = vmatpush.bf16.msra.mxu1 %v11548_v0  ;;  %v11568_v8 = vld [vmem:[%s17110_s2 + $0x18] sm:$0xff]  ;;  %v11567_v9 = vld [vmem:[%s17110_s2 + $0x10] sm:$0xff]  ;;  %vm585_vm2 = vcmask 588800   ;;  %vm1822_vm3 = vcmask 125952   ;;  %v12090_v24 = vmov 0  }
  0x15   : > { %s365_s11 = scalar_select %p364_p10, %s12170_s17, 1  ;;  %v11566_v10 = vld [vmem:[%s17110_s2 + $0x8] sm:$0xff]  ;;  %v11565_v11 = vld [vmem:[%s17110_s2] sm:$0xff]  ;;  %1828 = vst.msk [vmem:[#allocation2 + $0x14] sm:$0xf] %vm1822_vm3, %v12090_v24  ;;  %vm1367_vm15 = vcmask 130048  }
  0x16   : > { %v580_v4 = vpack.c.b16 %v575_v3, %v575_v3  ;;  %1823 = vst.msk [vmem:[#allocation2] sm:$0xf] %vm1822_vm3, %v12090_v24  ;;  %v12373_v34 = vld [vmem:[%s17115_s7] ss:$0 sm:$0xff]  ;;  %s361_s25 = sand.u32 1, %s12080_s14   ;;  %s11706_s29 = sshll.u32 %s12170_s17, 6 }
  0x17   : > { %s371_s20 = scalar_lea.vmem %s17109_s1, %s365_s11  ;;  %s11546_s30 = sshll.u32 %s365_s11, 7  ;;  %1824 = vst.msk [vmem:[#allocation2 + $0x4] sm:$0xf] %vm1822_vm3, %v12090_v24 }
  0x18   : > { %v636_v5 = vsel %vm634_vm0, %v580_v4, 0  ;;  %v381_v6 = vld [vmem:[%s371_s20] sm:$0x1]  ;;  %410 = vmatpush.bf16.msra.mxu1 %v11547_v2  ;;  %s12223_s20 = scalar_lea.vmem %s17108_s0, %s11546_s30  ;;  %1825 = vst.msk [vmem:[#allocation2 + $0x8] sm:$0xf] %vm1822_vm3, %v12090_v24  ;;  %s10478_s11 = sshll.u32 %s361_s25, 6 }
  0x19   : > { %v382_v7 = vpack.c.bf16 %v381_v6, %v381_v6  ;;  %v11549_v12 = vld [vmem:[%s12223_s20] sm:$0xff]  ;;  %v11550_v13 = vld [vmem:[%s12223_s20 + $0x8] sm:$0xff]  ;;  %v11551_v14 = vld [vmem:[%s12223_s20 + $0x10] sm:$0xff]  ;;  %1826 = vst.msk [vmem:[#allocation2 + $0xc] sm:$0xf] %vm1822_vm3, %v12090_v24  ;;  %s17024_s28 = scalar_lea.vmem [#allocation4], %s10478_s11  ;;  %s10399_s18 = scalar_lea.hbm %s17118_s10, %s11706_s29 }
  0x1a   : > { %v11552_v15 = vld [vmem:[%s12223_s20 + $0x18] sm:$0xff]  ;;  %v11553_v16 = vld [vmem:[%s12223_s20 + $0x20] sm:$0xff]  ;;  %v11554_v17 = vld [vmem:[%s12223_s20 + $0x28] sm:$0xff]  ;;  %1827 = vst.msk [vmem:[#allocation2 + $0x10] sm:$0xf] %vm1822_vm3, %v12090_v24  ;;  %s10402_s21 = sshll.u32 %s10399_s18, 4  ;;  %s10403_s21 = int_to_ptr.hbm [resolvable:$true] %s10402_s21 }
  0x1b   : > { %10489 = vmatmul.msk.bf16.vlgmr.msra.gmra.mxu1 %vm399_vm1, %v382_v7  ;;  %v11555_v18 = vld [vmem:[%s12223_s20 + $0x30] sm:$0xff]  ;;  %v11556_v20 = vld [vmem:[%s12223_s20 + $0x38] sm:$0xff]  ;;  %v11557_v22 = vld [vmem:[%s12223_s20 + $0x40] sm:$0xff]  ;;  %1829 = vst.msk [vmem:[#allocation2 + $0x18] sm:$0xf] %vm1822_vm3, %v12090_v24  ;;  %s10388_s17 = scalar_lea.sflag [#allocation5], %s361_s25 }
  0x1c   : > { %641 = vmatpush.bf16.msrb.mxu1 %v636_v5  ;;  %1830 = vst.msk [vmem:[#allocation2 + $0x1c] sm:$0xf] %vm1822_vm3, %v12090_v24  ;;  %v11558_v26 = vld [vmem:[%s12223_s20 + $0x48] sm:$0xff]  ;;  %v11559_v29 = vld [vmem:[%s12223_s20 + $0x50] sm:$0xff]  ;;  %v11560_v32 = vld [vmem:[%s12223_s20 + $0x58] sm:$0xff]  ;;  %s12040_s11 = sshra.s32 %s10403_s21, 4  ;;  %s12041_s11 = int_to_ptr.hbm [resolvable:$true] %s12040_s11 }
  0x1d   : > { %1831 = vst.msk [vmem:[#allocation2 + $0x20] sm:$0xf] %vm1822_vm3, %v12090_v24  ;;  %v11561_v37 = vld [vmem:[%s12223_s20 + $0x60] sm:$0xff]  ;;  %v11562_v49 = vld [vmem:[%s12223_s20 + $0x68] sm:$0xff]  ;;  %v11563_v6 = vld [vmem:[%s12223_s20 + $0x70] sm:$0xff]  ;;  %s12042_s26 = scalar_lea.hbm %s12041_s11, 64  ;;  %p12047_p0 = scmp.lt.s32.totalorder %s12041_s11, %s17118_s10 }
  0x1e   : > { %1832 = vst.msk [vmem:[#allocation2 + $0x24] sm:$0xf] %vm1822_vm3, %v12090_v24  ;;  %p12043_p11 = scmp.ne.s32.totalorder %s12041_s11, %s12042_s26  ;;  %s12046_s30 = scalar_lea.hbm %s17118_s10, 128 }
  0x1f   : > { %1833 = vst.msk [vmem:[#allocation2 + $0x28] sm:$0xf] %vm1822_vm3, %v12090_v24  ;;  %p12048_p1 = scmp.lt.s32.totalorder %s12046_s30, %s12042_s26 }
  0x20   : > { %642 = vmatpush.bf16.msrb.mxu1 %v11568_v8  ;;  %1834 = vst.msk [vmem:[#allocation2 + $0x2c] sm:$0xf] %vm1822_vm3, %v12090_v24  ;;  %p12044_p12 = pnand %p12043_p11, %p12187_p5 }
  0x21   : > { %1835 = vst.msk [vmem:[#allocation2 + $0x30] sm:$0xf] %vm1822_vm3, %v12090_v24  ;;  %p12049_p2 = por %p12048_p1, %p12047_p0 }
  0x22   : > { %1836 = vst.msk [vmem:[#allocation2 + $0x34] sm:$0xf] %vm1822_vm3, %v12090_v24  ;;  %p12045_p13 = pneg %p12044_p12 }
  0x23   : > { %1837 = vst.msk [vmem:[#allocation2 + $0x38] sm:$0xf] %vm1822_vm3, %v12090_v24 }
  0x24   : > { %643 = vmatpush.bf16.msrb.mxu1 %v11567_v9  ;;  %1838 = vst.msk [vmem:[#allocation2 + $0x3c] sm:$0xf] %vm1822_vm3, %v12090_v24  ;;  %p12050_p3 = pnand %p12049_p2, %p12045_p13 }
  0x25   : > { %1839 = vst.msk [vmem:[#allocation2 + $0x40] sm:$0xf] %vm1822_vm3, %v12090_v24 }
  0x26   : > { %1840 = vst.msk [vmem:[#allocation2 + $0x44] sm:$0xf] %vm1822_vm3, %v12090_v24 }
  0x27   : > { %1841 = vst.msk [vmem:[#allocation2 + $0x48] sm:$0xf] %vm1822_vm3, %v12090_v24 }
  0x28   : > { %644 = vmatpush.bf16.msrb.mxu1 %v11566_v10  ;;  %1842 = vst.msk [vmem:[#allocation2 + $0x4c] sm:$0xf] %vm1822_vm3, %v12090_v24 }
  0x29   : > { %1843 = vst.msk [vmem:[#allocation2 + $0x50] sm:$0xf] %vm1822_vm3, %v12090_v24 }
  0x2a   : > { %1844 = vst.msk [vmem:[#allocation2 + $0x54] sm:$0xf] %vm1822_vm3, %v12090_v24 }
  0x2b   : > { %1845 = vst.msk [vmem:[#allocation2 + $0x58] sm:$0xf] %vm1822_vm3, %v12090_v24 }
  0x2c   : > { %645 = vmatpush.bf16.msrb.mxu1 %v11565_v11  ;;  %1846 = vst.msk [vmem:[#allocation2 + $0x5c] sm:$0xf] %vm1822_vm3, %v12090_v24 }
  0x2d   : > { %1847 = vst.msk [vmem:[#allocation2 + $0x60] sm:$0xf] %vm1822_vm3, %v12090_v24 }
  0x2e   : > { %1848 = vst.msk [vmem:[#allocation2 + $0x64] sm:$0xf] %vm1822_vm3, %v12090_v24 }
  0x2f   : > { %10571 = vmatmul.msk.bf16.vlgmr.msrb.gmra.mxu1 %vm585_vm2, %v11549_v12  ;;  %1849 = vst.msk [vmem:[#allocation2 + $0x68] sm:$0xf] %vm1822_vm3, %v12090_v24 }
  0x30   : > { %1850 = vst.msk [vmem:[#allocation2 + $0x6c] sm:$0xf] %vm1822_vm3, %v12090_v24 }
  0x31   : > { %1851 = vst.msk [vmem:[#allocation2 + $0x70] sm:$0xf] %vm1822_vm3, %v12090_v24 }
  0x32   : > { %1852 = vst.msk [vmem:[#allocation2 + $0x74] sm:$0xf] %vm1822_vm3, %v12090_v24 }
  0x33   : > { %1853 = vst.msk [vmem:[#allocation2 + $0x78] sm:$0xf] %vm1822_vm3, %v12090_v24 }
  0x34   : > { %1854 = vst.msk [vmem:[#allocation2 + $0x7c] sm:$0xf] %vm1822_vm3, %v12090_v24 }
  0x35   : > { %1855 = vst.msk [vmem:[#allocation2 + $0x80] sm:$0xf] %vm1822_vm3, %v12090_v24 }
  0x36   : > { %1856 = vst.msk [vmem:[#allocation2 + $0x84] sm:$0xf] %vm1822_vm3, %v12090_v24 }
  0x37   : > { %1857 = vst.msk [vmem:[#allocation2 + $0x88] sm:$0xf] %vm1822_vm3, %v12090_v24 }
  0x38   : > { %1858 = vst.msk [vmem:[#allocation2 + $0x8c] sm:$0xf] %vm1822_vm3, %v12090_v24 }
  0x39   : > { %1859 = vst.msk [vmem:[#allocation2 + $0x90] sm:$0xf] %vm1822_vm3, %v12090_v24 }
  0x3a   : > { %1860 = vst.msk [vmem:[#allocation2 + $0x94] sm:$0xf] %vm1822_vm3, %v12090_v24 }
  0x3b   : > { %1861 = vst.msk [vmem:[#allocation2 + $0x98] sm:$0xf] %vm1822_vm3, %v12090_v24 }
  0x3c   : > { %1862 = vst.msk [vmem:[#allocation2 + $0x9c] sm:$0xf] %vm1822_vm3, %v12090_v24 }
  0x3d   : > { %1863 = vst.msk [vmem:[#allocation2 + $0xa0] sm:$0xf] %vm1822_vm3, %v12090_v24 }
  0x3e   : > { %1864 = vst.msk [vmem:[#allocation2 + $0xa4] sm:$0xf] %vm1822_vm3, %v12090_v24 }
  0x3f   : > { %10572 = vmatmul.msk.bf16.gmra.mxu1 %vm585_vm2, %v11550_v13  ;;  %1865 = vst.msk [vmem:[#allocation2 + $0xa8] sm:$0xf] %vm1822_vm3, %v12090_v24 }
  0x40   : > { %1866 = vst.msk [vmem:[#allocation2 + $0xac] sm:$0xf] %vm1822_vm3, %v12090_v24 }
  0x41   : > { %1867 = vst.msk [vmem:[#allocation2 + $0xb0] sm:$0xf] %vm1822_vm3, %v12090_v24 }
  0x42   : > { %1868 = vst.msk [vmem:[#allocation2 + $0xb4] sm:$0xf] %vm1822_vm3, %v12090_v24 }
  0x43   : > { %1869 = vst.msk [vmem:[#allocation2 + $0xb8] sm:$0xf] %vm1822_vm3, %v12090_v24 }
  0x44   : > { %1870 = vst.msk [vmem:[#allocation2 + $0xbc] sm:$0xf] %vm1822_vm3, %v12090_v24 }
  0x45   : > { %1871 = vst.msk [vmem:[#allocation2 + $0xc0] sm:$0xf] %vm1822_vm3, %v12090_v24 }
  0x46   : > { %1872 = vst.msk [vmem:[#allocation2 + $0xc4] sm:$0xf] %vm1822_vm3, %v12090_v24 }
  0x47   : > { %1873 = vst.msk [vmem:[#allocation2 + $0xc8] sm:$0xf] %vm1822_vm3, %v12090_v24 }
  0x48   : > { %1874 = vst.msk [vmem:[#allocation2 + $0xcc] sm:$0xf] %vm1822_vm3, %v12090_v24 }
  0x49   : > { %1875 = vst.msk [vmem:[#allocation2 + $0xd0] sm:$0xf] %vm1822_vm3, %v12090_v24 }
  0x4a   : > { %1876 = vst.msk [vmem:[#allocation2 + $0xd4] sm:$0xf] %vm1822_vm3, %v12090_v24 }
  0x4b   : > { %1877 = vst.msk [vmem:[#allocation2 + $0xd8] sm:$0xf] %vm1822_vm3, %v12090_v24 }
  0x4c   : > { %1878 = vst.msk [vmem:[#allocation2 + $0xdc] sm:$0xf] %vm1822_vm3, %v12090_v24 }
  0x4d   : > { %1879 = vst.msk [vmem:[#allocation2 + $0xe0] sm:$0xf] %vm1822_vm3, %v12090_v24 }
  0x4e   : > { %1880 = vst.msk [vmem:[#allocation2 + $0xe4] sm:$0xf] %vm1822_vm3, %v12090_v24 }
  0x4f   : > { %10573 = vmatmul.msk.bf16.gmra.mxu1 %vm585_vm2, %v11551_v14  ;;  %1881 = vst.msk [vmem:[#allocation2 + $0xe8] sm:$0xf] %vm1822_vm3, %v12090_v24 }
  0x50   : > { %1882 = vst.msk [vmem:[#allocation2 + $0xec] sm:$0xf] %vm1822_vm3, %v12090_v24 }
  0x51   : > { %1883 = vst.msk [vmem:[#allocation2 + $0xf0] sm:$0xf] %vm1822_vm3, %v12090_v24 }
  0x52   : > { %1884 = vst.msk [vmem:[#allocation2 + $0xf4] sm:$0xf] %vm1822_vm3, %v12090_v24 }
  0x53   : > { %1885 = vst.msk [vmem:[#allocation2 + $0xf8] sm:$0xf] %vm1822_vm3, %v12090_v24 }
  0x54   : > { %1886 = vst.msk [vmem:[#allocation2 + $0xfc] sm:$0xf] %vm1822_vm3, %v12090_v24 }
  0x55   : > { %1887 = vst.msk [vmem:[#allocation2 + $0x100] sm:$0xf] %vm1822_vm3, %v12090_v24 }
  0x56   : > { %1888 = vst.msk [vmem:[#allocation2 + $0x104] sm:$0xf] %vm1822_vm3, %v12090_v24 }
  0x57   : > { %1889 = vst.msk [vmem:[#allocation2 + $0x108] sm:$0xf] %vm1822_vm3, %v12090_v24 }
  0x58   : > { %1890 = vst.msk [vmem:[#allocation2 + $0x10c] sm:$0xf] %vm1822_vm3, %v12090_v24 }
  0x59   : > { %1891 = vst.msk [vmem:[#allocation2 + $0x110] sm:$0xf] %vm1822_vm3, %v12090_v24 }
  0x5a   : > { %1892 = vst.msk [vmem:[#allocation2 + $0x114] sm:$0xf] %vm1822_vm3, %v12090_v24 }
  0x5b   : > { %1893 = vst.msk [vmem:[#allocation2 + $0x118] sm:$0xf] %vm1822_vm3, %v12090_v24 }
  0x5c   : > { %1894 = vst.msk [vmem:[#allocation2 + $0x11c] sm:$0xf] %vm1822_vm3, %v12090_v24 }
  0x5d   : > { %8032 = vst.msk [vmem:[#allocation3] sm:$0xf] %vm1822_vm3, %v12090_v24 }
  0x5e   : > { %8033 = vst.msk [vmem:[#allocation3 + $0x4] sm:$0xf] %vm1822_vm3, %v12090_v24 }
  0x5f   : > { %10574 = vmatmul.msk.bf16.gmra.mxu1 %vm585_vm2, %v11552_v15  ;;  %8035 = vst.msk [vmem:[#allocation3 + $0xc] sm:$0xf] %vm1822_vm3, %v12090_v24 }
  0x60   : > { %8036 = vst.msk [vmem:[#allocation3 + $0x10] sm:$0xf] %vm1822_vm3, %v12090_v24 }
  0x61   : > { %8038 = vst.msk [vmem:[#allocation3 + $0x18] sm:$0xf] %vm1822_vm3, %v12090_v24 }
  0x62   : > { %8039 = vst.msk [vmem:[#allocation3 + $0x1c] sm:$0xf] %vm1822_vm3, %v12090_v24 }
  0x63   : > { %8041 = vst.msk [vmem:[#allocation3 + $0x24] sm:$0xf] %vm1822_vm3, %v12090_v24 }
  0x64   : > { %8042 = vst.msk [vmem:[#allocation3 + $0x28] sm:$0xf] %vm1822_vm3, %v12090_v24 }
  0x65   : > { %8044 = vst.msk [vmem:[#allocation3 + $0x30] sm:$0xf] %vm1822_vm3, %v12090_v24 }
  0x66   : > { %8045 = vst.msk [vmem:[#allocation3 + $0x34] sm:$0xf] %vm1822_vm3, %v12090_v24 }
  0x67   : > { %8047 = vst.msk [vmem:[#allocation3 + $0x3c] sm:$0xf] %vm1822_vm3, %v12090_v24 }
  0x68   : > { %8048 = vst.msk [vmem:[#allocation3 + $0x40] sm:$0xf] %vm1822_vm3, %v12090_v24 }
  0x69   : > { %8050 = vst.msk [vmem:[#allocation3 + $0x48] sm:$0xf] %vm1822_vm3, %v12090_v24 }
  0x6a   : > { %8051 = vst.msk [vmem:[#allocation3 + $0x4c] sm:$0xf] %vm1822_vm3, %v12090_v24 }
  0x6b   : > { %8053 = vst.msk [vmem:[#allocation3 + $0x54] sm:$0xf] %vm1822_vm3, %v12090_v24 }
  0x6c   : > { %8054 = vst.msk [vmem:[#allocation3 + $0x58] sm:$0xf] %vm1822_vm3, %v12090_v24 }
  0x6d   : > { %8056 = vst.msk [vmem:[#allocation3 + $0x60] sm:$0xf] %vm1822_vm3, %v12090_v24 }
  0x6e   : > { %8057 = vst.msk [vmem:[#allocation3 + $0x64] sm:$0xf] %vm1822_vm3, %v12090_v24 }
  0x6f   : > { %10575 = vmatmul.msk.bf16.gmra.mxu1 %vm585_vm2, %v11553_v16  ;;  %8060 = vst.msk [vmem:[#allocation3 + $0x70] sm:$0xf] %vm1822_vm3, %v12090_v24 }
  0x70   : > { %8061 = vst.msk [vmem:[#allocation3 + $0x74] sm:$0xf] %vm1822_vm3, %v12090_v24 }
  0x71   : > { %8063 = vst.msk [vmem:[#allocation3 + $0x7c] sm:$0xf] %vm1822_vm3, %v12090_v24 }
  0x72   : > { %8064 = vst.msk [vmem:[#allocation3 + $0x80] sm:$0xf] %vm1822_vm3, %v12090_v24 }
  0x73   : > { %8066 = vst.msk [vmem:[#allocation3 + $0x88] sm:$0xf] %vm1822_vm3, %v12090_v24 }
  0x74   : > { %8067 = vst.msk [vmem:[#allocation3 + $0x8c] sm:$0xf] %vm1822_vm3, %v12090_v24 }
  0x75   : > { %8069 = vst.msk [vmem:[#allocation3 + $0x94] sm:$0xf] %vm1822_vm3, %v12090_v24 }
  0x76   : > { %8070 = vst.msk [vmem:[#allocation3 + $0x98] sm:$0xf] %vm1822_vm3, %v12090_v24 }
  0x77   : > { %8072 = vst.msk [vmem:[#allocation3 + $0xa0] sm:$0xf] %vm1822_vm3, %v12090_v24 }
  0x78   : > { %8073 = vst.msk [vmem:[#allocation3 + $0xa4] sm:$0xf] %vm1822_vm3, %v12090_v24 }
  0x79   : > { %8075 = vst.msk [vmem:[#allocation3 + $0xac] sm:$0xf] %vm1822_vm3, %v12090_v24 }
  0x7a   : > { %8076 = vst.msk [vmem:[#allocation3 + $0xb0] sm:$0xf] %vm1822_vm3, %v12090_v24 }
  0x7b   : > { %8078 = vst.msk [vmem:[#allocation3 + $0xb8] sm:$0xf] %vm1822_vm3, %v12090_v24 }
  0x7c   : > { %8079 = vst.msk [vmem:[#allocation3 + $0xbc] sm:$0xf] %vm1822_vm3, %v12090_v24 }
  0x7d   : > { %8081 = vst.msk [vmem:[#allocation3 + $0xc4] sm:$0xf] %vm1822_vm3, %v12090_v24 }
  0x7e   : > { %8082 = vst.msk [vmem:[#allocation3 + $0xc8] sm:$0xf] %vm1822_vm3, %v12090_v24 }
  0x7f   : > { %10576 = vmatmul.msk.bf16.gmra.mxu1 %vm585_vm2, %v11554_v17  ;;  %8084 = vst.msk [vmem:[#allocation3 + $0xd0] sm:$0xf] %vm1822_vm3, %v12090_v24 }
  0x80   : > { %8085 = vst.msk [vmem:[#allocation3 + $0xd4] sm:$0xf] %vm1822_vm3, %v12090_v24 }
  0x81   : > { %8086 = vst.msk [vmem:[#allocation3 + $0xd8] sm:$0xf] %vm1822_vm3, %v12090_v24 }
  0x82   : > { %8087 = vst.msk [vmem:[#allocation3 + $0xdc] sm:$0xf] %vm1822_vm3, %v12090_v24 }
  0x83   : > { %8089 = vst.msk [vmem:[#allocation3 + $0xe4] sm:$0xf] %vm1822_vm3, %v12090_v24 }
  0x84   : > { %8090 = vst.msk [vmem:[#allocation3 + $0xe8] sm:$0xf] %vm1822_vm3, %v12090_v24 }
  0x85   : > { %8092 = vst.msk [vmem:[#allocation3 + $0xf0] sm:$0xf] %vm1822_vm3, %v12090_v24 }
  0x86   : > { %8093 = vst.msk [vmem:[#allocation3 + $0xf4] sm:$0xf] %vm1822_vm3, %v12090_v24 }
  0x87   : > { %8095 = vst.msk [vmem:[#allocation3 + $0xfc] sm:$0xf] %vm1822_vm3, %v12090_v24 }
  0x88   : > { %8096 = vst.msk [vmem:[#allocation3 + $0x100] sm:$0xf] %vm1822_vm3, %v12090_v24 }
  0x89   : > { %8098 = vst.msk [vmem:[#allocation3 + $0x108] sm:$0xf] %vm1822_vm3, %v12090_v24 }
  0x8a   : > { %8099 = vst.msk [vmem:[#allocation3 + $0x10c] sm:$0xf] %vm1822_vm3, %v12090_v24 }
  0x8b   : > { %8101 = vst.msk [vmem:[#allocation3 + $0x114] sm:$0xf] %vm1822_vm3, %v12090_v24 }
  0x8c   : > { %8102 = vst.msk [vmem:[#allocation3 + $0x118] sm:$0xf] %vm1822_vm3, %v12090_v24 }
  0x8d   : > { %8104 = vst.msk [vmem:[#allocation3 + $0x120] sm:$0xf] %vm1822_vm3, %v12090_v24 }
  0x8e   : > { %8105 = vst.msk [vmem:[#allocation3 + $0x124] sm:$0xf] %vm1822_vm3, %v12090_v24 }
  0x8f   : > { %10577 = vmatmul.msk.bf16.gmra.mxu1 %vm585_vm2, %v11555_v18  ;;  %8107 = vst.msk [vmem:[#allocation3 + $0x12c] sm:$0xf] %vm1822_vm3, %v12090_v24 }
  0x90   : > { %8108 = vst.msk [vmem:[#allocation3 + $0x130] sm:$0xf] %vm1822_vm3, %v12090_v24 }
  0x91   : > { %8110 = vst.msk [vmem:[#allocation3 + $0x138] sm:$0xf] %vm1822_vm3, %v12090_v24 }
  0x92   : > { %8111 = vst.msk [vmem:[#allocation3 + $0x13c] sm:$0xf] %vm1822_vm3, %v12090_v24 }
  0x93   : > { %8114 = vst.msk [vmem:[#allocation3 + $0x148] sm:$0xf] %vm1822_vm3, %v12090_v24 }
  0x94   : > { %8115 = vst.msk [vmem:[#allocation3 + $0x14c] sm:$0xf] %vm1822_vm3, %v12090_v24 }
  0x95   : > { %8117 = vst.msk [vmem:[#allocation3 + $0x154] sm:$0xf] %vm1822_vm3, %v12090_v24 }
  0x96   : > { %8118 = vst.msk [vmem:[#allocation3 + $0x158] sm:$0xf] %vm1822_vm3, %v12090_v24 }
  0x97   : > { %8120 = vst.msk [vmem:[#allocation3 + $0x160] sm:$0xf] %vm1822_vm3, %v12090_v24 }
  0x98   : > { %v12242_v19 = vpop.f32.mrf.mxu1  ;;  %8121 = vst.msk [vmem:[#allocation3 + $0x164] sm:$0xf] %vm1822_vm3, %v12090_v24 }
  0x99   : > { %8123 = vst.msk [vmem:[#allocation3 + $0x16c] sm:$0xf] %vm1822_vm3, %v12090_v24 }
  0x9a   : > { %8124 = vst.msk [vmem:[#allocation3 + $0x170] sm:$0xf] %vm1822_vm3, %v12090_v24 }
  0x9b   : > { %8126 = vst.msk [vmem:[#allocation3 + $0x178] sm:$0xf] %vm1822_vm3, %v12090_v24 }
  0x9c   : > { %8127 = vst.msk [vmem:[#allocation3 + $0x17c] sm:$0xf] %vm1822_vm3, %v12090_v24 }
  0x9d   : > { %8129 = vst.msk [vmem:[#allocation3 + $0x184] sm:$0xf] %vm1822_vm3, %v12090_v24 }
  0x9e   : > { %8130 = vst.msk [vmem:[#allocation3 + $0x188] sm:$0xf] %vm1822_vm3, %v12090_v24 }
  0x9f   : > { %10578 = vmatmul.msk.bf16.gmra.mxu1 %vm585_vm2, %v11556_v20  ;;  %8132 = vst.msk [vmem:[#allocation3 + $0x190] sm:$0xf] %vm1822_vm3, %v12090_v24 }
  0xa0   : > { %v414_v21 = vpop.f32.mrf.mxu1  ;;  %8133 = vst.msk [vmem:[#allocation3 + $0x194] sm:$0xf] %vm1822_vm3, %v12090_v24 }
  0xa1   : > { %8135 = vst.msk [vmem:[#allocation3 + $0x19c] sm:$0xf] %vm1822_vm3, %v12090_v24 }
  0xa2   : > { %8136 = vst.msk [vmem:[#allocation3 + $0x1a0] sm:$0xf] %vm1822_vm3, %v12090_v24 }
  0xa3   : > { %8138 = vst.msk [vmem:[#allocation3 + $0x1a8] sm:$0xf] %vm1822_vm3, %v12090_v24 }
  0xa4   : > { %8139 = vst.msk [vmem:[#allocation3 + $0x1ac] sm:$0xf] %vm1822_vm3, %v12090_v24 }
  0xac   : > { %v12247_v23 = vpop.f32.mrf.mxu1 }
  0xad   : > { %v12387_v36 = vadd.f32 %v12373_v34, %v12247_v23 }
  0xaf   : > { %10579 = vmatmul.msk.bf16.gmra.mxu1 %vm585_vm2, %v11557_v22  ;;  %v10587_v38 = vmul.f32 -1.442695, %v12387_v36 }
  0xb1   : > { %11758 = vpow2.f32 %v10587_v38 }
  0xb4   : > { %v12258_v25 = vpop.f32.mrf.mxu1 }
  0xb5   : > { %v12403_v39 = vadd.f32 %v12373_v34, %v12258_v25 }
  0xb7   : > { %v10588_v41 = vmul.f32 -1.442695, %v12403_v39  ;;  %v11759_v45 = vpop.eup %11758 }
  0xb8   : > { %v12444_v47 = vadd.f32 1.0, %v11759_v45 }
  0xb9   : > { %11760 = vpow2.f32 %v10588_v41 }
  0xba   : > { %v866_v21 = vand.u32 2147483648, %v12444_v47  ;;  %vm860_vm5 = vweird.f32 %v12444_v47  ;;  %v864_v25 = vand.u32 2147483647, %v12444_v47 }
  0xbc   : > { %v12277_v27 = vpop.f32.mrf.mxu1  ;;  %vm865_vm8 = vcmp.eq.f32.partialorder %v864_v25, 8.507059e+37 }
  0xbd   : > { %v12419_v42 = vadd.f32 %v12373_v34, %v12277_v27 }
  0xbf   : > { %10580 = vmatmul.msk.bf16.gmra.mxu1 %vm585_vm2, %v11558_v26  ;;  %v10589_v43 = vmul.f32 -1.442695, %v12419_v42  ;;  %v11761_v48 = vpop.eup %11760 }
  0xc0   : > { %v12459_v52 = vadd.f32 1.0, %v11761_v48 }
  0xc1   : > { %11762 = vpow2.f32 %v10589_v43 }
  0xc2   : > { %11764 = vrcp.f32 %v12444_v47  ;;  %vm875_vm9 = vweird.f32 %v12459_v52  ;;  %v879_v43 = vand.u32 2147483647, %v12459_v52 }
  0xc4   : > { %v12296_v28 = vpop.f32.mrf.mxu1  ;;  %vm880_vm12 = vcmp.eq.f32.partialorder %v879_v43, 8.507059e+37 }
  0xc5   : > { %v12442_v46 = vadd.f32 %v12373_v34, %v12296_v28 }
  0xc7   : > { %v10590_v50 = vmul.f32 -1.442695, %v12442_v46  ;;  %v11763_v53 = vpop.eup %11762 }
  0xc8   : > { %v12471_v55 = vadd.f32 1.0, %v11763_v53  ;;  %v12480_v58 = vpop.eup %11764  ;;  %v11564_v53 = vld [vmem:[%s12223_s20 + $0x78] sm:$0xff]  ;;  %s10400_s20 = sshll.u32 %s17024_s28, 4  ;;  %s10401_s20 = int_to_ptr.vmem [resolvable:$true] %s10400_s20 }
  0xc9   : > { %11766 = vpow2.f32 %v10590_v50  ;;  %v856_v62 = vmul.f32 %v12480_v58, %v12444_v47  ;;  %vm861_vm4 = vweird.f32 %v12480_v58 }
  0xca   : > { %11768 = vrcp.f32 %v12459_v52  ;;  %vm12551_vm6 = vmor %vm860_vm5, %vm861_vm4  ;;  %vm890_vm13 = vweird.f32 %v12471_v55 }
  0xcb   : > { %11770 = vrcp.f32 %v12471_v55  ;;  %v857_v2 = vsub.f32 1.0, %v856_v62 }
  0xcc   : > { %v12315_v30 = vpop.f32.mrf.mxu1 }
  0xcd   : > { %v12463_v54 = vadd.f32 %v12373_v34, %v12315_v30  ;;  %v858_v10 = vmul.f32 %v12480_v58, %v857_v2 }
  0xcf   : > { %10581 = vmatmul.msk.bf16.gmra.mxu1 %vm585_vm2, %v11559_v29  ;;  %v10591_v57 = vmul.f32 -1.442695, %v12463_v54  ;;  %v11767_v61 = vpop.eup %11766  ;;  %v859_v16 = vadd.f32 %v12480_v58, %v858_v10 }
  0xd0   : > { %v12498_v0 = vpop.eup %11768  ;;  %v12504_v1 = vadd.f32 1.0, %v11767_v61  ;;  %v896_v61 = vand.u32 2147483648, %v12471_v55 }
  0xd1   : > { %11772 = vpow2.f32 %v10591_v57  ;;  %v871_v3 = vmul.f32 %v12498_v0, %v12459_v52  ;;  %v12509_v5 = vpop.eup %11770  ;;  %v863_v29 = vsel %vm12551_vm6, %v12480_v58, %v859_v16  ;;  %vm876_vm7 = vweird.f32 %v12498_v0 }
  0xd2   : > { %v886_v13 = vmul.f32 %v12509_v5, %v12471_v55  ;;  %vm12582_vm10 = vmor %vm875_vm9, %vm876_vm7  ;;  %vm891_vm11 = vweird.f32 %v12509_v5  ;;  %v911_v16 = vand.u32 2147483648, %v12504_v1 }
  0xd3   : > { %v872_v11 = vsub.f32 1.0, %v871_v3  ;;  %vm12619_vm14 = vmor %vm890_vm13, %vm891_vm11 }
  0xd4   : > { %v12334_v31 = vpop.f32.mrf.mxu1  ;;  %v887_v22 = vsub.f32 1.0, %v886_v13 }
  0xd5   : > { %v12475_v56 = vadd.f32 %v12373_v34, %v12334_v31  ;;  %v873_v17 = vmul.f32 %v12498_v0, %v872_v11  ;;  %v867_v31 = vor.u32 1.1754944e-38, %v866_v21  ;;  %v897_v11 = vor.u32 1.1754944e-38, %v896_v61 }
  0xd7   : > { %v10592_v60 = vmul.f32 -1.442695, %v12475_v56  ;;  %v11773_v7 = vpop.eup %11772  ;;  %v874_v30 = vadd.f32 %v12498_v0, %v873_v17 }
  0xd8   : > { %v12530_v14 = vadd.f32 1.0, %v11773_v7 }
  0xd9   : > { %11774 = vpow2.f32 %v10592_v60  ;;  %v878_v47 = vsel %vm12582_vm10, %v12498_v0, %v874_v30 }
  0xda   : > { %11776 = vrcp.f32 %v12504_v1  ;;  %v926_v43 = vand.u32 2147483648, %v12530_v14  ;;  %vm920_vm7 = vweird.f32 %v12530_v14 }
  0xdc   : > { %v12353_v33 = vpop.f32.mrf.mxu1 }
  0xdd   : > { %v12496_v63 = vadd.f32 %v12373_v34, %v12353_v33 }
  0xdf   : > { %10582 = vmatmul.msk.bf16.gmra.mxu1 %vm585_vm2, %v11560_v32  ;;  %v10593_v4 = vmul.f32 -1.442695, %v12496_v63  ;;  %v11775_v12 = vpop.eup %11774  ;;  %v888_v32 = vmul.f32 %v12509_v5, %v887_v22 }
  0xe0   : > { %v12541_v18 = vadd.f32 1.0, %v11775_v12  ;;  %v12543_v20 = vpop.eup %11776 }
  0xe1   : > { %11778 = vpow2.f32 %v10593_v4  ;;  %v901_v33 = vmul.f32 %v12543_v20, %v12504_v1  ;;  %vm906_vm1 = vweird.f32 %v12543_v20 }
  0xe2   : > { %11780 = vrcp.f32 %v12530_v14  ;;  %vm935_vm10 = vweird.f32 %v12541_v18 }
  0xe3   : > { %v902_v50 = vsub.f32 1.0, %v901_v33 }
  0xe4   : > { %v12377_v35 = vpop.f32.mrf.mxu1 }
  0xe5   : > { %v12521_v9 = vadd.f32 %v12373_v34, %v12377_v35 }
  0xe7   : > { %v10594_v15 = vmul.f32 -1.442695, %v12521_v9  ;;  %v11779_v23 = vpop.eup %11778 }
  0xe8   : > { %v12572_v35 = vadd.f32 1.0, %v11779_v23  ;;  %v12578_v38 = vpop.eup %11780 }
  0xe9   : > { %11782 = vpow2.f32 %v10594_v15  ;;  %v916_v62 = vmul.f32 %v12578_v38, %v12530_v14  ;;  %v909_v15 = vand.u32 2147483647, %v12504_v1  ;;  %vm921_vm6 = vweird.f32 %v12578_v38 }
  0xea   : > { %11784 = vrcp.f32 %v12541_v18 }
  0xeb   : > { %11786 = vrcp.f32 %v12572_v35  ;;  %v917_v12 = vsub.f32 1.0, %v916_v62  ;;  %vm12677_vm4 = vcmp.eq.f32.partialorder %v909_v15, 8.507059e+37 }
  0xec   : > { %v12405_v40 = vpop.f32.mrf.mxu1 }
  0xed   : > { %v12559_v28 = vadd.f32 %v12373_v34, %v12405_v40  ;;  %v868_v40 = vsel %vm865_vm8, %v867_v31, %v863_v29  ;;  %v918_v30 = vmul.f32 %v12578_v38, %v917_v12  ;;  %vm12722_vm8 = vmor %vm920_vm7, %vm921_vm6 }
  0xee   : > { %v12604_v58 = vmul.f32 %v868_v40, %v12387_v36 }
  0xef   : > { %10583 = vmatmul.msk.bf16.gmra.mxu1 %vm585_vm2, %v11561_v37  ;;  %v881_v37 = vand.u32 2147483648, %v12459_v52  ;;  %v10595_v45 = vmul.f32 -1.442695, %v12559_v28  ;;  %v11783_v48 = vpop.eup %11782 }
  0xf0   : > { %v12601_v57 = vpop.eup %11784  ;;  %v12623_v3 = vadd.f32 1.0, %v11783_v48  ;;  %v1368_v27 = vsel %vm1367_vm15, %v12604_v58, 0.0 }
  0xf1   : > { %v882_v60 = vor.u32 1.1754944e-38, %v881_v37  ;;  %11788 = vpow2.f32 %v10595_v45  ;;  %v931_v7 = vmul.f32 %v12601_v57, %v12541_v18  ;;  %v12641_v13 = vpop.eup %11786  ;;  %vm936_vm9 = vweird.f32 %v12601_v57 }
  0xf2   : > { %11790 = vrcp.f32 %v12623_v3  ;;  %v946_v31 = vmul.f32 %v12641_v13, %v12572_v35  ;;  %vm951_vm13 = vweird.f32 %v12641_v13  ;;  %v956_v37 = vand.u32 2147483648, %v12572_v35 }
  0xf3   : > { %v883_v36 = vsel %vm880_vm12, %v882_v60, %v878_v47  ;;  %vm12753_vm12 = vmor %vm935_vm10, %vm936_vm9 }
  0xf4   : > { %v12430_v44 = vpop.f32.mrf.mxu1  ;;  %v947_v60 = vsub.f32 1.0, %v946_v31 }
  0xf5   : > { %v12598_v52 = vadd.f32 %v12373_v34, %v12430_v44  ;;  %v894_v44 = vand.u32 2147483647, %v12471_v55 }
  0xf7   : > { %v10596_v10 = vmul.f32 -1.442695, %v12598_v52  ;;  %vm895_vm0 = vcmp.eq.f32.partialorder %v894_v44, 8.507059e+37  ;;  %v11789_v22 = vpop.eup %11788 }
  0xf8   : > { %v12691_v45 = vadd.f32 1.0, %v11789_v22 }
  0xf9   : > { %11792 = vpow2.f32 %v10596_v10 }
  0xfa   : > { %vm980_vm9 = vweird.f32 %v12691_v45 }
  0xfc   : > { %v12454_v51 = vpop.f32.mrf.mxu1 }
  0xfd   : > { %v12627_v4 = vadd.f32 %v12373_v34, %v12454_v51  ;;  %v1437_v51 = vmul.f32 %v12604_v58, %v12604_v58 }
  0xff   : > { %10584 = vmatmul.msk.bf16.gmra.mxu1 %vm585_vm2, %v11562_v49  ;;  %v889_v49 = vadd.f32 %v12509_v5, %v888_v32  ;;  %v10597_v21 = vmul.f32 -1.442695, %v12627_v4  ;;  %v1469_v29 = vsel %vm1367_vm15, %v1437_v51, 0.0  ;;  %v948_v51 = vmul.f32 %v12641_v13, %v947_v60 }
 0x101   : > { %v893_v55 = vsel %vm12619_vm14, %v12509_v5, %v889_v49  ;;  %v12646_v5 = vmul.f32 %v883_v36, %v12403_v39  ;;  %v932_v39 = vsub.f32 1.0, %v931_v7  ;;  %11794 = vpow2.f32 %v10597_v21  ;;  %v12700_v49 = vpop.eup %11790 }
 0x102   : > { %v898_v17 = vsel %vm895_vm0, %v897_v11, %v893_v55  ;;  %v11793_v61 = vpop.eup %11792  ;;  %v927_v55 = vor.u32 1.1754944e-38, %v926_v43  ;;  %11796 = vrcp.f32 %v12691_v45  ;;  %v961_v11 = vmul.f32 %v12700_v49, %v12623_v3 }
 0x103   : > { %v1438_v33 = vmul.f32 %v12646_v5, %v12646_v5  ;;  %v12682_v40 = vmul.f32 %v898_v17, %v12419_v42  ;;  %v912_v42 = vor.u32 1.1754944e-38, %v911_v16  ;;  %v933_v47 = vmul.f32 %v12601_v57, %v932_v39 }
 0x104   : > { %v12484_v59 = vpop.f32.mrf.mxu1  ;;  %v12735_v12 = vadd.f32 1.0, %v11793_v61  ;;  %v939_v17 = vand.u32 2147483647, %v12541_v18  ;;  %v949_v31 = vadd.f32 %v12641_v13, %v948_v51  ;;  %vm950_vm0 = vweird.f32 %v12572_v35 }
 0x105   : > { %v12658_v25 = vadd.f32 %v12373_v34, %v12484_v59  ;;  %v1369_v59 = vsel %vm1367_vm15, %v12646_v5, 0.0  ;;  %v1470_v62 = vsel %vm1367_vm15, %v1438_v33, 0.0  ;;  %v1371_v36 = vsel %vm1367_vm15, %v12682_v40, 0.0 }
 0x106   : > { %v1471_v16 = vadd.f32 %v1470_v62, %v1469_v29  ;;  %v1439_v22 = vmul.f32 %v12682_v40, %v12682_v40  ;;  %vm940_vm14 = vcmp.eq.f32.partialorder %v939_v17, 8.507059e+37  ;;  %v957_v62 = vor.u32 1.1754944e-38, %v956_v37 }
 0x107   : > { %v10598_v48 = vmul.f32 -1.442695, %v12658_v25  ;;  %v11795_v7 = vpop.eup %11794  ;;  %v969_v17 = vand.u32 2147483647, %v12623_v3 }
 0x109   : > { %11798 = vpow2.f32 %v10598_v48  ;;  %vm970_vm7 = vcmp.eq.f32.partialorder %v969_v17, 8.507059e+37 }
 0x10a   : > { %11800 = vrcp.f32 %v12735_v12 }
 0x10c   : > { %v12516_v8 = vpop.f32.mrf.mxu1 }
 0x10d   : > { %v12711_v44 = vadd.f32 %v12373_v34, %v12516_v8  ;;  %v934_v8 = vadd.f32 %v12601_v57, %v933_v47 }
 0x10f   : > { %10585 = vmatmul.msk.bf16.gmra.mxu1 %vm585_vm2, %v11563_v6  ;;  %v903_v6 = vmul.f32 %v12543_v20, %v902_v50  ;;  %v1370_v50 = vadd.f32 %v1369_v59, %v1368_v27  ;;  %v10599_v21 = vmul.f32 -1.442695, %v12711_v44  ;;  %v938_v27 = vsel %vm12753_vm12, %v12601_v57, %v934_v8 }
 0x110   : > { %v962_v59 = vsub.f32 1.0, %v961_v11  ;;  %vm995_vm12 = vweird.f32 %v12735_v12 }
 0x111   : > { %v904_v23 = vadd.f32 %v12543_v20, %v903_v6  ;;  %v941_v6 = vand.u32 2147483648, %v12541_v18  ;;  %11802 = vpow2.f32 %v10599_v21  ;;  %v971_v21 = vand.u32 2147483648, %v12623_v3 }
 0x113   : > { %v942_v29 = vor.u32 1.1754944e-38, %v941_v6 }
 0x114   : > { %v12549_v26 = vpop.f32.mrf.mxu1 }
 0x115   : > { %v12774_v57 = vadd.f32 %v12373_v34, %v12549_v26  ;;  %v943_v43 = vsel %vm940_vm14, %v942_v29, %v938_v27  ;;  %v1001_v29 = vand.u32 2147483648, %v12735_v12 }
 0x116   : > { %v12810_v61 = vmul.f32 %v943_v43, %v12475_v56  ;;  %v972_v43 = vor.u32 1.1754944e-38, %v971_v21 }
 0x118   : > { %v1377_v37 = vsel %vm1367_vm15, %v12810_v61, 0.0 }
 0x11c   : > { %v12611_v0 = vpop.f32.mrf.mxu1 }
 0x11d   : > { %v12829_v51 = vadd.f32 %v12373_v34, %v12611_v0 }
 0x11f   : > { %10586 = vmatmul.msk.bf16.gmra.mxu1 %vm585_vm2, %v11564_v53  ;;  %vm905_vm2 = vweird.f32 %v12504_v1  ;;  %v919_v53 = vadd.f32 %v12578_v38, %v918_v30  ;;  %v12762_v30 = vadd.f32 1.0, %v11795_v7 }
 0x120   : > { %vm12686_vm5 = vmor %vm905_vm2, %vm906_vm1 }
 0x121   : > { %v908_v1 = vsel %vm12686_vm5, %v12543_v20, %v904_v23  ;;  %v924_v20 = vand.u32 2147483647, %v12530_v14  ;;  %v923_v10 = vsel %vm12722_vm8, %v12578_v38, %v919_v53  ;;  %v1372_v38 = vadd.f32 %v1371_v36, %v1370_v50  ;;  %vm12792_vm1 = vmor %vm950_vm0, %vm951_vm13 }
 0x122   : > { %v913_v2 = vsel %vm12677_vm4, %v912_v42, %v908_v1  ;;  %v954_v1 = vand.u32 2147483647, %v12572_v35  ;;  %v1472_v42 = vsel %vm1367_vm15, %v1439_v22, 0.0  ;;  %11804 = vrcp.f32 %v12762_v30 }
 0x123   : > { %v12749_v23 = vmul.f32 %v913_v2, %v12442_v46  ;;  %vm925_vm11 = vcmp.eq.f32.partialorder %v924_v20, 8.507059e+37  ;;  %v12764_v46 = vpop.eup %11796  ;;  %v953_v35 = vsel %vm12792_vm1, %v12641_v13, %v949_v31  ;;  %v963_v50 = vmul.f32 %v12700_v49, %v962_v59 }
 0x124   : > { %v12668_v32 = vpop.f32.mrf.mxu1  ;;  %v928_v18 = vsel %vm925_vm11, %v927_v55, %v923_v10  ;;  %v11799_v33 = vpop.eup %11798  ;;  %v976_v53 = vmul.f32 %v12764_v46, %v12691_v45  ;;  %v10600_v20 = vmul.f32 -1.442695, %v12774_v57  ;;  %v1473_v13 = vadd.f32 %v1472_v42, %v1471_v16 }
 0x125   : > { %v1440_v41 = vmul.f32 %v12749_v23, %v12749_v23  ;;  %v1373_v26 = vsel %vm1367_vm15, %v12749_v23, 0.0  ;;  %v12788_v47 = vmul.f32 %v928_v18, %v12463_v54  ;;  %v12803_v60 = vadd.f32 1.0, %v11799_v33  ;;  %v12813_v36 = vpop.eup %11800 }
 0x126   : > { %v1374_v2 = vadd.f32 %v1373_v26, %v1372_v38  ;;  %vm955_vm2 = vcmp.eq.f32.partialorder %v954_v1, 8.507059e+37  ;;  %v11803_v14 = vpop.eup %11802  ;;  %vm966_vm4 = vweird.f32 %v12700_v49  ;;  %v964_v7 = vadd.f32 %v12700_v49, %v963_v50 }
 0x127   : > { %v1474_v55 = vsel %vm1367_vm15, %v1440_v41, 0.0  ;;  %v1375_v8 = vsel %vm1367_vm15, %v12788_v47, 0.0  ;;  %v1441_v56 = vmul.f32 %v12788_v47, %v12788_v47  ;;  %v958_v6 = vsel %vm955_vm2, %v957_v62, %v953_v35 }
 0x128   : > { %v977_v10 = vsub.f32 1.0, %v976_v53  ;;  %11806 = vrcp.f32 %v12803_v60  ;;  %v12831_v11 = vpop.eup %11804  ;;  %v1442_v16 = vmul.f32 %v12810_v61, %v12810_v61  ;;  %vm965_vm5 = vweird.f32 %v12623_v3 }
 0x129   : > { %11808 = vpow2.f32 %v10600_v20  ;;  %v991_v38 = vmul.f32 %v12813_v36, %v12735_v12  ;;  %v12842_v0 = vadd.f32 1.0, %v11803_v14  ;;  %v1475_v22 = vadd.f32 %v1474_v55, %v1473_v13  ;;  %vm12852_vm6 = vmor %vm965_vm5, %vm966_vm4 }
 0x12a   : > { %v1376_v39 = vadd.f32 %v1375_v8, %v1374_v2  ;;  %v1476_v18 = vsel %vm1367_vm15, %v1441_v56, 0.0  ;;  %v12848_v27 = vmul.f32 %v958_v6, %v12496_v63  ;;  %v968_v3 = vsel %vm12852_vm6, %v12700_v49, %v964_v7 }
 0x12b   : > { %v978_v31 = vmul.f32 %v12764_v46, %v977_v10  ;;  %v1006_v59 = vmul.f32 %v12831_v11, %v12762_v30  ;;  %v10601_v63 = vmul.f32 -1.442695, %v12829_v51  ;;  %v1478_v41 = vsel %vm1367_vm15, %v1442_v16, 0.0 }
 0x12c   : > { %v12737_v15 = vpop.f32.mrf.mxu1  ;;  %v984_v49 = vand.u32 2147483647, %v12691_v45  ;;  %v986_v42 = vand.u32 2147483648, %v12691_v45  ;;  %v992_v26 = vsub.f32 1.0, %v991_v38  ;;  %11810 = vrcp.f32 %v12842_v0 }
 0x12d   : > { %v1443_v35 = vmul.f32 %v12848_v27, %v12848_v27  ;;  %v973_v50 = vsel %vm970_vm7, %v972_v43, %v968_v3  ;;  %vm981_vm8 = vweird.f32 %v12764_v46  ;;  %v12884_v53 = vadd.f32 %v12373_v34, %v12668_v32 }
 0x12e   : > { %v12870_v1 = vpop.eup %11806  ;;  %v979_v62 = vadd.f32 %v12764_v46, %v978_v31  ;;  %v1007_v20 = vsub.f32 1.0, %v1006_v59  ;;  %11812 = vpow2.f32 %v10601_v63  ;;  %v12889_v13 = vadd.f32 %v12373_v34, %v12737_v15  ;;  %vm12912_vm11 = vmor %vm980_vm9, %vm981_vm8 }
 0x12f   : > { %v11809_v48 = vpop.eup %11808  ;;  %v1477_v2 = vadd.f32 %v1476_v18, %v1475_v22  ;;  %v1378_v55 = vadd.f32 %v1377_v37, %v1376_v39  ;;  %v1021_v14 = vmul.f32 %v12870_v1, %v12803_v60  ;;  %v12899_v32 = vmul.f32 %v973_v50, %v12521_v9 }
 0x130   : > { %vm12901_vm10 = vcmp.eq.f32.partialorder %v984_v49, 8.507059e+37  ;;  %v993_v15 = vmul.f32 %v12813_v36, %v992_v26  ;;  %v12906_v56 = vadd.f32 1.0, %v11809_v48  ;;  %v1379_v45 = vsel %vm1367_vm15, %v12848_v27, 0.0 }
 0x131   : > { %v1479_v6 = vadd.f32 %v1478_v41, %v1477_v2  ;;  %v987_v9 = vor.u32 1.1754944e-38, %v986_v42  ;;  %v10602_v10 = vmul.f32 -1.442695, %v12884_v53  ;;  %v1480_v17 = vsel %vm1367_vm15, %v1443_v35, 0.0 }
 0x132   : > { %v12917_v16 = vpop.eup %11810  ;;  %v983_v21 = vsel %vm12912_vm11, %v12764_v46, %v979_v62  ;;  %v1008_v38 = vmul.f32 %v12831_v11, %v1007_v20  ;;  %v10603_v22 = vmul.f32 -1.442695, %v12889_v13  ;;  %v999_v18 = vand.u32 2147483647, %v12735_v12 }
 0x133   : > { %v1022_v3 = vsub.f32 1.0, %v1021_v14  ;;  %v1444_v46 = vmul.f32 %v12899_v32, %v12899_v32  ;;  %v994_v59 = vadd.f32 %v12813_v36, %v993_v15  ;;  %vm996_vm13 = vweird.f32 %v12813_v36 }
 0x134   : > { %v12805_v54 = vpop.f32.mrf.mxu1  ;;  %v11813_v31 = vpop.eup %11812  ;;  %11814 = vrcp.f32 %v12906_v56  ;;  %v988_v63 = vsel %vm12901_vm10, %v987_v9, %v983_v21  ;;  %v1016_v37 = vand.u32 2147483648, %v12762_v30  ;;  %v1036_v41 = vmul.f32 %v12917_v16, %v12842_v0  ;;  %vm12956_vm0 = vmor %vm995_vm12, %vm996_vm13 }
 0x135   : > { %11816 = vpow2.f32 %v10602_v10  ;;  %v1009_v43 = vadd.f32 %v12831_v11, %v1008_v38  ;;  %vm1011_vm14 = vweird.f32 %v12831_v11  ;;  %v12952_v49 = vadd.f32 %v12373_v34, %v12805_v54 }
 0x136   : > { %11818 = vpow2.f32 %v10603_v22  ;;  %v1380_v42 = vadd.f32 %v1379_v45, %v1378_v55  ;;  %v1481_v26 = vadd.f32 %v1480_v17, %v1479_v6  ;;  %v1023_v35 = vmul.f32 %v12870_v1, %v1022_v3 }
 0x137   : > { %v12961_v50 = vadd.f32 1.0, %v11813_v31  ;;  %v12964_v62 = vmul.f32 %v988_v63, %v12559_v28  ;;  %v998_v54 = vsel %vm12956_vm0, %v12813_v36, %v994_v59  ;;  %vm1010_vm1 = vweird.f32 %v12762_v30 }
 0x138   : > { %v1014_v20 = vand.u32 2147483647, %v12762_v30  ;;  %v1381_v12 = vsel %vm1367_vm15, %v12899_v32, 0.0  ;;  %vm1000_vm2 = vcmp.eq.f32.partialorder %v999_v18, 8.507059e+37  ;;  %v1002_v2 = vor.u32 1.1754944e-38, %v1001_v29  ;;  %vm12977_vm4 = vmor %vm1010_vm1, %vm1011_vm14 }
 0x139   : > { %v1037_v55 = vsub.f32 1.0, %v1036_v41  ;;  %v1482_v30 = vsel %vm1367_vm15, %v1444_v46, 0.0  ;;  %v1013_v14 = vsel %vm12977_vm4, %v12831_v11, %v1009_v43  ;;  %v1017_v8 = vor.u32 1.1754944e-38, %v1016_v37 }
 0x13a   : > { %v12981_v36 = vpop.eup %11814  ;;  %v10604_v15 = vmul.f32 -1.442695, %v12952_v49  ;;  %v1003_v7 = vsel %vm1000_vm2, %v1002_v2, %v998_v54  ;;  %v1024_v9 = vadd.f32 %v12870_v1, %v1023_v35  ;;  %vm1026_vm5 = vweird.f32 %v12870_v1 }
 0x13b   : > { %v11817_v45 = vpop.eup %11816  ;;  %11820 = vrcp.f32 %v12961_v50  ;;  %v1445_v11 = vmul.f32 %v12964_v62, %v12964_v62  ;;  %vm1015_vm6 = vcmp.eq.f32.partialorder %v1014_v20, 8.507059e+37  ;;  %v1031_v17 = vand.u32 2147483648, %v12803_v60 }
 0x13c   : > { %v12865_v33 = vpop.f32.mrf.mxu1  ;;  %v11819_v10 = vpop.eup %11818  ;;  %v1018_v38 = vsel %vm1015_vm6, %v1017_v8, %v1013_v14  ;;  %vm1025_vm7 = vweird.f32 %v12803_v60  ;;  %v1029_v22 = vand.u32 2147483647, %v12803_v60  ;;  %v1038_v18 = vmul.f32 %v12917_v16, %v1037_v55 }
 0x13d   : > { %v13002_v21 = vadd.f32 %v12373_v34, %v12865_v33  ;;  %v1382_v29 = vadd.f32 %v1381_v12, %v1380_v42  ;;  %v13010_v3 = vmul.f32 %v1003_v7, %v12598_v52  ;;  %vm13014_vm8 = vmor %vm1025_vm7, %vm1026_vm5  ;;  %v13018_v33 = vadd.f32 1.0, %v11817_v45 }
 0x13e   : > { %11822 = vpow2.f32 %v10604_v15  ;;  %v1483_v46 = vadd.f32 %v1482_v30, %v1481_v26  ;;  %v1028_v60 = vsel %vm13014_vm8, %v12870_v1, %v1024_v9  ;;  %v1051_v52 = vmul.f32 %v12981_v36, %v12906_v56 }
 0x13f   : > { %v13027_v59 = vadd.f32 1.0, %v11819_v10  ;;  %v1383_v63 = vsel %vm1367_vm15, %v12964_v62, 0.0  ;;  %v13034_v37 = vmul.f32 %v1018_v38, %v12627_v4  ;;  %v1032_v41 = vor.u32 1.1754944e-38, %v1031_v17 }
 0x140   : > { %v10605_v43 = vmul.f32 -1.442695, %v13002_v21  ;;  %v1484_v1 = vsel %vm1367_vm15, %v1445_v11, 0.0  ;;  %vm1030_vm9 = vcmp.eq.f32.partialorder %v1029_v22, 8.507059e+37  ;;  %v1039_v26 = vadd.f32 %v12917_v16, %v1038_v18 }
 0x141   : > { %v13037_v42 = vpop.eup %11820  ;;  %vm1041_vm10 = vweird.f32 %v12917_v16  ;;  %v1446_v48 = vmul.f32 %v13010_v3, %v13010_v3  ;;  %v1033_v4 = vsel %vm1030_vm9, %v1032_v41, %v1028_v60  ;;  %v1046_v35 = vand.u32 2147483648, %v12842_v0 }
 0x142   : > { %11824 = vrcp.f32 %v13018_v33  ;;  %vm1040_vm11 = vweird.f32 %v12842_v0  ;;  %v1044_v20 = vand.u32 2147483647, %v12842_v0  ;;  %v1052_v12 = vsub.f32 1.0, %v1051_v52 }
 0x143   : > { %11826 = vrcp.f32 %v13027_v59  ;;  %v1385_v28 = vsel %vm1367_vm15, %v13010_v3, 0.0  ;;  %v1447_v55 = vmul.f32 %v13034_v37, %v13034_v37  ;;  %vm13059_vm12 = vmor %vm1040_vm11, %vm1041_vm10  ;;  %v1066_v14 = vmul.f32 %v13037_v42, %v12961_v50 }
 0x144   : > { %v12927_v39 = vpop.f32.mrf.mxu1  ;;  %v11823_v2 = vpop.eup %11822  ;;  %11828 = vpow2.f32 %v10605_v43  ;;  %v1384_v0 = vadd.f32 %v1383_v63, %v1382_v29  ;;  %v13068_v8 = vmul.f32 %v1033_v4, %v12658_v25  ;;  %v1043_v15 = vsel %vm13059_vm12, %v12917_v16, %v1039_v26  ;;  %v13105_v43 = vld [vmem:[%s17115_s7] ss:$0 sm:$0xff] }
 0x145   : > { %v1485_v45 = vadd.f32 %v1484_v1, %v1483_v46  ;;  %v1486_v7 = vsel %vm1367_vm15, %v1446_v48, 0.0  ;;  %v1047_v9 = vor.u32 1.1754944e-38, %v1046_v35  ;;  %v13078_v10 = vadd.f32 %v12373_v34, %v12927_v39 }
 0x146   : > { %v1386_v11 = vadd.f32 %v1385_v28, %v1384_v0  ;;  %vm1045_vm13 = vcmp.eq.f32.partialorder %v1044_v20, 8.507059e+37  ;;  %v1053_v25 = vmul.f32 %v12981_v36, %v1052_v12  ;;  %v13081_v17 = vadd.f32 1.0, %v11823_v2 }
 0x147   : > { %v1387_v16 = vsel %vm1367_vm15, %v13034_v37, 0.0  ;;  %v1488_v22 = vsel %vm1367_vm15, %v1447_v55, 0.0  ;;  %v1048_v18 = vsel %vm1045_vm13, %v1047_v9, %v1043_v15  ;;  %v1067_v29 = vsub.f32 1.0, %v1066_v14 }
 0x148   : > { %v13083_v38 = vpop.eup %11824  ;;  %v1487_v39 = vadd.f32 %v1486_v7, %v1485_v45  ;;  %v1389_v31 = vsel %vm1367_vm15, %v13068_v8, 0.0  ;;  %v1059_v46 = vand.u32 2147483647, %v12906_v56  ;;  %v1061_v60 = vand.u32 2147483648, %v12906_v56 }
 0x149   : > { %v13090_v34 = vpop.eup %11826  ;;  %v1448_v63 = vmul.f32 %v13068_v8, %v13068_v8  ;;  %vm1056_vm14 = vweird.f32 %v12981_v36  ;;  %v10606_v41 = vmul.f32 -1.442695, %v13078_v10  ;;  %v13114_v48 = vmul.f32 %v1048_v18, %v12711_v44 }
 0x14a   : > { %v11829_v52 = vpop.eup %11828  ;;  %v1054_v4 = vadd.f32 %v12981_v36, %v1053_v25  ;;  %v1081_v35 = vmul.f32 %v13083_v38, %v13018_v33  ;;  %11830 = vrcp.f32 %v13081_v17  ;;  %v1388_v20 = vadd.f32 %v1387_v16, %v1386_v11 }
 0x14b   : > { %v1096_v12 = vmul.f32 %v13090_v34, %v13027_v59  ;;  %v1489_v44 = vadd.f32 %v1488_v22, %v1487_v39  ;;  %vm1055_vm0 = vweird.f32 %v12906_v56  ;;  %vm13129_vm1 = vcmp.eq.f32.partialorder %v1059_v46, 8.507059e+37 }
 0x14c   : > { %v12990_v6 = vpop.f32.mrf.mxu1  ;;  %v13133_v55 = vadd.f32 1.0, %v11829_v52  ;;  %v1390_v30 = vadd.f32 %v1389_v31, %v1388_v20  ;;  %vm13139_vm2 = vmor %vm1055_vm0, %vm1056_vm14  ;;  %11832 = vpow2.f32 %v10606_v41  ;;  %v1490_v0 = vsel %vm1367_vm15, %v1448_v63, 0.0 }
 0x14d   : > { %v13109_v1 = vadd.f32 %v13105_v43, %v12990_v6  ;;  %v1068_v6 = vmul.f32 %v13037_v42, %v1067_v29  ;;  %v1391_v15 = vsel %vm1367_vm15, %v13114_v48, 0.0  ;;  %v1058_v45 = vsel %vm13139_vm2, %v12981_v36, %v1054_v4 }
 0x14e   : > { %v1082_v7 = vsub.f32 1.0, %v1081_v35  ;;  %vm1071_vm4 = vweird.f32 %v13037_v42  ;;  %v1097_v11 = vsub.f32 1.0, %v1096_v12  ;;  %v1074_v22 = vand.u32 2147483647, %v12961_v50 }
 0x14f   : > { %v10607_v56 = vmul.f32 -1.442695, %v13109_v1  ;;  %v1069_v9 = vadd.f32 %v13037_v42, %v1068_v6  ;;  %v1076_v18 = vand.u32 2147483648, %v12961_v50  ;;  %11834 = vrcp.f32 %v13133_v55 }
 0x150   : > { %v13155_v16 = vpop.eup %11830  ;;  %v1449_v29 = vmul.f32 %v13114_v48, %v13114_v48  ;;  %vm1070_vm5 = vweird.f32 %v12961_v50  ;;  %v1491_v46 = vadd.f32 %v1490_v0, %v1489_v44  ;;  %v1083_v24 = vmul.f32 %v13083_v38, %v1082_v7 }
 0x151   : > { %11836 = vpow2.f32 %v10607_v56  ;;  %vm13174_vm6 = vmor %vm1070_vm5, %vm1071_vm4  ;;  %v1111_v50 = vmul.f32 %v13155_v16, %v13081_v17  ;;  %vm1075_vm7 = vcmp.eq.f32.partialorder %v1074_v22, 8.507059e+37  ;;  %v1077_v35 = vor.u32 1.1754944e-38, %v1076_v18 }
 0x152   : > { %v11833_v63 = vpop.eup %11832  ;;  %v1073_v41 = vsel %vm13174_vm6, %v13037_v42, %v1069_v9  ;;  %v1492_v6 = vsel %vm1367_vm15, %v1449_v29, 0.0  ;;  %vm1085_vm8 = vweird.f32 %v13018_v33  ;;  %v1089_v12 = vand.u32 2147483647, %v13018_v33 }
 0x153   : > { %v1078_v28 = vsel %vm1075_vm7, %v1077_v35, %v1073_v41  ;;  %vm1086_vm9 = vweird.f32 %v13083_v38  ;;  %vm1101_vm10 = vweird.f32 %v13090_v34  ;;  %v1112_v0 = vsub.f32 1.0, %v1111_v50 }
 0x154   : > { %v699_v54 = vpop.f32.mrf.mxu1  ;;  %v1106_v7 = vand.u32 2147483648, %v13027_v59  ;;  %vm13214_vm11 = vmor %vm1085_vm8, %vm1086_vm9  ;;  %vm1100_vm12 = vweird.f32 %v13027_v59  ;;  %v1104_v22 = vand.u32 2147483647, %v13027_v59  ;;  %v1493_v52 = vadd.f32 %v1492_v6, %v1491_v46 }
 0x155   : > { %v13126_v2 = vadd.f32 %v13105_v43, %v699_v54  ;;  %v1062_v54 = vor.u32 1.1754944e-38, %v1061_v60  ;;  %v1392_v60 = vadd.f32 %v1391_v15, %v1390_v30  ;;  %v13195_v44 = vpop.eup %11834  ;;  %v1084_v30 = vadd.f32 %v13083_v38, %v1083_v24  ;;  %vm13224_vm13 = vmor %vm1100_vm12, %vm1101_vm10 }
 0x156   : > { %vm1090_vm14 = vcmp.eq.f32.partialorder %v1089_v12, 8.507059e+37  ;;  %v1107_v41 = vor.u32 1.1754944e-38, %v1106_v7  ;;  %vm1105_vm0 = vcmp.eq.f32.partialorder %v1104_v22, 8.507059e+37  ;;  %v1119_v12 = vand.u32 2147483647, %v13081_v17 }
 0x157   : > { %v10608_v25 = vmul.f32 -1.442695, %v13126_v2  ;;  %v1063_v39 = vsel %vm13129_vm1, %v1062_v54, %v1058_v45  ;;  %v11837_v14 = vpop.eup %11836  ;;  %v1091_v54 = vand.u32 2147483648, %v13018_v33  ;;  %v1126_v33 = vmul.f32 %v13195_v44, %v13133_v55 }
 0x158   : > { %v13186_v4 = vmul.f32 %v1063_v39, %v12774_v57  ;;  %v13199_v57 = vadd.f32 1.0, %v11833_v63  ;;  %v1088_v39 = vsel %vm13214_vm11, %v13083_v38, %v1084_v30  ;;  %v1113_v63 = vmul.f32 %v13155_v16, %v1112_v0 }
 0x159   : > { %11838 = vpow2.f32 %v10608_v25  ;;  %v1092_v59 = vor.u32 1.1754944e-38, %v1091_v54  ;;  %vm1116_vm1 = vweird.f32 %v13155_v16  ;;  %v1121_v54 = vand.u32 2147483648, %v13081_v17 }
 0x15a   : > { %v1393_v15 = vsel %vm1367_vm15, %v13186_v4, 0.0  ;;  %v1450_v45 = vmul.f32 %v13186_v4, %v13186_v4  ;;  %vm1115_vm2 = vweird.f32 %v13081_v17  ;;  %vm1120_vm5 = vcmp.eq.f32.partialorder %v1119_v12, 8.507059e+37 }
 0x15b   : > { %v1394_v38 = vadd.f32 %v1393_v15, %v1392_v60  ;;  %v1093_v35 = vsel %vm1090_vm14, %v1092_v59, %v1088_v39  ;;  %v1114_v60 = vadd.f32 %v13155_v16, %v1113_v63  ;;  %vm13264_vm4 = vmor %vm1115_vm2, %vm1116_vm1  ;;  %vm1131_vm6 = vweird.f32 %v13195_v44 }
 0x15c   : > { %v702_v26 = vpop.f32.mrf.mxu1  ;;  %v1494_v50 = vsel %vm1367_vm15, %v1450_v45, 0.0  ;;  %vm1130_vm7 = vweird.f32 %v13133_v55  ;;  %vm1145_vm10 = vweird.f32 %v13199_v57 }
 0x15d   : > { %v13163_v36 = vadd.f32 %v13105_v43, %v702_v26  ;;  %v1098_v26 = vmul.f32 %v13090_v34, %v1097_v11  ;;  %v13210_v11 = vmul.f32 %v1078_v28, %v12829_v51  ;;  %v1127_v28 = vsub.f32 1.0, %v1126_v33  ;;  %vm13306_vm8 = vmor %vm1130_vm7, %vm1131_vm6 }
 0x15e   : > { %v1495_v7 = vadd.f32 %v1494_v50, %v1493_v52  ;;  %v1122_v33 = vor.u32 1.1754944e-38, %v1121_v54 }
 0x15f   : > { %v10609_v20 = vmul.f32 -1.442695, %v13163_v36  ;;  %v1099_v56 = vadd.f32 %v13090_v34, %v1098_v26  ;;  %v11839_v9 = vpop.eup %11838  ;;  %v1395_v46 = vsel %vm1367_vm15, %v13210_v11, 0.0  ;;  %v1128_v25 = vmul.f32 %v13195_v44, %v1127_v28 }
 0x160   : > { %v13237_v26 = vadd.f32 1.0, %v11839_v9  ;;  %v1396_v9 = vadd.f32 %v1395_v46, %v1394_v38 }
 0x161   : > { %11840 = vpow2.f32 %v10609_v20  ;;  %v1103_v24 = vsel %vm13224_vm13, %v13090_v34, %v1099_v56  ;;  %v1451_v34 = vmul.f32 %v13210_v11, %v13210_v11 }
 0x162   : > { %11842 = vrcp.f32 %v13199_v57  ;;  %v1108_v6 = vsel %vm1105_vm0, %v1107_v41, %v1103_v24  ;;  %v1136_v24 = vand.u32 2147483648, %v13133_v55  ;;  %v1129_v41 = vadd.f32 %v13195_v44, %v1128_v25 }
 0x163   : > { %v13259_v0 = vmul.f32 %v1108_v6, %v12889_v13  ;;  %v1118_v13 = vsel %vm13264_vm4, %v13155_v16, %v1114_v60  ;;  %vm1175_vm4 = vweird.f32 %v13237_v26 }
 0x164   : > { %v704_v31 = vpop.f32.mrf.mxu1  ;;  %v1123_v38 = vsel %vm1120_vm5, %v1122_v33, %v1118_v13  ;;  %v1137_v25 = vor.u32 1.1754944e-38, %v1136_v24  ;;  %v1151_v33 = vand.u32 2147483648, %v13199_v57 }
 0x165   : > { %v13193_v42 = vadd.f32 %v13105_v43, %v704_v31  ;;  %v13231_v31 = vadd.f32 1.0, %v11837_v14  ;;  %v13251_v14 = vmul.f32 %v1093_v35, %v12884_v53  ;;  %v1453_v16 = vmul.f32 %v13259_v0, %v13259_v0 }
 0x166   : > { %v1399_v12 = vsel %vm1367_vm15, %v13259_v0, 0.0  ;;  %v13304_v54 = vmul.f32 %v1123_v38, %v12952_v49 }
 0x167   : > { %v10610_v18 = vmul.f32 -1.442695, %v13193_v42  ;;  %v11841_v20 = vpop.eup %11840  ;;  %v1397_v51 = vsel %vm1367_vm15, %v13251_v14, 0.0  ;;  %v1452_v59 = vmul.f32 %v13251_v14, %v13251_v14  ;;  %v1500_v53 = vsel %vm1367_vm15, %v1453_v16, 0.0 }
 0x168   : > { %v13248_v30 = vpop.eup %11842  ;;  %v13262_v15 = vadd.f32 1.0, %v11841_v20  ;;  %v1398_v28 = vadd.f32 %v1397_v51, %v1396_v9  ;;  %v1149_v51 = vand.u32 2147483647, %v13199_v57  ;;  %vm1160_vm13 = vweird.f32 %v13231_v31 }
 0x169   : > { %11844 = vpow2.f32 %v10610_v18  ;;  %v1496_v18 = vsel %vm1367_vm15, %v1451_v34, 0.0  ;;  %v1141_v17 = vmul.f32 %v13248_v30, %v13199_v57  ;;  %v1134_v34 = vand.u32 2147483647, %v13133_v55 }
 0x16a   : > { %11846 = vrcp.f32 %v13231_v31  ;;  %v1497_v35 = vadd.f32 %v1496_v18, %v1495_v7  ;;  %v1498_v60 = vsel %vm1367_vm15, %v1452_v59, 0.0  ;;  %v1133_v55 = vsel %vm13306_vm8, %v13195_v44, %v1129_v41 }
 0x16b   : > { %11848 = vrcp.f32 %v13237_v26  ;;  %v1142_v20 = vsub.f32 1.0, %v1141_v17  ;;  %vm1135_vm9 = vcmp.eq.f32.partialorder %v1134_v34, 8.507059e+37  ;;  %v1401_v44 = vsel %vm1367_vm15, %v13304_v54, 0.0 }
 0x16c   : > { %v707_v29 = vpop.f32.mrf.mxu1  ;;  %11850 = vrcp.f32 %v13262_v15  ;;  %v1499_v17 = vadd.f32 %v1498_v60, %v1497_v35  ;;  %v1138_v59 = vsel %vm1135_vm9, %v1137_v25, %v1133_v55  ;;  %v1400_v38 = vadd.f32 %v1399_v12, %v1398_v28 }
 0x16d   : > { %v13256_v56 = vadd.f32 %v13105_v43, %v707_v29  ;;  %v1143_v49 = vmul.f32 %v13248_v30, %v1142_v20  ;;  %vm1146_vm11 = vweird.f32 %v13248_v30  ;;  %vm13341_vm12 = vcmp.eq.f32.partialorder %v1149_v51, 8.507059e+37 }
 0x16e   : > { %v1501_v41 = vadd.f32 %v1500_v53, %v1499_v17  ;;  %v1402_v60 = vadd.f32 %v1401_v44, %v1400_v38  ;;  %v1152_v12 = vor.u32 1.1754944e-38, %v1151_v33  ;;  %vm13352_vm14 = vmor %vm1145_vm10, %vm1146_vm11  ;;  %vm1190_vm9 = vweird.f32 %v13262_v15 }
 0x16f   : > { %v11845_v22 = vpop.eup %11844  ;;  %v10611_v52 = vmul.f32 -1.442695, %v13256_v56  ;;  %v1144_v20 = vadd.f32 %v13248_v30, %v1143_v49  ;;  %v1164_v49 = vand.u32 2147483647, %v13231_v31 }
 0x170   : > { %v13278_v39 = vpop.eup %11846  ;;  %v13293_v50 = vadd.f32 1.0, %v11845_v22 }
 0x171   : > { %v13289_v63 = vpop.eup %11848  ;;  %v1156_v46 = vmul.f32 %v13278_v39, %v13231_v31  ;;  %11852 = vpow2.f32 %v10611_v52  ;;  %v1454_v52 = vmul.f32 %v13304_v54, %v13304_v54  ;;  %v1148_v33 = vsel %vm13352_vm14, %v13248_v30, %v1144_v20 }
 0x172   : > { %v1171_v7 = vmul.f32 %v13289_v63, %v13237_v26  ;;  %11854 = vrcp.f32 %v13293_v50  ;;  %v13317_v22 = vpop.eup %11850  ;;  %vm1161_vm0 = vweird.f32 %v13278_v39  ;;  %vm1176_vm1 = vweird.f32 %v13289_v63 }
 0x173   : > { %v1157_v18 = vsub.f32 1.0, %v1156_v46  ;;  %v1186_v35 = vmul.f32 %v13317_v22, %v13262_v15  ;;  %v1181_v30 = vand.u32 2147483648, %v13237_v26  ;;  %vm13381_vm2 = vmor %vm1160_vm13, %vm1161_vm0  ;;  %vm1165_vm5 = vcmp.eq.f32.partialorder %v1164_v49, 8.507059e+37 }
 0x174   : > { %v709_v45 = vpop.f32.mrf.mxu1  ;;  %v1172_v16 = vsub.f32 1.0, %v1171_v7  ;;  %vm13393_vm6 = vmor %vm1175_vm4, %vm1176_vm1  ;;  %vm1191_vm7 = vweird.f32 %v13317_v22  ;;  %vm1205_vm13 = vweird.f32 %v13293_v50 }
 0x175   : > { %v13276_v29 = vadd.f32 %v13105_v43, %v709_v45  ;;  %v1158_v46 = vmul.f32 %v13278_v39, %v1157_v18  ;;  %v13339_v45 = vmul.f32 %v1138_v59, %v13002_v21  ;;  %v1166_v18 = vand.u32 2147483648, %v13231_v31  ;;  %vm13424_vm10 = vmor %vm1190_vm9, %vm1191_vm7 }
 0x176   : > { %v1173_v53 = vmul.f32 %v13289_v63, %v1172_v16  ;;  %v1187_v17 = vsub.f32 1.0, %v1186_v35  ;;  %v1153_v35 = vsel %vm13341_vm12, %v1152_v12, %v1148_v33 }
 0x177   : > { %v10612_v6 = vmul.f32 -1.442695, %v13276_v29  ;;  %v11853_v24 = vpop.eup %11852  ;;  %v1159_v44 = vadd.f32 %v13278_v39, %v1158_v46  ;;  %v1455_v57 = vmul.f32 %v13339_v45, %v13339_v45  ;;  %v1167_v31 = vor.u32 1.1754944e-38, %v1166_v18 }
 0x178   : > { %v13336_v34 = vpop.eup %11854  ;;  %v13348_v55 = vadd.f32 1.0, %v11853_v24  ;;  %v1174_v24 = vadd.f32 %v13289_v63, %v1173_v53  ;;  %v1188_v46 = vmul.f32 %v13317_v22, %v1187_v17 }
 0x179   : > { %11856 = vpow2.f32 %v10612_v6  ;;  %v1504_v53 = vsel %vm1367_vm15, %v1455_v57, 0.0  ;;  %vm1206_vm12 = vweird.f32 %v13336_v34 }
 0x17a   : > { %v1189_v18 = vadd.f32 %v13317_v22, %v1188_v46  ;;  %vm13463_vm14 = vmor %vm1205_vm13, %vm1206_vm12  ;;  %vm1220_vm1 = vweird.f32 %v13348_v55 }
 0x17c   : > { %v712_v9 = vpop.f32.mrf.mxu1 }
 0x17d   : > { %v13321_v13 = vadd.f32 %v13105_v43, %v712_v9  ;;  %v1502_v9 = vsel %vm1367_vm15, %v1454_v52, 0.0  ;;  %v1201_v52 = vmul.f32 %v13336_v34, %v13293_v50 }
 0x17e   : > { %v1503_v38 = vadd.f32 %v1502_v9, %v1501_v41  ;;  %v1179_v41 = vand.u32 2147483647, %v13237_v26  ;;  %v1182_v26 = vor.u32 1.1754944e-38, %v1181_v30 }
 0x17f   : > { %v10613_v6 = vmul.f32 -1.442695, %v13321_v13  ;;  %v11857_v7 = vpop.eup %11856  ;;  %v1202_v12 = vsub.f32 1.0, %v1201_v52 }
 0x180   : > { %v13370_v59 = vadd.f32 1.0, %v11857_v7  ;;  %v1163_v7 = vsel %vm13381_vm2, %v13278_v39, %v1159_v44  ;;  %v1178_v39 = vsel %vm13393_vm6, %v13289_v63, %v1174_v24  ;;  %vm1180_vm8 = vcmp.eq.f32.partialorder %v1179_v41, 8.507059e+37 }
 0x181   : > { %11858 = vpow2.f32 %v10613_v6  ;;  %v1403_v6 = vsel %vm1367_vm15, %v13339_v45, 0.0  ;;  %v1168_v49 = vsel %vm1165_vm5, %v1167_v31, %v1163_v7  ;;  %v1196_v44 = vand.u32 2147483648, %v13262_v15 }
 0x182   : > { %11860 = vrcp.f32 %v13348_v55  ;;  %v1183_v57 = vsel %vm1180_vm8, %v1182_v26, %v1178_v39  ;;  %v1203_v52 = vmul.f32 %v13336_v34, %v1202_v12  ;;  %v1404_v30 = vadd.f32 %v1403_v6, %v1402_v60 }
 0x183   : > { %v13420_v20 = vmul.f32 %v1168_v49, %v13109_v1  ;;  %v1193_v41 = vsel %vm13424_vm10, %v13317_v22, %v1189_v18  ;;  %v1197_v6 = vor.u32 1.1754944e-38, %v1196_v44  ;;  %v1209_v39 = vand.u32 2147483647, %v13293_v50 }
 0x184   : > { %v714_v25 = vpop.f32.mrf.mxu1  ;;  %v1204_v28 = vadd.f32 %v13336_v34, %v1203_v52  ;;  %vm1235_vm5 = vweird.f32 %v13370_v59 }
 0x185   : > { %v13359_v51 = vadd.f32 %v13105_v43, %v714_v25  ;;  %v13400_v25 = vmul.f32 %v1153_v35, %v13078_v10  ;;  %v1194_v10 = vand.u32 2147483647, %v13262_v15  ;;  %v1505_v35 = vadd.f32 %v1504_v53, %v1503_v38  ;;  %17188 = vst [vmem:[#allocation7_spill] sm:$0xff] %v13420_v20 }
 0x186   : > { %v13440_v38 = vmul.f32 %v1183_v57, %v13126_v2  ;;  %v1457_v22 = vmul.f32 %v13420_v20, %v13420_v20  ;;  %v1407_v49 = vsel %vm1367_vm15, %v13420_v20, 0.0  ;;  %v1208_v52 = vsel %vm13463_vm14, %v13336_v34, %v1204_v28 }
 0x187   : > { %v10614_v16 = vmul.f32 -1.442695, %v13359_v51  ;;  %v11859_v9 = vpop.eup %11858  ;;  %v1405_v7 = vsel %vm1367_vm15, %v13400_v25, 0.0  ;;  %v1456_v1 = vmul.f32 %v13400_v25, %v13400_v25  ;;  %vm1195_vm11 = vcmp.eq.f32.partialorder %v1194_v10, 8.507059e+37 }
 0x188   : > { %v13410_v33 = vpop.eup %11860  ;;  %v1198_v12 = vsel %vm1195_vm11, %v1197_v6, %v1193_v41  ;;  %v1458_v18 = vmul.f32 %v13440_v38, %v13440_v38  ;;  %v1508_v46 = vsel %vm1367_vm15, %v1457_v22, 0.0  ;;  %vm1210_vm0 = vcmp.eq.f32.partialorder %v1209_v39, 8.507059e+37 }
 0x189   : > { %11862 = vpow2.f32 %v10614_v16  ;;  %v13416_v16 = vadd.f32 1.0, %v11859_v9  ;;  %v1216_v31 = vmul.f32 %v13410_v33, %v13348_v55  ;;  %v1211_v9 = vand.u32 2147483648, %v13293_v50 }
 0x18a   : > { %11864 = vrcp.f32 %v13370_v59  ;;  %v1406_v50 = vadd.f32 %v1405_v7, %v1404_v30  ;;  %v13468_v57 = vmul.f32 %v1198_v12, %v13163_v36  ;;  %v1409_v36 = vsel %vm1367_vm15, %v13440_v38, 0.0 }
 0x18b   : > { %v1217_v44 = vsub.f32 1.0, %v1216_v31  ;;  %v1212_v41 = vor.u32 1.1754944e-38, %v1211_v9  ;;  %v1510_v30 = vsel %vm1367_vm15, %v1458_v18, 0.0  ;;  %vm1221_vm2 = vweird.f32 %v13410_v33 }
 0x18c   : > { %v717_v21 = vpop.f32.mrf.mxu1  ;;  %v1408_v20 = vadd.f32 %v1407_v49, %v1406_v50  ;;  %v1459_v12 = vmul.f32 %v13468_v57, %v13468_v57  ;;  %vm13521_vm7 = vmor %vm1220_vm1, %vm1221_vm2  ;;  %vm1250_vm10 = vweird.f32 %v13416_v16 }
 0x18d   : > { %v13408_v17 = vadd.f32 %v13105_v43, %v717_v21  ;;  %v1506_v21 = vsel %vm1367_vm15, %v1456_v1, 0.0  ;;  %v1213_v7 = vsel %vm1210_vm0, %v1212_v41, %v1208_v52  ;;  %v1218_v34 = vmul.f32 %v13410_v33, %v1217_v44 }
 0x18e   : > { %v1507_v31 = vadd.f32 %v1506_v21, %v1505_v35  ;;  %v1224_v35 = vand.u32 2147483647, %v13348_v55  ;;  %v1410_v9 = vadd.f32 %v1409_v36, %v1408_v20  ;;  %v13495_v10 = vmul.f32 %v1213_v7, %v13193_v42 }
 0x18f   : > { %v11863_v63 = vpop.eup %11862  ;;  %v10615_v24 = vmul.f32 -1.442695, %v13408_v17  ;;  %v1226_v44 = vand.u32 2147483648, %v13348_v55 }
 0x190   : > { %v13428_v15 = vpop.eup %11864  ;;  %v13435_v60 = vadd.f32 1.0, %v11863_v63  ;;  %v1509_v22 = vadd.f32 %v1508_v46, %v1507_v31  ;;  %vm13507_vm4 = vcmp.eq.f32.partialorder %v1224_v35, 8.507059e+37 }
 0x191   : > { %11866 = vpow2.f32 %v10615_v24  ;;  %v1231_v2 = vmul.f32 %v13428_v15, %v13370_v59  ;;  %vm1236_vm6 = vweird.f32 %v13428_v15 }
 0x192   : > { %11868 = vrcp.f32 %v13416_v16  ;;  %v1511_v18 = vadd.f32 %v1510_v30, %v1509_v22  ;;  %v1460_v30 = vmul.f32 %v13495_v10, %v13495_v10  ;;  %v1241_v22 = vand.u32 2147483648, %v13370_v59  ;;  %vm13542_vm8 = vmor %vm1235_vm5, %vm1236_vm6 }
 0x193   : > { %11870 = vrcp.f32 %v13435_v60  ;;  %v1232_v1 = vsub.f32 1.0, %v1231_v2  ;;  %v1411_v2 = vsel %vm1367_vm15, %v13468_v57, 0.0  ;;  %vm1265_vm1 = vweird.f32 %v13435_v60 }
 0x194   : > { %v719_v53 = vpop.f32.mrf.mxu1  ;;  %v1412_v52 = vadd.f32 %v1411_v2, %v1410_v9 }
 0x195   : > { %v13456_v26 = vadd.f32 %v13105_v43, %v719_v53  ;;  %v1233_v39 = vmul.f32 %v13428_v15, %v1232_v1 }
 0x197   : > { %v11867_v63 = vpop.eup %11866  ;;  %v10616_v24 = vmul.f32 -1.442695, %v13456_v26  ;;  %v1234_v41 = vadd.f32 %v13428_v15, %v1233_v39  ;;  %v1413_v39 = vsel %vm1367_vm15, %v13495_v10, 0.0 }
 0x198   : > { %v13475_v6 = vadd.f32 1.0, %v11867_v63  ;;  %v13477_v53 = vpop.eup %11868  ;;  %v1219_v63 = vadd.f32 %v13410_v33, %v1218_v34  ;;  %v1239_v34 = vand.u32 2147483647, %v13370_v59  ;;  %v1242_v59 = vor.u32 1.1754944e-38, %v1241_v22  ;;  %v1539_v22 = vld [vmem:[%s17116_s8 + $0x8] sm:$0xff] }
 0x199   : > { %v13484_v28 = vpop.eup %11870  ;;  %v1246_v21 = vmul.f32 %v13477_v53, %v13416_v16  ;;  %vm1251_vm11 = vweird.f32 %v13477_v53  ;;  %1557 = vmatpush.msra.mxu2 %v1539_v22  ;;  %1580 = vmatpush.msra.mxu3 %v1539_v22 }
 0x19a   : > { %11872 = vrcp.f32 %v13475_v6  ;;  %v1261_v20 = vmul.f32 %v13484_v28, %v13435_v60  ;;  %v1223_v35 = vsel %vm13521_vm7, %v13410_v33, %v1219_v63  ;;  %v1238_v33 = vsel %vm13542_vm8, %v13428_v15, %v1234_v41  ;;  %vm13593_vm14 = vmor %vm1250_vm10, %vm1251_vm11 }
 0x19b   : > { %11874 = vpow2.f32 %v10616_v24  ;;  %v1512_v24 = vsel %vm1367_vm15, %v1459_v12, 0.0  ;;  %v1247_v1 = vsub.f32 1.0, %v1246_v21  ;;  %v1227_v21 = vor.u32 1.1754944e-38, %v1226_v44 }
 0x19c   : > { %v722_v49 = vpop.f32.mrf.mxu1  ;;  %v1262_v9 = vsub.f32 1.0, %v1261_v20  ;;  %v13534_v55 = vadd.f32 %v1512_v24, %v1511_v18  ;;  %v1254_v63 = vand.u32 2147483647, %v13416_v16  ;;  %v1256_v24 = vand.u32 2147483648, %v13416_v16 }
 0x19d   : > { %v13504_v50 = vadd.f32 %v13105_v43, %v722_v49  ;;  %v1248_v18 = vmul.f32 %v13477_v53, %v1247_v1  ;;  %v1228_v20 = vsel %vm13507_vm4, %v1227_v21, %v1223_v35  ;;  %v1514_v15 = vsel %vm1367_vm15, %v1460_v30, 0.0 }
 0x19e   : > { %vm1240_vm9 = vcmp.eq.f32.partialorder %v1239_v34, 8.507059e+37  ;;  %v1263_v41 = vmul.f32 %v13484_v28, %v1262_v9  ;;  %v13572_v30 = vmul.f32 %v1228_v20, %v13256_v56  ;;  %vm13576_vm12 = vcmp.eq.f32.partialorder %v1254_v63, 8.507059e+37 }
 0x19f   : > { %v10617_v31 = vmul.f32 -1.442695, %v13504_v50  ;;  %v1243_v1 = vsel %vm1240_vm9, %v1242_v59, %v1238_v33  ;;  %v1249_v34 = vadd.f32 %v13477_v53, %v1248_v18  ;;  %v1257_v9 = vor.u32 1.1754944e-38, %v1256_v24 }
 0x1a0   : > { %v13512_v46 = vpop.eup %11872  ;;  %v13584_v56 = vmul.f32 %v1243_v1, %v13276_v29  ;;  %vm1266_vm13 = vweird.f32 %v13484_v28  ;;  %v1271_v33 = vand.u32 2147483648, %v13435_v60  ;;  %v1284_v16 = vand.u32 2147483647, %v13475_v6 }
 0x1a1   : > { %v11875_v36 = vpop.eup %11874  ;;  %v1276_v12 = vmul.f32 %v13512_v46, %v13475_v6  ;;  %11876 = vpow2.f32 %v10617_v31  ;;  %vm1281_vm0 = vweird.f32 %v13512_v46  ;;  %v1286_v20 = vand.u32 2147483648, %v13475_v6  ;;  %vm13613_vm2 = vmor %vm1265_vm1, %vm1266_vm13 }
 0x1a2   : > { %v13532_v2 = vadd.f32 1.0, %v11875_v36  ;;  %v13558_v36 = vadd.f32 %v1413_v39, %v1412_v52  ;;  %v1269_v39 = vand.u32 2147483647, %v13435_v60  ;;  %v1415_v59 = vsel %vm1367_vm15, %v13572_v30, 0.0 }
 0x1a3   : > { %v1277_v7 = vsub.f32 1.0, %v1276_v12  ;;  %v1461_v24 = vmul.f32 %v13572_v30, %v13572_v30  ;;  %vm1280_vm4 = vweird.f32 %v13475_v6  ;;  %v1462_v60 = vmul.f32 %v13584_v56, %v13584_v56 }
 0x1a4   : > { %11878 = vrcp.f32 %v13532_v2  ;;  %v724_v44 = vpop.f32.mrf.mxu1  ;;  %vm1270_vm5 = vcmp.eq.f32.partialorder %v1269_v39, 8.507059e+37  ;;  %vm13625_vm6 = vmor %vm1280_vm4, %vm1281_vm0  ;;  %vm1285_vm8 = vcmp.eq.f32.partialorder %v1284_v16, 8.507059e+37  ;;  %vm1295_vm9 = vweird.f32 %v13532_v2 }
 0x1a5   : > { %v13556_v31 = vadd.f32 %v13105_v43, %v724_v44  ;;  %v1278_v12 = vmul.f32 %v13512_v46, %v1277_v7  ;;  %v1538_v43 = vld [vmem:[%s17116_s8] sm:$0xff]  ;;  %v1264_v7 = vadd.f32 %v13484_v28, %v1263_v41  ;;  %v1253_v44 = vsel %vm13593_vm14, %v13477_v53, %v1249_v34 }
 0x1a6   : > { %1558 = vmatpush.msra.mxu2 %v1538_v43  ;;  %1581 = vmatpush.msra.mxu3 %v1538_v43  ;;  %v1258_v6 = vsel %vm13576_vm12, %v1257_v9, %v1253_v44  ;;  %v1301_v34 = vand.u32 2147483648, %v13532_v2  ;;  %v1299_v35 = vand.u32 2147483647, %v13532_v2  ;;  %v1515_v9 = vadd.f32 %v1514_v15, %v13534_v55 }
 0x1a7   : > { %v10618_v42 = vmul.f32 -1.442695, %v13556_v31  ;;  %v11877_v52 = vpop.eup %11876  ;;  %v1279_v63 = vadd.f32 %v13512_v46, %v1278_v12  ;;  %v1268_v1 = vsel %vm13613_vm2, %v13484_v28, %v1264_v7  ;;  %v1272_v12 = vor.u32 1.1754944e-38, %v1271_v33 }
 0x1a8   : > { %v13581_v21 = vadd.f32 1.0, %v11877_v52  ;;  %v1287_v28 = vor.u32 1.1754944e-38, %v1286_v20  ;;  %v1416_v44 = vadd.f32 %v1415_v59, %v13558_v36  ;;  %v1516_v16 = vsel %vm1367_vm15, %v1461_v24, 0.0 }
 0x1a9   : > { %11880 = vpow2.f32 %v10618_v42  ;;  %v1283_v43 = vsel %vm13625_vm6, %v13512_v46, %v1279_v63  ;;  %v1273_v33 = vsel %vm1270_vm5, %v1272_v12, %v1268_v1  ;;  %v13649_v20 = vmul.f32 %v1258_v6, %v13321_v13 }
 0x1aa   : > { %v11879_v49 = vpop.eup %11878  ;;  %11882 = vrcp.f32 %v13581_v21  ;;  %v1417_v55 = vsel %vm1367_vm15, %v13584_v56, 0.0  ;;  %v13656_v15 = vmul.f32 %v1273_v33, %v13359_v51  ;;  %v1302_v41 = vor.u32 1.1754944e-38, %v1301_v34 }
 0x1ab   : > { %v1291_v29 = vmul.f32 %v11879_v49, %v13532_v2  ;;  %vm1296_vm7 = vweird.f32 %v11879_v49  ;;  %v1518_v1 = vsel %vm1367_vm15, %v1462_v60, 0.0  ;;  %vm1300_vm11 = vcmp.eq.f32.partialorder %v1299_v35, 8.507059e+37 }
 0x1ac   : > { %vm13640_vm10 = vmor %vm1295_vm9, %vm1296_vm7  ;;  %v1316_v13 = vand.u32 2147483648, %v13581_v21  ;;  %v1517_v12 = vadd.f32 %v1516_v16, %v1515_v9  ;;  %v1419_v51 = vsel %vm1367_vm15, %v13649_v20, 0.0  ;;  %v1463_v42 = vmul.f32 %v13649_v20, %v13649_v20 }
 0x1ad   : > { %v1292_v53 = vsub.f32 1.0, %v1291_v29  ;;  %v1288_v29 = vsel %vm1285_vm8, %v1287_v28, %v1283_v43  ;;  %v1418_v60 = vadd.f32 %v1417_v55, %v1416_v44  ;;  %vm1310_vm13 = vweird.f32 %v13581_v21 }
 0x1ae   : > { %v13660_v36 = vmul.f32 %v1288_v29, %v13408_v17  ;;  %v1464_v17 = vmul.f32 %v13656_v15, %v13656_v15  ;;  %v1519_v43 = vadd.f32 %v1518_v1, %v1517_v12  ;;  %v1317_v28 = vor.u32 1.1754944e-38, %v1316_v13 }
 0x1af   : > { %v11881_v22 = vpop.eup %11880  ;;  %v1293_v52 = vmul.f32 %v11879_v49, %v1292_v53  ;;  %v1420_v33 = vadd.f32 %v1419_v51, %v1418_v60  ;;  %v1520_v9 = vsel %vm1367_vm15, %v1463_v42, 0.0  ;;  %v1421_v29 = vsel %vm1367_vm15, %v13656_v15, 0.0 }
 0x1b0   : > { %v13635_v39 = vadd.f32 1.0, %v11881_v22  ;;  %v11883_v7 = vpop.eup %11882  ;;  %vm1610_vm7 = vcmask 64512  }
 0x1b1   : > { %v1294_v18 = vadd.f32 %v11879_v49, %v1293_v52  ;;  %v1306_v63 = vmul.f32 %v11883_v7, %v13581_v21  ;;  %vm1311_vm12 = vweird.f32 %v11883_v7 }
 0x1b2   : > { %11884 = vrcp.f32 %v13635_v39  ;;  %vm1312_vm14 = vmor %vm1310_vm13, %vm1311_vm12  ;;  %v1331_v16 = vand.u32 2147483648, %v13635_v39  ;;  %v1329_v55 = vand.u32 2147483647, %v13635_v39  ;;  %vm1325_vm2 = vweird.f32 %v13635_v39 }
 0x1b3   : > { %v1298_v2 = vsel %vm13640_vm10, %v11879_v49, %v1294_v18  ;;  %v1307_v53 = vsub.f32 1.0, %v1306_v63  ;;  %v1314_v49 = vand.u32 2147483647, %v13581_v21  ;;  %v1465_v18 = vmul.f32 %v13660_v36, %v13660_v36 }
 0x1b4   : > { %v1303_v59 = vsel %vm1300_vm11, %v1302_v41, %v1298_v2  ;;  %v1423_v63 = vsel %vm1367_vm15, %v13660_v36, 0.0  ;;  %v1521_v41 = vadd.f32 %v1520_v9, %v1519_v43  ;;  %v1332_v12 = vor.u32 1.1754944e-38, %v1331_v16 }
 0x1b5   : > { %v1308_v24 = vmul.f32 %v11883_v7, %v1307_v53  ;;  %v13672_v52 = vmul.f32 %v1303_v59, %v13456_v26  ;;  %vm1315_vm0 = vcmp.eq.f32.partialorder %v1314_v49, 8.507059e+37  ;;  %v1522_v26 = vsel %vm1367_vm15, %v1464_v17, 0.0 }
 0x1b6   : > { %v1422_v53 = vadd.f32 %v1421_v29, %v1420_v33  ;;  %v1524_v1 = vsel %vm1367_vm15, %v1465_v18, 0.0  ;;  %vm1330_vm5 = vcmp.eq.f32.partialorder %v1329_v55, 8.507059e+37 }
 0x1b7   : > { %v1309_v6 = vadd.f32 %v11883_v7, %v1308_v24  ;;  %v1425_v13 = vsel %vm1367_vm15, %v13672_v52, 0.0  ;;  %v1523_v24 = vadd.f32 %v1522_v26, %v1521_v41 }
 0x1b8   : > { %v11885_v22 = vpop.eup %11884  ;;  %v1424_v49 = vadd.f32 %v1423_v63, %v1422_v53 }
 0x1b9   : > { %v1321_v34 = vmul.f32 %v11885_v22, %v13635_v39  ;;  %v1313_v35 = vsel %vm1312_vm14, %v11883_v7, %v1309_v6  ;;  %v1466_v7 = vmul.f32 %v13672_v52, %v13672_v52  ;;  %vm1326_vm1 = vweird.f32 %v11885_v22 }
 0x1ba   : > { %v1318_v21 = vsel %vm1315_vm0, %v1317_v28, %v1313_v35  ;;  %vm1327_vm4 = vmor %vm1325_vm2, %vm1326_vm1  ;;  %v1525_v17 = vadd.f32 %v1524_v1, %v1523_v24  ;;  %v1426_v6 = vadd.f32 %v1425_v13, %v1424_v49  ;;  %vm2830_vm0 = vsmask.f32 3328 }
 0x1bb   : > { %v1322_v46 = vsub.f32 1.0, %v1321_v34  ;;  %v13684_v44 = vmul.f32 %v1318_v21, %v13504_v50  ;;  %v1526_v51 = vsel %vm1367_vm15, %v1466_v7, 0.0  ;;  %vm2831_vm1 = vsmask.f32 7440 }
 0x1bc   : > { %v1527_v39 = vadd.f32 %v1526_v51, %v1525_v17  ;;  %vm13761_vm2 = vmor %vm2830_vm0, %vm2831_vm1 }
 0x1bd   : > { %v1323_v2 = vmul.f32 %v11885_v22, %v1322_v46  ;;  %v1467_v50 = vmul.f32 %v13684_v44, %v13684_v44  ;;  %v1427_v42 = vsel %vm1367_vm15, %v13684_v44, 0.0 }
 0x1be   : > { %v1428_v33 = vadd.f32 %v1427_v42, %v1426_v6 }
 0x1bf   : > { %v1324_v59 = vadd.f32 %v11885_v22, %v1323_v2  ;;  %v1528_v28 = vsel %vm1367_vm15, %v1467_v50, 0.0  ;;  %v1609_v50 = vld [vmem:[%s17117_s9] sm:$0xff] }
 0x1c0   : > { %v1529_v9 = vadd.f32 %v1528_v28, %v1527_v39  ;;  %1629 = vmatpush.msrb.mxu2 %v1609_v50  ;;  %1652 = vmatpush.msra.mxu0 %v1609_v50 }
 0x1c1   : > { %v1328_v60 = vsel %vm1327_vm4, %v11885_v22, %v1324_v59  ;;  %v12091_v59 = vmov 512.0   ;;  %vm2008_vm4 = vsmask.f32 256 }
 0x1c2   : > { %v1333_v43 = vsel %vm1330_vm5, %v1332_v12, %v1328_v60  ;;  %11886 = vrcp.f32 %v12091_v59  ;;  %vm2009_vm5 = vsmask.f32 4368 }
 0x1c3   : > { %v13701_v34 = vmul.f32 %v1333_v43, %v13556_v31 }
 0x1c5   : > { %v1429_v18 = vsel %vm1367_vm15, %v13701_v34, 0.0  ;;  %v1468_v35 = vmul.f32 %v13701_v34, %v13701_v34 }
 0x1c6   : > { %v1430_v29 = vadd.f32 %v1429_v18, %v1428_v33 }
 0x1c7   : > { %v1530_v22 = vsel %vm1367_vm15, %v1468_v35, 0.0 }
 0x1c8   : > { %v1431_v21 = vrot.slane %v1430_v29, 4  ;;  %v1531_v46 = vadd.f32 %v1530_v22, %v1529_v9  ;;  %v11887_v24 = vpop.eup %11886 }
 0x1c9   : > { %v1587_v49 = vmul.f32 512.0, %v11887_v24  ;;  %vm1591_vm6 = vweird.f32 %v11887_v24 }
 0x1ca   : > { %v1432_v26 = vadd.f32 %v1431_v21, %v1430_v29  ;;  %v1532_v63 = vrot.slane %v1531_v46, 4 }
 0x1cb   : > { %v1588_v12 = vsub.f32 1.0, %v1587_v49 }
 0x1cc   : > { %v1433_v16 = vrot.slane %v1432_v26, 2  ;;  %v1533_v7 = vadd.f32 %v1532_v63, %v1531_v46 }
 0x1cd   : > { %v1589_v51 = vmul.f32 %v11887_v24, %v1588_v12 }
 0x1ce   : > { %v1434_v31 = vadd.f32 %v1433_v16, %v1432_v26  ;;  %v1534_v2 = vrot.slane %v1533_v7, 2  ;;  %v376_v16 = vld [vmem:[%s17115_s7 + $0x3] sm:$0x1] }
 0x1cf   : > { %v1590_v42 = vadd.f32 %v11887_v24, %v1589_v51 }
 0x1d0   : > { %v1435_v55 = vrot.slane %v1434_v31, 1  ;;  %v1535_v41 = vadd.f32 %v1534_v2, %v1533_v7  ;;  %v413_v7 = vadd.f32 %v12242_v19, %v376_v16  ;;  %v11585_v19 = vld [vmem:[%s17112_s4] sm:$0xff] }
 0x1d1   : > { %v13713_v60 = vsel %vm1591_vm6, %v11887_v24, %v1590_v42  ;;  %11707 = vmatpush.bf16.msrb.mxu3 %v11585_v19  ;;  %vm13962_vm6 = vmor %vm2008_vm4, %vm2009_vm5 }
 0x1d2   : > { %v1436_v53 = vadd.f32 %v1435_v55, %v1434_v31  ;;  %v1536_v1 = vrot.slane %v1535_v41, 1  ;;  %17209 = vst [vmem:[#allocation8_spill] sm:$0xff] %v13713_v60  ;;  %v10490_v31 = vmul.f32 -1.442695, %v413_v7 }
 0x1d4   : > { %10619 = vmatmul.msk.f32.vlgmr.msra.gmra.mxu2 %vm1367_vm15, %v1436_v53  ;;  %v1537_v13 = vadd.f32 %v1536_v1, %v1535_v41  ;;  %v11586_v41 = vld [vmem:[%s17112_s4 + $0x8] sm:$0xff] }
 0x1d5   : > { %v11569_v53 = vld [vmem:[#allocation2 + $0x4] sm:$0xff]  ;;  %2509 = vmatpush.bf16.msra.mxu2 %v11586_v41 }
 0x1d6   : > { %10620 = vmatmul.msk.f32.vlgmr.msra.gmra.mxu3 %vm1367_vm15, %v1537_v13 }
 0x257   : > { %v1560_v17 = vpop.f32.mrf.mxu2 }
 0x258   : > { %v1593_v6 = vmul.f32 %v13713_v60, %v1560_v17 }
 0x259   : > { %v1583_v43 = vpop.f32.mrf.mxu3 }
 0x25a   : > { %v1595_v28 = vmul.f32 %v1593_v6, %v1593_v6  ;;  %v1594_v39 = vmul.f32 %v13713_v60, %v1583_v43  ;;  %10621 = vmatmul.msk.f32.vlgmr.msrb.gmra.mxu2 %vm1610_vm7, %v1593_v6  ;;  %v11587_v6 = vld [vmem:[%s17112_s4 + $0x10] sm:$0xff] }
 0x25b   : > { %2700 = vmatpush.bf16.msrb.mxu2 %v11585_v19  ;;  %3329 = vmatpush.bf16.msrb.mxu0 %v11587_v6  ;;  %v17210_v19 = vmov 0 }
 0x25c   : > { %v1596_v33 = vsub.f32 %v1594_v39, %v1595_v28  ;;  %v17211_v19 = vsel %vm13761_vm2, 4294967295, %v17210_v19 }
 0x25d   : > { %17212 = vst [vmem:[#allocation9_spill] sm:$0xff] %v17211_v19 }
 0x25e   : > { %v1597_v18 = vmax.f32 %v1596_v33, 0.0  ;;  %v2782_v33 = vld [vmem:[#allocation2 + $0x4] sm:$0xf] }
 0x260   : > { %v1598_v35 = vadd.f32 1e-05, %v1597_v18  ;;  %v2783_v18 = vld [vmem:[#allocation2 + $0x8] sm:$0xf] }
 0x262   : > { %11888 = vrsqrt.f32 %v1598_v35  ;;  %vm1605_vm9 = vweird.f32 %v1598_v35  ;;  %10709 = vmatmul.msk.bf16.vlgmr.msra.gmra.mxu2 %vm1367_vm15, %v11569_v53 }
 0x263   : > { %11890 = vpow2.f32 %v10490_v31 }
 0x268   : > { %v11889_v9 = vpop.eup %11888 }
 0x269   : > { %v1600_v29 = vmul.f32 %v11889_v9, %v1598_v35  ;;  %vm1606_vm8 = vweird.f32 %v11889_v9  ;;  %v11891_v2 = vpop.eup %11890  ;;  %v2834_v35 = vshrl.u32 %v2782_v33, 16 }
 0x26a   : > { %vm1607_vm10 = vmor %vm1605_vm9, %vm1606_vm8  ;;  %v419_v55 = vadd.f32 1.0, %v11891_v2 }
 0x26b   : > { %v1601_v22 = vmul.f32 %v11889_v9, %v1600_v29  ;;  %v2843_v29 = vshll.u32 %v2783_v18, 16  ;;  %v2836_v31 = vrot.slane %v2834_v35, 4 }
 0x26c   : > { %11892 = vrcp.f32 %v419_v55  ;;  %v431_v49 = vand.u32 2147483648, %v419_v55  ;;  %vm425_vm12 = vweird.f32 %v419_v55  ;;  %v429_v12 = vand.u32 2147483647, %v419_v55 }
 0x26d   : > { %v1602_v21 = vmul.f32 0.5, %v1601_v22  ;;  %v2847_v22 = vshrl.u32 %v2783_v18, 16 }
 0x26e   : > { %v432_v42 = vor.u32 1.1754944e-38, %v431_v49  ;;  %vm430_vm14 = vcmp.eq.f32.partialorder %v429_v12, 8.507059e+37 }
 0x26f   : > { %v1603_v46 = vsub.f32 1.5, %v1602_v21  ;;  %v2849_v41 = vrot.slane %v2847_v22, 4 }
 0x271   : > { %v1604_v26 = vmul.f32 %v11889_v9, %v1603_v46 }
 0x272   : > { %v11893_v1 = vpop.eup %11892 }
 0x273   : > { %v1608_v63 = vsel %vm1607_vm10, %v11889_v9, %v1604_v26  ;;  %v421_v13 = vmul.f32 %v11893_v1, %v419_v55  ;;  %vm426_vm11 = vweird.f32 %v11893_v1  ;;  %v2837_v9 = vshll.u32 %v2782_v33, 16 }
 0x274   : > { %10622 = vmatmul.msk.f32.vlgmr.msra.gmra.mxu0 %vm1610_vm7, %v1608_v63  ;;  %vm427_vm13 = vmor %vm425_vm12, %vm426_vm11  ;;  %v2845_v55 = vrot.slane %v2843_v29, 5 }
 0x275   : > { %v422_v50 = vsub.f32 1.0, %v421_v13  ;;  %v2839_v2 = vrot.slane %v2837_v9, 5 }
 0x276   : > { %v2850_v13 = vor.u32 %v2849_v41, %v2845_v55 }
 0x277   : > { %v423_v59 = vmul.f32 %v11893_v1, %v422_v50 }
 0x279   : > { %v424_v24 = vadd.f32 %v11893_v1, %v423_v59 }
 0x27b   : > { %v428_v51 = vsel %vm427_vm13, %v11893_v1, %v424_v24  ;;  %v2840_v1 = vor.u32 %v2839_v2, %v2836_v31  ;;  %v2851_v24 = vrot.slane %v2850_v13, 4 }
 0x27c   : > { %v433_v17 = vsel %vm430_vm14, %v432_v42, %v428_v51 }
 0x27d   : > { %v435_v28 = vmul.f32 %v433_v17, %v413_v7  ;;  %v2784_v7 = vld [vmem:[#allocation2 + $0xc] sm:$0x1] }
 0x27f   : > { %v13735_v21 = vperm.slane %v435_v28, 0 }
 0x2dd   : > { %v1631_v43 = vpop.f32.mrf.mxu2 }
 0x2de   : > { %v13733_v39 = vperm.slane %v1631_v43, 0 }
 0x2e0   : > { %v1658_v46 = vsub.f32 %v12604_v58, %v13733_v39  ;;  %v1659_v26 = vsub.f32 %v12646_v5, %v13733_v39  ;;  %v1660_v63 = vsub.f32 %v12682_v40, %v13733_v39  ;;  %v1661_v16 = vsub.f32 %v12749_v23, %v13733_v39 }
 0x2e1   : > { %v1662_v53 = vsub.f32 %v12788_v47, %v13733_v39  ;;  %v2853_v58 = vshll.u32 %v2784_v7, 16  ;;  %v1663_v5 = vsub.f32 %v12810_v61, %v13733_v39  ;;  %v1664_v40 = vsub.f32 %v12848_v27, %v13733_v39 }
 0x2e2   : > { %v1665_v23 = vsub.f32 %v12899_v32, %v13733_v39  ;;  %v1666_v50 = vsub.f32 %v12964_v62, %v13733_v39  ;;  %v1667_v47 = vsub.f32 %v13010_v3, %v13733_v39  ;;  %v1668_v59 = vsub.f32 %v13034_v37, %v13733_v39 }
 0x2e3   : > { %v1669_v61 = vsub.f32 %v13068_v8, %v13733_v39  ;;  %v2841_v27 = vrot.slane %v2840_v1, 4  ;;  %v2855_v49 = vrot.slane %v2853_v58, 5  ;;  %v1670_v32 = vsub.f32 %v13114_v48, %v13733_v39 }
 0x2e4   : > { %v1671_v62 = vsub.f32 %v13186_v4, %v13733_v39  ;;  %v1672_v3 = vsub.f32 %v13210_v11, %v13733_v39  ;;  %v1673_v37 = vsub.f32 %v13251_v14, %v13733_v39  ;;  %v1674_v12 = vsub.f32 %v13259_v0, %v13733_v39  ;;  %v17213_v4 = vld [vmem:[#allocation7_spill] sm:$0xff] }
 0x2e5   : > { %v1675_v51 = vsub.f32 %v13304_v54, %v13733_v39  ;;  %v1676_v42 = vsub.f32 %v13339_v45, %v13733_v39  ;;  %v1677_v48 = vsub.f32 %v13400_v25, %v13733_v39  ;;  %v1678_v17 = vsub.f32 %v17213_v4, %v13733_v39 }
 0x2e6   : > { %v1679_v11 = vsub.f32 %v13440_v38, %v13733_v39  ;;  %v2846_v6 = vsel %vm13761_vm2, %v2841_v27, %v2845_v55  ;;  %v1680_v0 = vsub.f32 %v13468_v57, %v13733_v39  ;;  %v1681_v54 = vsub.f32 %v13495_v10, %v13733_v39 }
 0x2e7   : > { %v1682_v45 = vsub.f32 %v13572_v30, %v13733_v39  ;;  %v2856_v25 = vsel %vm13761_vm2, %v2851_v24, %v2855_v49  ;;  %v1683_v43 = vsub.f32 %v13584_v56, %v13733_v39  ;;  %v1684_v38 = vsub.f32 %v13649_v20, %v13733_v39 }
 0x2e8   : > { %v1685_v28 = vsub.f32 %v13656_v15, %v13733_v39  ;;  %v1686_v57 = vsub.f32 %v13660_v36, %v13733_v39  ;;  %v1687_v10 = vsub.f32 %v13672_v52, %v13733_v39  ;;  %v1688_v30 = vsub.f32 %v13684_v44, %v13733_v39 }
 0x2e9   : > { %v1689_v33 = vsub.f32 %v13701_v34, %v13733_v39  ;;  %v13809_v18 = vunpack.c.l.b16 %v2846_v6  ;;  %v13811_v9 = vunpack.c.l.b16 %v2856_v25  ;;  %v11752_v34 = vld [vmem:[%s17115_s7 + $0x1] ss:$0 sm:$0xff] }
 0x2f1   : > { %v1654_v8 = vpop.f32.mrf.mxu0 }
 0x2f2   : > { %v1690_v14 = vperm.slane %v1654_v8, 0 }
 0x2f4   : > { %v1691_v56 = vmul.f32 %v1690_v14, %v1658_v46  ;;  %v1692_v35 = vmul.f32 %v1690_v14, %v1659_v26  ;;  %v1693_v20 = vmul.f32 %v1690_v14, %v1660_v63  ;;  %v1694_v15 = vmul.f32 %v1690_v14, %v1661_v16 }
 0x2f5   : > { %v1695_v29 = vmul.f32 %v1690_v14, %v1662_v53  ;;  %v1696_v22 = vmul.f32 %v1690_v14, %v1663_v5  ;;  %v1697_v36 = vmul.f32 %v1690_v14, %v1664_v40  ;;  %v1698_v7 = vmul.f32 %v1690_v14, %v1665_v23 }
 0x2f6   : > { %v1699_v31 = vmul.f32 %v1690_v14, %v1666_v50  ;;  %v1700_v52 = vmul.f32 %v1690_v14, %v1667_v47  ;;  %v1701_v2 = vmul.f32 %v1690_v14, %v1668_v59  ;;  %v1702_v55 = vmul.f32 %v1690_v14, %v1669_v61 }
 0x2f7   : > { %v1703_v44 = vmul.f32 %v1690_v14, %v1670_v32  ;;  %v1704_v41 = vmul.f32 %v1690_v14, %v1671_v62  ;;  %v1705_v58 = vmul.f32 %v1690_v14, %v1672_v3  ;;  %v1706_v39 = vmul.f32 %v1690_v14, %v1673_v37 }
 0x2f8   : > { %v1707_v46 = vmul.f32 %v1690_v14, %v1674_v12  ;;  %v1708_v26 = vmul.f32 %v1690_v14, %v1675_v51  ;;  %v1709_v63 = vmul.f32 %v1690_v14, %v1676_v42  ;;  %v1710_v16 = vmul.f32 %v1690_v14, %v1677_v48  ;;  %v11604_v51 = vld [vmem:[%s17112_s4 + $0x18] sm:$0xff] }
 0x2f9   : > { %v1711_v53 = vmul.f32 %v1690_v14, %v1678_v17  ;;  %v1712_v5 = vmul.f32 %v1690_v14, %v1679_v11  ;;  %v1713_v40 = vmul.f32 %v1690_v14, %v1680_v0  ;;  %v1714_v1 = vmul.f32 %v1690_v14, %v1681_v54  ;;  %3955 = vmatpush.bf16.msra.mxu1 %v11604_v51 }
 0x2fa   : > { %v1715_v13 = vmul.f32 %v1690_v14, %v1682_v45  ;;  %v1716_v23 = vmul.f32 %v1690_v14, %v1683_v43  ;;  %v1717_v50 = vmul.f32 %v1690_v14, %v1684_v38  ;;  %v1718_v47 = vmul.f32 %v1690_v14, %v1685_v28 }
 0x2fb   : > { %v1719_v59 = vmul.f32 %v1690_v14, %v1686_v57  ;;  %v1720_v61 = vmul.f32 %v1690_v14, %v1687_v10  ;;  %v1721_v27 = vmul.f32 %v1690_v14, %v1688_v30  ;;  %v1722_v24 = vmul.f32 %v1690_v14, %v1689_v33  ;;  %v11753_v14 = vld [vmem:[%s17115_s7 + $0x2] ss:$0 sm:$0xff] }
 0x2fc   : > { %v1724_v49 = vmul.f32 %v11752_v34, %v1691_v56  ;;  %v1725_v32 = vmul.f32 %v11752_v34, %v1692_v35  ;;  %v1726_v62 = vmul.f32 %v11752_v34, %v1693_v20  ;;  %v1727_v3 = vmul.f32 %v11752_v34, %v1694_v15 }
 0x2fd   : > { %v1728_v37 = vmul.f32 %v11752_v34, %v1695_v29  ;;  %v1729_v8 = vmul.f32 %v11752_v34, %v1696_v22  ;;  %v1730_v12 = vmul.f32 %v11752_v34, %v1697_v36  ;;  %v1731_v42 = vmul.f32 %v11752_v34, %v1698_v7 }
 0x2fe   : > { %v1732_v48 = vmul.f32 %v11752_v34, %v1699_v31  ;;  %v1733_v4 = vmul.f32 %v11752_v34, %v1700_v52  ;;  %v1734_v17 = vmul.f32 %v11752_v34, %v1701_v2  ;;  %v1735_v11 = vmul.f32 %v11752_v34, %v1702_v55 }
 0x2ff   : > { %v1736_v6 = vmul.f32 %v11752_v34, %v1703_v44  ;;  %v1737_v0 = vmul.f32 %v11752_v34, %v1704_v41  ;;  %v1738_v54 = vmul.f32 %v11752_v34, %v1705_v58  ;;  %v1739_v45 = vmul.f32 %v11752_v34, %v1706_v39 }
 0x300   : > { %v1740_v25 = vmul.f32 %v11752_v34, %v1707_v46  ;;  %v1741_v43 = vmul.f32 %v11752_v34, %v1708_v26  ;;  %v1742_v38 = vmul.f32 %v11752_v34, %v1709_v63  ;;  %v1743_v28 = vmul.f32 %v11752_v34, %v1710_v16 }
 0x301   : > { %v1744_v57 = vmul.f32 %v11752_v34, %v1711_v53  ;;  %v1745_v10 = vmul.f32 %v11752_v34, %v1712_v5  ;;  %v1746_v30 = vmul.f32 %v11752_v34, %v1713_v40  ;;  %v1747_v33 = vmul.f32 %v11752_v34, %v1714_v1 }
 0x302   : > { %v1748_v56 = vmul.f32 %v11752_v34, %v1715_v13  ;;  %v1749_v35 = vmul.f32 %v11752_v34, %v1716_v23  ;;  %v1750_v20 = vmul.f32 %v11752_v34, %v1717_v50  ;;  %v1751_v15 = vmul.f32 %v11752_v34, %v1718_v47 }
 0x303   : > { %v1752_v29 = vmul.f32 %v11752_v34, %v1719_v59  ;;  %v1753_v22 = vmul.f32 %v11752_v34, %v1720_v61  ;;  %v1754_v36 = vmul.f32 %v11752_v34, %v1721_v27  ;;  %v1755_v7 = vmul.f32 %v11752_v34, %v1722_v24 }
 0x304   : > { %v1757_v31 = vadd.f32 %v11753_v14, %v1724_v49  ;;  %v1758_v52 = vadd.f32 %v11753_v14, %v1725_v32  ;;  %v1759_v2 = vadd.f32 %v11753_v14, %v1726_v62  ;;  %v1760_v55 = vadd.f32 %v11753_v14, %v1727_v3 }
 0x305   : > { %v1761_v44 = vadd.f32 %v11753_v14, %v1728_v37  ;;  %v1762_v41 = vadd.f32 %v11753_v14, %v1729_v8  ;;  %v1763_v58 = vadd.f32 %v11753_v14, %v1730_v12  ;;  %v1764_v39 = vadd.f32 %v11753_v14, %v1731_v42 }
 0x306   : > { %v1765_v46 = vadd.f32 %v11753_v14, %v1732_v48  ;;  %v1766_v26 = vadd.f32 %v11753_v14, %v1733_v4  ;;  %v1767_v63 = vadd.f32 %v11753_v14, %v1734_v17  ;;  %v1768_v16 = vadd.f32 %v11753_v14, %v1735_v11 }
 0x307   : > { %v1769_v53 = vadd.f32 %v11753_v14, %v1736_v6  ;;  %v1770_v5 = vadd.f32 %v11753_v14, %v1737_v0  ;;  %v1771_v40 = vadd.f32 %v11753_v14, %v1738_v54  ;;  %v1772_v1 = vadd.f32 %v11753_v14, %v1739_v45 }
 0x308   : > { %v1773_v13 = vadd.f32 %v11753_v14, %v1740_v25  ;;  %v1774_v23 = vadd.f32 %v11753_v14, %v1741_v43  ;;  %v1775_v50 = vadd.f32 %v11753_v14, %v1742_v38  ;;  %v1776_v34 = vadd.f32 %v11753_v14, %v1743_v28 }
 0x309   : > { %v1777_v47 = vadd.f32 %v11753_v14, %v1744_v57  ;;  %v1778_v59 = vadd.f32 %v11753_v14, %v1745_v10  ;;  %v3252_v61 = vpack.c.b16 %v13811_v9, %v13809_v18  ;;  %v1779_v27 = vadd.f32 %v11753_v14, %v1746_v30 }
 0x30a   : > { %v1780_v24 = vadd.f32 %v11753_v14, %v1747_v33  ;;  %v1781_v49 = vadd.f32 %v11753_v14, %v1748_v56  ;;  %v1782_v32 = vadd.f32 %v11753_v14, %v1749_v35  ;;  %v1783_v62 = vadd.f32 %v11753_v14, %v1750_v20 }
 0x30b   : > { %v1784_v3 = vadd.f32 %v11753_v14, %v1751_v15  ;;  %v1785_v37 = vadd.f32 %v11753_v14, %v1752_v29  ;;  %v1786_v8 = vadd.f32 %v11753_v14, %v1753_v22  ;;  %10751 = vmatmul.msk.bf16.vlgmr.msrb.gmra.mxu0 %vm1367_vm15, %v3252_v61  ;;  %v1787_v12 = vadd.f32 %v11753_v14, %v1754_v36 }
 0x30c   : > { %v1788_v51 = vadd.f32 %v11753_v14, %v1755_v7  ;;  %v1790_v42 = vadd.f32 %v13735_v21, %v1757_v31  ;;  %v1791_v48 = vadd.f32 %v13735_v21, %v1758_v52  ;;  %v1792_v4 = vadd.f32 %v13735_v21, %v1759_v2 }
 0x30d   : > { %v1793_v18 = vadd.f32 %v13735_v21, %v1760_v55  ;;  %v1794_v9 = vadd.f32 %v13735_v21, %v1761_v44  ;;  %v1795_v17 = vadd.f32 %v13735_v21, %v1762_v41  ;;  %v1796_v11 = vadd.f32 %v13735_v21, %v1763_v58 }
 0x30e   : > { %v1797_v6 = vadd.f32 %v13735_v21, %v1764_v39  ;;  %v13834_v0 = vadd.f32 %v13735_v21, %v1765_v46  ;;  %v13837_v54 = vadd.f32 %v13735_v21, %v1766_v26  ;;  %v13840_v14 = vadd.f32 %v13735_v21, %v1767_v63 }
 0x30f   : > { %v13843_v45 = vadd.f32 %v13735_v21, %v1768_v16  ;;  %v13846_v25 = vadd.f32 %v13735_v21, %v1769_v53  ;;  %v13849_v43 = vadd.f32 %v13735_v21, %v1770_v5  ;;  %v13852_v38 = vadd.f32 %v13735_v21, %v1771_v40 }
 0x310   : > { %v13855_v28 = vadd.f32 %v13735_v21, %v1772_v1  ;;  %v13858_v57 = vadd.f32 %v13735_v21, %v1773_v13  ;;  %v13861_v10 = vadd.f32 %v13735_v21, %v1774_v23  ;;  %v13864_v30 = vadd.f32 %v13735_v21, %v1775_v50  ;;  %v1963_v23 = vld [vmem:[#allocation2 + $0x10] sm:$0x8] }
 0x311   : > { %v1895_v33 = vpack.c.bf16 %v1790_v42, %v1790_v42  ;;  %v1896_v56 = vpack.c.bf16 %v1791_v48, %v1791_v48  ;;  %v1897_v35 = vpack.c.bf16 %v1792_v4, %v1792_v4  ;;  %v13867_v20 = vadd.f32 %v13735_v21, %v1776_v34  ;;  %v3443_v50 = vld [vmem:[#allocation2 + $0x10] sm:$0x8] }
 0x312   : > { %v13870_v15 = vadd.f32 %v13735_v21, %v1777_v47  ;;  %v13873_v29 = vadd.f32 %v13735_v21, %v1778_v59  ;;  %v1898_v22 = vpack.c.bf16 %v1793_v18, %v1793_v18  ;;  %v13876_v36 = vadd.f32 %v13735_v21, %v1779_v27 }
 0x313   : > { %v13879_v7 = vadd.f32 %v13735_v21, %v1780_v24  ;;  %v13882_v31 = vadd.f32 %v13735_v21, %v1781_v49  ;;  %1928 = vst.msk [vmem:[#allocation2 + $0x14] sm:$0xf] %vm1822_vm3, %v1895_v33  ;;  %v1899_v52 = vpack.c.bf16 %v1794_v9, %v1794_v9  ;;  %v13886_v2 = vadd.f32 %v13735_v21, %v1782_v32 }
 0x314   : > { %v13889_v55 = vadd.f32 %v13735_v21, %v1783_v62  ;;  %v13892_v44 = vadd.f32 %v13735_v21, %v1784_v3  ;;  %1929 = vst.msk [vmem:[#allocation2 + $0x18] sm:$0xf] %vm1822_vm3, %v1896_v56  ;;  %v1900_v41 = vpack.c.bf16 %v1795_v17, %v1795_v17  ;;  %v13896_v58 = vadd.f32 %v13735_v21, %v1785_v37 }
 0x315   : > { %v13899_v39 = vadd.f32 %v13735_v21, %v1786_v8  ;;  %v13902_v46 = vadd.f32 %v13735_v21, %v1787_v12  ;;  %v1901_v26 = vpack.c.bf16 %v1796_v11, %v1796_v11  ;;  %1930 = vst.msk [vmem:[#allocation2 + $0x24] sm:$0xf] %vm1822_vm3, %v1897_v35  ;;  %v13906_v63 = vadd.f32 %v13735_v21, %v1788_v51 }
 0x316   : > { %v1902_v16 = vpack.c.bf16 %v1797_v6, %v1797_v6  ;;  %v1903_v53 = vpack.c.bf16 %v13834_v0, %v13834_v0  ;;  %v1904_v5 = vpack.c.bf16 %v13837_v54, %v13837_v54  ;;  %1931 = vst.msk [vmem:[#allocation2 + $0x28] sm:$0xf] %vm1822_vm3, %v1898_v22  ;;  %v1905_v40 = vpack.c.bf16 %v13840_v14, %v13840_v14 }
 0x317   : > { %v1906_v1 = vpack.c.bf16 %v13843_v45, %v13843_v45  ;;  %v1907_v13 = vpack.c.bf16 %v13846_v25, %v13846_v25  ;;  %v1908_v21 = vpack.c.bf16 %v13849_v43, %v13849_v43  ;;  %1932 = vst.msk [vmem:[#allocation2 + $0x34] sm:$0xf] %vm1822_vm3, %v1899_v52  ;;  %v1909_v34 = vpack.c.bf16 %v13852_v38, %v13852_v38 }
 0x318   : > { %v1910_v47 = vpack.c.bf16 %v13855_v28, %v13855_v28  ;;  %v1911_v59 = vpack.c.bf16 %v13858_v57, %v13858_v57  ;;  %v1912_v61 = vpack.c.bf16 %v13861_v10, %v13861_v10  ;;  %1933 = vst.msk [vmem:[#allocation2 + $0x38] sm:$0xf] %vm1822_vm3, %v1900_v41  ;;  %v1913_v27 = vpack.c.bf16 %v13864_v30, %v13864_v30 }
 0x319   : > { %v1914_v24 = vpack.c.bf16 %v13867_v20, %v13867_v20  ;;  %1934 = vst.msk [vmem:[#allocation2 + $0x44] sm:$0xf] %vm1822_vm3, %v1901_v26  ;;  %v1915_v49 = vpack.c.bf16 %v13870_v15, %v13870_v15  ;;  %v1916_v32 = vpack.c.bf16 %v13873_v29, %v13873_v29  ;;  %v2034_v3 = vshrl.u32 %v1963_v23, 16  ;;  %v2787_v26 = vld [vmem:[#allocation2 + $0x1c] sm:$0x1] }
 0x31a   : > { %1935 = vst.msk [vmem:[#allocation2 + $0x48] sm:$0xf] %vm1822_vm3, %v1902_v16  ;;  %v1964_v62 = vld [vmem:[#allocation2 + $0x14] sm:$0xf]  ;;  %v3492_v37 = vshrl.u32 %v3443_v50, 16  ;;  %v1917_v12 = vpack.c.bf16 %v13876_v36, %v13876_v36  ;;  %v1918_v51 = vpack.c.bf16 %v13879_v7, %v13879_v7  ;;  %v1919_v42 = vpack.c.bf16 %v13882_v31, %v13882_v31 }
 0x31b   : > { %v11570_v8 = vld [vmem:[#allocation2 + $0x14] sm:$0xff]  ;;  %1936 = vst.msk [vmem:[#allocation2 + $0x54] sm:$0xf] %vm1822_vm3, %v1903_v53  ;;  %v2039_v4 = vshrl.u32 %v1964_v62, 16  ;;  %v10624_v18 = vrot.slane %v2034_v3, 11  ;;  %v2042_v9 = vshll.u32 %v1964_v62, 16  ;;  %v1920_v6 = vpack.c.bf16 %v13886_v2, %v13886_v2 }
 0x31c   : > { %v1965_v48 = vld [vmem:[#allocation2 + $0x18] sm:$0xf]  ;;  %1937 = vst.msk [vmem:[#allocation2 + $0x58] sm:$0xf] %vm1822_vm3, %v1904_v5  ;;  %10710 = vmatmul.msk.bf16.gmra.mxu2 %vm1367_vm15, %v11570_v8  ;;  %v1921_v0 = vpack.c.bf16 %v13889_v55, %v13889_v55  ;;  %v3444_v14 = vld [vmem:[#allocation2 + $0x14] sm:$0xf]  ;;  %v1922_v25 = vpack.c.bf16 %v13892_v44, %v13892_v44  ;;  %v1923_v43 = vpack.c.bf16 %v13896_v58, %v13896_v58 }
 0x31d   : > { %v2048_v17 = vshrl.u32 %v1965_v48, 16  ;;  %v2051_v11 = vshll.u32 %v1965_v48, 16  ;;  %1938 = vst.msk [vmem:[#allocation2 + $0x64] sm:$0xf] %vm1822_vm3, %v1905_v40  ;;  %v2041_v54 = vrot.slane %v2039_v4, 7  ;;  %v10767_v45 = vrot.slane %v3492_v37, 11 }
 0x31e   : > { %1939 = vst.msk [vmem:[#allocation2 + $0x68] sm:$0xf] %vm1822_vm3, %v1906_v1  ;;  %v17214_v38 = vmov 0  ;;  %v3445_v33 = vld [vmem:[#allocation2 + $0x18] sm:$0xf]  ;;  %v3497_v56 = vshrl.u32 %v3444_v14, 16  ;;  %v1924_v16 = vpack.c.bf16 %v13899_v39, %v13899_v39  ;;  %v1925_v23 = vpack.c.bf16 %v13902_v46, %v13902_v46 }
 0x31f   : > { %v17215_v38 = vsel %vm13962_vm6, 4294967295, %v17214_v38  ;;  %v2050_v28 = vrot.slane %v2048_v17, 7  ;;  %1940 = vst.msk [vmem:[#allocation2 + $0x74] sm:$0xf] %vm1822_vm3, %v1907_v13  ;;  %v2044_v35 = vor.u32 %v2042_v9, %v2041_v54  ;;  %v2046_v22 = vrot.slane %v2041_v54, 4 }
 0x320   : > { %17216 = vst [vmem:[#allocation7_spill] sm:$0xff] %v17215_v38  ;;  %v3500_v52 = vshll.u32 %v3444_v14, 16  ;;  %v3506_v41 = vshrl.u32 %v3445_v33, 16  ;;  %v3499_v5 = vrot.slane %v3497_v56, 7  ;;  %v3509_v40 = vshll.u32 %v3445_v33, 16 }
 0x321   : > { %1941 = vst.msk [vmem:[#allocation2 + $0x78] sm:$0xf] %vm1822_vm3, %v1908_v21  ;;  %v2053_v53 = vor.u32 %v2051_v11, %v2050_v28  ;;  %v2785_v1 = vld [vmem:[#allocation2 + $0x14] sm:$0xf]  ;;  %v2045_v13 = vsel %vm13962_vm6, %v10624_v18, %v2044_v35  ;;  %v2786_v62 = vld [vmem:[#allocation2 + $0x18] sm:$0xf] }
 0x322   : > { %1942 = vst.msk [vmem:[#allocation2 + $0x84] sm:$0xf] %vm1822_vm3, %v1909_v34  ;;  %v3508_v50 = vrot.slane %v3506_v41, 7  ;;  %v2858_v3 = vshrl.u32 %v2785_v1, 16  ;;  %v2593_v37 = vunpack.c.l.b16 %v2045_v13  ;;  %v3502_v8 = vor.u32 %v3500_v52, %v3499_v5  ;;  %v1966_v4 = vld [vmem:[#allocation2 + $0x20] sm:$0x8] }
 0x323   : > { %1943 = vst.msk [vmem:[#allocation2 + $0x88] sm:$0xf] %vm1822_vm3, %v1910_v47  ;;  %v2054_v21 = vsel %vm13962_vm6, %v2046_v22, %v2053_v53  ;;  %v3504_v48 = vrot.slane %v3499_v5, 4  ;;  %v1967_v9 = vld [vmem:[#allocation2 + $0x24] sm:$0xf]  ;;  %v2861_v11 = vshll.u32 %v2785_v1, 16 }
 0x324   : > { %1944 = vst.msk [vmem:[#allocation2 + $0x94] sm:$0xf] %vm1822_vm3, %v1911_v59  ;;  %v2594_v34 = vunpack.c.l.b16 %v2054_v21  ;;  %v3511_v18 = vor.u32 %v3509_v40, %v3508_v50  ;;  %v2860_v17 = vrot.slane %v2858_v3, 4  ;;  %v1968_v54 = vld [vmem:[#allocation2 + $0x28] sm:$0xf]  ;;  %v3503_v47 = vsel %vm13962_vm6, %v10767_v45, %v3502_v8 }
 0x325   : > { %1945 = vst.msk [vmem:[#allocation2 + $0x98] sm:$0xf] %vm1822_vm3, %v1912_v61  ;;  %v2867_v14 = vshll.u32 %v2786_v62, 16  ;;  %v2871_v28 = vshrl.u32 %v2786_v62, 16  ;;  %v2877_v33 = vshll.u32 %v2787_v26, 16  ;;  %v3846_v35 = vunpack.c.l.b16 %v3503_v47 }
 0x326   : > { %v3446_v56 = vld [vmem:[#allocation2 + $0x20] sm:$0x8]  ;;  %1946 = vst.msk [vmem:[#allocation2 + $0xa4] sm:$0xf] %vm1822_vm3, %v1913_v27  ;;  %v2624_v57 = vpack.c.b16 %v2594_v34, %v2593_v37  ;;  %v3512_v59 = vsel %vm13962_vm6, %v3504_v48, %v3511_v18  ;;  %v2863_v10 = vrot.slane %v2861_v11, 5  ;;  %v2056_v27 = vshrl.u32 %v1966_v4, 16 }
 0x327   : > { %v3447_v22 = vld [vmem:[#allocation2 + $0x24] sm:$0xf]  ;;  %1947 = vst.msk [vmem:[#allocation2 + $0xa8] sm:$0xf] %vm1822_vm3, %v1914_v24  ;;  %v3847_v61 = vunpack.c.l.b16 %v3512_v59  ;;  %v2869_v45 = vrot.slane %v2867_v14, 5  ;;  %v2873_v52 = vrot.slane %v2871_v28, 4 }
 0x328   : > { %v2879_v41 = vrot.slane %v2877_v33, 5  ;;  %1948 = vst.msk [vmem:[#allocation2 + $0xb4] sm:$0xf] %vm1822_vm3, %v1915_v49  ;;  %10730 = vmatmul.msk.bf16.vlgmr.msrb.gmra.mxu3 %vm1367_vm15, %v2624_v57  ;;  %v2864_v30 = vor.u32 %v2863_v10, %v2860_v17  ;;  %v2061_v26 = vshrl.u32 %v1967_v9, 16  ;;  %v2064_v53 = vshll.u32 %v1967_v9, 16  ;;  %v11571_v49 = vld [vmem:[#allocation2 + $0x24] sm:$0xff] }
 0x329   : > { %1949 = vst.msk [vmem:[#allocation2 + $0xb8] sm:$0xf] %vm1822_vm3, %v1916_v32  ;;  %v3878_v20 = vpack.c.b16 %v3847_v61, %v3846_v35  ;;  %v2874_v24 = vor.u32 %v2873_v52, %v2869_v45  ;;  %v2070_v5 = vshrl.u32 %v1968_v54, 16  ;;  %v2073_v40 = vshll.u32 %v1968_v54, 16  ;;  %v3448_v1 = vld [vmem:[#allocation2 + $0x28] sm:$0xf] }
 0x32a   : > { %1950 = vst.msk [vmem:[#allocation2 + $0xc4] sm:$0xf] %vm1822_vm3, %v1917_v12  ;;  %v2865_v15 = vrot.slane %v2864_v30, 4  ;;  %v10625_v13 = vrot.slane %v2056_v27, 11  ;;  %v2063_v50 = vrot.slane %v2061_v26, 7  ;;  %v3514_v62 = vshrl.u32 %v3446_v56, 16 }
 0x32b   : > { %1951 = vst.msk [vmem:[#allocation2 + $0xc8] sm:$0xf] %vm1822_vm3, %v1918_v51  ;;  %10789 = vmatmul.msk.bf16.vlgmr.msra.gmra.mxu1 %vm1367_vm15, %v3878_v20  ;;  %v2875_v29 = vrot.slane %v2874_v24, 4  ;;  %v2072_v32 = vrot.slane %v2070_v5, 7  ;;  %v3519_v3 = vshrl.u32 %v3447_v22, 16  ;;  %v3522_v21 = vshll.u32 %v3447_v22, 16 }
 0x32c   : > { %1952 = vst.msk [vmem:[#allocation2 + $0xd4] sm:$0xf] %vm1822_vm3, %v1919_v42  ;;  %v2870_v36 = vsel %vm13761_vm2, %v2865_v15, %v2869_v45  ;;  %v2066_v12 = vor.u32 %v2064_v53, %v2063_v50  ;;  %v2068_v37 = vrot.slane %v2063_v50, 4  ;;  %v10768_v8 = vrot.slane %v3514_v62, 11  ;;  %v2788_v7 = vld [vmem:[#allocation2 + $0x24] sm:$0xf]  ;;  %10711 = vmatmul.msk.bf16.gmra.mxu2 %vm1367_vm15, %v11571_v49 }
 0x32d   : > { %1953 = vst.msk [vmem:[#allocation2 + $0xd8] sm:$0xf] %vm1822_vm3, %v1920_v6  ;;  %v2880_v51 = vsel %vm13761_vm2, %v2875_v29, %v2879_v41  ;;  %v3222_v48 = vunpack.c.l.b16 %v2870_v36  ;;  %v2075_v4 = vor.u32 %v2073_v40, %v2072_v32  ;;  %v3521_v31 = vrot.slane %v3519_v3, 7  ;;  %v2789_v9 = vld [vmem:[#allocation2 + $0x28] sm:$0xf] }
 0x32e   : > { %v1926_v42 = vpack.c.bf16 %v13906_v63, %v13906_v63  ;;  %1954 = vst.msk [vmem:[#allocation2 + $0xe4] sm:$0xf] %vm1822_vm3, %v1921_v0  ;;  %v3223_v34 = vunpack.c.l.b16 %v2880_v51  ;;  %v2067_v2 = vsel %vm13962_vm6, %v10625_v13, %v2066_v12  ;;  %v3528_v6 = vshrl.u32 %v3448_v1, 16  ;;  %v2790_v18 = vld [vmem:[#allocation2 + $0x2c] sm:$0x1] }
 0x32f   : > { %1955 = vst.msk [vmem:[#allocation2 + $0xe8] sm:$0xf] %vm1822_vm3, %v1922_v25  ;;  %v2076_v63 = vsel %vm13962_vm6, %v2068_v37, %v2075_v4  ;;  %v3524_v17 = vor.u32 %v3522_v21, %v3521_v31  ;;  %v3526_v55 = vrot.slane %v3521_v31, 4  ;;  %v3531_v11 = vshll.u32 %v3448_v1, 16  ;;  %v1969_v0 = vld [vmem:[#allocation2 + $0x30] sm:$0x8] }
 0x330   : > { %1956 = vst.msk [vmem:[#allocation2 + $0xf4] sm:$0xf] %vm1822_vm3, %v1923_v43  ;;  %v3253_v54 = vpack.c.b16 %v3223_v34, %v3222_v48  ;;  %v3530_v47 = vrot.slane %v3528_v6, 7  ;;  %v2882_v14 = vshrl.u32 %v2788_v7, 16  ;;  %v1970_v28 = vld [vmem:[#allocation2 + $0x34] sm:$0xf]  ;;  %v2595_v58 = vunpack.c.l.b16 %v2067_v2 }
 0x331   : > { %1957 = vst.msk [vmem:[#allocation2 + $0xf8] sm:$0xf] %vm1822_vm3, %v1924_v16  ;;  %v3525_v44 = vsel %vm13962_vm6, %v10768_v8, %v3524_v17  ;;  %v2885_v25 = vshll.u32 %v2788_v7, 16  ;;  %v2891_v33 = vshll.u32 %v2789_v9, 16  ;;  %v2895_v56 = vshrl.u32 %v2789_v9, 16  ;;  %v11572_v2 = vld [vmem:[#allocation2 + $0x34] sm:$0xff] }
 0x332   : > { %1958 = vst.msk [vmem:[#allocation2 + $0x104] sm:$0xf] %vm1822_vm3, %v1925_v23  ;;  %10752 = vmatmul.msk.bf16.gmra.mxu0 %vm1367_vm15, %v3253_v54  ;;  %v2596_v43 = vunpack.c.l.b16 %v2076_v63  ;;  %v3533_v57 = vor.u32 %v3531_v11, %v3530_v47  ;;  %v2884_v59 = vrot.slane %v2882_v14, 4  ;;  %v1971_v39 = vld [vmem:[#allocation2 + $0x38] sm:$0xf]  ;;  %v2901_v22 = vshll.u32 %v2790_v18, 16 }
 0x333   : > { %1959 = vst.msk [vmem:[#allocation2 + $0x108] sm:$0xf] %vm1822_vm3, %v1926_v42  ;;  %v2887_v16 = vrot.slane %v2885_v25, 5  ;;  %v2893_v35 = vrot.slane %v2891_v33, 5  ;;  %v2897_v10 = vrot.slane %v2895_v56, 4  ;;  %v3848_v45 = vunpack.c.l.b16 %v3525_v44 }
 0x334   : > { %v3534_v61 = vsel %vm13962_vm6, %v3526_v55, %v3533_v57  ;;  %v2078_v46 = vshrl.u32 %v1969_v0, 16  ;;  %v2083_v52 = vshrl.u32 %v1970_v28, 16  ;;  %v3449_v23 = vld [vmem:[#allocation2 + $0x30] sm:$0x8]  ;;  %v2903_v26 = vrot.slane %v2901_v22, 5 }
 0x335   : > { %v3849_v41 = vunpack.c.l.b16 %v3534_v61  ;;  %v2888_v30 = vor.u32 %v2887_v16, %v2884_v59  ;;  %v2898_v27 = vor.u32 %v2897_v10, %v2893_v35  ;;  %v3450_v53 = vld [vmem:[#allocation2 + $0x34] sm:$0xf]  ;;  %v2625_v20 = vpack.c.b16 %v2596_v43, %v2595_v58  ;;  %v3451_v32 = vld [vmem:[#allocation2 + $0x38] sm:$0xf]  ;;  %v2793_v47 = vld [vmem:[#allocation2 + $0x3c] sm:$0x1] }
 0x336   : > { %v2085_v24 = vrot.slane %v2083_v52, 7  ;;  %v2086_v5 = vshll.u32 %v1970_v28, 16  ;;  %v2092_v40 = vshrl.u32 %v1971_v39, 16  ;;  %v10626_v49 = vrot.slane %v2078_v46, 11  ;;  %v2791_v8 = vld [vmem:[#allocation2 + $0x34] sm:$0xf] }
 0x337   : > { %v2889_v1 = vrot.slane %v2888_v30, 4  ;;  %v2899_v15 = vrot.slane %v2898_v27, 4  ;;  %v3536_v13 = vshrl.u32 %v3449_v23, 16  ;;  %v2095_v29 = vshll.u32 %v1971_v39, 16  ;;  %v2792_v34 = vld [vmem:[#allocation2 + $0x38] sm:$0xf] }
 0x338   : > { %10731 = vmatmul.msk.bf16.gmra.mxu3 %vm1367_vm15, %v2625_v20  ;;  %v2088_v50 = vor.u32 %v2086_v5, %v2085_v24  ;;  %v2094_v62 = vrot.slane %v2092_v40, 7  ;;  %v3541_v3 = vshrl.u32 %v3450_v53, 16  ;;  %v3879_v21 = vpack.c.b16 %v3849_v41, %v3848_v45  ;;  %v1973_v33 = vld [vmem:[#allocation2 + $0x44] sm:$0xf]  ;;  %v1972_v57 = vld [vmem:[#allocation2 + $0x40] sm:$0x8] }
 0x339   : > { %v2894_v36 = vsel %vm13761_vm2, %v2889_v1, %v2893_v35  ;;  %v2904_v12 = vsel %vm13761_vm2, %v2899_v15, %v2903_v26  ;;  %v2090_v37 = vrot.slane %v2085_v24, 4  ;;  %v10769_v51 = vrot.slane %v3536_v13, 11  ;;  %v1974_v10 = vld [vmem:[#allocation2 + $0x48] sm:$0xf]  ;;  %v3453_v20 = vld [vmem:[#allocation2 + $0x44] sm:$0xf] }
 0x33a   : > { %v2097_v7 = vor.u32 %v2095_v29, %v2094_v62  ;;  %v3544_v48 = vshll.u32 %v3450_v53, 16  ;;  %v3224_v4 = vunpack.c.l.b16 %v2894_v36  ;;  %v3225_v31 = vunpack.c.l.b16 %v2904_v12  ;;  %v3452_v53 = vld [vmem:[#allocation2 + $0x40] sm:$0x8]  ;;  %v3454_v5 = vld [vmem:[#allocation2 + $0x48] sm:$0xf] }
 0x33b   : > { %10790 = vmatmul.msk.bf16.gmra.mxu1 %vm1367_vm15, %v3879_v21  ;;  %v3543_v9 = vrot.slane %v3541_v3, 7  ;;  %v3550_v42 = vshrl.u32 %v3451_v32, 16  ;;  %v2089_v6 = vsel %vm13962_vm6, %v10626_v49, %v2088_v50  ;;  %v3553_v18 = vshll.u32 %v3451_v32, 16  ;;  %v2794_v13 = vld [vmem:[#allocation2 + $0x44] sm:$0xf] }
 0x33c   : > { %v2906_v63 = vshrl.u32 %v2791_v8, 16  ;;  %v2909_v17 = vshll.u32 %v2791_v8, 16  ;;  %v2098_v55 = vsel %vm13962_vm6, %v2090_v37, %v2097_v7  ;;  %10712 = vmatmul.msk.bf16.gmra.mxu2 %vm1367_vm15, %v11572_v2  ;;  %v2915_v44 = vshll.u32 %v2792_v34, 16 }
 0x33d   : > { %v3546_v11 = vor.u32 %v3544_v48, %v3543_v9  ;;  %v3548_v0 = vrot.slane %v3543_v9, 4  ;;  %v3552_v54 = vrot.slane %v3550_v42, 7  ;;  %v2919_v25 = vshrl.u32 %v2792_v34, 16 }
 0x33e   : > { %v2908_v14 = vrot.slane %v2906_v63, 4  ;;  %v2911_v28 = vrot.slane %v2909_v17, 5  ;;  %v3254_v56 = vpack.c.b16 %v3225_v31, %v3224_v4  ;;  %v2597_v58 = vunpack.c.l.b16 %v2089_v6 }
 0x33f   : > { %v3555_v43 = vor.u32 %v3553_v18, %v3552_v54  ;;  %v3547_v59 = vsel %vm13962_vm6, %v10769_v51, %v3546_v11  ;;  %v2917_v16 = vrot.slane %v2915_v44, 5  ;;  %v2921_v35 = vrot.slane %v2919_v25, 4  ;;  %v2795_v51 = vld [vmem:[#allocation2 + $0x48] sm:$0xf]  ;;  %v2796_v25 = vld [vmem:[#allocation2 + $0x4c] sm:$0x1] }
 0x340   : > { %v2912_v39 = vor.u32 %v2911_v28, %v2908_v14  ;;  %v2598_v22 = vunpack.c.l.b16 %v2098_v55  ;;  %v2925_v45 = vshll.u32 %v2793_v47, 16  ;;  %v2105_v46 = vshrl.u32 %v1973_v33, 16  ;;  %v11573_v47 = vld [vmem:[#allocation2 + $0x44] sm:$0xff] }
 0x341   : > { %v3556_v61 = vsel %vm13962_vm6, %v3548_v0, %v3555_v43  ;;  %v2922_v52 = vor.u32 %v2921_v35, %v2917_v16  ;;  %v2100_v23 = vshrl.u32 %v1972_v57, 16  ;;  %v3850_v41 = vunpack.c.l.b16 %v3547_v59  ;;  %v1977_v35 = vld [vmem:[#allocation2 + $0x58] sm:$0xf] }
 0x342   : > { %10753 = vmatmul.msk.bf16.gmra.mxu0 %vm1367_vm15, %v3254_v56  ;;  %v3851_v30 = vunpack.c.l.b16 %v3556_v61  ;;  %v2913_v27 = vrot.slane %v2912_v39, 4  ;;  %v2114_v26 = vshrl.u32 %v1974_v10, 16  ;;  %v2107_v24 = vrot.slane %v2105_v46, 7 }
 0x343   : > { %v2626_v40 = vpack.c.b16 %v2598_v22, %v2597_v58  ;;  %v2923_v1 = vrot.slane %v2922_v52, 4  ;;  %v2927_v15 = vrot.slane %v2925_v45, 5  ;;  %v2108_v49 = vshll.u32 %v1973_v33, 16  ;;  %v1975_v52 = vld [vmem:[#allocation2 + $0x50] sm:$0x8] }
 0x344   : > { %v10627_v50 = vrot.slane %v2100_v23, 11  ;;  %v2116_v62 = vrot.slane %v2114_v26, 7  ;;  %v3558_v29 = vshrl.u32 %v3452_v53, 16  ;;  %v3563_v32 = vshrl.u32 %v3453_v20, 16  ;;  %v3456_v23 = vld [vmem:[#allocation2 + $0x54] sm:$0xf] }
 0x345   : > { %v3880_v3 = vpack.c.b16 %v3851_v30, %v3850_v41  ;;  %v2918_v21 = vsel %vm13761_vm2, %v2913_v27, %v2917_v16  ;;  %v2117_v36 = vshll.u32 %v1974_v10, 16  ;;  %v3572_v12 = vshrl.u32 %v3454_v5, 16  ;;  %v1976_v16 = vld [vmem:[#allocation2 + $0x54] sm:$0xf]  ;;  %v3457_v53 = vld [vmem:[#allocation2 + $0x58] sm:$0xf] }
 0x346   : > { %v2110_v37 = vor.u32 %v2108_v49, %v2107_v24  ;;  %v3565_v8 = vrot.slane %v3563_v32, 7  ;;  %v3566_v7 = vshll.u32 %v3453_v20, 16  ;;  %v2930_v48 = vshrl.u32 %v2794_v13, 16  ;;  %v3455_v20 = vld [vmem:[#allocation2 + $0x50] sm:$0x8] }
 0x347   : > { %v2928_v4 = vsel %vm13761_vm2, %v2923_v1, %v2927_v15  ;;  %v2112_v31 = vrot.slane %v2107_v24, 4  ;;  %v3574_v9 = vrot.slane %v3572_v12, 7  ;;  %v2933_v42 = vshll.u32 %v2794_v13, 16  ;;  %v2797_v1 = vld [vmem:[#allocation2 + $0x54] sm:$0xf] }
 0x348   : > { %10732 = vmatmul.msk.bf16.gmra.mxu3 %vm1367_vm15, %v2626_v40  ;;  %v2119_v34 = vor.u32 %v2117_v36, %v2116_v62  ;;  %v10770_v2 = vrot.slane %v3558_v29, 11  ;;  %v3568_v6 = vor.u32 %v3566_v7, %v3565_v8  ;;  %v3575_v18 = vshll.u32 %v3454_v5, 16  ;;  %v2798_v62 = vld [vmem:[#allocation2 + $0x58] sm:$0xf] }
 0x349   : > { %v2932_v63 = vrot.slane %v2930_v48, 4  ;;  %v2935_v17 = vrot.slane %v2933_v42, 5  ;;  %v2939_v55 = vshll.u32 %v2795_v51, 16  ;;  %v2943_v11 = vshrl.u32 %v2795_v51, 16 }
 0x34a   : > { %v3226_v0 = vunpack.c.l.b16 %v2918_v21  ;;  %v3227_v54 = vunpack.c.l.b16 %v2928_v4  ;;  %v3570_v14 = vrot.slane %v3565_v8, 4  ;;  %v3577_v28 = vor.u32 %v3575_v18, %v3574_v9 }
 0x34b   : > { %10791 = vmatmul.msk.bf16.gmra.mxu1 %vm1367_vm15, %v3880_v3  ;;  %v2941_v44 = vrot.slane %v2939_v55, 5  ;;  %v2945_v33 = vrot.slane %v2943_v11, 4  ;;  %v2111_v56 = vsel %vm13962_vm6, %v10627_v50, %v2110_v37  ;;  %v2120_v58 = vsel %vm13962_vm6, %v2112_v31, %v2119_v34 }
 0x34c   : > { %10713 = vmatmul.msk.bf16.gmra.mxu2 %vm1367_vm15, %v11573_v47  ;;  %v3569_v43 = vsel %vm13962_vm6, %v10770_v2, %v3568_v6  ;;  %v2936_v57 = vor.u32 %v2935_v17, %v2932_v63  ;;  %v3255_v59 = vpack.c.b16 %v3227_v54, %v3226_v0  ;;  %v3578_v39 = vsel %vm13962_vm6, %v3570_v14, %v3577_v28  ;;  %v11574_v17 = vld [vmem:[#allocation2 + $0x54] sm:$0xff]  ;;  %v1979_v54 = vld [vmem:[#allocation2 + $0x64] sm:$0xf] }
 0x34d   : > { %v2946_v10 = vor.u32 %v2945_v33, %v2941_v44  ;;  %v2949_v22 = vshll.u32 %v2796_v25, 16  ;;  %v2599_v61 = vunpack.c.l.b16 %v2111_v56  ;;  %v2600_v45 = vunpack.c.l.b16 %v2120_v58  ;;  %v2799_v56 = vld [vmem:[#allocation2 + $0x5c] sm:$0x1]  ;;  %v1980_v58 = vld [vmem:[#allocation2 + $0x68] sm:$0xf] }
 0x34e   : > { %v3852_v46 = vunpack.c.l.b16 %v3569_v43  ;;  %v3853_v41 = vunpack.c.l.b16 %v3578_v39  ;;  %v2937_v30 = vrot.slane %v2936_v57, 4  ;;  %v2127_v27 = vshrl.u32 %v1976_v16, 16 }
 0x34f   : > { %v2136_v26 = vshrl.u32 %v1977_v35, 16  ;;  %v2947_v24 = vrot.slane %v2946_v10, 4  ;;  %v2951_v5 = vrot.slane %v2949_v22, 5  ;;  %v3585_v40 = vshrl.u32 %v3456_v23, 16 }
 0x350   : > { %v2627_v15 = vpack.c.b16 %v2600_v45, %v2599_v61  ;;  %v2122_v49 = vshrl.u32 %v1975_v52, 16  ;;  %v2130_v13 = vshll.u32 %v1976_v16, 16  ;;  %v3594_v50 = vshrl.u32 %v3457_v53, 16 }
 0x351   : > { %v3881_v29 = vpack.c.b16 %v3853_v41, %v3852_v46  ;;  %v2942_v32 = vsel %vm13761_vm2, %v2937_v30, %v2941_v44  ;;  %v2129_v3 = vrot.slane %v2127_v27, 7  ;;  %v2138_v21 = vrot.slane %v2136_v26, 7  ;;  %v3459_v27 = vld [vmem:[#allocation2 + $0x64] sm:$0xf]  ;;  %v3460_v26 = vld [vmem:[#allocation2 + $0x68] sm:$0xf] }
 0x352   : > { %10754 = vmatmul.msk.bf16.gmra.mxu0 %vm1367_vm15, %v3255_v59  ;;  %v2139_v36 = vshll.u32 %v1977_v35, 16  ;;  %v3580_v12 = vshrl.u32 %v3455_v20, 16  ;;  %v2954_v37 = vshrl.u32 %v2797_v1, 16  ;;  %v2957_v8 = vshll.u32 %v2797_v1, 16  ;;  %v1978_v59 = vld [vmem:[#allocation2 + $0x60] sm:$0x8] }
 0x353   : > { %v2952_v7 = vsel %vm13761_vm2, %v2947_v24, %v2951_v5  ;;  %v3587_v51 = vrot.slane %v3585_v40, 7  ;;  %v2963_v48 = vshll.u32 %v2798_v62, 16  ;;  %v2967_v4 = vshrl.u32 %v2798_v62, 16  ;;  %v2800_v5 = vld [vmem:[#allocation2 + $0x64] sm:$0xf] }
 0x354   : > { %v3228_v31 = vunpack.c.l.b16 %v2942_v32  ;;  %v10628_v9 = vrot.slane %v2122_v49, 11  ;;  %v3596_v42 = vrot.slane %v3594_v50, 7  ;;  %v2132_v34 = vor.u32 %v2130_v13, %v2129_v3  ;;  %v2801_v13 = vld [vmem:[#allocation2 + $0x68] sm:$0xf] }
 0x355   : > { %v2134_v2 = vrot.slane %v2129_v3, 4  ;;  %v2141_v6 = vor.u32 %v2139_v36, %v2138_v21  ;;  %v3588_v18 = vshll.u32 %v3456_v23, 16  ;;  %v3229_v63 = vunpack.c.l.b16 %v2952_v7  ;;  %v3458_v36 = vld [vmem:[#allocation2 + $0x60] sm:$0x8] }
 0x356   : > { %v3597_v55 = vshll.u32 %v3457_v53, 16  ;;  %v2956_v11 = vrot.slane %v2954_v37, 4  ;;  %v2959_v0 = vrot.slane %v2957_v8, 5  ;;  %v10771_v47 = vrot.slane %v3580_v12, 11 }
 0x357   : > { %v3590_v14 = vor.u32 %v3588_v18, %v3587_v51  ;;  %v2965_v28 = vrot.slane %v2963_v48, 5  ;;  %v2969_v44 = vrot.slane %v2967_v4, 4  ;;  %v3592_v25 = vrot.slane %v3587_v51, 4 }
 0x358   : > { %10733 = vmatmul.msk.bf16.gmra.mxu3 %vm1367_vm15, %v2627_v15  ;;  %v3599_v33 = vor.u32 %v3597_v55, %v3596_v42  ;;  %v2133_v43 = vsel %vm13962_vm6, %v10628_v9, %v2132_v34  ;;  %v2142_v57 = vsel %vm13962_vm6, %v2134_v2, %v2141_v6  ;;  %v2149_v39 = vshrl.u32 %v1979_v54, 16 }
 0x359   : > { %v3256_v16 = vpack.c.b16 %v3229_v63, %v3228_v31  ;;  %v2960_v35 = vor.u32 %v2959_v0, %v2956_v11  ;;  %v3591_v10 = vsel %vm13962_vm6, %v10771_v47, %v3590_v14  ;;  %v2970_v22 = vor.u32 %v2969_v44, %v2965_v28  ;;  %v11575_v0 = vld [vmem:[#allocation2 + $0x64] sm:$0xff]  ;;  %v2802_v44 = vld [vmem:[#allocation2 + $0x6c] sm:$0x1] }
 0x35a   : > { %v2973_v61 = vshll.u32 %v2799_v56, 16  ;;  %v2158_v45 = vshrl.u32 %v1980_v58, 16  ;;  %v2601_v46 = vunpack.c.l.b16 %v2133_v43  ;;  %v2602_v52 = vunpack.c.l.b16 %v2142_v57  ;;  %v1982_v43 = vld [vmem:[#allocation2 + $0x74] sm:$0xf] }
 0x35b   : > { %10792 = vmatmul.msk.bf16.gmra.mxu1 %vm1367_vm15, %v3881_v29  ;;  %v3600_v23 = vsel %vm13962_vm6, %v3592_v25, %v3599_v33  ;;  %v2144_v41 = vshrl.u32 %v1978_v59, 16  ;;  %v2151_v30 = vrot.slane %v2149_v39, 7  ;;  %v3854_v53 = vunpack.c.l.b16 %v3591_v10  ;;  %v1981_v39 = vld [vmem:[#allocation2 + $0x70] sm:$0x8] }
 0x35c   : > { %10714 = vmatmul.msk.bf16.gmra.mxu2 %vm1367_vm15, %v11574_v17  ;;  %v2961_v20 = vrot.slane %v2960_v35, 4  ;;  %v2152_v24 = vshll.u32 %v1979_v54, 16  ;;  %v3855_v40 = vunpack.c.l.b16 %v3600_v23  ;;  %v2971_v1 = vrot.slane %v2970_v22, 4 }
 0x35d   : > { %v2975_v15 = vrot.slane %v2973_v61, 5  ;;  %v2160_v49 = vrot.slane %v2158_v45, 7  ;;  %v2628_v50 = vpack.c.b16 %v2602_v52, %v2601_v46  ;;  %v10629_v62 = vrot.slane %v2144_v41, 11  ;;  %v3462_v45 = vld [vmem:[#allocation2 + $0x74] sm:$0xf] }
 0x35e   : > { %v3607_v29 = vshrl.u32 %v3459_v27, 16  ;;  %v3616_v32 = vshrl.u32 %v3460_v26, 16  ;;  %v2154_v3 = vor.u32 %v2152_v24, %v2151_v30  ;;  %v2161_v21 = vshll.u32 %v1980_v58, 16  ;;  %v3463_v52 = vld [vmem:[#allocation2 + $0x78] sm:$0xf] }
 0x35f   : > { %v2978_v12 = vshrl.u32 %v2800_v5, 16  ;;  %v2981_v37 = vshll.u32 %v2800_v5, 16  ;;  %v2966_v8 = vsel %vm13761_vm2, %v2961_v20, %v2965_v28  ;;  %v2987_v7 = vshll.u32 %v2801_v13, 16 }
 0x360   : > { %v2991_v51 = vshrl.u32 %v2801_v13, 16  ;;  %v3882_v48 = vpack.c.b16 %v3855_v40, %v3854_v53  ;;  %v2976_v4 = vsel %vm13761_vm2, %v2971_v1, %v2975_v15  ;;  %v2156_v31 = vrot.slane %v2151_v30, 4  ;;  %v3461_v53 = vld [vmem:[#allocation2 + $0x70] sm:$0x8]  ;;  %v2803_v15 = vld [vmem:[#allocation2 + $0x74] sm:$0xf] }
 0x361   : > { %v2163_v9 = vor.u32 %v2161_v21, %v2160_v49  ;;  %v3602_v42 = vshrl.u32 %v3458_v36, 16  ;;  %v3609_v34 = vrot.slane %v3607_v29, 7  ;;  %v3610_v2 = vshll.u32 %v3459_v27, 16  ;;  %v2804_v29 = vld [vmem:[#allocation2 + $0x78] sm:$0xf] }
 0x362   : > { %10755 = vmatmul.msk.bf16.gmra.mxu0 %vm1367_vm15, %v3256_v16  ;;  %v3618_v6 = vrot.slane %v3616_v32, 7  ;;  %v3230_v18 = vunpack.c.l.b16 %v2966_v8  ;;  %v2155_v63 = vsel %vm13962_vm6, %v10629_v62, %v2154_v3  ;;  %v2980_v17 = vrot.slane %v2978_v12, 4  ;;  %v1983_v16 = vld [vmem:[#allocation2 + $0x78] sm:$0xf] }
 0x363   : > { %v2983_v55 = vrot.slane %v2981_v37, 5  ;;  %v3231_v11 = vunpack.c.l.b16 %v2976_v4  ;;  %v3619_v54 = vshll.u32 %v3460_v26, 16  ;;  %v2989_v47 = vrot.slane %v2987_v7, 5 }
 0x364   : > { %v2993_v14 = vrot.slane %v2991_v51, 4  ;;  %v2164_v28 = vsel %vm13962_vm6, %v2156_v31, %v2163_v9  ;;  %v10772_v25 = vrot.slane %v3602_v42, 11  ;;  %v3612_v33 = vor.u32 %v3610_v2, %v3609_v34 }
 0x365   : > { %v3614_v56 = vrot.slane %v3609_v34, 4  ;;  %v3621_v58 = vor.u32 %v3619_v54, %v3618_v6  ;;  %v2603_v57 = vunpack.c.l.b16 %v2155_v63  ;;  %v2984_v59 = vor.u32 %v2983_v55, %v2980_v17 }
 0x366   : > { %v3257_v35 = vpack.c.b16 %v3231_v11, %v3230_v18  ;;  %v2604_v10 = vunpack.c.l.b16 %v2164_v28  ;;  %v2994_v22 = vor.u32 %v2993_v14, %v2989_v47  ;;  %v2997_v61 = vshll.u32 %v2802_v44, 16  ;;  %v2805_v44 = vld [vmem:[#allocation2 + $0x7c] sm:$0x1] }
 0x367   : > { %v2171_v46 = vshrl.u32 %v1982_v43, 16  ;;  %v3613_v23 = vsel %vm13962_vm6, %v10772_v25, %v3612_v33  ;;  %v3622_v41 = vsel %vm13962_vm6, %v3614_v56, %v3621_v58  ;;  %v2166_v30 = vshrl.u32 %v1981_v39, 16  ;;  %v1985_v56 = vld [vmem:[#allocation2 + $0x84] sm:$0xf] }
 0x368   : > { %10734 = vmatmul.msk.bf16.gmra.mxu3 %vm1367_vm15, %v2628_v50  ;;  %v2180_v27 = vshrl.u32 %v1983_v16, 16  ;;  %v2985_v26 = vrot.slane %v2984_v59, 4  ;;  %v3629_v20 = vshrl.u32 %v3462_v45, 16  ;;  %v2629_v24 = vpack.c.b16 %v2604_v10, %v2603_v57  ;;  %v1986_v57 = vld [vmem:[#allocation2 + $0x88] sm:$0xf] }
 0x369   : > { %v2995_v5 = vrot.slane %v2994_v22, 4  ;;  %v2999_v40 = vrot.slane %v2997_v61, 5  ;;  %v3638_v1 = vshrl.u32 %v3463_v52, 16  ;;  %v3856_v49 = vunpack.c.l.b16 %v3613_v23 }
 0x36a   : > { %v3857_v13 = vunpack.c.l.b16 %v3622_v41  ;;  %v2173_v50 = vrot.slane %v2171_v46, 7  ;;  %v2174_v62 = vshll.u32 %v1982_v43, 16  ;;  %v10630_v32 = vrot.slane %v2166_v30, 11  ;;  %v3465_v41 = vld [vmem:[#allocation2 + $0x84] sm:$0xf] }
 0x36b   : > { %10793 = vmatmul.msk.bf16.gmra.mxu1 %vm1367_vm15, %v3882_v48  ;;  %v2182_v3 = vrot.slane %v2180_v27, 7  ;;  %v2183_v21 = vshll.u32 %v1983_v16, 16  ;;  %v3624_v36 = vshrl.u32 %v3461_v53, 16  ;;  %v2990_v12 = vsel %vm13761_vm2, %v2985_v26, %v2989_v47  ;;  %v11576_v47 = vld [vmem:[#allocation2 + $0x74] sm:$0xff]  ;;  %v3466_v30 = vld [vmem:[#allocation2 + $0x88] sm:$0xf] }
 0x36c   : > { %10715 = vmatmul.msk.bf16.gmra.mxu2 %vm1367_vm15, %v11575_v0  ;;  %v3631_v37 = vrot.slane %v3629_v20, 7  ;;  %v3002_v8 = vshrl.u32 %v2803_v15, 16  ;;  %v3005_v7 = vshll.u32 %v2803_v15, 16  ;;  %v3000_v51 = vsel %vm13761_vm2, %v2995_v5, %v2999_v40  ;;  %v2806_v5 = vld [vmem:[#allocation2 + $0x84] sm:$0xf] }
 0x36d   : > { %v3640_v48 = vrot.slane %v3638_v1, 7  ;;  %v3011_v4 = vshll.u32 %v2804_v29, 16  ;;  %v3015_v31 = vshrl.u32 %v2804_v29, 16  ;;  %v3883_v9 = vpack.c.b16 %v3857_v13, %v3856_v49  ;;  %v3464_v15 = vld [vmem:[#allocation2 + $0x80] sm:$0x8] }
 0x36e   : > { %v2176_v42 = vor.u32 %v2174_v62, %v2173_v50  ;;  %v2178_v34 = vrot.slane %v2173_v50, 4  ;;  %v3632_v2 = vshll.u32 %v3462_v45, 16  ;;  %v3232_v6 = vunpack.c.l.b16 %v2990_v12 }
 0x36f   : > { %v2185_v18 = vor.u32 %v2183_v21, %v2182_v3  ;;  %v10773_v63 = vrot.slane %v3624_v36, 11  ;;  %v3641_v17 = vshll.u32 %v3463_v52, 16  ;;  %v3233_v55 = vunpack.c.l.b16 %v3000_v51  ;;  %v2807_v3 = vld [vmem:[#allocation2 + $0x88] sm:$0xf] }
 0x370   : > { %v3634_v11 = vor.u32 %v3632_v2, %v3631_v37  ;;  %v3004_v0 = vrot.slane %v3002_v8, 4  ;;  %v3007_v54 = vrot.slane %v3005_v7, 5  ;;  %v3636_v14 = vrot.slane %v3631_v37, 4 }
 0x371   : > { %v3643_v28 = vor.u32 %v3641_v17, %v3640_v48  ;;  %v3013_v25 = vrot.slane %v3011_v4, 5  ;;  %v3017_v33 = vrot.slane %v3015_v31, 4  ;;  %v2177_v58 = vsel %vm13962_vm6, %v10630_v32, %v2176_v42 }
 0x372   : > { %10756 = vmatmul.msk.bf16.gmra.mxu0 %vm1367_vm15, %v3257_v35  ;;  %v2186_v43 = vsel %vm13962_vm6, %v2178_v34, %v2185_v18  ;;  %v3258_v59 = vpack.c.b16 %v3233_v55, %v3232_v6  ;;  %v3008_v39 = vor.u32 %v3007_v54, %v3004_v0  ;;  %v3021_v16 = vshll.u32 %v2805_v44, 16  ;;  %v1984_v35 = vld [vmem:[#allocation2 + $0x80] sm:$0x8]  ;;  %v11577_v54 = vld [vmem:[#allocation2 + $0x84] sm:$0xff] }
 0x373   : > { %v3635_v10 = vsel %vm13962_vm6, %v10773_v63, %v3634_v11  ;;  %v3644_v22 = vsel %vm13962_vm6, %v3636_v14, %v3643_v28  ;;  %v3018_v61 = vor.u32 %v3017_v33, %v3013_v25  ;;  %v2193_v45 = vshrl.u32 %v1985_v56, 16  ;;  %v2808_v33 = vld [vmem:[#allocation2 + $0x8c] sm:$0x1] }
 0x374   : > { %v2605_v46 = vunpack.c.l.b16 %v2177_v58  ;;  %v2606_v52 = vunpack.c.l.b16 %v2186_v43  ;;  %v2202_v23 = vshrl.u32 %v1986_v57, 16  ;;  %v2188_v27 = vshrl.u32 %v1984_v35, 16  ;;  %v1988_v35 = vld [vmem:[#allocation2 + $0x94] sm:$0xf] }
 0x375   : > { %v3858_v26 = vunpack.c.l.b16 %v3635_v10  ;;  %v3859_v53 = vunpack.c.l.b16 %v3644_v22  ;;  %v3009_v20 = vrot.slane %v3008_v39, 4  ;;  %v3019_v40 = vrot.slane %v3018_v61, 4  ;;  %v1989_v10 = vld [vmem:[#allocation2 + $0x98] sm:$0xf]  ;;  %v3468_v22 = vld [vmem:[#allocation2 + $0x94] sm:$0xf] }
 0x376   : > { %v2195_v1 = vrot.slane %v2193_v45, 7  ;;  %v3651_v49 = vshrl.u32 %v3465_v41, 16  ;;  %v3660_v13 = vshrl.u32 %v3466_v30, 16  ;;  %v2630_v50 = vpack.c.b16 %v2606_v52, %v2605_v46 }
 0x377   : > { %v2204_v62 = vrot.slane %v2202_v23, 7  ;;  %v10631_v29 = vrot.slane %v2188_v27, 11  ;;  %v2196_v32 = vshll.u32 %v1985_v56, 16  ;;  %v3026_v21 = vshrl.u32 %v2806_v5, 16  ;;  %v3469_v23 = vld [vmem:[#allocation2 + $0x98] sm:$0xf] }
 0x378   : > { %10735 = vmatmul.msk.bf16.gmra.mxu3 %vm1367_vm15, %v2629_v24  ;;  %v3023_v24 = vrot.slane %v3021_v16, 5  ;;  %v3029_v36 = vshll.u32 %v2806_v5, 16  ;;  %v3884_v12 = vpack.c.b16 %v3859_v53, %v3858_v26  ;;  %v3014_v37 = vsel %vm13761_vm2, %v3009_v20, %v3013_v25  ;;  %v3467_v20 = vld [vmem:[#allocation2 + $0x90] sm:$0x8] }
 0x379   : > { %v2205_v8 = vshll.u32 %v1986_v57, 16  ;;  %v3646_v7 = vshrl.u32 %v3464_v15, 16  ;;  %v2198_v48 = vor.u32 %v2196_v32, %v2195_v1  ;;  %v3653_v4 = vrot.slane %v3651_v49, 7  ;;  %v1987_v57 = vld [vmem:[#allocation2 + $0x90] sm:$0x8] }
 0x37a   : > { %v3024_v51 = vsel %vm13761_vm2, %v3019_v40, %v3023_v24  ;;  %v3662_v31 = vrot.slane %v3660_v13, 7  ;;  %v3035_v34 = vshll.u32 %v2807_v3, 16  ;;  %v3039_v2 = vshrl.u32 %v2807_v3, 16  ;;  %v2809_v13 = vld [vmem:[#allocation2 + $0x94] sm:$0xf] }
 0x37b   : > { %10794 = vmatmul.msk.bf16.gmra.mxu1 %vm1367_vm15, %v3883_v9  ;;  %v2200_v9 = vrot.slane %v2195_v1, 4  ;;  %v2207_v42 = vor.u32 %v2205_v8, %v2204_v62  ;;  %v3654_v6 = vshll.u32 %v3465_v41, 16  ;;  %v3663_v18 = vshll.u32 %v3466_v30, 16  ;;  %v2810_v3 = vld [vmem:[#allocation2 + $0x98] sm:$0xf] }
 0x37c   : > { %10716 = vmatmul.msk.bf16.gmra.mxu2 %vm1367_vm15, %v11576_v47  ;;  %v3028_v63 = vrot.slane %v3026_v21, 4  ;;  %v3031_v17 = vrot.slane %v3029_v36, 5  ;;  %v3234_v55 = vunpack.c.l.b16 %v3014_v37  ;;  %v3235_v11 = vunpack.c.l.b16 %v3024_v51 }
 0x37d   : > { %v10774_v0 = vrot.slane %v3646_v7, 11  ;;  %v2199_v47 = vsel %vm13962_vm6, %v10631_v29, %v2198_v48  ;;  %v3656_v14 = vor.u32 %v3654_v6, %v3653_v4  ;;  %v3658_v28 = vrot.slane %v3653_v4, 4 }
 0x37e   : > { %v3665_v44 = vor.u32 %v3663_v18, %v3662_v31  ;;  %v2208_v25 = vsel %vm13962_vm6, %v2200_v9, %v2207_v42  ;;  %v3037_v56 = vrot.slane %v3035_v34, 5  ;;  %v3041_v58 = vrot.slane %v3039_v2, 4 }
 0x37f   : > { %v3032_v43 = vor.u32 %v3031_v17, %v3028_v63  ;;  %v3259_v39 = vpack.c.b16 %v3235_v11, %v3234_v55  ;;  %v2607_v16 = vunpack.c.l.b16 %v2199_v47  ;;  %v2608_v61 = vunpack.c.l.b16 %v2208_v25  ;;  %v1991_v17 = vld [vmem:[#allocation2 + $0xa4] sm:$0xf]  ;;  %v1992_v47 = vld [vmem:[#allocation2 + $0xa8] sm:$0xf] }
 0x380   : > { %v3657_v45 = vsel %vm13962_vm6, %v10774_v0, %v3656_v14  ;;  %v3666_v46 = vsel %vm13962_vm6, %v3658_v28, %v3665_v44  ;;  %v3045_v52 = vshll.u32 %v2808_v33, 16  ;;  %v3042_v41 = vor.u32 %v3041_v58, %v3037_v56  ;;  %v11578_v58 = vld [vmem:[#allocation2 + $0x94] sm:$0xff] }
 0x381   : > { %v2210_v30 = vshrl.u32 %v1987_v57, 16  ;;  %v3033_v27 = vrot.slane %v3032_v43, 4  ;;  %v2215_v26 = vshrl.u32 %v1988_v35, 16  ;;  %v2224_v53 = vshrl.u32 %v1989_v10, 16  ;;  %v2811_v43 = vld [vmem:[#allocation2 + $0x9c] sm:$0x1] }
 0x382   : > { %10757 = vmatmul.msk.bf16.gmra.mxu0 %vm1367_vm15, %v3258_v59  ;;  %v14152_v59 = vpop.f32.mrf.mxu2  ;;  %v3673_v24 = vshrl.u32 %v3468_v22, 16  ;;  %v3860_v5 = vunpack.c.l.b16 %v3657_v45  ;;  %v3861_v40 = vunpack.c.l.b16 %v3666_v46  ;;  %v3682_v1 = vshrl.u32 %v3469_v23, 16  ;;  %v3471_v45 = vld [vmem:[#allocation2 + $0xa4] sm:$0xf] }
 0x383   : > { %v2631_v15 = vpack.c.b16 %v2608_v61, %v2607_v16  ;;  %v3047_v49 = vrot.slane %v3045_v52, 5  ;;  %v10632_v62 = vrot.slane %v2210_v30, 11  ;;  %v2218_v29 = vshll.u32 %v1988_v35, 16  ;;  %v1990_v35 = vld [vmem:[#allocation2 + $0xa0] sm:$0x8] }
 0x384   : > { %v3668_v32 = vshrl.u32 %v3467_v20, 16  ;;  %v3038_v21 = vsel %vm13761_vm2, %v3033_v27, %v3037_v56  ;;  %v2217_v36 = vrot.slane %v2215_v26, 7  ;;  %v3675_v37 = vrot.slane %v3673_v24, 7  ;;  %v3472_v30 = vld [vmem:[#allocation2 + $0xa8] sm:$0xf] }
 0x385   : > { %v3885_v8 = vpack.c.b16 %v3861_v40, %v3860_v5  ;;  %v3684_v7 = vrot.slane %v3682_v1, 7  ;;  %v3050_v51 = vshrl.u32 %v2809_v13, 16  ;;  %v3053_v48 = vshll.u32 %v2809_v13, 16 }
 0x386   : > { %v2227_v4 = vshll.u32 %v1989_v10, 16  ;;  %v3676_v31 = vshll.u32 %v3468_v22, 16  ;;  %v3059_v9 = vshll.u32 %v2810_v3, 16  ;;  %v3063_v42 = vshrl.u32 %v2810_v3, 16 }
 0x387   : > { %v3236_v6 = vunpack.c.l.b16 %v3038_v21  ;;  %v10775_v18 = vrot.slane %v3668_v32, 11  ;;  %v3685_v63 = vshll.u32 %v3469_v23, 16  ;;  %v2220_v55 = vor.u32 %v2218_v29, %v2217_v36 }
 0x388   : > { %10736 = vmatmul.msk.bf16.gmra.mxu3 %vm1367_vm15, %v2630_v50  ;;  %v3043_v50 = vrot.slane %v3042_v41, 4  ;;  %v2222_v11 = vrot.slane %v2217_v36, 4  ;;  %v14166_v14 = vpop.f32.mrf.mxu0  ;;  %v3680_v28 = vrot.slane %v3675_v37, 4  ;;  %v3052_v25 = vrot.slane %v3050_v51, 4 }
 0x389   : > { %v3687_v44 = vor.u32 %v3685_v63, %v3684_v7  ;;  %v3055_v33 = vrot.slane %v3053_v48, 5  ;;  %v14169_v57 = vrot.slane %v3059_v9, 5  ;;  %v2237_v16 = vshrl.u32 %v1991_v17, 16  ;;  %v2812_v7 = vld [vmem:[#allocation2 + $0xa4] sm:$0xf] }
 0x38a   : > { %v14162_v34 = vpop.f32.mrf.mxu2  ;;  %v3048_v2 = vsel %vm13761_vm2, %v3043_v50, %v3047_v49  ;;  %v2246_v10 = vshrl.u32 %v1992_v47, 16  ;;  %v2221_v22 = vsel %vm13962_vm6, %v10632_v62, %v2220_v55  ;;  %v3069_v41 = vshll.u32 %v2811_v43, 16 }
 0x38b   : > { %10795 = vmatmul.msk.bf16.gmra.mxu1 %vm1367_vm15, %v3884_v12  ;;  %v2226_v12 = vrot.slane %v2224_v53, 7  ;;  %v3237_v56 = vunpack.c.l.b16 %v3048_v2  ;;  %v3688_v52 = vsel %vm13962_vm6, %v3680_v28, %v3687_v44  ;;  %v3056_v23 = vor.u32 %v3055_v33, %v3052_v25 }
 0x38c   : > { %10717 = vmatmul.msk.bf16.gmra.mxu2 %vm1367_vm15, %v11577_v54  ;;  %v3678_v54 = vor.u32 %v3676_v31, %v3675_v37  ;;  %v2232_v53 = vshrl.u32 %v1990_v35, 16  ;;  %v2239_v20 = vrot.slane %v2237_v16, 7  ;;  %v2609_v5 = vunpack.c.l.b16 %v2221_v22 }
 0x38d   : > { %v2229_v0 = vor.u32 %v2227_v4, %v2226_v12  ;;  %v3260_v27 = vpack.c.b16 %v3237_v56, %v3236_v6  ;;  %v2248_v1 = vrot.slane %v2246_v10, 7  ;;  %v3695_v49 = vshrl.u32 %v3471_v45, 16  ;;  %v2813_v6 = vld [vmem:[#allocation2 + $0xa8] sm:$0xf] }
 0x38e   : > { %v3679_v46 = vsel %vm13962_vm6, %v10775_v18, %v3678_v54  ;;  %v3863_v50 = vunpack.c.l.b16 %v3688_v52  ;;  %v2240_v62 = vshll.u32 %v1991_v17, 16  ;;  %v3704_v29 = vshrl.u32 %v3472_v30, 16 }
 0x38f   : > { %v2230_v61 = vsel %vm13962_vm6, %v2222_v11, %v2229_v0  ;;  %v3862_v13 = vunpack.c.l.b16 %v3679_v46  ;;  %v3057_v32 = vrot.slane %v3056_v23, 4  ;;  %v3071_v3 = vrot.slane %v3069_v41, 5  ;;  %v11579_v23 = vld [vmem:[#allocation2 + $0xa4] sm:$0xff] }
 0x390   : > { %v2610_v40 = vunpack.c.l.b16 %v2230_v61  ;;  %v2249_v21 = vshll.u32 %v1992_v47, 16  ;;  %v10633_v12 = vrot.slane %v2232_v53, 11  ;;  %v2242_v37 = vor.u32 %v2240_v62, %v2239_v20  ;;  %v14182_v51 = vpop.f32.mrf.mxu0  ;;  %v1994_v61 = vld [vmem:[#allocation2 + $0xb4] sm:$0xf]  ;;  %v3475_v62 = vld [vmem:[#allocation2 + $0xb8] sm:$0xf] }
 0x391   : > { %v2244_v48 = vrot.slane %v2239_v20, 4  ;;  %v3697_v31 = vrot.slane %v3695_v49, 7  ;;  %v3706_v2 = vrot.slane %v3704_v29, 7  ;;  %v3062_v18 = vsel %vm13761_vm2, %v3057_v32, %v14169_v57  ;;  %v3474_v49 = vld [vmem:[#allocation2 + $0xb4] sm:$0xf] }
 0x392   : > { %10758 = vmatmul.msk.bf16.gmra.mxu0 %vm1367_vm15, %v3259_v39  ;;  %v3065_v39 = vrot.slane %v3063_v42, 4  ;;  %v2251_v4 = vor.u32 %v2249_v21, %v2248_v1  ;;  %v2632_v9 = vpack.c.b16 %v2610_v40, %v2609_v5  ;;  %v3886_v42 = vpack.c.b16 %v3863_v50, %v3862_v13 }
 0x393   : > { %v3698_v63 = vshll.u32 %v3471_v45, 16  ;;  %v3074_v17 = vshrl.u32 %v2812_v7, 16  ;;  %v3077_v55 = vshll.u32 %v2812_v7, 16  ;;  %v2243_v54 = vsel %vm13962_vm6, %v10633_v12, %v2242_v37  ;;  %v1995_v45 = vld [vmem:[#allocation2 + $0xb8] sm:$0xf] }
 0x394   : > { %v3066_v26 = vor.u32 %v3065_v39, %v14169_v57  ;;  %v3707_v28 = vshll.u32 %v3472_v30, 16  ;;  %v2252_v25 = vsel %vm13962_vm6, %v2244_v48, %v2251_v4  ;;  %v3083_v56 = vshll.u32 %v2813_v6, 16  ;;  %v2814_v39 = vld [vmem:[#allocation2 + $0xac] sm:$0x1]  ;;  %v2815_v12 = vld [vmem:[#allocation2 + $0xb4] sm:$0xf] }
 0x395   : > { %v3700_v33 = vor.u32 %v3698_v63, %v3697_v31  ;;  %v3702_v43 = vrot.slane %v3697_v31, 4  ;;  %v3238_v16 = vunpack.c.l.b16 %v3062_v18  ;;  %v3076_v10 = vrot.slane %v3074_v17, 4  ;;  %v2816_v31 = vld [vmem:[#allocation2 + $0xb8] sm:$0xf] }
 0x396   : > { %v3067_v36 = vrot.slane %v3066_v26, 4  ;;  %v3709_v57 = vor.u32 %v3707_v28, %v3706_v2  ;;  %v3079_v22 = vrot.slane %v3077_v55, 5  ;;  %v2611_v41 = vunpack.c.l.b16 %v2243_v54 }
 0x397   : > { %v2612_v30 = vunpack.c.l.b16 %v2252_v25  ;;  %v14199_v53 = vrot.slane %v3083_v56, 5  ;;  %v3093_v40 = vshll.u32 %v2814_v39, 16  ;;  %v2259_v1 = vshrl.u32 %v1994_v61, 16 }
 0x398   : > { %10737 = vmatmul.msk.bf16.gmra.mxu3 %vm1367_vm15, %v2631_v15  ;;  %v3470_v15 = vld [vmem:[#allocation2 + $0xa0] sm:$0x8]  ;;  %v3072_v0 = vsel %vm13761_vm2, %v3067_v36, %v3071_v3  ;;  %v3710_v5 = vsel %vm13962_vm6, %v3702_v43, %v3709_v57  ;;  %v3080_v13 = vor.u32 %v3079_v22, %v3076_v10  ;;  %v2262_v48 = vshll.u32 %v1994_v61, 16 }
 0x399   : > { %v3239_v46 = vunpack.c.l.b16 %v3072_v0  ;;  %v2633_v21 = vpack.c.b16 %v2612_v30, %v2611_v41  ;;  %v3717_v4 = vshrl.u32 %v3474_v49, 16  ;;  %v3726_v18 = vshrl.u32 %v3475_v62, 16 }
 0x39a   : > { %v3081_v17 = vrot.slane %v3080_v13, 4  ;;  %v3098_v0 = vshrl.u32 %v2815_v12, 16  ;;  %v3101_v54 = vshll.u32 %v2815_v12, 16  ;;  %v2271_v28 = vshll.u32 %v1995_v45, 16 }
 0x39b   : > { %10796 = vmatmul.msk.bf16.gmra.mxu1 %vm1367_vm15, %v3885_v8  ;;  %v3690_v8 = vshrl.u32 %v3470_v15, 16  ;;  %v2268_v15 = vshrl.u32 %v1995_v45, 16  ;;  %v3261_v29 = vpack.c.b16 %v3239_v46, %v3238_v16  ;;  %v3107_v25 = vshll.u32 %v2816_v31, 16 }
 0x39c   : > { %10718 = vmatmul.msk.bf16.gmra.mxu2 %vm1367_vm15, %v11578_v58  ;;  %v3087_v58 = vshrl.u32 %v2813_v6, 16  ;;  %v3473_v6 = vld [vmem:[#allocation2 + $0xb0] sm:$0x8]  ;;  %v3719_v57 = vrot.slane %v3717_v4, 7  ;;  %v3728_v10 = vrot.slane %v3726_v18, 7  ;;  %v3086_v61 = vsel %vm13761_vm2, %v3081_v17, %v14199_v53 }
 0x39d   : > { %v10776_v47 = vrot.slane %v3690_v8, 11  ;;  %v3865_v8 = vunpack.c.l.b16 %v3710_v5  ;;  %v2270_v2 = vrot.slane %v2268_v15, 7  ;;  %v3712_v43 = vshrl.u32 %v3473_v6, 16 }
 0x39e   : > { %v3089_v20 = vrot.slane %v3087_v58, 4  ;;  %v3720_v46 = vshll.u32 %v3474_v49, 16  ;;  %v3729_v41 = vshll.u32 %v3475_v62, 16  ;;  %v14212_v30 = vrot.slane %v3107_v25, 5 }
 0x39f   : > { %v2516_v24 = vpop.f32.mrf.mxu2  ;;  %v3701_v26 = vsel %vm13962_vm6, %v10776_v47, %v3700_v33  ;;  %v3111_v33 = vshrl.u32 %v2816_v31, 16 }
 0x3a0   : > { %v3864_v36 = vunpack.c.l.b16 %v3701_v26  ;;  %v3090_v7 = vor.u32 %v3089_v20, %v14199_v53  ;;  %v2817_v53 = vld [vmem:[#allocation2 + $0xbc] sm:$0x1]  ;;  %v3731_v13 = vor.u32 %v3729_v41, %v3728_v10 }
 0x3a1   : > { %v3117_v4 = vshll.u32 %v2817_v53, 16 }
 0x3a2   : > { %10759 = vmatmul.msk.bf16.gmra.mxu0 %vm1367_vm15, %v3260_v27  ;;  %v1993_v27 = vld [vmem:[#allocation2 + $0xb0] sm:$0x8]  ;;  %v3887_v56 = vpack.c.b16 %v3865_v8, %v3864_v36  ;;  %v3091_v58 = vrot.slane %v3090_v7, 4  ;;  %v1998_v36 = vld [vmem:[#allocation2 + $0xc8] sm:$0xf]  ;;  %v11580_v7 = vld [vmem:[#allocation2 + $0xb4] sm:$0xff] }
 0x3a3   : > { %v2254_v50 = vshrl.u32 %v1993_v27, 16  ;;  %v3113_v27 = vrot.slane %v3111_v33, 4  ;;  %v3119_v25 = vrot.slane %v3117_v4, 5  ;;  %v3476_v33 = vld [vmem:[#allocation2 + $0xc0] sm:$0x8] }
 0x3a4   : > { %v3734_v41 = vshrl.u32 %v3476_v33, 16 }
 0x3a5   : > { %v10634_v55 = vrot.slane %v2254_v50, 11  ;;  %v3240_v50 = vunpack.c.l.b16 %v3086_v61 }
 0x3a7   : > { %v2518_v44 = vpop.f32.mrf.mxu2 }
 0x3a8   : > { %v14187_v11 = vpop.f32.mrf.mxu1  ;;  %10738 = vmatmul.msk.bf16.gmra.mxu3 %vm1367_vm15, %v2632_v9  ;;  %v3095_v9 = vrot.slane %v3093_v40, 5  ;;  %v10777_v40 = vrot.slane %v3712_v43, 11 }
 0x3aa   : > { %v3096_v5 = vsel %vm13761_vm2, %v3091_v58, %v3095_v9 }
 0x3ab   : > { %10797 = vmatmul.msk.bf16.gmra.mxu1 %vm1367_vm15, %v3886_v42  ;;  %v2707_v35 = vpop.f32.mrf.mxu3  ;;  %v2261_v42 = vrot.slane %v2259_v1, 7  ;;  %v3722_v1 = vor.u32 %v3720_v46, %v3719_v57  ;;  %v3241_v12 = vunpack.c.l.b16 %v3096_v5 }
 0x3ac   : > { %v2708_v52 = vadd.f32 %v2707_v35, %v2516_v24  ;;  %10719 = vmatmul.msk.bf16.gmra.mxu2 %vm1367_vm15, %v11579_v23  ;;  %v2273_v35 = vor.u32 %v2271_v28, %v2270_v2  ;;  %v3103_v23 = vrot.slane %v3101_v54, 5 }
 0x3ad   : > { %v2264_v39 = vor.u32 %v2262_v48, %v2261_v42  ;;  %v2266_v16 = vrot.slane %v2261_v42, 4  ;;  %v3114_v48 = vor.u32 %v3113_v27, %v14212_v30  ;;  %v3723_v42 = vsel %vm13962_vm6, %v10777_v40, %v3722_v1 }
 0x3ae   : > { %v2293_v1 = vshll.u32 %v1998_v36, 16 }
 0x3af   : > { %v3336_v24 = vpop.f32.mrf.mxu0  ;;  %v2521_v37 = vpop.f32.mrf.mxu2  ;;  %v2265_v15 = vsel %vm13962_vm6, %v10634_v55, %v2264_v39  ;;  %v2274_v49 = vsel %vm13962_vm6, %v2266_v16, %v2273_v35  ;;  %v3115_v28 = vrot.slane %v3114_v48, 4  ;;  %v3866_v39 = vunpack.c.l.b16 %v3723_v42  ;;  %v2818_v35 = vld [vmem:[#allocation2 + $0xc4] sm:$0xf]  ;;  %v2001_v48 = vld [vmem:[#allocation2 + $0xd8] sm:$0xf] }
 0x3b0   : > { %v14204_v32 = vpop.f32.mrf.mxu1  ;;  %v3413_v3 = vadd.f32 %v3336_v24, %v2708_v52  ;;  %v3100_v52 = vrot.slane %v3098_v0, 4  ;;  %v3724_v24 = vrot.slane %v3719_v57, 4  ;;  %v2613_v31 = vunpack.c.l.b16 %v2265_v15  ;;  %v2820_v42 = vld [vmem:[#allocation2 + $0xcc] sm:$0x1] }
 0x3b1   : > { %v2614_v9 = vunpack.c.l.b16 %v2274_v49  ;;  %v3262_v0 = vpack.c.b16 %v3241_v12, %v3240_v50  ;;  %v3120_v40 = vsel %vm13761_vm2, %v3115_v28, %v3119_v25  ;;  %v3122_v53 = vshrl.u32 %v2818_v35, 16  ;;  %v1999_v28 = vld [vmem:[#allocation2 + $0xd0] sm:$0x8] }
 0x3b2   : > { %10760 = vmatmul.msk.bf16.gmra.mxu0 %vm1367_vm15, %v3261_v29  ;;  %v3104_v29 = vor.u32 %v3103_v23, %v3100_v52  ;;  %v3732_v2 = vsel %vm13962_vm6, %v3724_v24, %v3731_v13  ;;  %v2819_v52 = vld [vmem:[#allocation2 + $0xc8] sm:$0xf]  ;;  %v3125_v49 = vshll.u32 %v2818_v35, 16  ;;  %v3243_v12 = vunpack.c.l.b16 %v3120_v40 }
 0x3b3   : > { %v2709_v63 = vpop.f32.mrf.mxu3  ;;  %v2634_v57 = vpack.c.b16 %v2614_v9, %v2613_v31  ;;  %v3867_v16 = vunpack.c.l.b16 %v3732_v2  ;;  %v3131_v24 = vshll.u32 %v2819_v52, 16  ;;  %v3135_v13 = vshrl.u32 %v2819_v52, 16  ;;  %v11581_v35 = vld [vmem:[#allocation2 + $0xc4] sm:$0xff] }
 0x3b4   : > { %v2710_v47 = vadd.f32 %v2709_v63, %v2518_v44  ;;  %v2290_v63 = vshrl.u32 %v1998_v36, 16  ;;  %v3105_v55 = vrot.slane %v3104_v29, 4  ;;  %v3124_v2 = vrot.slane %v3122_v53, 4  ;;  %v3479_v53 = vld [vmem:[#allocation2 + $0xd0] sm:$0x8] }
 0x3b5   : > { %v3888_v15 = vpack.c.b16 %v3867_v16, %v3866_v39  ;;  %v2312_v33 = vshrl.u32 %v2001_v48, 16  ;;  %v3141_v39 = vshll.u32 %v2820_v42, 16  ;;  %v2298_v52 = vshrl.u32 %v1999_v28, 16 }
 0x3b6   : > { %v2292_v46 = vrot.slane %v2290_v63, 7  ;;  %v3127_v63 = vrot.slane %v3125_v49, 5 }
 0x3b7   : > { %v3338_v22 = vpop.f32.mrf.mxu0  ;;  %v2523_v20 = vpop.f32.mrf.mxu2 }
 0x3b8   : > { %v3962_v44 = vpop.f32.mrf.mxu1  ;;  %10739 = vmatmul.msk.bf16.gmra.mxu3 %vm1367_vm15, %v2633_v21  ;;  %v3414_v45 = vadd.f32 %v3338_v22, %v2710_v47  ;;  %v1997_v21 = vld [vmem:[#allocation2 + $0xc4] sm:$0xf] }
 0x3b9   : > { %v14214_v26 = vadd.f32 %v3962_v44, %v3413_v3  ;;  %v1996_v3 = vld [vmem:[#allocation2 + $0xc0] sm:$0x8]  ;;  %v2281_v18 = vshrl.u32 %v1997_v21, 16  ;;  %v2284_v61 = vshll.u32 %v1997_v21, 16  ;;  %v3110_v44 = vsel %vm13761_vm2, %v3105_v55, %v14212_v30  ;;  %v2000_v30 = vld [vmem:[#allocation2 + $0xd4] sm:$0xf] }
 0x3ba   : > { %v2276_v6 = vshrl.u32 %v1996_v3, 16  ;;  %v14240_v50 = vunpack.c.l.b16 %v3110_v44  ;;  %v2295_v3 = vor.u32 %v2293_v1, %v2292_v46  ;;  %v3137_v55 = vrot.slane %v3135_v13, 4 }
 0x3bb   : > { %10798 = vmatmul.msk.bf16.gmra.mxu1 %vm1367_vm15, %v3887_v56  ;;  %v2712_v62 = vpop.f32.mrf.mxu3  ;;  %v3478_v56 = vld [vmem:[#allocation2 + $0xc8] sm:$0xf]  ;;  %v2283_v22 = vrot.slane %v2281_v18, 7  ;;  %v2303_v25 = vshrl.u32 %v2000_v30, 16  ;;  %v3128_v46 = vor.u32 %v3127_v63, %v3124_v2  ;;  %v3143_v1 = vrot.slane %v3141_v39, 5 }
 0x3bc   : > { %v2713_v8 = vadd.f32 %v2712_v62, %v2521_v37  ;;  %10720 = vmatmul.msk.bf16.gmra.mxu2 %vm1367_vm15, %v11580_v7  ;;  %v14229_v37 = vld [vmem:[#allocation2 + $0xc4] sm:$0xf]  ;;  %v10635_v10 = vrot.slane %v2276_v6, 11  ;;  %v3748_v27 = vshrl.u32 %v3478_v56, 16  ;;  %v3751_v9 = vshll.u32 %v3478_v56, 16 }
 0x3bd   : > { %v2286_v62 = vor.u32 %v2284_v61, %v2283_v22  ;;  %v2288_v29 = vrot.slane %v2283_v22, 4  ;;  %v3742_v31 = vshll.u32 %v14229_v37, 16  ;;  %v3480_v22 = vld [vmem:[#allocation2 + $0xd4] sm:$0xf]  ;;  %v3263_v44 = vpack.c.b16 %v3243_v12, %v14240_v50 }
 0x3be   : > { %v3750_v7 = vrot.slane %v3748_v27, 7  ;;  %v2314_v27 = vrot.slane %v2312_v33, 7  ;;  %v2306_v13 = vshll.u32 %v2000_v30, 16  ;;  %v2315_v50 = vshll.u32 %v2001_v48, 16  ;;  %v2821_v48 = vld [vmem:[#allocation2 + $0xd4] sm:$0xf] }
 0x3bf   : > { %v3341_v17 = vpop.f32.mrf.mxu0  ;;  %v2526_v43 = vpop.f32.mrf.mxu2  ;;  %v3764_v28 = vshll.u32 %v3480_v22, 16 }
 0x3c0   : > { %v3964_v54 = vpop.f32.mrf.mxu1  ;;  %v3415_v47 = vadd.f32 %v3341_v17, %v2713_v8  ;;  %v14242_v8 = vrot.slane %v3734_v41, 11  ;;  %v14248_v17 = vrot.slane %v3131_v24, 5 }
 0x3c1   : > { %v14231_v58 = vadd.f32 %v3964_v54, %v3414_v45  ;;  %v3739_v45 = vshrl.u32 %v14229_v37, 16  ;;  %v2296_v54 = vsel %vm13962_vm6, %v2288_v29, %v2295_v3 }
 0x3c2   : > { %10761 = vmatmul.msk.bf16.gmra.mxu0 %vm1367_vm15, %v3262_v0  ;;  %v2287_v0 = vsel %vm13962_vm6, %v10635_v10, %v2286_v62  ;;  %v3138_v10 = vor.u32 %v3137_v55, %v14248_v17  ;;  %v2616_v41 = vunpack.c.l.b16 %v2296_v54 }
 0x3c3   : > { %v2714_v23 = vpop.f32.mrf.mxu3  ;;  %v2615_v61 = vunpack.c.l.b16 %v2287_v0 }
 0x3c4   : > { %v2715_v5 = vadd.f32 %v2714_v23, %v2523_v20  ;;  %v3741_v20 = vrot.slane %v3739_v45, 7  ;;  %v3481_v23 = vld [vmem:[#allocation2 + $0xd8] sm:$0xf]  ;;  %v2305_v45 = vrot.slane %v2303_v25, 7  ;;  %v3139_v12 = vrot.slane %v3138_v10, 4 }
 0x3c5   : > { %v3770_v62 = vshrl.u32 %v3481_v23, 16  ;;  %v2635_v63 = vpack.c.b16 %v2616_v41, %v2615_v61  ;;  %v2822_v25 = vld [vmem:[#allocation2 + $0xd8] sm:$0xf] }
 0x3c6   : > { %v3744_v56 = vor.u32 %v3742_v31, %v3741_v20  ;;  %v3756_v31 = vshrl.u32 %v3479_v53, 16  ;;  %v3144_v54 = vsel %vm13761_vm2, %v3139_v12, %v3143_v1  ;;  %v3159_v10 = vshrl.u32 %v2822_v25, 16 }
 0x3c7   : > { %v3343_v21 = vpop.f32.mrf.mxu0  ;;  %v2528_v18 = vpop.f32.mrf.mxu2  ;;  %v3772_v30 = vrot.slane %v3770_v62, 7  ;;  %v2003_v62 = vld [vmem:[#allocation2 + $0xe4] sm:$0xf] }
 0x3c8   : > { %v3967_v4 = vpop.f32.mrf.mxu1  ;;  %10740 = vmatmul.msk.bf16.gmra.mxu3 %vm1367_vm15, %v2634_v57  ;;  %v3416_v36 = vadd.f32 %v3343_v21, %v2715_v5  ;;  %v3753_v57 = vor.u32 %v3751_v9, %v3750_v7  ;;  %v3129_v21 = vrot.slane %v3128_v46, 4  ;;  %v2310_v7 = vrot.slane %v2305_v45, 4 }
 0x3c9   : > { %v14246_v6 = vadd.f32 %v3967_v4, %v3415_v47  ;;  %v3746_v47 = vrot.slane %v3741_v20, 4  ;;  %v10636_v20 = vrot.slane %v2298_v52, 11  ;;  %v2317_v4 = vor.u32 %v2315_v50, %v2314_v27 }
 0x3ca   : > { %v3245_v27 = vunpack.c.l.b16 %v3144_v54  ;;  %v3161_v50 = vrot.slane %v3159_v10, 4  ;;  %v2328_v10 = vshll.u32 %v2003_v62, 16 }
 0x3cb   : > { %10799 = vmatmul.msk.bf16.gmra.mxu1 %vm1367_vm15, %v3888_v15  ;;  %v2717_v37 = vpop.f32.mrf.mxu3  ;;  %v3754_v40 = vsel %vm13962_vm6, %v3746_v47, %v3753_v57  ;;  %v3761_v15 = vshrl.u32 %v3480_v22, 16  ;;  %v3155_v22 = vshll.u32 %v2822_v25, 16 }
 0x3cc   : > { %v2718_v16 = vadd.f32 %v2717_v37, %v2526_v43  ;;  %10721 = vmatmul.msk.bf16.gmra.mxu2 %vm1367_vm15, %v11581_v35  ;;  %v3745_v43 = vsel %vm13962_vm6, %v14242_v8, %v3744_v56  ;;  %v2308_v8 = vor.u32 %v2306_v13, %v2305_v45  ;;  %v3869_v0 = vunpack.c.l.b16 %v3754_v40 }
 0x3cd   : > { %v3763_v42 = vrot.slane %v3761_v15, 7  ;;  %v3868_v55 = vunpack.c.l.b16 %v3745_v43  ;;  %v10779_v37 = vrot.slane %v3756_v31, 11  ;;  %v3773_v56 = vshll.u32 %v3481_v23, 16 }
 0x3ce   : > { %v2309_v33 = vsel %vm13962_vm6, %v10636_v20, %v2308_v8  ;;  %v3149_v35 = vshll.u32 %v2821_v48, 16  ;;  %v14283_v13 = vrot.slane %v3155_v22, 5  ;;  %v2002_v20 = vld [vmem:[#allocation2 + $0xe0] sm:$0x8]  ;;  %v2004_v8 = vld [vmem:[#allocation2 + $0xe8] sm:$0xf] }
 0x3cf   : > { %v3346_v5 = vpop.f32.mrf.mxu0  ;;  %v2531_v3 = vpop.f32.mrf.mxu2  ;;  %v3766_v57 = vor.u32 %v3764_v28, %v3763_v42  ;;  %v3768_v39 = vrot.slane %v3763_v42, 4  ;;  %v3775_v46 = vor.u32 %v3773_v56, %v3772_v30  ;;  %v2320_v25 = vshrl.u32 %v2002_v20, 16  ;;  %v3482_v56 = vld [vmem:[#allocation2 + $0xe0] sm:$0x8] }
 0x3d0   : > { %v3969_v49 = vpop.f32.mrf.mxu1  ;;  %v3417_v24 = vadd.f32 %v3346_v5, %v2718_v16  ;;  %v3146_v16 = vshrl.u32 %v2821_v48, 16  ;;  %v2617_v5 = vunpack.c.l.b16 %v2309_v33  ;;  %v3151_v53 = vrot.slane %v3149_v35, 5 }
 0x3d1   : > { %v14263_v29 = vadd.f32 %v3969_v49, %v3416_v36  ;;  %v3134_v36 = vsel %vm13761_vm2, %v3129_v21, %v14248_v17  ;;  %v3767_v40 = vsel %vm13962_vm6, %v10779_v37, %v3766_v57  ;;  %v11582_v49 = vld [vmem:[#allocation2 + $0xd4] sm:$0xff]  ;;  %v2823_v21 = vld [vmem:[#allocation2 + $0xdc] sm:$0x1]  ;;  %v2334_v33 = vshrl.u32 %v2004_v8, 16 }
 0x3d2   : > { %10762 = vmatmul.msk.bf16.gmra.mxu0 %vm1367_vm15, %v3263_v44  ;;  %v3889_v44 = vpack.c.b16 %v3869_v0, %v3868_v55  ;;  %v3244_v45 = vunpack.c.l.b16 %v3134_v36  ;;  %v3148_v1 = vrot.slane %v3146_v16, 4  ;;  %v3870_v31 = vunpack.c.l.b16 %v3767_v40 }
 0x3d3   : > { %v2719_v9 = vpop.f32.mrf.mxu3  ;;  %v3162_v0 = vor.u32 %v3161_v50, %v14283_v13  ;;  %v3165_v36 = vshll.u32 %v2823_v21, 16 }
 0x3d4   : > { %v2720_v2 = vadd.f32 %v2719_v9, %v2528_v18  ;;  %v2318_v18 = vsel %vm13962_vm6, %v2310_v7, %v2317_v4  ;;  %v3264_v12 = vpack.c.b16 %v3245_v27, %v3244_v45  ;;  %v3483_v7 = vld [vmem:[#allocation2 + $0xe4] sm:$0xf]  ;;  %v3152_v42 = vor.u32 %v3151_v53, %v3148_v1 }
 0x3d5   : > { %v2618_v43 = vunpack.c.l.b16 %v2318_v18  ;;  %v3484_v18 = vld [vmem:[#allocation2 + $0xe8] sm:$0xf]  ;;  %v3783_v37 = vshrl.u32 %v3483_v7, 16  ;;  %v3167_v45 = vrot.slane %v3165_v36, 5 }
 0x3d6   : > { %v3792_v27 = vshrl.u32 %v3484_v18, 16 }
 0x3d7   : > { %v3348_v47 = vpop.f32.mrf.mxu0  ;;  %v2533_v41 = vpop.f32.mrf.mxu2  ;;  %v2636_v48 = vpack.c.b16 %v2618_v43, %v2617_v5  ;;  %v10637_v5 = vrot.slane %v2320_v25, 11  ;;  %v3778_v43 = vshrl.u32 %v3482_v56, 16  ;;  %v3785_v40 = vrot.slane %v3783_v37, 7  ;;  %v2006_v25 = vld [vmem:[#allocation2 + $0xf4] sm:$0xf] }
 0x3d8   : > { %v3972_v61 = vpop.f32.mrf.mxu1  ;;  %10741 = vmatmul.msk.bf16.gmra.mxu3 %vm1367_vm15, %v2635_v63  ;;  %v3418_v17 = vadd.f32 %v3348_v47, %v2720_v2  ;;  %v2824_v2 = vld [vmem:[#allocation2 + $0xe4] sm:$0xf]  ;;  %v2825_v63 = vld [vmem:[#allocation2 + $0xe8] sm:$0xf]  ;;  %v2007_v56 = vld [vmem:[#allocation2 + $0xf8] sm:$0xf] }
 0x3d9   : > { %v14276_v52 = vadd.f32 %v3972_v61, %v3417_v24  ;;  %v3776_v24 = vsel %vm13962_vm6, %v3768_v39, %v3775_v46  ;;  %v3170_v47 = vshrl.u32 %v2824_v2, 16  ;;  %v3173_v57 = vshll.u32 %v2824_v2, 16 }
 0x3da   : > { %v3871_v9 = vunpack.c.l.b16 %v3776_v24  ;;  %v3179_v39 = vshll.u32 %v2825_v63, 16  ;;  %v3183_v16 = vshrl.u32 %v2825_v63, 16  ;;  %v3153_v46 = vrot.slane %v3152_v42, 4 }
 0x3db   : > { %10800 = vmatmul.msk.bf16.gmra.mxu1 %vm1367_vm15, %v3889_v44  ;;  %v2722_v23 = vpop.f32.mrf.mxu3  ;;  %v3172_v1 = vrot.slane %v3170_v47, 4  ;;  %v3175_v53 = vrot.slane %v3173_v57, 5  ;;  %v3794_v42 = vrot.slane %v3792_v27, 7  ;;  %v11583_v57 = vld [vmem:[#allocation2 + $0xe4] sm:$0xff] }
 0x3dc   : > { %v2723_v15 = vadd.f32 %v2722_v23, %v2531_v3  ;;  %10722 = vmatmul.msk.bf16.gmra.mxu2 %vm1367_vm15, %v11582_v49  ;;  %v2325_v3 = vshrl.u32 %v2003_v62, 16  ;;  %v3890_v61 = vpack.c.b16 %v3871_v9, %v3870_v31  ;;  %v2336_v23 = vrot.slane %v2334_v33, 7 }
 0x3dd   : > { %v3185_v49 = vrot.slane %v3183_v16, 4  ;;  %v3158_v50 = vsel %vm13761_vm2, %v3153_v46, %v14283_v13  ;;  %v2337_v62 = vshll.u32 %v2004_v8, 16  ;;  %v3795_v13 = vshll.u32 %v3484_v18, 16 }
 0x3de   : > { %v2327_v22 = vrot.slane %v2325_v3, 7  ;;  %v3176_v36 = vor.u32 %v3175_v53, %v3172_v1 }
 0x3df   : > { %v3351_v4 = vpop.f32.mrf.mxu0  ;;  %v2536_v28 = vpop.f32.mrf.mxu2  ;;  %v2339_v63 = vor.u32 %v2337_v62, %v2336_v23  ;;  %v3797_v16 = vor.u32 %v3795_v13, %v3794_v42  ;;  %v2827_v13 = vld [vmem:[#allocation2 + $0xf4] sm:$0xf] }
 0x3e0   : > { %v3974_v55 = vpop.f32.mrf.mxu1  ;;  %v3419_v30 = vadd.f32 %v3351_v4, %v2723_v15  ;;  %v14290_v15 = vrot.slane %v3179_v39, 5  ;;  %v2330_v21 = vor.u32 %v2328_v10, %v2327_v22  ;;  %v2332_v9 = vrot.slane %v2327_v22, 4 }
 0x3e1   : > { %v14287_v54 = vadd.f32 %v3974_v55, %v3418_v17  ;;  %v3163_v17 = vrot.slane %v3162_v0, 4  ;;  %v10780_v55 = vrot.slane %v3778_v43, 11  ;;  %v3790_v39 = vrot.slane %v3785_v40, 4 }
 0x3e2   : > { %10763 = vmatmul.msk.bf16.gmra.mxu0 %vm1367_vm15, %v3264_v12  ;;  %v2826_v12 = vld [vmem:[#allocation2 + $0xec] sm:$0x1]  ;;  %v3186_v8 = vor.u32 %v3185_v49, %v14290_v15  ;;  %v2340_v18 = vsel %vm13962_vm6, %v2332_v9, %v2339_v63  ;;  %v2347_v22 = vshrl.u32 %v2006_v25, 16  ;;  %v14311_v49 = vld [vmem:[#allocation2 + $0xf4] sm:$0xf] }
 0x3e3   : > { %v2724_v35 = vpop.f32.mrf.mxu3  ;;  %v3168_v4 = vsel %vm13761_vm2, %v3163_v17, %v3167_v45  ;;  %v2620_v1 = vunpack.c.l.b16 %v2340_v18  ;;  %v3798_v53 = vsel %vm13962_vm6, %v3790_v39, %v3797_v16 }
 0x3e4   : > { %v2725_v44 = vadd.f32 %v2724_v35, %v2533_v41  ;;  %v3786_v41 = vshll.u32 %v3483_v7, 16  ;;  %v3189_v7 = vshll.u32 %v2826_v12, 16  ;;  %v3247_v33 = vunpack.c.l.b16 %v3168_v4  ;;  %v2005_v35 = vld [vmem:[#allocation2 + $0xf0] sm:$0x8]  ;;  %v14323_v4 = vld [vmem:[#allocation2 + $0xf8] sm:$0xf] }
 0x3e5   : > { %v3187_v10 = vrot.slane %v3186_v8, 4  ;;  %v2342_v27 = vshrl.u32 %v2005_v35, 16  ;;  %v2349_v62 = vrot.slane %v2347_v22, 7  ;;  %v1960_v22 = vld [vmem:[#allocation2] sm:$0x8] }
 0x3e6   : > { %v3788_v0 = vor.u32 %v3786_v41, %v3785_v40 }
 0x3e7   : > { %v3353_v24 = vpop.f32.mrf.mxu0  ;;  %v2538_v2 = vpop.f32.mrf.mxu2  ;;  %v14325_v63 = vrot.slane %v2342_v27, 11  ;;  %v2354_v39 = vrot.slane %v2349_v62, 4 }
 0x3e8   : > { %v3977_v20 = vpop.f32.mrf.mxu1  ;;  %10742 = vmatmul.msk.bf16.gmra.mxu3 %vm1367_vm15, %v2636_v48  ;;  %v3420_v31 = vadd.f32 %v3353_v24, %v2725_v44  ;;  %v3246_v48 = vunpack.c.l.b16 %v3158_v50  ;;  %v3789_v46 = vsel %vm13962_vm6, %v10780_v55, %v3788_v0  ;;  %v3191_v44 = vrot.slane %v3189_v7, 5 }
 0x3e9   : > { %v14298_v3 = vadd.f32 %v3977_v20, %v3419_v30  ;;  %v2331_v30 = vsel %vm13962_vm6, %v10637_v5, %v2330_v21  ;;  %v3485_v5 = vld [vmem:[#allocation2 + $0xf0] sm:$0x8]  ;;  %v3872_v21 = vunpack.c.l.b16 %v3789_v46  ;;  %v2350_v55 = vshll.u32 %v2006_v25, 16  ;;  %v2828_v25 = vld [vmem:[#allocation2 + $0xf8] sm:$0xf] }
 0x3ea   : > { %v2619_v45 = vunpack.c.l.b16 %v2331_v30  ;;  %v3265_v23 = vpack.c.b16 %v3247_v33, %v3246_v48  ;;  %v3192_v12 = vsel %vm13761_vm2, %v3187_v10, %v3191_v44  ;;  %v3800_v9 = vshrl.u32 %v3485_v5, 16  ;;  %v1961_v48 = vld [vmem:[#allocation2 + $0x4] sm:$0xf]  ;;  %v14329_v33 = vld [vmem:[#allocation2 + $0x8] sm:$0xf] }
 0x3eb   : > { %10801 = vmatmul.msk.bf16.gmra.mxu1 %vm1367_vm15, %v3890_v61  ;;  %v2727_v37 = vpop.f32.mrf.mxu3  ;;  %v3177_v61 = vrot.slane %v3176_v36, 4  ;;  %v3805_v0 = vshrl.u32 %v14311_v49, 16  ;;  %v2359_v7 = vshll.u32 %v2007_v56, 16  ;;  %v3814_v30 = vshrl.u32 %v14323_v4, 16  ;;  %v11605_v44 = vld [vmem:[%s17112_s4 + $0x20] sm:$0xff] }
 0x3ec   : > { %v2728_v47 = vadd.f32 %v2727_v37, %v2536_v28  ;;  %10723 = vmatmul.msk.bf16.gmra.mxu2 %vm1367_vm15, %v11583_v57  ;;  %v2356_v28 = vshrl.u32 %v2007_v56, 16  ;;  %v2637_v8 = vpack.c.b16 %v2620_v1, %v2619_v45  ;;  %v14335_v57 = vor.u32 %v2350_v55, %v2349_v62  ;;  %v11606_v62 = vld [vmem:[%s17112_s4 + $0x28] sm:$0xff] }
 0x3ed   : > { %v3182_v41 = vsel %vm13761_vm2, %v3177_v61, %v14290_v15  ;;  %v3808_v15 = vshll.u32 %v14311_v49, 16  ;;  %v14338_v35 = vrot.slane %v3800_v9, 11  ;;  %v14340_v46 = vrot.slane %v3805_v0, 7  ;;  %4213 = vmatpush.bf16.msra.mxu2 %v11605_v44  ;;  %v4327_v9 = vld [vmem:[#allocation2 + $0x14] sm:$0xf]  ;;  %4871 = vmatpush.bf16.msra.mxu3 %v11606_v62 }
 0x3ee   : > { %v2358_v20 = vrot.slane %v2356_v28, 7  ;;  %v14331_v37 = vunpack.c.l.b16 %v3182_v41  ;;  %v2017_v61 = vshrl.u32 %v1961_v48, 16  ;;  %v2026_v10 = vshrl.u32 %v14329_v33, 16 }
 0x3ef   : > { %v3356_v17 = vpop.f32.mrf.mxu0  ;;  %v14315_v50 = vpop.f32.mrf.mxu2  ;;  %v3197_v45 = vshll.u32 %v2827_v13, 16  ;;  %v3203_v27 = vshll.u32 %v2828_v25, 16  ;;  %v3207_v5 = vshrl.u32 %v2828_v25, 16  ;;  %v3816_v49 = vrot.slane %v3814_v30, 7 }
 0x3f0   : > { %v3979_v43 = vpop.f32.mrf.mxu1  ;;  %v3421_v40 = vadd.f32 %v3356_v17, %v2728_v47  ;;  %v14333_v47 = vunpack.c.l.b16 %v3192_v12  ;;  %v2361_v16 = vor.u32 %v2359_v7, %v2358_v20  ;;  %v3817_v41 = vshll.u32 %v14323_v4, 16 }
 0x3f1   : > { %v14313_v24 = vadd.f32 %v3979_v43, %v3420_v31  ;;  %v3873_v31 = vunpack.c.l.b16 %v3798_v53  ;;  %v2353_v53 = vsel %vm13962_vm6, %v14325_v63, %v14335_v57  ;;  %v2012_v20 = vshrl.u32 %v1960_v22, 16 }
 0x3f2   : > { %10764 = vmatmul.msk.bf16.gmra.mxu0 %vm1367_vm15, %v3265_v23  ;;  %v3266_v1 = vpack.c.b16 %v14333_v47, %v14331_v37  ;;  %v2020_v63 = vshll.u32 %v1961_v48, 16  ;;  %v2028_v55 = vrot.slane %v2026_v10, 7  ;;  %v2029_v0 = vshll.u32 %v14329_v33, 16 }
 0x3f3   : > { %v2729_v42 = vpop.f32.mrf.mxu3  ;;  %v3891_v18 = vpack.c.b16 %v3873_v31, %v3872_v21  ;;  %v2829_v21 = vld [vmem:[#allocation2 + $0xfc] sm:$0x1]  ;;  %v2019_v31 = vrot.slane %v2017_v61, 7  ;;  %v3199_v7 = vrot.slane %v3197_v45, 5  ;;  %v14368_v37 = vrot.slane %v3203_v27, 5  ;;  %v11623_v61 = vld [vmem:[%s17112_s4 + $0x30] sm:$0xff] }
 0x3f4   : > { %v2730_v36 = vadd.f32 %v2729_v42, %v2538_v2  ;;  %v3194_v2 = vshrl.u32 %v2827_v13, 16  ;;  %v4328_v13 = vld [vmem:[#allocation2 + $0x18] sm:$0xf]  ;;  %v3209_v4 = vrot.slane %v3207_v5, 4  ;;  %v3810_v47 = vor.u32 %v3808_v15, %v14340_v46  ;;  %v3489_v15 = vld [vmem:[#allocation2 + $0x104] sm:$0xf]  ;;  %5498 = vmatpush.bf16.msra.mxu0 %v11623_v61 }
 0x3f5   : > { %v3812_v57 = vrot.slane %v14340_v46, 4  ;;  %v3819_v30 = vor.u32 %v3817_v41, %v3816_v49  ;;  %v3213_v25 = vshll.u32 %v2829_v21, 16  ;;  %v4376_v48 = vshrl.u32 %v4327_v9, 16  ;;  %v3490_v41 = vld [vmem:[#allocation2 + $0x108] sm:$0xf] }
 0x3f6   : > { %v3196_v12 = vrot.slane %v3194_v2, 4  ;;  %v4385_v33 = vshll.u32 %v4328_v13, 16  ;;  %v2031_v22 = vor.u32 %v2029_v0, %v2028_v55  ;;  %v2621_v44 = vunpack.c.l.b16 %v2353_v53 }
 0x3f7   : > { %v3358_v56 = vpop.f32.mrf.mxu0  ;;  %v14349_v43 = vpop.f32.mrf.mxu2  ;;  %v3210_v45 = vor.u32 %v3209_v4, %v14368_v37  ;;  %v3811_v21 = vsel %vm13962_vm6, %v14338_v35, %v3810_v47  ;;  %v3820_v62 = vsel %vm13962_vm6, %v3812_v57, %v3819_v30  ;;  %v3215_v53 = vrot.slane %v3213_v25, 5 }
 0x3f8   : > { %v3982_v28 = vpop.f32.mrf.mxu1  ;;  %10743 = vmatmul.msk.bf16.gmra.mxu3 %vm1367_vm15, %v2637_v8  ;;  %v3422_v17 = vadd.f32 %v3358_v56, %v2730_v36  ;;  %v11584_v8 = vld [vmem:[#allocation2 + $0xf4] sm:$0xff]  ;;  %v10623_v56 = vrot.slane %v2012_v20, 11  ;;  %v3827_v20 = vshrl.u32 %v3489_v15, 16  ;;  %v14390_v35 = vrot.slane %v4385_v33, 5 }
 0x3f9   : > { %v14347_v23 = vadd.f32 %v3982_v28, %v3421_v40  ;;  %v14362_v40 = vsel %vm13962_vm6, %v2354_v39, %v2361_v16  ;;  %v4379_v39 = vshll.u32 %v4327_v9, 16  ;;  %v4389_v16 = vshrl.u32 %v4328_v13, 16 }
 0x3fa   : > { %v3200_v28 = vor.u32 %v3199_v7, %v3196_v12  ;;  %v2622_v49 = vunpack.c.l.b16 %v14362_v40  ;;  %v3488_v12 = vld [vmem:[#allocation2 + $0x100] sm:$0x8]  ;;  %v4378_v9 = vrot.slane %v4376_v48, 4  ;;  %v3211_v13 = vrot.slane %v3210_v45, 4  ;;  %v4987_v45 = vld [vmem:[#allocation2 + $0x24] sm:$0xf] }
 0x3fb   : > { %10802 = vmatmul.msk.bf16.gmra.mxu1 %vm1367_vm15, %v3891_v18  ;;  %v2732_v42 = vpop.f32.mrf.mxu3  ;;  %v2024_v18 = vrot.slane %v2019_v31, 4  ;;  %v3874_v7 = vunpack.c.l.b16 %v3811_v21  ;;  %v3875_v4 = vunpack.c.l.b16 %v3820_v62  ;;  %v3822_v47 = vshrl.u32 %v3488_v12, 16 }
 0x3fc   : > { %v2733_v36 = vadd.f32 %v2732_v42, %v14315_v50  ;;  %10724 = vmatmul.msk.bf16.gmra.mxu2 %vm1367_vm15, %v11584_v8  ;;  %v2022_v50 = vor.u32 %v2020_v63, %v2019_v31  ;;  %v4391_v63 = vrot.slane %v4389_v16, 4  ;;  %v3201_v0 = vrot.slane %v3200_v28, 4 }
 0x3fd   : > { %v2032_v31 = vsel %vm13962_vm6, %v2024_v18, %v2031_v22  ;;  %v2638_v8 = vpack.c.b16 %v2622_v49, %v2621_v44  ;;  %v3829_v25 = vrot.slane %v3827_v20, 7  ;;  %v3216_v18 = vsel %vm13761_vm2, %v3211_v13, %v3215_v53  ;;  %v4988_v20 = vld [vmem:[#allocation2 + $0x28] sm:$0xf] }
 0x3fe   : > { %v2023_v40 = vsel %vm13962_vm6, %v10623_v56, %v2022_v50  ;;  %v2592_v30 = vunpack.c.l.b16 %v2032_v31  ;;  %v4392_v33 = vor.u32 %v4391_v63, %v14390_v35  ;;  %v3206_v50 = vsel %vm13761_vm2, %v3201_v0, %v14368_v37  ;;  %v4331_v31 = vld [vmem:[#allocation2 + $0x28] sm:$0xf] }
 0x3ff   : > { %v3361_v2 = vpop.f32.mrf.mxu0  ;;  %v2546_v5 = vpop.f32.mrf.mxu2  ;;  %v2591_v57 = vunpack.c.l.b16 %v2023_v40  ;;  %v10782_v28 = vrot.slane %v3822_v47, 11  ;;  %v3839_v62 = vshll.u32 %v3490_v41, 16  ;;  %v3250_v37 = vunpack.c.l.b16 %v3206_v50 }
 0x400   : > { %v3984_v10 = vpop.f32.mrf.mxu1  ;;  %v3423_v46 = vadd.f32 %v3361_v2, %v2733_v36  ;;  %v4329_v36 = vld [vmem:[#allocation2 + $0x1c] sm:$0x1]  ;;  %v3830_v2 = vshll.u32 %v3489_v15, 16  ;;  %v5040_v13 = vshrl.u32 %v4987_v45, 16  ;;  %v4413_v47 = vshrl.u32 %v4331_v31, 16 }
 0x401   : > { %v14377_v27 = vadd.f32 %v3984_v10, %v3422_v17  ;;  %v4381_v17 = vrot.slane %v4379_v39, 5  ;;  %v4395_v56 = vshll.u32 %v4329_v36, 16  ;;  %v3892_v10 = vpack.c.b16 %v3875_v4, %v3874_v7 }
 0x402   : > { %10765 = vmatmul.msk.bf16.gmra.mxu0 %vm1367_vm15, %v3266_v1  ;;  %v3836_v1 = vshrl.u32 %v3490_v41, 16  ;;  %v2623_v49 = vpack.c.b16 %v2592_v30, %v2591_v57  ;;  %v3832_v21 = vor.u32 %v3830_v2, %v3829_v25  ;;  %v4986_v41 = vld [vmem:[#allocation2 + $0x20] sm:$0x8]  ;;  %v4409_v4 = vshll.u32 %v4331_v31, 16 }
 0x403   : > { %v2734_v42 = vpop.f32.mrf.mxu3  ;;  %v4382_v48 = vor.u32 %v4381_v17, %v4378_v9  ;;  %v4330_v9 = vld [vmem:[#allocation2 + $0x24] sm:$0xf]  ;;  %v3251_v17 = vunpack.c.l.b16 %v3216_v18  ;;  %v4397_v40 = vrot.slane %v4395_v56, 5  ;;  %v5042_v56 = vrot.slane %v5040_v13, 7 }
 0x404   : > { %v2735_v55 = vadd.f32 %v2734_v42, %v14349_v43  ;;  %v11624_v43 = vld [vmem:[%s17112_s4 + $0x38] sm:$0xff]  ;;  %v3838_v61 = vrot.slane %v3836_v1, 7  ;;  %v4393_v42 = vrot.slane %v4392_v33, 4  ;;  %v5049_v1 = vshrl.u32 %v4988_v20, 16 }
 0x405   : > { %5756 = vmatpush.bf16.msrb.mxu1 %v11624_v43  ;;  %v4383_v12 = vrot.slane %v4382_v48, 4  ;;  %v4400_v36 = vshrl.u32 %v4330_v9, 16  ;;  %v4403_v7 = vshll.u32 %v4330_v9, 16  ;;  %v3267_v30 = vpack.c.b16 %v3251_v17, %v3250_v37  ;;  %v4332_v9 = vld [vmem:[#allocation2 + $0x2c] sm:$0x1] }
 0x406   : > { %v3841_v0 = vor.u32 %v3839_v62, %v3838_v61  ;;  %v5035_v33 = vshrl.u32 %v4986_v41, 16  ;;  %v5051_v50 = vrot.slane %v5049_v1, 7  ;;  %v5043_v62 = vshll.u32 %v4987_v45, 16 }
 0x407   : > { %v3363_v39 = vpop.f32.mrf.mxu0  ;;  %v2548_v44 = vpop.f32.mrf.mxu2  ;;  %v4402_v18 = vrot.slane %v4400_v36, 4 }
 0x408   : > { %v3987_v16 = vpop.f32.mrf.mxu1  ;;  %10744 = vmatmul.msk.bf16.gmra.mxu3 %vm1367_vm15, %v2638_v8  ;;  %v3424_v22 = vadd.f32 %v3363_v39, %v2735_v55  ;;  %v3834_v55 = vrot.slane %v3829_v25, 4  ;;  %v4388_v8 = vsel %vm13761_vm2, %v4383_v12, %v14390_v35  ;;  %v4398_v25 = vsel %vm13761_vm2, %v4393_v42, %v4397_v40 }
 0x409   : > { %v14403_v15 = vadd.f32 %v3987_v16, %v3423_v46  ;;  %v11625_v46 = vld [vmem:[%s17112_s4 + $0x40] sm:$0xff]  ;;  %v4762_v16 = vunpack.c.l.b16 %v4388_v8  ;;  %v4763_v61 = vunpack.c.l.b16 %v4398_v25  ;;  %v5052_v12 = vshll.u32 %v4988_v20, 16 }
 0x40a   : > { %v3842_v2 = vsel %vm13962_vm6, %v3834_v55, %v3841_v0  ;;  %v5047_v40 = vrot.slane %v5042_v56, 4  ;;  %v4419_v0 = vshll.u32 %v4332_v9, 16 }
 0x40b   : > { %10803 = vmatmul.msk.bf16.gmra.mxu1 %vm1367_vm15, %v3892_v10  ;;  %v2737_v53 = vpop.f32.mrf.mxu3  ;;  %v4405_v10 = vrot.slane %v4403_v7, 5  ;;  %v3877_v42 = vunpack.c.l.b16 %v3842_v2  ;;  %v4794_v31 = vpack.c.b16 %v4763_v61, %v4762_v16  ;;  %v4990_v7 = vld [vmem:[#allocation2 + $0x34] sm:$0xf] }
 0x40c   : > { %v2738_v63 = vadd.f32 %v2737_v53, %v2546_v5  ;;  %10729 = vmatmul.msk.bf16.vlgmr.msrb.gmra.mxu2 %vm1367_vm15, %v2623_v49  ;;  %v3833_v5 = vsel %vm13962_vm6, %v10782_v28, %v3832_v21  ;;  %v4411_v28 = vrot.slane %v4409_v4, 5  ;;  %v4415_v49 = vrot.slane %v4413_v47, 4  ;;  %v11588_v2 = vld [vmem:[#allocation2 + $0x14] sm:$0xff] }
 0x40d   : > { %6414 = vmatpush.bf16.msrb.mxu2 %v11625_v46  ;;  %v3876_v17 = vunpack.c.l.b16 %v3833_v5  ;;  %v10913_v53 = vrot.slane %v5035_v33, 11  ;;  %v5054_v46 = vor.u32 %v5052_v12, %v5051_v50  ;;  %v4333_v33 = vld [vmem:[#allocation2 + $0x34] sm:$0xf]  ;;  %v5062_v16 = vshrl.u32 %v4990_v7, 16 }
 0x40e   : > { %v4416_v55 = vor.u32 %v4415_v49, %v4411_v28 }
 0x40f   : > { %v3366_v57 = vpop.f32.mrf.mxu0  ;;  %v2551_v43 = vpop.f32.mrf.mxu2  ;;  %v3893_v45 = vpack.c.b16 %v3877_v42, %v3876_v17  ;;  %v5055_v8 = vsel %vm13962_vm6, %v5047_v40, %v5054_v46  ;;  %v5064_v40 = vrot.slane %v5062_v16, 7  ;;  %v11607_v16 = vld [vmem:[#allocation2 + $0x24] sm:$0xff] }
 0x410   : > { %v3989_v48 = vpop.f32.mrf.mxu1  ;;  %v3425_v39 = vadd.f32 %v3366_v57, %v2738_v63  ;;  %v4406_v63 = vor.u32 %v4405_v10, %v4402_v18  ;;  %v4417_v47 = vrot.slane %v4416_v55, 4  ;;  %v4421_v57 = vrot.slane %v4419_v0, 5  ;;  %v4989_v10 = vld [vmem:[#allocation2 + $0x30] sm:$0x8] }
 0x411   : > { %v14419_v35 = vadd.f32 %v3989_v48, %v3424_v22  ;;  %v5045_v22 = vor.u32 %v5043_v62, %v5042_v56  ;;  %v5390_v48 = vunpack.c.l.b16 %v5055_v8  ;;  %v4334_v56 = vld [vmem:[#allocation2 + $0x38] sm:$0xf]  ;;  %v4427_v62 = vshll.u32 %v4333_v33, 16 }
 0x412   : > { %10766 = vmatmul.msk.bf16.gmra.mxu0 %vm1367_vm15, %v3267_v30  ;;  %v4407_v4 = vrot.slane %v4406_v63, 4  ;;  %v4991_v30 = vld [vmem:[#allocation2 + $0x38] sm:$0xf]  ;;  %v4422_v61 = vsel %vm13761_vm2, %v4417_v47, %v4421_v57  ;;  %v4433_v12 = vshll.u32 %v4334_v56, 16  ;;  %v4437_v9 = vshrl.u32 %v4334_v56, 16 }
 0x413   : > { %v2739_v21 = vpop.f32.mrf.mxu3  ;;  %v5071_v50 = vshrl.u32 %v4991_v30, 16  ;;  %v5065_v63 = vshll.u32 %v4990_v7, 16  ;;  %v5074_v55 = vshll.u32 %v4991_v30, 16  ;;  %v5069_v57 = vrot.slane %v5064_v40, 4 }
 0x414   : > { %v2740_v37 = vadd.f32 %v2739_v21, %v2548_v44  ;;  %v5046_v44 = vsel %vm13962_vm6, %v10913_v53, %v5045_v22  ;;  %v4412_v18 = vsel %vm13761_vm2, %v4407_v4, %v4411_v28  ;;  %v4424_v21 = vshrl.u32 %v4333_v33, 16  ;;  %v4335_v4 = vld [vmem:[#allocation2 + $0x3c] sm:$0x1] }
 0x415   : > { %v5389_v25 = vunpack.c.l.b16 %v5046_v44  ;;  %v5057_v22 = vshrl.u32 %v4989_v10, 16  ;;  %v5073_v46 = vrot.slane %v5071_v50, 7  ;;  %v4764_v28 = vunpack.c.l.b16 %v4412_v18  ;;  %v4994_v10 = vld [vmem:[#allocation2 + $0x48] sm:$0xf] }
 0x416   : > { %v4439_v44 = vrot.slane %v4437_v9, 4  ;;  %v4443_v33 = vshll.u32 %v4335_v4, 16  ;;  %v4336_v9 = vld [vmem:[#allocation2 + $0x44] sm:$0xf] }
 0x417   : > { %v3368_v13 = vpop.f32.mrf.mxu0  ;;  %v2553_v20 = vpop.f32.mrf.mxu2  ;;  %v10914_v47 = vrot.slane %v5057_v22, 11  ;;  %v11589_v22 = vld [vmem:[#allocation2 + $0x24] sm:$0xff] }
 0x418   : > { %v3992_v41 = vpop.f32.mrf.mxu1  ;;  %10897 = vmatmul.msk.bf16.vlgmr.msra.gmra.mxu3 %vm1367_vm15, %v4794_v31  ;;  %v3426_v1 = vadd.f32 %v3368_v13, %v2740_v37  ;;  %v4765_v31 = vunpack.c.l.b16 %v4422_v61  ;;  %v4426_v13 = vrot.slane %v4424_v21, 4  ;;  %v4993_v61 = vld [vmem:[#allocation2 + $0x44] sm:$0xf] }
 0x419   : > { %v14423_v36 = vadd.f32 %v3992_v41, %v3425_v39  ;;  %v4429_v41 = vrot.slane %v4427_v62, 5 }
 0x41b   : > { %10804 = vmatmul.msk.bf16.gmra.mxu1 %vm1367_vm15, %v3893_v45  ;;  %v2742_v5 = vpop.f32.mrf.mxu3  ;;  %v4435_v45 = vrot.slane %v4433_v12, 5  ;;  %v4445_v12 = vrot.slane %v4443_v33, 5 }
 0x41c   : > { %v2743_v39 = vadd.f32 %v2742_v5, %v2551_v43  ;;  %10875 = vmatmul.msk.bf16.vlgmr.msra.gmra.mxu2 %vm1367_vm15, %v11588_v2  ;;  %v5421_v43 = vpack.c.b16 %v5390_v48, %v5389_v25  ;;  %v5076_v5 = vor.u32 %v5074_v55, %v5073_v46  ;;  %v4795_v25 = vpack.c.b16 %v4765_v31, %v4764_v28  ;;  %v4992_v31 = vld [vmem:[#allocation2 + $0x40] sm:$0x8] }
 0x41d   : > { %v4440_v2 = vor.u32 %v4439_v44, %v4435_v45  ;;  %v5084_v46 = vshrl.u32 %v4993_v61, 16  ;;  %v5093_v28 = vshrl.u32 %v4994_v10, 16  ;;  %v4451_v55 = vshll.u32 %v4336_v9, 16 }
 0x41e   : > { %v5077_v18 = vsel %vm13962_vm6, %v5069_v57, %v5076_v5  ;;  %v5079_v5 = vshrl.u32 %v4992_v31, 16 }
 0x41f   : > { %v3371_v49 = vpop.f32.mrf.mxu0  ;;  %v2556_v42 = vpop.f32.mrf.mxu2  ;;  %v4441_v62 = vrot.slane %v4440_v2, 4 }
 0x420   : > { %v3994_v37 = vpop.f32.mrf.mxu1  ;;  %v3427_v17 = vadd.f32 %v3371_v49, %v2743_v39  ;;  %v4430_v39 = vor.u32 %v4429_v41, %v4426_v13 }
 0x421   : > { %v14435_v53 = vadd.f32 %v3994_v37, %v3426_v1  ;;  %v5067_v1 = vor.u32 %v5065_v63, %v5064_v40  ;;  %v5392_v37 = vunpack.c.l.b16 %v5077_v18  ;;  %v4337_v40 = vld [vmem:[#allocation2 + $0x48] sm:$0xf]  ;;  %v4448_v63 = vshrl.u32 %v4336_v9, 16 }
 0x422   : > { %10935 = vmatmul.msk.bf16.vlgmr.msra.gmra.mxu0 %vm1367_vm15, %v5421_v43  ;;  %v4431_v21 = vrot.slane %v4430_v39, 4  ;;  %v4446_v41 = vsel %vm13761_vm2, %v4441_v62, %v4445_v12  ;;  %v4457_v44 = vshll.u32 %v4337_v40, 16  ;;  %v4338_v62 = vld [vmem:[#allocation2 + $0x4c] sm:$0x1]  ;;  %v10915_v12 = vrot.slane %v5079_v5, 11 }
 0x423   : > { %v2744_v0 = vpop.f32.mrf.mxu3  ;;  %v4767_v2 = vunpack.c.l.b16 %v4446_v41  ;;  %v4450_v33 = vrot.slane %v4448_v63, 4  ;;  %v4997_v41 = vld [vmem:[#allocation2 + $0x58] sm:$0xf] }
 0x424   : > { %v2745_v8 = vadd.f32 %v2744_v0, %v2553_v20  ;;  %v5068_v20 = vsel %vm13962_vm6, %v10914_v47, %v5067_v1  ;;  %v4436_v13 = vsel %vm13761_vm2, %v4431_v21, %v4435_v45  ;;  %v4453_v45 = vrot.slane %v4451_v55, 5 }
 0x425   : > { %v5391_v43 = vunpack.c.l.b16 %v5068_v20  ;;  %v4766_v39 = vunpack.c.l.b16 %v4436_v13  ;;  %v5096_v20 = vshll.u32 %v4994_v10, 16  ;;  %v4459_v18 = vrot.slane %v4457_v44, 5  ;;  %v4996_v13 = vld [vmem:[#allocation2 + $0x54] sm:$0xf] }
 0x427   : > { %v3373_v48 = vpop.f32.mrf.mxu0  ;;  %v2558_v50 = vpop.f32.mrf.mxu2  ;;  %v5422_v4 = vpack.c.b16 %v5392_v37, %v5391_v43  ;;  %v4796_v37 = vpack.c.b16 %v4767_v2, %v4766_v39  ;;  %v4340_v39 = vld [vmem:[#allocation2 + $0x58] sm:$0xf]  ;;  %v5106_v2 = vshrl.u32 %v4996_v13, 16 }
 0x428   : > { %v3997_v56 = vpop.f32.mrf.mxu1  ;;  %10898 = vmatmul.msk.bf16.gmra.mxu3 %vm1367_vm15, %v4795_v25  ;;  %v3428_v7 = vadd.f32 %v3373_v48, %v2745_v8  ;;  %v4461_v8 = vshrl.u32 %v4337_v40, 16  ;;  %v5086_v25 = vrot.slane %v5084_v46, 7  ;;  %v5095_v48 = vrot.slane %v5093_v28, 7 }
 0x429   : > { %v14439_v30 = vadd.f32 %v3997_v56, %v3427_v17  ;;  %v4467_v46 = vshll.u32 %v4338_v62, 16  ;;  %v4481_v62 = vshll.u32 %v4340_v39, 16 }
 0x42a   : > { %v5091_v9 = vrot.slane %v5086_v25, 4  ;;  %v5098_v43 = vor.u32 %v5096_v20, %v5095_v48  ;;  %v11590_v48 = vld [vmem:[#allocation2 + $0x34] sm:$0xff] }
 0x42b   : > { %11021 = vmatmul.msk.bf16.vlgmr.msrb.gmra.mxu1 %vm1367_vm15, %v11607_v16  ;;  %v2747_v49 = vpop.f32.mrf.mxu3  ;;  %v5087_v16 = vshll.u32 %v4993_v61, 16  ;;  %v11608_v61 = vld [vmem:[#allocation2 + $0x34] sm:$0xff] }
 0x42c   : > { %v2748_v17 = vadd.f32 %v2747_v49, %v2556_v42  ;;  %10876 = vmatmul.msk.bf16.gmra.mxu2 %vm1367_vm15, %v11589_v22  ;;  %v4463_v49 = vrot.slane %v4461_v8, 4  ;;  %v5099_v55 = vsel %vm13962_vm6, %v5091_v9, %v5098_v43 }
 0x42e   : > { %v4464_v40 = vor.u32 %v4463_v49, %v4459_v18 }
 0x42f   : > { %v3376_v0 = vpop.f32.mrf.mxu0  ;;  %v2561_v57 = vpop.f32.mrf.mxu2 }
 0x430   : > { %v3999_v42 = vpop.f32.mrf.mxu1  ;;  %v3429_v47 = vadd.f32 %v3376_v0, %v2748_v17  ;;  %v4454_v17 = vor.u32 %v4453_v45, %v4450_v33  ;;  %v4465_v8 = vrot.slane %v4464_v40, 4  ;;  %v5115_v33 = vshrl.u32 %v4997_v41, 16 }
 0x431   : > { %v14451_v1 = vadd.f32 %v3999_v42, %v3428_v7  ;;  %v5089_v7 = vor.u32 %v5087_v16, %v5086_v25  ;;  %v4339_v42 = vld [vmem:[#allocation2 + $0x54] sm:$0xf] }
 0x432   : > { %10936 = vmatmul.msk.bf16.gmra.mxu0 %vm1367_vm15, %v5422_v4  ;;  %v4455_v0 = vrot.slane %v4454_v17, 4  ;;  %v4469_v4 = vrot.slane %v4467_v46, 5  ;;  %v4472_v16 = vshrl.u32 %v4339_v42, 16  ;;  %v5117_v40 = vrot.slane %v5115_v33, 7 }
 0x433   : > { %v2749_v56 = vpop.f32.mrf.mxu3 }
 0x434   : > { %v2750_v21 = vadd.f32 %v2749_v56, %v2558_v50  ;;  %v5090_v50 = vsel %vm13962_vm6, %v10915_v12, %v5089_v7  ;;  %v4460_v45 = vsel %vm13761_vm2, %v4455_v0, %v4459_v18  ;;  %v4995_v56 = vld [vmem:[#allocation2 + $0x50] sm:$0x8]  ;;  %v4470_v49 = vsel %vm13761_vm2, %v4465_v8, %v4469_v4 }
 0x435   : > { %v5393_v5 = vunpack.c.l.b16 %v5090_v50  ;;  %v4485_v12 = vshrl.u32 %v4340_v39, 16  ;;  %v5101_v17 = vshrl.u32 %v4995_v56, 16  ;;  %v4768_v18 = vunpack.c.l.b16 %v4460_v45 }
 0x436   : > { %v4769_v46 = vunpack.c.l.b16 %v4470_v49 }
 0x437   : > { %v3378_v22 = vpop.f32.mrf.mxu0  ;;  %v2563_v10 = vpop.f32.mrf.mxu2  ;;  %v4487_v8 = vrot.slane %v4485_v12, 4 }
 0x438   : > { %v4002_v28 = vpop.f32.mrf.mxu1  ;;  %10899 = vmatmul.msk.bf16.gmra.mxu3 %vm1367_vm15, %v4796_v37  ;;  %v3430_v31 = vadd.f32 %v3378_v22, %v2750_v21  ;;  %v4475_v21 = vshll.u32 %v4339_v42, 16  ;;  %v5108_v22 = vrot.slane %v5106_v2, 7  ;;  %v4341_v42 = vld [vmem:[#allocation2 + $0x5c] sm:$0x1] }
 0x439   : > { %v14455_v63 = vadd.f32 %v4002_v28, %v3429_v47  ;;  %v5394_v47 = vunpack.c.l.b16 %v5099_v55  ;;  %v5109_v28 = vshll.u32 %v4996_v13, 16  ;;  %v4474_v55 = vrot.slane %v4472_v16, 4  ;;  %v11609_v16 = vld [vmem:[#allocation2 + $0x44] sm:$0xff] }
 0x43a   : > { %v4477_v0 = vrot.slane %v4475_v21, 5  ;;  %v4491_v56 = vshll.u32 %v4341_v42, 16  ;;  %v4999_v21 = vld [vmem:[#allocation2 + $0x64] sm:$0xf] }
 0x43b   : > { %11022 = vmatmul.msk.bf16.gmra.mxu1 %vm1367_vm15, %v11608_v61  ;;  %v2752_v44 = vpop.f32.mrf.mxu3  ;;  %v5423_v7 = vpack.c.b16 %v5394_v47, %v5393_v5  ;;  %v5118_v61 = vshll.u32 %v4997_v41, 16  ;;  %v10916_v5 = vrot.slane %v5101_v17, 11  ;;  %v5113_v47 = vrot.slane %v5108_v22, 4 }
 0x43c   : > { %v2753_v25 = vadd.f32 %v2752_v44, %v2561_v57  ;;  %10877 = vmatmul.msk.bf16.gmra.mxu2 %vm1367_vm15, %v11590_v48  ;;  %v4483_v44 = vrot.slane %v4481_v62, 5  ;;  %v4797_v48 = vpack.c.b16 %v4769_v46, %v4768_v18  ;;  %v4478_v2 = vor.u32 %v4477_v0, %v4474_v55  ;;  %v5000_v62 = vld [vmem:[#allocation2 + $0x68] sm:$0xf]  ;;  %v4998_v55 = vld [vmem:[#allocation2 + $0x60] sm:$0x8] }
 0x43d   : > { %v4493_v17 = vrot.slane %v4491_v56, 5  ;;  %v11591_v46 = vld [vmem:[#allocation2 + $0x44] sm:$0xff] }
 0x43e   : > { %v4488_v33 = vor.u32 %v4487_v8, %v4483_v44 }
 0x43f   : > { %v3381_v20 = vpop.f32.mrf.mxu0  ;;  %v2566_v37 = vpop.f32.mrf.mxu2 }
 0x440   : > { %v4004_v57 = vpop.f32.mrf.mxu1  ;;  %v3431_v9 = vadd.f32 %v3381_v20, %v2753_v25  ;;  %v5120_v25 = vor.u32 %v5118_v61, %v5117_v40  ;;  %v5128_v61 = vshrl.u32 %v4999_v21, 16 }
 0x441   : > { %v14467_v43 = vadd.f32 %v4004_v57, %v3430_v31  ;;  %v5111_v31 = vor.u32 %v5109_v28, %v5108_v22  ;;  %v4489_v57 = vrot.slane %v4488_v33, 4  ;;  %v4342_v22 = vld [vmem:[#allocation2 + $0x64] sm:$0xf]  ;;  %v4343_v28 = vld [vmem:[#allocation2 + $0x68] sm:$0xf]  ;;  %v5123_v33 = vshrl.u32 %v4998_v55, 16 }
 0x442   : > { %10937 = vmatmul.msk.bf16.gmra.mxu0 %vm1367_vm15, %v5423_v7  ;;  %v5121_v49 = vsel %vm13962_vm6, %v5113_v47, %v5120_v25  ;;  %v4479_v7 = vrot.slane %v4478_v2, 4  ;;  %v4496_v0 = vshrl.u32 %v4342_v22, 16  ;;  %v4499_v8 = vshll.u32 %v4342_v22, 16 }
 0x443   : > { %v2754_v50 = vpop.f32.mrf.mxu3  ;;  %v4509_v47 = vshrl.u32 %v4343_v28, 16  ;;  %v5130_v56 = vrot.slane %v5128_v61, 7 }
 0x444   : > { %v2755_v4 = vadd.f32 %v2754_v50, %v2563_v10  ;;  %v5112_v10 = vsel %vm13962_vm6, %v10916_v5, %v5111_v31  ;;  %v5137_v50 = vshrl.u32 %v5000_v62, 16  ;;  %v4484_v42 = vsel %vm13761_vm2, %v4479_v7, %v4483_v44 }
 0x445   : > { %v5395_v40 = vunpack.c.l.b16 %v5112_v10  ;;  %v4494_v5 = vsel %vm13761_vm2, %v4489_v57, %v4493_v17  ;;  %v4505_v31 = vshll.u32 %v4343_v28, 16  ;;  %v4501_v44 = vrot.slane %v4499_v8, 5 }
 0x446   : > { %v4771_v10 = vunpack.c.l.b16 %v4494_v5  ;;  %v5131_v7 = vshll.u32 %v4999_v21, 16  ;;  %v5140_v57 = vshll.u32 %v5000_v62, 16  ;;  %v4511_v22 = vrot.slane %v4509_v47, 4  ;;  %v11610_v21 = vld [vmem:[#allocation2 + $0x54] sm:$0xff] }
 0x447   : > { %v3383_v39 = vpop.f32.mrf.mxu0  ;;  %v2568_v20 = vpop.f32.mrf.mxu2  ;;  %v4507_v17 = vrot.slane %v4505_v31, 5  ;;  %v5002_v47 = vld [vmem:[#allocation2 + $0x74] sm:$0xf] }
 0x448   : > { %v4007_v45 = vpop.f32.mrf.mxu1  ;;  %10900 = vmatmul.msk.bf16.gmra.mxu3 %vm1367_vm15, %v4797_v48  ;;  %v3432_v13 = vadd.f32 %v3383_v39, %v2755_v4 }
 0x449   : > { %v14471_v41 = vadd.f32 %v4007_v45, %v3431_v9  ;;  %v5396_v9 = vunpack.c.l.b16 %v5121_v49  ;;  %v5139_v45 = vrot.slane %v5137_v50, 7  ;;  %v4498_v49 = vrot.slane %v4496_v0, 4 }
 0x44b   : > { %11023 = vmatmul.msk.bf16.gmra.mxu1 %vm1367_vm15, %v11609_v16  ;;  %v2757_v12 = vpop.f32.mrf.mxu3  ;;  %v5424_v25 = vpack.c.b16 %v5396_v9, %v5395_v40  ;;  %v4770_v16 = vunpack.c.l.b16 %v4484_v42  ;;  %v4344_v9 = vld [vmem:[#allocation2 + $0x6c] sm:$0x1]  ;;  %v5142_v28 = vor.u32 %v5140_v57, %v5139_v45  ;;  %v4502_v61 = vor.u32 %v4501_v44, %v4498_v49  ;;  %v11592_v44 = vld [vmem:[#allocation2 + $0x54] sm:$0xff] }
 0x44c   : > { %v2758_v18 = vadd.f32 %v2757_v12, %v2566_v37  ;;  %10878 = vmatmul.msk.bf16.gmra.mxu2 %vm1367_vm15, %v11591_v46  ;;  %v5135_v46 = vrot.slane %v5130_v56, 4 }
 0x44d   : > { %v4798_v55 = vpack.c.b16 %v4771_v10, %v4770_v16  ;;  %v4503_v31 = vrot.slane %v4502_v61, 4  ;;  %v4345_v16 = vld [vmem:[#allocation2 + $0x74] sm:$0xf] }
 0x44e   : > { %v5143_v5 = vsel %vm13962_vm6, %v5135_v46, %v5142_v28  ;;  %v4523_v46 = vshll.u32 %v4345_v16, 16 }
 0x44f   : > { %v3386_v4 = vpop.f32.mrf.mxu0  ;;  %v2571_v2 = vpop.f32.mrf.mxu2 }
 0x450   : > { %v4009_v37 = vpop.f32.mrf.mxu1  ;;  %v3433_v48 = vadd.f32 %v3386_v4, %v2758_v18  ;;  %v10917_v18 = vrot.slane %v5123_v33, 11  ;;  %v4512_v4 = vor.u32 %v4511_v22, %v4507_v17  ;;  %v4508_v22 = vsel %vm13761_vm2, %v4503_v31, %v4507_v17 }
 0x451   : > { %v14483_v39 = vadd.f32 %v4009_v37, %v3432_v13  ;;  %v5133_v13 = vor.u32 %v5131_v7, %v5130_v56  ;;  %v5003_v37 = vld [vmem:[#allocation2 + $0x78] sm:$0xf]  ;;  %v5150_v7 = vshrl.u32 %v5002_v47, 16  ;;  %v4772_v17 = vunpack.c.l.b16 %v4508_v22 }
 0x452   : > { %10938 = vmatmul.msk.bf16.gmra.mxu0 %vm1367_vm15, %v5424_v25  ;;  %v4515_v25 = vshll.u32 %v4344_v9, 16  ;;  %v4513_v56 = vrot.slane %v4512_v4, 4  ;;  %v5159_v57 = vshrl.u32 %v5003_v37, 16  ;;  %v4520_v9 = vshrl.u32 %v4345_v16, 16 }
 0x453   : > { %v2759_v12 = vpop.f32.mrf.mxu3  ;;  %v5153_v31 = vshll.u32 %v5002_v47, 16 }
 0x454   : > { %v2760_v40 = vadd.f32 %v2759_v12, %v2568_v20  ;;  %v5134_v20 = vsel %vm13962_vm6, %v10917_v18, %v5133_v13  ;;  %v4517_v45 = vrot.slane %v4515_v25, 5  ;;  %v4346_v12 = vld [vmem:[#allocation2 + $0x78] sm:$0xf] }
 0x455   : > { %v5397_v10 = vunpack.c.l.b16 %v5134_v20  ;;  %v4529_v28 = vshll.u32 %v4346_v12, 16  ;;  %v5161_v20 = vrot.slane %v5159_v57, 7 }
 0x456   : > { %v4518_v13 = vsel %vm13761_vm2, %v4513_v56, %v4517_v45  ;;  %v4522_v56 = vrot.slane %v4520_v9, 4  ;;  %v4525_v45 = vrot.slane %v4523_v46, 5  ;;  %v11611_v9 = vld [vmem:[#allocation2 + $0x64] sm:$0xff] }
 0x457   : > { %v3388_v50 = vpop.f32.mrf.mxu0  ;;  %v2573_v62 = vpop.f32.mrf.mxu2  ;;  %v4531_v16 = vrot.slane %v4529_v28, 5  ;;  %v5005_v28 = vld [vmem:[#allocation2 + $0x84] sm:$0xf] }
 0x458   : > { %v4012_v42 = vpop.f32.mrf.mxu1  ;;  %10901 = vmatmul.msk.bf16.gmra.mxu3 %vm1367_vm15, %v4798_v55  ;;  %v3434_v0 = vadd.f32 %v3388_v50, %v2760_v40  ;;  %v5001_v40 = vld [vmem:[#allocation2 + $0x70] sm:$0x8]  ;;  %v4533_v55 = vshrl.u32 %v4346_v12, 16  ;;  %v4526_v57 = vor.u32 %v4525_v45, %v4522_v56  ;;  %v4349_v56 = vld [vmem:[#allocation2 + $0x88] sm:$0xf]  ;;  %v5172_v45 = vshrl.u32 %v5005_v28, 16 }
 0x459   : > { %v14487_v8 = vadd.f32 %v4012_v42, %v3433_v48  ;;  %v5398_v48 = vunpack.c.l.b16 %v5143_v5  ;;  %v5145_v42 = vshrl.u32 %v5001_v40, 16  ;;  %v4773_v5 = vunpack.c.l.b16 %v4518_v13 }
 0x45a   : > { %v4535_v12 = vrot.slane %v4533_v55, 4  ;;  %v5006_v55 = vld [vmem:[#allocation2 + $0x88] sm:$0xf] }
 0x45b   : > { %11024 = vmatmul.msk.bf16.gmra.mxu1 %vm1367_vm15, %v11610_v21  ;;  %v2762_v33 = vpop.f32.mrf.mxu3  ;;  %v5425_v61 = vpack.c.b16 %v5398_v48, %v5397_v10  ;;  %v5152_v21 = vrot.slane %v5150_v7, 7  ;;  %v4347_v48 = vld [vmem:[#allocation2 + $0x7c] sm:$0x1]  ;;  %v4799_v40 = vpack.c.b16 %v4773_v5, %v4772_v17  ;;  %v4348_v5 = vld [vmem:[#allocation2 + $0x84] sm:$0xf] }
 0x45c   : > { %v2763_v49 = vadd.f32 %v2762_v33, %v2571_v2  ;;  %10879 = vmatmul.msk.bf16.gmra.mxu2 %vm1367_vm15, %v11592_v44  ;;  %v5162_v33 = vshll.u32 %v5003_v37, 16  ;;  %v4536_v60 = vor.u32 %v4535_v12, %v4531_v16  ;;  %v5181_v12 = vshrl.u32 %v5006_v55, 16 }
 0x45f   : > { %v3391_v18 = vpop.f32.mrf.mxu0  ;;  %v2576_v25 = vpop.f32.mrf.mxu2 }
 0x460   : > { %v4014_v2 = vpop.f32.mrf.mxu1  ;;  %v3435_v50 = vadd.f32 %v3391_v18, %v2763_v49  ;;  %v10918_v49 = vrot.slane %v5145_v42, 11  ;;  %v5157_v18 = vrot.slane %v5152_v21, 4 }
 0x461   : > { %v14499_v4 = vadd.f32 %v4014_v2, %v3434_v0  ;;  %v5155_v0 = vor.u32 %v5153_v31, %v5152_v21  ;;  %v5164_v2 = vor.u32 %v5162_v33, %v5161_v20  ;;  %v4527_v21 = vrot.slane %v4526_v57, 4 }
 0x462   : > { %10939 = vmatmul.msk.bf16.gmra.mxu0 %vm1367_vm15, %v5425_v61  ;;  %v4539_v61 = vshll.u32 %v4347_v48, 16  ;;  %v4537_v20 = vrot.slane %v4536_v60, 4  ;;  %v4544_v48 = vshrl.u32 %v4348_v5, 16 }
 0x463   : > { %v2764_v44 = vpop.f32.mrf.mxu3  ;;  %v5165_v46 = vsel %vm13962_vm6, %v5157_v18, %v5164_v2  ;;  %v4532_v18 = vsel %vm13761_vm2, %v4527_v21, %v4531_v16  ;;  %v4553_v2 = vshll.u32 %v4349_v56, 16 }
 0x464   : > { %v2765_v10 = vadd.f32 %v2764_v44, %v2573_v62  ;;  %v5156_v62 = vsel %vm13962_vm6, %v10918_v49, %v5155_v0  ;;  %v4541_v17 = vrot.slane %v4539_v61, 5  ;;  %v11593_v44 = vld [vmem:[#allocation2 + $0x64] sm:$0xff]  ;;  %v4547_v49 = vshll.u32 %v4348_v5, 16 }
 0x465   : > { %v5399_v31 = vunpack.c.l.b16 %v5156_v62  ;;  %v5174_v62 = vrot.slane %v5172_v45, 7 }
 0x466   : > { %v4542_v60 = vsel %vm13761_vm2, %v4537_v20, %v4541_v17  ;;  %v4549_v16 = vrot.slane %v4547_v49, 5  ;;  %v5184_v20 = vshll.u32 %v5006_v55, 16  ;;  %v4555_v17 = vrot.slane %v4553_v2, 5  ;;  %v5008_v2 = vld [vmem:[#allocation2 + $0x94] sm:$0xf] }
 0x467   : > { %v3393_v7 = vpop.f32.mrf.mxu0  ;;  %v2578_v13 = vpop.f32.mrf.mxu2  ;;  %v4775_v5 = vunpack.c.l.b16 %v4542_v60 }
 0x468   : > { %v4017_v22 = vpop.f32.mrf.mxu1  ;;  %10902 = vmatmul.msk.bf16.gmra.mxu3 %vm1367_vm15, %v4799_v40  ;;  %v3436_v47 = vadd.f32 %v3393_v7, %v2765_v10  ;;  %v5004_v10 = vld [vmem:[#allocation2 + $0x80] sm:$0x8]  ;;  %v4557_v40 = vshrl.u32 %v4349_v56, 16 }
 0x469   : > { %v14503_v37 = vadd.f32 %v4017_v22, %v3435_v50  ;;  %v5400_v50 = vunpack.c.l.b16 %v5165_v46  ;;  %v5183_v46 = vrot.slane %v5181_v12, 7 }
 0x46a   : > { %v4559_v56 = vrot.slane %v4557_v40, 4  ;;  %v5009_v40 = vld [vmem:[#allocation2 + $0x98] sm:$0xf] }
 0x46b   : > { %17217 = vst [vmem:[#allocation10_spill] sm:$0xff] %v14503_v37  ;;  %11025 = vmatmul.msk.bf16.gmra.mxu1 %vm1367_vm15, %v11611_v9  ;;  %v2767_v42 = vpop.f32.mrf.mxu3  ;;  %v5426_v7 = vpack.c.b16 %v5400_v50, %v5399_v31  ;;  %v5167_v9 = vshrl.u32 %v5004_v10, 16  ;;  %v5175_v37 = vshll.u32 %v5005_v28, 16  ;;  %v4350_v50 = vld [vmem:[#allocation2 + $0x8c] sm:$0x1]  ;;  %v11612_v28 = vld [vmem:[#allocation2 + $0x74] sm:$0xff] }
 0x46c   : > { %v2768_v33 = vadd.f32 %v2767_v42, %v2576_v25  ;;  %10880 = vmatmul.msk.bf16.gmra.mxu2 %vm1367_vm15, %v11593_v44  ;;  %v4774_v42 = vunpack.c.l.b16 %v4532_v18  ;;  %v4546_v44 = vrot.slane %v4544_v48, 4 }
 0x46e   : > { %v4800_v10 = vpack.c.b16 %v4775_v5, %v4774_v42  ;;  %v4550_v45 = vor.u32 %v4549_v16, %v4546_v44  ;;  %v4351_v42 = vld [vmem:[#allocation2 + $0x94] sm:$0xf] }
 0x46f   : > { %v3396_v0 = vpop.f32.mrf.mxu0  ;;  %v2581_v22 = vpop.f32.mrf.mxu2  ;;  %v11594_v16 = vld [vmem:[#allocation2 + $0x74] sm:$0xff] }
 0x470   : > { %v4019_v25 = vpop.f32.mrf.mxu1  ;;  %v3437_v57 = vadd.f32 %v3396_v0, %v2768_v33  ;;  %v10919_v33 = vrot.slane %v5167_v9, 11  ;;  %v5179_v0 = vrot.slane %v5174_v62, 4  ;;  %v4551_v60 = vrot.slane %v4550_v45, 4 }
 0x471   : > { %v14515_v61 = vadd.f32 %v4019_v25, %v3436_v47  ;;  %v5177_v47 = vor.u32 %v5175_v37, %v5174_v62  ;;  %v5186_v25 = vor.u32 %v5184_v20, %v5183_v46  ;;  %v5194_v20 = vshrl.u32 %v5008_v2, 16 }
 0x472   : > { %10940 = vmatmul.msk.bf16.gmra.mxu0 %vm1367_vm15, %v5426_v7  ;;  %v4563_v7 = vshll.u32 %v4350_v50, 16  ;;  %v5007_v50 = vld [vmem:[#allocation2 + $0x90] sm:$0x8] }
 0x473   : > { %17218 = vst [vmem:[#allocation11_spill] sm:$0xff] %v14515_v61  ;;  %v2769_v21 = vpop.f32.mrf.mxu3  ;;  %v4560_v61 = vor.u32 %v4559_v56, %v4555_v17  ;;  %v5187_v37 = vsel %vm13962_vm6, %v5179_v0, %v5186_v25  ;;  %v5203_v56 = vshrl.u32 %v5009_v40, 16  ;;  %v4571_v0 = vshll.u32 %v4351_v42, 16 }
 0x474   : > { %v2770_v31 = vadd.f32 %v2769_v21, %v2578_v13  ;;  %v5178_v13 = vsel %vm13962_vm6, %v10919_v33, %v5177_v47  ;;  %v4565_v46 = vrot.slane %v4563_v7, 5  ;;  %v4352_v21 = vld [vmem:[#allocation2 + $0x98] sm:$0xf]  ;;  %v4568_v33 = vshrl.u32 %v4351_v42, 16 }
 0x475   : > { %v4561_v62 = vrot.slane %v4560_v61, 4  ;;  %v5401_v5 = vunpack.c.l.b16 %v5178_v13  ;;  %v4577_v25 = vshll.u32 %v4352_v21, 16  ;;  %v5196_v13 = vrot.slane %v5194_v20, 7 }
 0x477   : > { %v3398_v12 = vpop.f32.mrf.mxu0  ;;  %v2583_v55 = vpop.f32.mrf.mxu2  ;;  %v4566_v61 = vsel %vm13761_vm2, %v4561_v62, %v4565_v46  ;;  %v4570_v62 = vrot.slane %v4568_v33, 4  ;;  %v4573_v46 = vrot.slane %v4571_v0, 5  ;;  %v4579_v42 = vrot.slane %v4577_v25, 5  ;;  %v11613_v33 = vld [vmem:[#allocation2 + $0x84] sm:$0xff] }
 0x478   : > { %v4022_v18 = vpop.f32.mrf.mxu1  ;;  %10903 = vmatmul.msk.bf16.gmra.mxu3 %vm1367_vm15, %v4800_v10  ;;  %v3438_v48 = vadd.f32 %v3398_v12, %v2770_v31  ;;  %v4556_v31 = vsel %vm13761_vm2, %v4551_v60, %v4555_v17  ;;  %v4581_v10 = vshrl.u32 %v4352_v21, 16  ;;  %v4777_v60 = vunpack.c.l.b16 %v4566_v61  ;;  %v5011_v0 = vld [vmem:[#allocation2 + $0xa4] sm:$0xf]  ;;  %v5012_v25 = vld [vmem:[#allocation2 + $0xa8] sm:$0xf] }
 0x479   : > { %v14519_v49 = vadd.f32 %v4022_v18, %v3437_v57  ;;  %v5402_v57 = vunpack.c.l.b16 %v5187_v37  ;;  %v5205_v37 = vrot.slane %v5203_v56, 7  ;;  %v4776_v17 = vunpack.c.l.b16 %v4556_v31 }
 0x47a   : > { %v4583_v21 = vrot.slane %v4581_v10, 4  ;;  %v4574_v56 = vor.u32 %v4573_v46, %v4570_v62  ;;  %v4355_v62 = vld [vmem:[#allocation2 + $0xa8] sm:$0xf]  ;;  %v5216_v46 = vshrl.u32 %v5011_v0, 16 }
 0x47b   : > { %17219 = vst [vmem:[#allocation12_spill] sm:$0xff] %v14519_v49  ;;  %11026 = vmatmul.msk.bf16.gmra.mxu1 %vm1367_vm15, %v11612_v28  ;;  %v2772_v9 = vpop.f32.mrf.mxu3  ;;  %v5427_v45 = vpack.c.b16 %v5402_v57, %v5401_v5  ;;  %v5189_v28 = vshrl.u32 %v5007_v50, 16  ;;  %v4353_v57 = vld [vmem:[#allocation2 + $0x9c] sm:$0x1]  ;;  %v4801_v50 = vpack.c.b16 %v4777_v60, %v4776_v17  ;;  %v4354_v17 = vld [vmem:[#allocation2 + $0xa4] sm:$0xf] }
 0x47c   : > { %v2773_v44 = vadd.f32 %v2772_v9, %v2581_v22  ;;  %10881 = vmatmul.msk.bf16.gmra.mxu2 %vm1367_vm15, %v11594_v16  ;;  %v5197_v9 = vshll.u32 %v5008_v2, 16  ;;  %v5206_v16 = vshll.u32 %v5009_v40, 16 }
 0x47f   : > { %v3401_v47 = vpop.f32.mrf.mxu0  ;;  %v2586_v18 = vpop.f32.mrf.mxu2 }
 0x480   : > { %v4024_v22 = vpop.f32.mrf.mxu1  ;;  %v3439_v12 = vadd.f32 %v3401_v47, %v2773_v44  ;;  %v10920_v44 = vrot.slane %v5189_v28, 11  ;;  %v5201_v47 = vrot.slane %v5196_v13, 4  ;;  %v4575_v28 = vrot.slane %v4574_v56, 4 }
 0x481   : > { %v14531_v7 = vadd.f32 %v4024_v22, %v3438_v48  ;;  %v5199_v48 = vor.u32 %v5197_v9, %v5196_v13  ;;  %v5208_v22 = vor.u32 %v5206_v16, %v5205_v37  ;;  %v11595_v16 = vld [vmem:[#allocation2 + $0x84] sm:$0xff] }
 0x482   : > { %10941 = vmatmul.msk.bf16.gmra.mxu0 %vm1367_vm15, %v5427_v45  ;;  %v4587_v45 = vshll.u32 %v4353_v57, 16  ;;  %v4592_v57 = vshrl.u32 %v4354_v17, 16 }
 0x483   : > { %17220 = vst [vmem:[#allocation13_spill] sm:$0xff] %v14531_v7  ;;  %v2774_v49 = vpop.f32.mrf.mxu3  ;;  %v4584_v7 = vor.u32 %v4583_v21, %v4579_v42  ;;  %v5225_v21 = vshrl.u32 %v5012_v25, 16 }
 0x484   : > { %v2775_v5 = vadd.f32 %v2774_v49, %v2583_v55  ;;  %v5200_v49 = vsel %vm13962_vm6, %v10920_v44, %v5199_v48  ;;  %v5209_v55 = vsel %vm13962_vm6, %v5201_v47, %v5208_v22  ;;  %v4589_v37 = vrot.slane %v4587_v45, 5 }
 0x485   : > { %v4585_v13 = vrot.slane %v4584_v7, 4  ;;  %v5403_v60 = vunpack.c.l.b16 %v5200_v49  ;;  %v4595_v44 = vshll.u32 %v4354_v17, 16  ;;  %v4580_v47 = vsel %vm13761_vm2, %v4575_v28, %v4579_v42 }
 0x486   : > { %v4601_v22 = vshll.u32 %v4355_v62, 16  ;;  %v5218_v49 = vrot.slane %v5216_v46, 7 }
 0x487   : > { %v3403_v20 = vpop.f32.mrf.mxu0  ;;  %v2588_v61 = vpop.f32.mrf.mxu2  ;;  %v4590_v7 = vsel %vm13761_vm2, %v4585_v13, %v4589_v37  ;;  %v4597_v42 = vrot.slane %v4595_v44, 5  ;;  %v5228_v13 = vshll.u32 %v5012_v25, 16  ;;  %v11614_v44 = vld [vmem:[#allocation2 + $0x94] sm:$0xff] }
 0x488   : > { %v4027_v31 = vpop.f32.mrf.mxu1  ;;  %10904 = vmatmul.msk.bf16.gmra.mxu3 %vm1367_vm15, %v4801_v50  ;;  %v3440_v2 = vadd.f32 %v3403_v20, %v2775_v5  ;;  %v5010_v5 = vld [vmem:[#allocation2 + $0xa0] sm:$0x8]  ;;  %v4605_v50 = vshrl.u32 %v4355_v62, 16  ;;  %v4779_v17 = vunpack.c.l.b16 %v4590_v7  ;;  %v4603_v37 = vrot.slane %v4601_v22, 5 }
 0x489   : > { %v14535_v40 = vadd.f32 %v4027_v31, %v3439_v12  ;;  %v5404_v12 = vunpack.c.l.b16 %v5209_v55  ;;  %v5227_v55 = vrot.slane %v5225_v21, 7 }
 0x48a   : > { %v4607_v62 = vrot.slane %v4605_v50, 4  ;;  %v5014_v50 = vld [vmem:[#allocation2 + $0xb4] sm:$0xf] }
 0x48b   : > { %17221 = vst [vmem:[#allocation14_spill] sm:$0xff] %v14535_v40  ;;  %11027 = vmatmul.msk.bf16.gmra.mxu1 %vm1367_vm15, %v11613_v33  ;;  %v2777_v10 = vpop.f32.mrf.mxu3  ;;  %v5428_v20 = vpack.c.b16 %v5404_v12, %v5403_v60  ;;  %v5211_v33 = vshrl.u32 %v5010_v5, 16  ;;  %v5219_v40 = vshll.u32 %v5011_v0, 16  ;;  %v4356_v12 = vld [vmem:[#allocation2 + $0xac] sm:$0x1] }
 0x48c   : > { %v2778_v9 = vadd.f32 %v2777_v10, %v2586_v18  ;;  %10882 = vmatmul.msk.bf16.gmra.mxu2 %vm1367_vm15, %v11595_v16  ;;  %v4778_v10 = vunpack.c.l.b16 %v4580_v47  ;;  %v4594_v16 = vrot.slane %v4592_v57, 4 }
 0x48e   : > { %v4802_v5 = vpack.c.b16 %v4779_v17, %v4778_v10  ;;  %v4598_v46 = vor.u32 %v4597_v42, %v4594_v16  ;;  %v11596_v16 = vld [vmem:[#allocation2 + $0x94] sm:$0xff] }
 0x48f   : > { %v3406_v48 = vpop.f32.mrf.mxu0  ;;  %v2702_v31 = vpop.f32.mrf.mxu2  ;;  %v4358_v42 = vld [vmem:[#allocation2 + $0xb8] sm:$0xf] }
 0x490   : > { %v4029_v18 = vpop.f32.mrf.mxu1  ;;  %v3441_v56 = vadd.f32 %v3406_v48, %v2778_v9  ;;  %v10921_v9 = vrot.slane %v5211_v33, 11  ;;  %v5223_v48 = vrot.slane %v5218_v49, 4  ;;  %v2703_v47 = vadd.f32 %v2702_v31, %v14152_v59  ;;  %v5015_v33 = vld [vmem:[#allocation2 + $0xb8] sm:$0xf] }
 0x491   : > { %v14547_v45 = vadd.f32 %v4029_v18, %v3440_v2  ;;  %v5221_v2 = vor.u32 %v5219_v40, %v5218_v49  ;;  %v5230_v18 = vor.u32 %v5228_v13, %v5227_v55  ;;  %v4599_v22 = vrot.slane %v4598_v46, 4  ;;  %v4357_v55 = vld [vmem:[#allocation2 + $0xb4] sm:$0xf] }
 0x492   : > { %10942 = vmatmul.msk.bf16.gmra.mxu0 %vm1367_vm15, %v5428_v20  ;;  %v4611_v20 = vshll.u32 %v4356_v12, 16  ;;  %v5238_v13 = vshrl.u32 %v5014_v50, 16  ;;  %v4616_v12 = vshrl.u32 %v4357_v55, 16 }
 0x493   : > { %17222 = vst [vmem:[#allocation15_spill] sm:$0xff] %v14547_v45  ;;  %v2779_v28 = vpop.f32.mrf.mxu3  ;;  %v4608_v45 = vor.u32 %v4607_v62, %v4603_v37  ;;  %v5222_v40 = vsel %vm13962_vm6, %v10921_v9, %v5221_v2  ;;  %v5231_v7 = vsel %vm13962_vm6, %v5223_v48, %v5230_v18  ;;  %v5247_v62 = vshrl.u32 %v5015_v33, 16 }
 0x494   : > { %v2780_v60 = vadd.f32 %v2779_v28, %v2588_v61  ;;  %v4613_v49 = vrot.slane %v4611_v20, 5  ;;  %v5405_v10 = vunpack.c.l.b16 %v5222_v40  ;;  %v5406_v17 = vunpack.c.l.b16 %v5231_v7  ;;  %v5013_v28 = vld [vmem:[#allocation2 + $0xb0] sm:$0x8] }
 0x495   : > { %v4609_v31 = vrot.slane %v4608_v45, 4  ;;  %v4619_v9 = vshll.u32 %v4357_v55, 16  ;;  %v4625_v48 = vshll.u32 %v4358_v42, 16  ;;  %v5233_v20 = vshrl.u32 %v5013_v28, 16 }
 0x496   : > { %v5249_v40 = vrot.slane %v5247_v62, 7 }
 0x497   : > { %v3408_v21 = vpop.f32.mrf.mxu0  ;;  %v2704_v61 = vpop.f32.mrf.mxu2  ;;  %v4614_v45 = vsel %vm13761_vm2, %v4609_v31, %v4613_v49  ;;  %v4618_v31 = vrot.slane %v4616_v12, 4  ;;  %v4621_v49 = vrot.slane %v4619_v9, 5 }
 0x498   : > { %v4032_v57 = vpop.f32.mrf.mxu1  ;;  %10905 = vmatmul.msk.bf16.gmra.mxu3 %vm1367_vm15, %v4802_v5  ;;  %v3442_v0 = vadd.f32 %v3408_v21, %v2780_v60  ;;  %v4604_v60 = vsel %vm13761_vm2, %v4599_v22, %v4603_v37  ;;  %v2705_v18 = vadd.f32 %v2704_v61, %v14162_v34  ;;  %v5429_v5 = vpack.c.b16 %v5406_v17, %v5405_v10 }
 0x499   : > { %v14552_v25 = vadd.f32 %v4032_v57, %v3441_v56  ;;  %v3411_v56 = vadd.f32 %v14166_v14, %v2703_v47  ;;  %v4629_v14 = vshrl.u32 %v4358_v42, 16  ;;  %v5240_v37 = vrot.slane %v5238_v13, 7 }
 0x49a   : > { %v4781_v22 = vunpack.c.l.b16 %v4614_v45  ;;  %v5250_v34 = vshll.u32 %v5015_v33, 16  ;;  %v4627_v61 = vrot.slane %v4625_v48, 5  ;;  %v10922_v17 = vrot.slane %v5233_v20, 11  ;;  %v5018_v20 = vld [vmem:[#allocation2 + $0xc8] sm:$0xf] }
 0x49b   : > { %11028 = vmatmul.msk.bf16.gmra.mxu1 %vm1367_vm15, %v11614_v44  ;;  %v4873_v59 = vpop.f32.mrf.mxu3  ;;  %v4037_v21 = vadd.f32 %v14187_v11, %v3411_v56  ;;  %v4780_v44 = vunpack.c.l.b16 %v4604_v60  ;;  %v4631_v10 = vrot.slane %v4629_v14, 4  ;;  %v3412_v11 = vadd.f32 %v14182_v51, %v2705_v18  ;;  %v11615_v51 = vld [vmem:[#allocation2 + $0xa4] sm:$0xff] }
 0x49c   : > { %10883 = vmatmul.msk.bf16.gmra.mxu2 %vm1367_vm15, %v11596_v16  ;;  %v5241_v16 = vshll.u32 %v5014_v50, 16  ;;  %v5245_v28 = vrot.slane %v5240_v37, 4  ;;  %v5252_v13 = vor.u32 %v5250_v34, %v5249_v40 }
 0x49d   : > { %v4803_v60 = vpack.c.b16 %v4781_v22, %v4780_v44  ;;  %v4632_v45 = vor.u32 %v4631_v10, %v4627_v61  ;;  %v4038_v50 = vadd.f32 %v14204_v32, %v3412_v11  ;;  %v4360_v32 = vld [vmem:[#allocation2 + $0xc4] sm:$0xf]  ;;  %v5269_v10 = vshrl.u32 %v5018_v20, 16 }
 0x49e   : > { %v5243_v42 = vor.u32 %v5241_v16, %v5240_v37  ;;  %v5016_v16 = vld [vmem:[#allocation2 + $0xc0] sm:$0x8] }
 0x49f   : > { %v5500_v2 = vpop.f32.mrf.mxu0  ;;  %v4215_v57 = vpop.f32.mrf.mxu2  ;;  %v4633_v44 = vrot.slane %v4632_v45, 4 }
 0x4a0   : > { %v4034_v46 = vpop.f32.mrf.mxu1  ;;  %v4295_v7 = vadd.f32 %v4215_v57, %v4037_v21  ;;  %v5244_v48 = vsel %vm13962_vm6, %v10922_v17, %v5243_v42  ;;  %v5017_v21 = vld [vmem:[#allocation2 + $0xc4] sm:$0xf]  ;;  %v4643_v17 = vshll.u32 %v4360_v32, 16 }
 0x4a1   : > { %v14567_v47 = vadd.f32 %v4034_v46, %v3442_v0  ;;  %v4359_v0 = vld [vmem:[#allocation2 + $0xbc] sm:$0x1]  ;;  %v5260_v34 = vshrl.u32 %v5017_v21, 16 }
 0x4a2   : > { %10943 = vmatmul.msk.bf16.gmra.mxu0 %vm1367_vm15, %v5429_v5  ;;  %v4953_v56 = vadd.f32 %v4873_v59, %v4295_v7  ;;  %v4622_v5 = vor.u32 %v4621_v49, %v4618_v31  ;;  %v4635_v12 = vshll.u32 %v4359_v0, 16  ;;  %v5407_v7 = vunpack.c.l.b16 %v5244_v48  ;;  %v11597_v31 = vld [vmem:[#allocation2 + $0xa4] sm:$0xff] }
 0x4a3   : > { %v4875_v55 = vpop.f32.mrf.mxu3  ;;  %v4361_v49 = vld [vmem:[#allocation2 + $0xc8] sm:$0xf]  ;;  %v4640_v0 = vshrl.u32 %v4360_v32, 16  ;;  %v4645_v48 = vrot.slane %v4643_v17, 5 }
 0x4a4   : > { %v5580_v62 = vadd.f32 %v5500_v2, %v4953_v56  ;;  %v5253_v2 = vsel %vm13962_vm6, %v5245_v28, %v5252_v13  ;;  %v4623_v18 = vrot.slane %v4622_v5, 4  ;;  %v4637_v37 = vrot.slane %v4635_v12, 5 }
 0x4a5   : > { %v5408_v22 = vunpack.c.l.b16 %v5253_v2  ;;  %v4653_v13 = vshrl.u32 %v4361_v49, 16  ;;  %v5255_v5 = vshrl.u32 %v5016_v16, 16 }
 0x4a6   : > { %v4628_v56 = vsel %vm13761_vm2, %v4623_v18, %v4627_v61  ;;  %v4638_v28 = vsel %vm13761_vm2, %v4633_v44, %v4637_v37  ;;  %v5272_v18 = vshll.u32 %v5018_v20, 16 }
 0x4a7   : > { %v5502_v46 = vpop.f32.mrf.mxu0  ;;  %v4217_v59 = vpop.f32.mrf.mxu2  ;;  %v4655_v37 = vrot.slane %v4653_v13, 4  ;;  %v5020_v13 = vld [vmem:[#allocation2 + $0xd4] sm:$0xf] }
 0x4a8   : > { %v5758_v9 = vpop.f32.mrf.mxu1  ;;  %10906 = vmatmul.msk.bf16.gmra.mxu3 %vm1367_vm15, %v4803_v60  ;;  %v4296_v14 = vadd.f32 %v4217_v59, %v4038_v50  ;;  %v5271_v50 = vrot.slane %v5269_v10, 7  ;;  %v4642_v59 = vrot.slane %v4640_v0, 4 }
 0x4a9   : > { %v14573_v33 = vadd.f32 %v5758_v9, %v5580_v62  ;;  %v5430_v62 = vpack.c.b16 %v5408_v22, %v5407_v7  ;;  %v5262_v9 = vrot.slane %v5260_v34, 7  ;;  %v10923_v7 = vrot.slane %v5255_v5, 11 }
 0x4aa   : > { %v4954_v40 = vadd.f32 %v4875_v55, %v4296_v14  ;;  %v4649_v55 = vshll.u32 %v4361_v49, 16  ;;  %v5263_v14 = vshll.u32 %v5017_v21, 16  ;;  %v5274_v49 = vor.u32 %v5272_v18, %v5271_v50  ;;  %v11616_v21 = vld [vmem:[#allocation2 + $0xb4] sm:$0xff] }
 0x4ab   : > { %11029 = vmatmul.msk.bf16.gmra.mxu1 %vm1367_vm15, %v11615_v51  ;;  %v4878_v57 = vpop.f32.mrf.mxu3  ;;  %v4783_v51 = vunpack.c.l.b16 %v4638_v28  ;;  %v4646_v10 = vor.u32 %v4645_v48, %v4642_v59  ;;  %v4364_v59 = vld [vmem:[#allocation2 + $0xd8] sm:$0xf]  ;;  %v5019_v48 = vld [vmem:[#allocation2 + $0xd0] sm:$0x8] }
 0x4ac   : > { %v5581_v11 = vadd.f32 %v5502_v46, %v4954_v40  ;;  %10884 = vmatmul.msk.bf16.gmra.mxu2 %vm1367_vm15, %v11597_v31  ;;  %v4782_v46 = vunpack.c.l.b16 %v4628_v56  ;;  %v4651_v44 = vrot.slane %v4649_v55, 5  ;;  %v4362_v40 = vld [vmem:[#allocation2 + $0xcc] sm:$0x1]  ;;  %v5265_v22 = vor.u32 %v5263_v14, %v5262_v9 }
 0x4ad   : > { %v5267_v31 = vrot.slane %v5262_v9, 4  ;;  %v4647_v55 = vrot.slane %v4646_v10, 4  ;;  %v5282_v14 = vshrl.u32 %v5020_v13, 16 }
 0x4ae   : > { %v4804_v34 = vpack.c.b16 %v4783_v51, %v4782_v46  ;;  %v4656_v56 = vor.u32 %v4655_v37, %v4651_v44  ;;  %v4363_v46 = vld [vmem:[#allocation2 + $0xd4] sm:$0xf] }
 0x4af   : > { %v5505_v42 = vpop.f32.mrf.mxu0  ;;  %v4220_v12 = vpop.f32.mrf.mxu2  ;;  %v5275_v17 = vsel %vm13962_vm6, %v5267_v31, %v5274_v49  ;;  %v11598_v51 = vld [vmem:[#allocation2 + $0xb4] sm:$0xff]  ;;  %v4677_v31 = vshrl.u32 %v4364_v59, 16 }
 0x4b0   : > { %v5760_v60 = vpop.f32.mrf.mxu1  ;;  %v4297_v61 = vadd.f32 %v4220_v12, %v14214_v26  ;;  %v4659_v26 = vshll.u32 %v4362_v40, 16  ;;  %v4657_v5 = vrot.slane %v4656_v56, 4  ;;  %v4667_v40 = vshll.u32 %v4363_v46, 16 }
 0x4b1   : > { %v14585_v45 = vadd.f32 %v5760_v60, %v5581_v11 }
 0x4b2   : > { %10944 = vmatmul.msk.bf16.gmra.mxu0 %vm1367_vm15, %v5430_v62  ;;  %v4955_v32 = vadd.f32 %v4878_v57, %v4297_v61  ;;  %v5266_v57 = vsel %vm13962_vm6, %v10923_v7, %v5265_v22  ;;  %v5021_v62 = vld [vmem:[#allocation2 + $0xd8] sm:$0xf]  ;;  %v4661_v12 = vrot.slane %v4659_v26, 5  ;;  %v5410_v61 = vunpack.c.l.b16 %v5275_v17 }
 0x4b3   : > { %v4880_v2 = vpop.f32.mrf.mxu3  ;;  %v5409_v50 = vunpack.c.l.b16 %v5266_v57  ;;  %v5291_v18 = vshrl.u32 %v5021_v62, 16  ;;  %v5284_v26 = vrot.slane %v5282_v14, 7  ;;  %v4669_v57 = vrot.slane %v4667_v40, 5 }
 0x4b4   : > { %v5582_v16 = vadd.f32 %v5505_v42, %v4955_v32  ;;  %v4664_v32 = vshrl.u32 %v4363_v46, 16  ;;  %v4662_v22 = vsel %vm13761_vm2, %v4657_v5, %v4661_v12  ;;  %v4679_v12 = vrot.slane %v4677_v31, 4  ;;  %v5023_v31 = vld [vmem:[#allocation2 + $0xe4] sm:$0xf] }
 0x4b5   : > { %v5431_v49 = vpack.c.b16 %v5410_v61, %v5409_v50 }
 0x4b7   : > { %v5507_v11 = vpop.f32.mrf.mxu0  ;;  %v4222_v20 = vpop.f32.mrf.mxu2 }
 0x4b8   : > { %v5763_v28 = vpop.f32.mrf.mxu1  ;;  %10907 = vmatmul.msk.bf16.gmra.mxu3 %vm1367_vm15, %v4804_v34  ;;  %v4298_v42 = vadd.f32 %v4222_v20, %v14231_v58  ;;  %v4652_v58 = vsel %vm13761_vm2, %v4647_v55, %v4651_v44  ;;  %v5277_v34 = vshrl.u32 %v5019_v48, 16  ;;  %v4666_v20 = vrot.slane %v4664_v32, 4 }
 0x4b9   : > { %v14590_v0 = vadd.f32 %v5763_v28, %v5582_v16  ;;  %v5293_v28 = vrot.slane %v5291_v18, 7  ;;  %v5294_v55 = vshll.u32 %v5021_v62, 16 }
 0x4ba   : > { %v4956_v9 = vadd.f32 %v4880_v2, %v4298_v42  ;;  %v4673_v2 = vshll.u32 %v4364_v59, 16  ;;  %v5285_v42 = vshll.u32 %v5020_v13, 16  ;;  %v10924_v50 = vrot.slane %v5277_v34, 11  ;;  %v11617_v13 = vld [vmem:[#allocation2 + $0xc4] sm:$0xff] }
 0x4bb   : > { %11030 = vmatmul.msk.bf16.gmra.mxu1 %vm1367_vm15, %v11616_v21  ;;  %v4883_v60 = vpop.f32.mrf.mxu3  ;;  %v4785_v21 = vunpack.c.l.b16 %v4662_v22  ;;  %v5296_v59 = vor.u32 %v5294_v55, %v5293_v28  ;;  %v4670_v18 = vor.u32 %v4669_v57, %v4666_v20  ;;  %v4367_v20 = vld [vmem:[#allocation2 + $0xe8] sm:$0xf]  ;;  %v5022_v57 = vld [vmem:[#allocation2 + $0xe0] sm:$0x8] }
 0x4bc   : > { %v5583_v37 = vadd.f32 %v5507_v11, %v4956_v9  ;;  %10885 = vmatmul.msk.bf16.gmra.mxu2 %vm1367_vm15, %v11598_v51  ;;  %v4784_v11 = vunpack.c.l.b16 %v4652_v58  ;;  %v4675_v5 = vrot.slane %v4673_v2, 5  ;;  %v4365_v9 = vld [vmem:[#allocation2 + $0xdc] sm:$0x1]  ;;  %v5287_v61 = vor.u32 %v5285_v42, %v5284_v26 }
 0x4bd   : > { %v5289_v51 = vrot.slane %v5284_v26, 4  ;;  %v4671_v2 = vrot.slane %v4670_v18, 4  ;;  %v5304_v42 = vshrl.u32 %v5023_v31, 16 }
 0x4be   : > { %v4805_v14 = vpack.c.b16 %v4785_v21, %v4784_v11  ;;  %v4680_v58 = vor.u32 %v4679_v12, %v4675_v5  ;;  %v4366_v11 = vld [vmem:[#allocation2 + $0xe4] sm:$0xf] }
 0x4bf   : > { %v5510_v7 = vpop.f32.mrf.mxu0  ;;  %v4225_v56 = vpop.f32.mrf.mxu2  ;;  %v5297_v40 = vsel %vm13962_vm6, %v5289_v51, %v5296_v59  ;;  %v11599_v21 = vld [vmem:[#allocation2 + $0xc4] sm:$0xff]  ;;  %v4701_v51 = vshrl.u32 %v4367_v20, 16 }
 0x4c0   : > { %v5765_v16 = vpop.f32.mrf.mxu1  ;;  %v4299_v44 = vadd.f32 %v4225_v56, %v14246_v6  ;;  %v4683_v6 = vshll.u32 %v4365_v9, 16  ;;  %v4681_v34 = vrot.slane %v4680_v58, 4  ;;  %v4691_v9 = vshll.u32 %v4366_v11, 16 }
 0x4c1   : > { %v14603_v10 = vadd.f32 %v5765_v16, %v5583_v37 }
 0x4c2   : > { %10945 = vmatmul.msk.bf16.gmra.mxu0 %vm1367_vm15, %v5431_v49  ;;  %v4957_v46 = vadd.f32 %v4883_v60, %v4299_v44  ;;  %v5288_v60 = vsel %vm13962_vm6, %v10924_v50, %v5287_v61  ;;  %v5024_v49 = vld [vmem:[#allocation2 + $0xe8] sm:$0xf]  ;;  %v4685_v56 = vrot.slane %v4683_v6, 5  ;;  %v5412_v44 = vunpack.c.l.b16 %v5297_v40 }
 0x4c3   : > { %v4885_v17 = vpop.f32.mrf.mxu3  ;;  %v5411_v28 = vunpack.c.l.b16 %v5288_v60  ;;  %v5313_v55 = vshrl.u32 %v5024_v49, 16  ;;  %v5306_v6 = vrot.slane %v5304_v42, 7  ;;  %v4693_v60 = vrot.slane %v4691_v9, 5 }
 0x4c4   : > { %v5584_v48 = vadd.f32 %v5510_v7, %v4957_v46  ;;  %v4688_v46 = vshrl.u32 %v4366_v11, 16  ;;  %v4686_v61 = vsel %vm13761_vm2, %v4681_v34, %v4685_v56  ;;  %v4703_v56 = vrot.slane %v4701_v51, 4 }
 0x4c5   : > { %v5432_v59 = vpack.c.b16 %v5412_v44, %v5411_v28 }
 0x4c7   : > { %v5512_v37 = vpop.f32.mrf.mxu0  ;;  %v4227_v62 = vpop.f32.mrf.mxu2 }
 0x4c8   : > { %v5768_v22 = vpop.f32.mrf.mxu1  ;;  %10908 = vmatmul.msk.bf16.gmra.mxu3 %vm1367_vm15, %v4805_v14  ;;  %v4300_v7 = vadd.f32 %v4227_v62, %v14263_v29  ;;  %v4676_v29 = vsel %vm13761_vm2, %v4671_v2, %v4675_v5  ;;  %v5299_v14 = vshrl.u32 %v5022_v57, 16  ;;  %v4690_v62 = vrot.slane %v4688_v46, 4 }
 0x4c9   : > { %v14608_v32 = vadd.f32 %v5768_v22, %v5584_v48  ;;  %v5315_v22 = vrot.slane %v5313_v55, 7  ;;  %v5316_v2 = vshll.u32 %v5024_v49, 16 }
 0x4ca   : > { %v4958_v26 = vadd.f32 %v4885_v17, %v4300_v7  ;;  %v4697_v17 = vshll.u32 %v4367_v20, 16  ;;  %v5307_v7 = vshll.u32 %v5023_v31, 16  ;;  %v10925_v28 = vrot.slane %v5299_v14, 11  ;;  %v11618_v31 = vld [vmem:[#allocation2 + $0xd4] sm:$0xff] }
 0x4cb   : > { %11031 = vmatmul.msk.bf16.gmra.mxu1 %vm1367_vm15, %v11617_v13  ;;  %v4888_v16 = vpop.f32.mrf.mxu3  ;;  %v4787_v13 = vunpack.c.l.b16 %v4686_v61  ;;  %v5318_v20 = vor.u32 %v5316_v2, %v5315_v22  ;;  %v4694_v55 = vor.u32 %v4693_v60, %v4690_v62  ;;  %v4370_v60 = vld [vmem:[#allocation2 + $0xf8] sm:$0xf] }
 0x4cc   : > { %v5585_v12 = vadd.f32 %v5512_v37, %v4958_v26  ;;  %10886 = vmatmul.msk.bf16.gmra.mxu2 %vm1367_vm15, %v11599_v21  ;;  %v4786_v37 = vunpack.c.l.b16 %v4676_v29  ;;  %v4699_v34 = vrot.slane %v4697_v17, 5  ;;  %v4368_v26 = vld [vmem:[#allocation2 + $0xec] sm:$0x1]  ;;  %v5309_v44 = vor.u32 %v5307_v7, %v5306_v6  ;;  %v5026_v17 = vld [vmem:[#allocation2 + $0xf4] sm:$0xf] }
 0x4cd   : > { %v5311_v21 = vrot.slane %v5306_v6, 4  ;;  %v4695_v51 = vrot.slane %v4694_v55, 4  ;;  %v5326_v62 = vshrl.u32 %v5026_v17, 16  ;;  %v5025_v7 = vld [vmem:[#allocation2 + $0xf0] sm:$0x8] }
 0x4ce   : > { %v4806_v42 = vpack.c.b16 %v4787_v13, %v4786_v37  ;;  %v4704_v29 = vor.u32 %v4703_v56, %v4699_v34  ;;  %v4369_v37 = vld [vmem:[#allocation2 + $0xf4] sm:$0xf] }
 0x4cf   : > { %v5515_v50 = vpop.f32.mrf.mxu0  ;;  %v4230_v58 = vpop.f32.mrf.mxu2  ;;  %v5319_v9 = vsel %vm13962_vm6, %v5311_v21, %v5318_v20  ;;  %v11600_v13 = vld [vmem:[#allocation2 + $0xd4] sm:$0xff]  ;;  %v4725_v21 = vshrl.u32 %v4370_v60, 16  ;;  %v5328_v55 = vrot.slane %v5326_v62, 7 }
 0x4d0   : > { %v5770_v48 = vpop.f32.mrf.mxu1  ;;  %v4301_v5 = vadd.f32 %v4230_v58, %v14276_v52  ;;  %v4707_v52 = vshll.u32 %v4368_v26, 16  ;;  %v4705_v14 = vrot.slane %v4704_v29, 4  ;;  %v4715_v26 = vshll.u32 %v4369_v37, 16 }
 0x4d1   : > { %v14621_v18 = vadd.f32 %v5770_v48, %v5585_v12 }
 0x4d2   : > { %10946 = vmatmul.msk.bf16.gmra.mxu0 %vm1367_vm15, %v5432_v59  ;;  %v4959_v11 = vadd.f32 %v4888_v16, %v4301_v5  ;;  %v5310_v16 = vsel %vm13962_vm6, %v10925_v28, %v5309_v44  ;;  %v5027_v59 = vld [vmem:[#allocation2 + $0xf8] sm:$0xf]  ;;  %v4709_v58 = vrot.slane %v4707_v52, 5  ;;  %v5414_v5 = vunpack.c.l.b16 %v5319_v9 }
 0x4d3   : > { %v4890_v40 = vpop.f32.mrf.mxu3  ;;  %v5413_v22 = vunpack.c.l.b16 %v5310_v16  ;;  %v5335_v2 = vshrl.u32 %v5027_v59, 16  ;;  %v4721_v44 = vshll.u32 %v4370_v60, 16  ;;  %v4717_v9 = vrot.slane %v4715_v26, 5  ;;  %v5029_v26 = vld [vmem:[#allocation2 + $0x104] sm:$0xf] }
 0x4d4   : > { %v5586_v57 = vadd.f32 %v5515_v50, %v4959_v11  ;;  %v4712_v11 = vshrl.u32 %v4369_v37, 16 }
 0x4d5   : > { %v5433_v20 = vpack.c.b16 %v5414_v5, %v5413_v22  ;;  %v4371_v22 = vld [vmem:[#allocation2 + $0xfc] sm:$0x1]  ;;  %v5333_v5 = vrot.slane %v5328_v55, 4 }
 0x4d6   : > { %v4714_v16 = vrot.slane %v4712_v11, 4 }
 0x4d7   : > { %v5517_v12 = vpop.f32.mrf.mxu0  ;;  %v4232_v49 = vpop.f32.mrf.mxu2 }
 0x4d8   : > { %v5773_v61 = vpop.f32.mrf.mxu1  ;;  %10909 = vmatmul.msk.bf16.gmra.mxu3 %vm1367_vm15, %v4806_v42  ;;  %v4302_v50 = vadd.f32 %v4232_v49, %v14287_v54  ;;  %v4700_v54 = vsel %vm13761_vm2, %v4695_v51, %v4699_v34  ;;  %v5321_v42 = vshrl.u32 %v5025_v7, 16  ;;  %v5338_v51 = vshll.u32 %v5027_v59, 16  ;;  %v11619_v59 = vld [vmem:[#allocation2 + $0xe4] sm:$0xff] }
 0x4d9   : > { %v14626_v46 = vadd.f32 %v5773_v61, %v5586_v57  ;;  %v4788_v52 = vunpack.c.l.b16 %v4700_v54  ;;  %v5329_v61 = vshll.u32 %v5026_v17, 16  ;;  %v4718_v17 = vor.u32 %v4717_v9, %v4714_v16 }
 0x4da   : > { %v4960_v6 = vadd.f32 %v4890_v40, %v4302_v50  ;;  %v4710_v40 = vsel %vm13761_vm2, %v4705_v14, %v4709_v58  ;;  %v4723_v14 = vrot.slane %v4721_v44, 5  ;;  %v4727_v58 = vrot.slane %v4725_v21, 4 }
 0x4db   : > { %11032 = vmatmul.msk.bf16.gmra.mxu1 %vm1367_vm15, %v11618_v31  ;;  %v14634_v48 = vpop.f32.mrf.mxu3  ;;  %v5337_v31 = vrot.slane %v5335_v2, 7  ;;  %v4789_v49 = vunpack.c.l.b16 %v4710_v40  ;;  %v10926_v37 = vrot.slane %v5321_v42, 11  ;;  %v4731_v2 = vshll.u32 %v4371_v22, 16  ;;  %v5030_v40 = vld [vmem:[#allocation2 + $0x108] sm:$0xf] }
 0x4dc   : > { %v5587_v56 = vadd.f32 %v5517_v12, %v4960_v6  ;;  %10887 = vmatmul.msk.bf16.gmra.mxu2 %vm1367_vm15, %v11600_v13  ;;  %v5331_v6 = vor.u32 %v5329_v61, %v5328_v55  ;;  %v4728_v7 = vor.u32 %v4727_v58, %v4723_v14  ;;  %v4719_v21 = vrot.slane %v4718_v17, 4  ;;  %v11601_v42 = vld [vmem:[#allocation2 + $0xe4] sm:$0xff] }
 0x4dd   : > { %v5340_v13 = vor.u32 %v5338_v51, %v5337_v31  ;;  %v4807_v62 = vpack.c.b16 %v4789_v49, %v4788_v52  ;;  %v4372_v52 = vld [vmem:[#allocation2 + $0x104] sm:$0xf]  ;;  %v5028_v49 = vld [vmem:[#allocation2 + $0x100] sm:$0x8]  ;;  %v5348_v16 = vshrl.u32 %v5029_v26, 16  ;;  %v5357_v9 = vshrl.u32 %v5030_v40, 16 }
 0x4de   : > { %v4729_v55 = vrot.slane %v4728_v7, 4  ;;  %v4373_v51 = vld [vmem:[#allocation2 + $0x108] sm:$0xf] }
 0x4df   : > { %v14639_v28 = vpop.f32.mrf.mxu0  ;;  %v4235_v12 = vpop.f32.mrf.mxu2  ;;  %v5341_v11 = vsel %vm13962_vm6, %v5333_v5, %v5340_v13  ;;  %v5343_v13 = vshrl.u32 %v5028_v49, 16 }
 0x4e0   : > { %v5775_v57 = vpop.f32.mrf.mxu1  ;;  %v14647_v34 = vadd.f32 %v4235_v12, %v14298_v3  ;;  %v5332_v3 = vsel %vm13962_vm6, %v10926_v37, %v5331_v6  ;;  %v4733_v12 = vrot.slane %v4731_v2, 5  ;;  %v5416_v31 = vunpack.c.l.b16 %v5341_v11 }
 0x4e1   : > { %v14643_v29 = vadd.f32 %v5775_v57, %v5587_v56  ;;  %v4736_v37 = vshrl.u32 %v4372_v52, 16  ;;  %v4739_v6 = vshll.u32 %v4372_v52, 16  ;;  %v5350_v2 = vrot.slane %v5348_v16, 7 }
 0x4e2   : > { %10947 = vmatmul.msk.bf16.gmra.mxu0 %vm1367_vm15, %v5433_v20  ;;  %v5415_v20 = vunpack.c.l.b16 %v5332_v3  ;;  %v4734_v5 = vsel %vm13761_vm2, %v4729_v55, %v4733_v12  ;;  %v5359_v3 = vrot.slane %v5357_v9, 7  ;;  %v5351_v11 = vshll.u32 %v5029_v26, 16 }
 0x4e3   : > { %17223 = vst [vmem:[#allocation16_spill] sm:$0xff] %v14643_v29  ;;  %v4895_v50 = vpop.f32.mrf.mxu3  ;;  %v4741_v55 = vrot.slane %v4739_v6, 5  ;;  %v10927_v52 = vrot.slane %v5343_v13, 11  ;;  %v5355_v16 = vrot.slane %v5350_v2, 4  ;;  %v5913_v29 = vld [vmem:[#allocation2 + $0x108] sm:$0xf] }
 0x4e4   : > { %v5434_v17 = vpack.c.b16 %v5416_v31, %v5415_v20  ;;  %v5353_v49 = vor.u32 %v5351_v11, %v5350_v2  ;;  %v11602_v11 = vld [vmem:[#allocation2 + $0xf4] sm:$0xff] }
 0x4e7   : > { %v5522_v60 = vpop.f32.mrf.mxu0  ;;  %v4237_v54 = vpop.f32.mrf.mxu2 }
 0x4e8   : > { %v14649_v56 = vpop.f32.mrf.mxu1  ;;  %10910 = vmatmul.msk.bf16.gmra.mxu3 %vm1367_vm15, %v4807_v62  ;;  %v4304_v44 = vadd.f32 %v4237_v54, %v14313_v24  ;;  %v4724_v24 = vsel %vm13761_vm2, %v4719_v21, %v4723_v14  ;;  %v4749_v62 = vshrl.u32 %v4373_v51, 16  ;;  %v5360_v14 = vshll.u32 %v5030_v40, 16 }
 0x4e9   : > { %v4790_v54 = vunpack.c.l.b16 %v4724_v24  ;;  %v4791_v21 = vunpack.c.l.b16 %v4734_v5 }
 0x4ea   : > { %v4962_v61 = vadd.f32 %v4895_v50, %v4304_v44  ;;  %v4745_v50 = vshll.u32 %v4373_v51, 16  ;;  %v4751_v20 = vrot.slane %v4749_v62, 4  ;;  %v5362_v9 = vor.u32 %v5360_v14, %v5359_v3  ;;  %v4374_v51 = vld [vmem:[#allocation2 + $0x10c] sm:$0x1] }
 0x4eb   : > { %11033 = vmatmul.msk.bf16.gmra.mxu1 %vm1367_vm15, %v11619_v59  ;;  %v4898_v57 = vpop.f32.mrf.mxu3 }
 0x4ec   : > { %v5589_v58 = vadd.f32 %v5522_v60, %v4962_v61  ;;  %10888 = vmatmul.msk.bf16.gmra.mxu2 %vm1367_vm15, %v11601_v42  ;;  %v4738_v42 = vrot.slane %v4736_v37, 4  ;;  %v4747_v61 = vrot.slane %v4745_v50, 5  ;;  %v11620_v37 = vld [vmem:[#allocation2 + $0xf4] sm:$0xff] }
 0x4ee   : > { %v4742_v26 = vor.u32 %v4741_v55, %v4738_v42  ;;  %v4752_v24 = vor.u32 %v4751_v20, %v4747_v61  ;;  %v5031_v55 = vld [vmem:[#allocation2 + $0x110] sm:$0x8]  ;;  %v5033_v20 = vld [vmem:[#allocation2 + $0x118] sm:$0xf] }
 0x4ef   : > { %v14661_v22 = vpop.f32.mrf.mxu0  ;;  %v4240_v59 = vpop.f32.mrf.mxu2 }
 0x4f0   : > { %v5780_v7 = vpop.f32.mrf.mxu1  ;;  %v4305_v44 = vadd.f32 %v4240_v59, %v14347_v23  ;;  %v5354_v23 = vsel %vm13962_vm6, %v10927_v52, %v5353_v49  ;;  %v4743_v13 = vrot.slane %v4742_v26, 4  ;;  %v4753_v3 = vrot.slane %v4752_v24, 4  ;;  %v5032_v52 = vld [vmem:[#allocation2 + $0x114] sm:$0xf] }
 0x4f1   : > { %v14665_v60 = vadd.f32 %v5780_v7, %v5589_v58  ;;  %v4808_v58 = vpack.c.b16 %v4791_v21, %v4790_v54  ;;  %v5417_v50 = vunpack.c.l.b16 %v5354_v23  ;;  %v5382_v24 = vshll.u32 %v5033_v20, 16 }
 0x4f2   : > { %10948 = vmatmul.msk.bf16.gmra.mxu0 %vm1367_vm15, %v5434_v17  ;;  %v14669_v31 = vadd.f32 %v4898_v57, %v4305_v44  ;;  %v4755_v17 = vshll.u32 %v4374_v51, 16  ;;  %v5363_v57 = vsel %vm13962_vm6, %v5355_v16, %v5362_v9  ;;  %v4748_v44 = vsel %vm13761_vm2, %v4743_v13, %v4747_v61 }
 0x4f3   : > { %17224 = vst [vmem:[#allocation17_spill] sm:$0xff] %v14665_v60  ;;  %v4900_v12 = vpop.f32.mrf.mxu3  ;;  %v5418_v62 = vunpack.c.l.b16 %v5363_v57  ;;  %v5365_v16 = vshrl.u32 %v5031_v55, 16  ;;  %v5370_v9 = vshrl.u32 %v5032_v52, 16  ;;  %v5379_v51 = vshrl.u32 %v5033_v20, 16 }
 0x4f4   : > { %v4757_v59 = vrot.slane %v4755_v17, 5 }
 0x4f5   : > { %v5435_v42 = vpack.c.b16 %v5418_v62, %v5417_v50  ;;  %v5372_v23 = vrot.slane %v5370_v9, 7  ;;  %v5381_v57 = vrot.slane %v5379_v51, 7  ;;  %v10928_v13 = vrot.slane %v5365_v16, 11 }
 0x4f7   : > { %v5527_v40 = vpop.f32.mrf.mxu0  ;;  %v4242_v6 = vpop.f32.mrf.mxu2 }
 0x4f8   : > { %v14671_v7 = vpop.f32.mrf.mxu1  ;;  %10911 = vmatmul.msk.bf16.gmra.mxu3 %vm1367_vm15, %v4808_v58  ;;  %v4306_v5 = vadd.f32 %v4242_v6, %v14377_v27  ;;  %v4758_v27 = vsel %vm13761_vm2, %v4753_v3, %v4757_v59  ;;  %v5871_v6 = vld [vmem:[#allocation2 + $0x28] sm:$0xf]  ;;  %v5377_v3 = vrot.slane %v5372_v23, 4  ;;  %v5384_v59 = vor.u32 %v5382_v24, %v5381_v57  ;;  %v5872_v24 = vld [vmem:[#allocation2 + $0x2c] sm:$0x1] }
 0x4f9   : > { %v4793_v17 = vunpack.c.l.b16 %v4758_v27 }
 0x4fa   : > { %v4964_v54 = vadd.f32 %v4900_v12, %v4306_v5  ;;  %v5373_v12 = vshll.u32 %v5032_v52, 16  ;;  %v5385_v27 = vsel %vm13962_vm6, %v5377_v3, %v5384_v59 }
 0x4fb   : > { %11034 = vmatmul.msk.bf16.gmra.mxu1 %vm1367_vm15, %v11620_v37  ;;  %v4903_v2 = vpop.f32.mrf.mxu3  ;;  %v5870_v37 = vld [vmem:[#allocation2 + $0x24] sm:$0xf] }
 0x4fc   : > { %v5591_v14 = vadd.f32 %v5527_v40, %v4964_v54  ;;  %10889 = vmatmul.msk.bf16.gmra.mxu2 %vm1367_vm15, %v11602_v11  ;;  %v4792_v40 = vunpack.c.l.b16 %v4748_v44  ;;  %v5375_v62 = vor.u32 %v5373_v12, %v5372_v23  ;;  %v5919_v54 = vshrl.u32 %v5870_v37, 16  ;;  %v11603_v23 = vld [vmem:[#allocation2 + $0x104] sm:$0xff] }
 0x4fd   : > { %v5922_v11 = vshll.u32 %v5870_v37, 16  ;;  %v5932_v44 = vshrl.u32 %v5871_v6, 16 }
 0x4fe   : > { %v4809_v55 = vpack.c.b16 %v4793_v17, %v4792_v40  ;;  %v5420_v40 = vunpack.c.l.b16 %v5385_v27 }
 0x4ff   : > { %v14683_v21 = vpop.f32.mrf.mxu0  ;;  %v4245_v26 = vpop.f32.mrf.mxu2  ;;  %v5924_v16 = vrot.slane %v5922_v11, 5  ;;  %v5934_v12 = vrot.slane %v5932_v44, 4 }
 0x500   : > { %v5785_v49 = vpop.f32.mrf.mxu1  ;;  %v4307_v61 = vadd.f32 %v4245_v26, %v14403_v15  ;;  %v5376_v15 = vsel %vm13962_vm6, %v10928_v13, %v5375_v62 }
 0x501   : > { %v14687_v58 = vadd.f32 %v5785_v49, %v5591_v14  ;;  %v5928_v14 = vshll.u32 %v5871_v6, 16  ;;  %v5921_v49 = vrot.slane %v5919_v54, 4  ;;  %v5419_v26 = vunpack.c.l.b16 %v5376_v15  ;;  %v5874_v15 = vld [vmem:[#allocation2 + $0x38] sm:$0xf] }
 0x502   : > { %10949 = vmatmul.msk.bf16.gmra.mxu0 %vm1367_vm15, %v5435_v42  ;;  %v14691_v50 = vadd.f32 %v4903_v2, %v4307_v61  ;;  %v11621_v2 = vld [vmem:[#allocation2 + $0x104] sm:$0xff]  ;;  %v5938_v6 = vshll.u32 %v5872_v24, 16 }
 0x503   : > { %17225 = vst [vmem:[#allocation18_spill] sm:$0xff] %v14687_v58  ;;  %v4905_v5 = vpop.f32.mrf.mxu3  ;;  %v5930_v9 = vrot.slane %v5928_v14, 5  ;;  %v5925_v57 = vor.u32 %v5924_v16, %v5921_v49  ;;  %v5436_v62 = vpack.c.b16 %v5420_v40, %v5419_v26  ;;  %v11622_v40 = vld [vmem:[#allocation2 + $0x114] sm:$0xff] }
 0x504   : > { %v5940_v44 = vrot.slane %v5938_v6, 5 }
 0x505   : > { %v5935_v37 = vor.u32 %v5934_v12, %v5930_v9  ;;  %v5926_v11 = vrot.slane %v5925_v57, 4  ;;  %v5952_v12 = vshll.u32 %v5874_v15, 16 }
 0x507   : > { %v5532_v42 = vpop.f32.mrf.mxu0  ;;  %v4247_v20 = vpop.f32.mrf.mxu2  ;;  %v5936_v14 = vrot.slane %v5935_v37, 4  ;;  %v5931_v49 = vsel %vm13761_vm2, %v5926_v11, %v5930_v9  ;;  %v5954_v37 = vrot.slane %v5952_v12, 5  ;;  %v5876_v12 = vld [vmem:[#allocation2 + $0x44] sm:$0xf] }
 0x508   : > { %v14697_v52 = vpop.f32.mrf.mxu1  ;;  %10912 = vmatmul.msk.bf16.gmra.mxu3 %vm1367_vm15, %v4809_v55  ;;  %v4308_v51 = vadd.f32 %v4247_v20, %v14419_v35  ;;  %v5873_v55 = vld [vmem:[#allocation2 + $0x34] sm:$0xf] }
 0x509   : > { %v5946_v20 = vshll.u32 %v5873_v55, 16  ;;  %v5941_v16 = vsel %vm13761_vm2, %v5936_v14, %v5940_v44 }
 0x50a   : > { %v4966_v17 = vadd.f32 %v4905_v5, %v4308_v51  ;;  %v5956_v51 = vshrl.u32 %v5874_v15, 16 }
 0x50b   : > { %11035 = vmatmul.msk.bf16.gmra.mxu1 %vm1367_vm15, %v11621_v2  ;;  %v4908_v61 = vpop.f32.mrf.mxu3  ;;  %v5943_v2 = vshrl.u32 %v5873_v55, 16 }
 0x50c   : > { %v5593_v13 = vadd.f32 %v5532_v42, %v4966_v17  ;;  %10890 = vmatmul.msk.bf16.gmra.mxu2 %vm1367_vm15, %v11603_v23  ;;  %v6306_v17 = vunpack.c.l.b16 %v5941_v16  ;;  %v5958_v6 = vrot.slane %v5956_v51, 4 }
 0x50d   : > { %v5945_v57 = vrot.slane %v5943_v2, 4 }
 0x50e   : > { %v5959_v14 = vor.u32 %v5958_v6, %v5954_v37 }
 0x50f   : > { %v14703_v3 = vpop.f32.mrf.mxu0  ;;  %v4250_v35 = vpop.f32.mrf.mxu2 }
 0x510   : > { %v5790_v59 = vpop.f32.mrf.mxu1  ;;  %v4309_v5 = vadd.f32 %v4250_v35, %v14423_v36  ;;  %v6305_v36 = vunpack.c.l.b16 %v5931_v49 }
 0x511   : > { %v14705_v54 = vadd.f32 %v5790_v59, %v5593_v13 }
 0x512   : > { %10950 = vmatmul.msk.bf16.gmra.mxu0 %vm1367_vm15, %v5436_v62  ;;  %v14709_v42 = vadd.f32 %v4908_v61, %v4309_v5  ;;  %v5948_v61 = vrot.slane %v5946_v20, 5  ;;  %v5875_v62 = vld [vmem:[#allocation2 + $0x3c] sm:$0x1]  ;;  %v6337_v35 = vpack.c.b16 %v6306_v17, %v6305_v36  ;;  %v5967_v36 = vshrl.u32 %v5876_v12, 16 }
 0x513   : > { %17226 = vst [vmem:[#allocation19_spill] sm:$0xff] %v14705_v54  ;;  %v4910_v27 = vpop.f32.mrf.mxu3  ;;  %v5962_v44 = vshll.u32 %v5875_v62, 16  ;;  %v5970_v17 = vshll.u32 %v5876_v12, 16 }
 0x514   : > { %v5949_v11 = vor.u32 %v5948_v61, %v5945_v57 }
 0x515   : > { %v5964_v16 = vrot.slane %v5962_v44, 5 }
 0x516   : > { %v5950_v49 = vrot.slane %v5949_v11, 4  ;;  %v5969_v11 = vrot.slane %v5967_v36, 4 }
 0x517   : > { %v5537_v26 = vpop.f32.mrf.mxu0  ;;  %v4252_v23 = vpop.f32.mrf.mxu2 }
 0x518   : > { %v14715_v24 = vpop.f32.mrf.mxu1  ;;  %v4310_v13 = vadd.f32 %v4252_v23, %v14435_v53  ;;  %v5960_v53 = vrot.slane %v5959_v14, 4  ;;  %v5955_v23 = vsel %vm13761_vm2, %v5950_v49, %v5954_v37 }
 0x519   : > { %v6307_v62 = vunpack.c.l.b16 %v5955_v23 }
 0x51a   : > { %v4968_v59 = vadd.f32 %v4910_v27, %v4310_v13  ;;  %v5877_v27 = vld [vmem:[#allocation2 + $0x48] sm:$0xf]  ;;  %v5965_v57 = vsel %vm13761_vm2, %v5960_v53, %v5964_v16 }
 0x51b   : > { %v4913_v9 = vpop.f32.mrf.mxu3  ;;  %11036 = vmatmul.msk.bf16.gmra.mxu1 %vm1367_vm15, %v11622_v40  ;;  %v5976_v61 = vshll.u32 %v5877_v27, 16  ;;  %v5980_v6 = vshrl.u32 %v5877_v27, 16 }
 0x51c   : > { %v5595_v55 = vadd.f32 %v5537_v26, %v4968_v59  ;;  %11043 = vmatmul.msk.bf16.vlgmr.msrb.gmra.mxu2 %vm1367_vm15, %v6337_v35  ;;  %v6308_v59 = vunpack.c.l.b16 %v5965_v57 }
 0x51d   : > { %v5978_v14 = vrot.slane %v5976_v61, 5  ;;  %v5982_v44 = vrot.slane %v5980_v6, 4  ;;  %v5879_v6 = vld [vmem:[#allocation2 + $0x54] sm:$0xf] }
 0x51e   : > { %v6338_v37 = vpack.c.b16 %v6308_v59, %v6307_v62  ;;  %v5991_v59 = vshrl.u32 %v5879_v6, 16 }
 0x51f   : > { %v14720_v5 = vpop.f32.mrf.mxu0  ;;  %v4255_v20 = vpop.f32.mrf.mxu2  ;;  %v5983_v12 = vor.u32 %v5982_v44, %v5978_v14 }
 0x520   : > { %v5795_v15 = vpop.f32.mrf.mxu1  ;;  %v4311_v51 = vadd.f32 %v4255_v20, %v14439_v30 }
 0x521   : > { %v14722_v2 = vadd.f32 %v5795_v15, %v5595_v55  ;;  %v5878_v15 = vld [vmem:[#allocation2 + $0x4c] sm:$0x1] }
 0x522   : > { %v14725_v40 = vadd.f32 %v4913_v9, %v4311_v51  ;;  %v5972_v9 = vrot.slane %v5970_v17, 5  ;;  %v5986_v53 = vshll.u32 %v5878_v15, 16  ;;  %v5984_v17 = vrot.slane %v5983_v12, 4 }
 0x523   : > { %17227 = vst [vmem:[#allocation20_spill] sm:$0xff] %v14722_v2  ;;  %v4915_v26 = vpop.f32.mrf.mxu3  ;;  %v5993_v12 = vrot.slane %v5991_v59, 4 }
 0x524   : > { %v5973_v49 = vor.u32 %v5972_v9, %v5969_v11  ;;  %v5988_v61 = vrot.slane %v5986_v53, 5 }
 0x526   : > { %v5974_v36 = vrot.slane %v5973_v49, 4  ;;  %v5989_v9 = vsel %vm13761_vm2, %v5984_v17, %v5988_v61 }
 0x527   : > { %v5542_v35 = vpop.f32.mrf.mxu0  ;;  %v4257_v30 = vpop.f32.mrf.mxu2 }
 0x528   : > { %v14731_v13 = vpop.f32.mrf.mxu1  ;;  %v4312_v55 = vadd.f32 %v4257_v30, %v14451_v1  ;;  %v5880_v30 = vld [vmem:[#allocation2 + $0x58] sm:$0xf]  ;;  %v5979_v11 = vsel %vm13761_vm2, %v5974_v36, %v5978_v14 }
 0x529   : > { %v6000_v44 = vshll.u32 %v5880_v30, 16 }
 0x52a   : > { %v4970_v20 = vadd.f32 %v4915_v26, %v4312_v55  ;;  %v6004_v55 = vshrl.u32 %v5880_v30, 16 }
 0x52b   : > { %v4918_v51 = vpop.f32.mrf.mxu3 }
 0x52c   : > { %v5597_v16 = vadd.f32 %v5542_v35, %v4970_v20  ;;  %11044 = vmatmul.msk.bf16.gmra.mxu2 %vm1367_vm15, %v6338_v37  ;;  %v5994_v35 = vshll.u32 %v5879_v6, 16  ;;  %v6309_v20 = vunpack.c.l.b16 %v5979_v11  ;;  %v6310_v37 = vunpack.c.l.b16 %v5989_v9 }
 0x52e   : > { %v5996_v53 = vrot.slane %v5994_v35, 5  ;;  %v6339_v14 = vpack.c.b16 %v6310_v37, %v6309_v20 }
 0x52f   : > { %v4260_v57 = vpop.f32.mrf.mxu2  ;;  %v14738_v26 = vpop.f32.mrf.mxu0 }
 0x530   : > { %v5800_v27 = vpop.f32.mrf.mxu1  ;;  %v4313_v1 = vadd.f32 %v4260_v57, %v14455_v63  ;;  %v5881_v57 = vld [vmem:[#allocation2 + $0x5c] sm:$0x1] }
 0x531   : > { %v14735_v23 = vadd.f32 %v5800_v27, %v5597_v16  ;;  %v6002_v16 = vrot.slane %v6000_v44, 5  ;;  %v6010_v61 = vshll.u32 %v5881_v57, 16 }
 0x532   : > { %v14740_v62 = vadd.f32 %v4918_v51, %v4313_v1  ;;  %v6006_v51 = vrot.slane %v6004_v55, 4  ;;  %v5997_v1 = vor.u32 %v5996_v53, %v5993_v12  ;;  %v5882_v55 = vld [vmem:[#allocation2 + $0x64] sm:$0xf] }
 0x533   : > { %17228 = vst [vmem:[#allocation21_spill] sm:$0xff] %v14735_v23  ;;  %v4920_v63 = vpop.f32.mrf.mxu3  ;;  %v6012_v44 = vrot.slane %v6010_v61, 5  ;;  %v6015_v37 = vshrl.u32 %v5882_v55, 16  ;;  %v6018_v12 = vshll.u32 %v5882_v55, 16 }
 0x534   : > { %v6007_v17 = vor.u32 %v6006_v51, %v6002_v16  ;;  %v5998_v59 = vrot.slane %v5997_v1, 4 }
 0x535   : > { %v6020_v1 = vrot.slane %v6018_v12, 5  ;;  %v5886_v12 = vld [vmem:[#allocation2 + $0x78] sm:$0xf] }
 0x536   : > { %v6008_v35 = vrot.slane %v6007_v17, 4  ;;  %v6003_v53 = vsel %vm13761_vm2, %v5998_v59, %v6002_v16 }
 0x537   : > { %v4262_v49 = vpop.f32.mrf.mxu2  ;;  %v5547_v36 = vpop.f32.mrf.mxu0 }
 0x538   : > { %v14746_v15 = vpop.f32.mrf.mxu1  ;;  %v4314_v27 = vadd.f32 %v4262_v49, %v14467_v43  ;;  %v5883_v49 = vld [vmem:[#allocation2 + $0x68] sm:$0xf]  ;;  %v6013_v51 = vsel %vm13761_vm2, %v6008_v35, %v6012_v44 }
 0x539   : > { %v6028_v57 = vshrl.u32 %v5883_v49, 16 }
 0x53a   : > { %v4972_v6 = vadd.f32 %v4920_v63, %v4314_v27  ;;  %v6024_v27 = vshll.u32 %v5883_v49, 16 }
 0x53b   : > { %v4923_v63 = vpop.f32.mrf.mxu3 }
 0x53c   : > { %v5599_v30 = vadd.f32 %v5547_v36, %v4972_v6  ;;  %11045 = vmatmul.msk.bf16.gmra.mxu2 %vm1367_vm15, %v6339_v14  ;;  %v6311_v6 = vunpack.c.l.b16 %v6003_v53  ;;  %v6312_v14 = vunpack.c.l.b16 %v6013_v51  ;;  %v6017_v36 = vrot.slane %v6015_v37, 4 }
 0x53e   : > { %v6021_v55 = vor.u32 %v6020_v1, %v6017_v36 }
 0x53f   : > { %v4265_v38 = vpop.f32.mrf.mxu2 }
 0x540   : > { %v5805_v11 = vpop.f32.mrf.mxu1  ;;  %v4315_v43 = vadd.f32 %v4265_v38, %v14471_v41  ;;  %v6026_v38 = vrot.slane %v6024_v27, 5  ;;  %v6030_v41 = vrot.slane %v6028_v57, 4  ;;  %v6022_v59 = vrot.slane %v6021_v55, 4  ;;  %v5887_v55 = vld [vmem:[#allocation2 + $0x7c] sm:$0x1] }
 0x541   : > { %v14750_v9 = vadd.f32 %v5805_v11, %v5599_v30  ;;  %v5884_v30 = vld [vmem:[#allocation2 + $0x6c] sm:$0x1]  ;;  %v6340_v11 = vpack.c.b16 %v6312_v14, %v6311_v6  ;;  %v6048_v57 = vshll.u32 %v5886_v12, 16  ;;  %v6052_v6 = vshrl.u32 %v5886_v12, 16  ;;  %v5888_v12 = vld [vmem:[#allocation2 + $0x84] sm:$0xf] }
 0x542   : > { %v14753_v20 = vadd.f32 %v4923_v63, %v4315_v43  ;;  %v6031_v43 = vor.u32 %v6030_v41, %v6026_v38  ;;  %v6034_v16 = vshll.u32 %v5884_v30, 16  ;;  %v5885_v63 = vld [vmem:[#allocation2 + $0x74] sm:$0xf] }
 0x543   : > { %17229 = vst [vmem:[#allocation22_spill] sm:$0xff] %v14750_v9  ;;  %v6039_v53 = vshrl.u32 %v5885_v63, 16  ;;  %v6042_v27 = vshll.u32 %v5885_v63, 16  ;;  %v6050_v30 = vrot.slane %v6048_v57, 5  ;;  %v6066_v57 = vshll.u32 %v5888_v12, 16 }
 0x544   : > { %v6032_v44 = vrot.slane %v6031_v43, 4  ;;  %v6036_v49 = vrot.slane %v6034_v16, 5 }
 0x545   : > { %v6044_v41 = vrot.slane %v6042_v27, 5  ;;  %v6063_v27 = vshrl.u32 %v5888_v12, 16 }
 0x546   : > { %v6037_v51 = vsel %vm13761_vm2, %v6032_v44, %v6036_v49 }
 0x547   : > { %v4267_v17 = vpop.f32.mrf.mxu2  ;;  %v6314_v36 = vunpack.c.l.b16 %v6037_v51  ;;  %v5889_v51 = vld [vmem:[#allocation2 + $0x88] sm:$0xf] }
 0x548   : > { %v14760_v61 = vadd.f32 %v4267_v17, %v14483_v39  ;;  %v6027_v39 = vsel %vm13761_vm2, %v6022_v59, %v6026_v38  ;;  %v6041_v17 = vrot.slane %v6039_v53, 4  ;;  %v6058_v59 = vshll.u32 %v5887_v55, 16 }
 0x549   : > { %v6313_v14 = vunpack.c.l.b16 %v6027_v39  ;;  %v17230_v39 = vld [vmem:[#allocation10_spill] sm:$0xff] }
 0x54a   : > { %v6045_v38 = vor.u32 %v6044_v41, %v6041_v17  ;;  %v6060_v63 = vrot.slane %v6058_v59, 5  ;;  %v6065_v41 = vrot.slane %v6063_v27, 4  ;;  %v17232_v27 = vld [vmem:[#allocation12_spill] sm:$0xff] }
 0x54b   : > { %v6341_v43 = vpack.c.b16 %v6314_v36, %v6313_v14  ;;  %v6072_v14 = vshll.u32 %v5889_v51, 16  ;;  %v6076_v36 = vshrl.u32 %v5889_v51, 16 }
 0x54c   : > { %11046 = vmatmul.msk.bf16.gmra.mxu2 %vm1367_vm15, %v6340_v11  ;;  %v6054_v11 = vrot.slane %v6052_v6, 4  ;;  %v6046_v44 = vrot.slane %v6045_v38, 4 }
 0x54d   : > { %v6078_v38 = vrot.slane %v6076_v36, 4 }
 0x54e   : > { %v6055_v16 = vor.u32 %v6054_v11, %v6050_v30  ;;  %v6068_v11 = vrot.slane %v6066_v57, 5 }
 0x54f   : > { %v4270_v35 = vpop.f32.mrf.mxu2 }
 0x550   : > { %v14764_v37 = vadd.f32 %v4270_v35, %v14487_v8  ;;  %v6056_v49 = vrot.slane %v6055_v16, 4  ;;  %v17231_v16 = vld [vmem:[#allocation11_spill] sm:$0xff] }
 0x552   : > { %v6061_v6 = vsel %vm13761_vm2, %v6056_v49, %v6060_v63 }
 0x553   : > { %v6316_v17 = vunpack.c.l.b16 %v6061_v6  ;;  %v5892_v6 = vld [vmem:[#allocation2 + $0x98] sm:$0xf] }
 0x557   : > { %v4272_v1 = vpop.f32.mrf.mxu2 }
 0x558   : > { %v14771_v8 = vadd.f32 %v4272_v1, %v14499_v4  ;;  %v6051_v4 = vsel %vm13761_vm2, %v6046_v44, %v6050_v30 }
 0x559   : > { %v6315_v1 = vunpack.c.l.b16 %v6051_v4  ;;  %v5891_v4 = vld [vmem:[#allocation2 + $0x94] sm:$0xf] }
 0x55a   : > { %v6087_v36 = vshrl.u32 %v5891_v4, 16 }
 0x55b   : > { %v6342_v12 = vpack.c.b16 %v6316_v17, %v6315_v1  ;;  %v6090_v17 = vshll.u32 %v5891_v4, 16 }
 0x55c   : > { %11047 = vmatmul.msk.bf16.gmra.mxu2 %vm1367_vm15, %v6341_v43  ;;  %v6074_v43 = vrot.slane %v6072_v14, 5 }
 0x55e   : > { %v6079_v9 = vor.u32 %v6078_v38, %v6074_v43 }
 0x55f   : > { %v4275_v35 = vpop.f32.mrf.mxu2 }
 0x560   : > { %v14775_v53 = vadd.f32 %v4275_v35, %v17230_v39  ;;  %v5890_v35 = vld [vmem:[#allocation2 + $0x8c] sm:$0x1]  ;;  %v6069_v39 = vor.u32 %v6068_v11, %v6065_v41  ;;  %v6080_v63 = vrot.slane %v6079_v9, 4  ;;  %v6096_v41 = vshll.u32 %v5892_v6, 16 }
 0x561   : > { %v6082_v30 = vshll.u32 %v5890_v35, 16  ;;  %v6100_v11 = vshrl.u32 %v5892_v6, 16  ;;  %v6089_v9 = vrot.slane %v6087_v36, 4  ;;  %v6092_v35 = vrot.slane %v6090_v17, 5  ;;  %v5895_v17 = vld [vmem:[#allocation2 + $0xa8] sm:$0xf] }
 0x562   : > { %v6070_v44 = vrot.slane %v6069_v39, 4 }
 0x563   : > { %v6084_v51 = vrot.slane %v6082_v30, 5  ;;  %v6102_v39 = vrot.slane %v6100_v11, 4  ;;  %v17233_v30 = vld [vmem:[#allocation13_spill] sm:$0xff] }
 0x564   : > { %v6075_v14 = vsel %vm13761_vm2, %v6070_v44, %v6074_v43  ;;  %v6093_v43 = vor.u32 %v6092_v35, %v6089_v9  ;;  %v6124_v9 = vshrl.u32 %v5895_v17, 16 }
 0x565   : > { %v6085_v1 = vsel %vm13761_vm2, %v6080_v63, %v6084_v51 }
 0x566   : > { %v6318_v38 = vunpack.c.l.b16 %v6085_v1  ;;  %v6094_v51 = vrot.slane %v6093_v43, 4  ;;  %v17234_v1 = vld [vmem:[#allocation14_spill] sm:$0xff]  ;;  %v6126_v43 = vrot.slane %v6124_v9, 4 }
 0x567   : > { %v4277_v55 = vpop.f32.mrf.mxu2 }
 0x568   : > { %v14782_v59 = vadd.f32 %v4277_v55, %v17231_v16  ;;  %v6317_v55 = vunpack.c.l.b16 %v6075_v14  ;;  %v5894_v14 = vld [vmem:[#allocation2 + $0xa4] sm:$0xf] }
 0x569   : > { %v6114_v11 = vshll.u32 %v5894_v14, 16 }
 0x56a   : > { %v6343_v23 = vpack.c.b16 %v6318_v38, %v6317_v55  ;;  %v6120_v38 = vshll.u32 %v5895_v17, 16 }
 0x56c   : > { %11048 = vmatmul.msk.bf16.gmra.mxu2 %vm1367_vm15, %v6342_v12  ;;  %v6098_v12 = vrot.slane %v6096_v41, 5  ;;  %v6111_v41 = vshrl.u32 %v5894_v14, 16 }
 0x56e   : > { %v6103_v44 = vor.u32 %v6102_v39, %v6098_v12 }
 0x56f   : > { %v4280_v49 = vpop.f32.mrf.mxu2 }
 0x570   : > { %v14786_v57 = vadd.f32 %v4280_v49, %v17232_v27  ;;  %v5893_v27 = vld [vmem:[#allocation2 + $0x9c] sm:$0x1]  ;;  %v6104_v4 = vrot.slane %v6103_v44, 4  ;;  %v17235_v44 = vld [vmem:[#allocation15_spill] sm:$0xff] }
 0x571   : > { %v6106_v2 = vshll.u32 %v5893_v27, 16  ;;  %v6122_v27 = vrot.slane %v6120_v38, 5 }
 0x573   : > { %v6108_v6 = vrot.slane %v6106_v2, 5  ;;  %v6116_v2 = vrot.slane %v6114_v11, 5  ;;  %v6127_v58 = vor.u32 %v6126_v43, %v6122_v27  ;;  %v5898_v11 = vld [vmem:[#allocation2 + $0xb8] sm:$0xf] }
 0x575   : > { %v6109_v55 = vsel %vm13761_vm2, %v6104_v4, %v6108_v6  ;;  %v6128_v6 = vrot.slane %v6127_v58, 4 }
 0x576   : > { %v6320_v35 = vunpack.c.l.b16 %v6109_v55 }
 0x577   : > { %v4282_v16 = vpop.f32.mrf.mxu2 }
 0x578   : > { %v14793_v49 = vadd.f32 %v4282_v16, %v17233_v30  ;;  %v6099_v16 = vsel %vm13761_vm2, %v6094_v51, %v6098_v12  ;;  %v6113_v30 = vrot.slane %v6111_v41, 4 }
 0x57a   : > { %v6117_v54 = vor.u32 %v6116_v2, %v6113_v30 }
 0x57c   : > { %11049 = vmatmul.msk.bf16.gmra.mxu2 %vm1367_vm15, %v6343_v23  ;;  %v6319_v23 = vunpack.c.l.b16 %v6099_v16  ;;  %v6118_v4 = vrot.slane %v6117_v54, 4  ;;  %v5897_v16 = vld [vmem:[#allocation2 + $0xb4] sm:$0xf] }
 0x57d   : > { %v6135_v55 = vshrl.u32 %v5897_v16, 16  ;;  %v6138_v38 = vshll.u32 %v5897_v16, 16 }
 0x57e   : > { %v6344_v14 = vpack.c.b16 %v6320_v35, %v6319_v23  ;;  %v6123_v9 = vsel %vm13761_vm2, %v6118_v4, %v6122_v27  ;;  %v6144_v35 = vshll.u32 %v5898_v11, 16 }
 0x57f   : > { %v4285_v63 = vpop.f32.mrf.mxu2  ;;  %v6321_v30 = vunpack.c.l.b16 %v6123_v9  ;;  %v6137_v58 = vrot.slane %v6135_v55, 4  ;;  %v6140_v43 = vrot.slane %v6138_v38, 5  ;;  %v5900_v9 = vld [vmem:[#allocation2 + $0xc4] sm:$0xf]  ;;  %v5901_v38 = vld [vmem:[#allocation2 + $0xc8] sm:$0xf] }
 0x580   : > { %v14797_v36 = vadd.f32 %v4285_v63, %v17234_v1  ;;  %v5896_v1 = vld [vmem:[#allocation2 + $0xac] sm:$0x1] }
 0x581   : > { %v6130_v12 = vshll.u32 %v5896_v1, 16 }
 0x583   : > { %v6132_v17 = vrot.slane %v6130_v12, 5 }
 0x585   : > { %v6133_v23 = vsel %vm13761_vm2, %v6128_v6, %v6132_v17 }
 0x586   : > { %v6322_v2 = vunpack.c.l.b16 %v6133_v23  ;;  %v6159_v23 = vshrl.u32 %v5900_v9, 16 }
 0x587   : > { %v4287_v39 = vpop.f32.mrf.mxu2 }
 0x588   : > { %v14804_v63 = vadd.f32 %v4287_v39, %v17235_v44  ;;  %v6148_v39 = vshrl.u32 %v5898_v11, 16  ;;  %v6146_v44 = vrot.slane %v6144_v35, 5  ;;  %v6345_v12 = vpack.c.b16 %v6322_v2, %v6321_v30 }
 0x589   : > { %v6162_v35 = vshll.u32 %v5900_v9, 16  ;;  %v6168_v30 = vshll.u32 %v5901_v38, 16  ;;  %v6172_v2 = vshrl.u32 %v5901_v38, 16 }
 0x58a   : > { %17236 = vst [vmem:[#allocation10_spill] sm:$0xff] %v14804_v63  ;;  %v6150_v1 = vrot.slane %v6148_v39, 4  ;;  %v5911_v63 = vld [vmem:[#allocation2 + $0xfc] sm:$0x1] }
 0x58c   : > { %11050 = vmatmul.msk.bf16.gmra.mxu2 %vm1367_vm15, %v6344_v14  ;;  %v5899_v14 = vld [vmem:[#allocation2 + $0xbc] sm:$0x1]  ;;  %v6151_v16 = vor.u32 %v6150_v1, %v6146_v44  ;;  %v6161_v1 = vrot.slane %v6159_v23, 4 }
 0x58d   : > { %v6154_v27 = vshll.u32 %v5899_v14, 16  ;;  %v6164_v14 = vrot.slane %v6162_v35, 5  ;;  %v5904_v35 = vld [vmem:[#allocation2 + $0xd8] sm:$0xf] }
 0x58e   : > { %v6152_v17 = vrot.slane %v6151_v16, 4  ;;  %v5902_v16 = vld [vmem:[#allocation2 + $0xcc] sm:$0x1] }
 0x58f   : > { %v4290_v51 = vpop.f32.mrf.mxu2  ;;  %v6156_v11 = vrot.slane %v6154_v27, 5 }
 0x590   : > { %v14808_v41 = vadd.f32 %v4290_v51, %v14552_v25  ;;  %v6141_v51 = vor.u32 %v6140_v43, %v6137_v58 }
 0x591   : > { %v6157_v39 = vsel %vm13761_vm2, %v6152_v17, %v6156_v11 }
 0x592   : > { %17237 = vst [vmem:[#allocation11_spill] sm:$0xff] %v14808_v41  ;;  %v6142_v6 = vrot.slane %v6141_v51, 4  ;;  %v6324_v58 = vunpack.c.l.b16 %v6157_v39  ;;  %v6174_v51 = vrot.slane %v6172_v2, 4 }
 0x597   : > { %v4292_v54 = vpop.f32.mrf.mxu2 }
 0x598   : > { %v14815_v25 = vadd.f32 %v4292_v54, %v14567_v47  ;;  %v6147_v47 = vsel %vm13761_vm2, %v6142_v6, %v6146_v44  ;;  %v6178_v44 = vshll.u32 %v5902_v16, 16 }
 0x599   : > { %v6323_v54 = vunpack.c.l.b16 %v6147_v47  ;;  %v5903_v47 = vld [vmem:[#allocation2 + $0xd4] sm:$0xf] }
 0x59a   : > { %17238 = vst [vmem:[#allocation12_spill] sm:$0xff] %v14815_v25  ;;  %v6180_v38 = vrot.slane %v6178_v44, 5  ;;  %v6183_v39 = vshrl.u32 %v5903_v47, 16 }
 0x59b   : > { %v6346_v27 = vpack.c.b16 %v6324_v58, %v6323_v54  ;;  %v6192_v54 = vshll.u32 %v5904_v35, 16  ;;  %v6196_v58 = vshrl.u32 %v5904_v35, 16 }
 0x59c   : > { %11051 = vmatmul.msk.bf16.gmra.mxu2 %vm1367_vm15, %v6345_v12  ;;  %v6170_v12 = vrot.slane %v6168_v30, 5  ;;  %v6186_v30 = vshll.u32 %v5903_v47, 16 }
 0x59e   : > { %v6175_v9 = vor.u32 %v6174_v51, %v6170_v12  ;;  %v6185_v51 = vrot.slane %v6183_v39, 4  ;;  %v6188_v16 = vrot.slane %v6186_v30, 5  ;;  %v5907_v30 = vld [vmem:[#allocation2 + $0xe8] sm:$0xf] }
 0x59f   : > { %v6416_v4 = vpop.f32.mrf.mxu2 }
 0x5a0   : > { %v14819_v55 = vadd.f32 %v6416_v4, %v14573_v33  ;;  %v6165_v4 = vor.u32 %v6164_v14, %v6161_v1  ;;  %v6176_v11 = vrot.slane %v6175_v9, 4  ;;  %v5905_v9 = vld [vmem:[#allocation2 + $0xdc] sm:$0x1] }
 0x5a2   : > { %v6166_v17 = vrot.slane %v6165_v4, 4  ;;  %v6181_v2 = vsel %vm13761_vm2, %v6176_v11, %v6180_v38  ;;  %v6198_v4 = vrot.slane %v6196_v58, 4 }
 0x5a3   : > { %v6326_v1 = vunpack.c.l.b16 %v6181_v2  ;;  %v14843_v2 = vpop.f32.mrf.mxu0 }
 0x5a7   : > { %v6418_v43 = vpop.f32.mrf.mxu2 }
 0x5a8   : > { %v14826_v33 = vadd.f32 %v6418_v43, %v14585_v45  ;;  %v6171_v45 = vsel %vm13761_vm2, %v6166_v17, %v6170_v12  ;;  %v6202_v12 = vshll.u32 %v5905_v9, 16  ;;  %v14851_v9 = vpop.f32.mrf.mxu3 }
 0x5a9   : > { %v6325_v43 = vunpack.c.l.b16 %v6171_v45  ;;  %v5906_v45 = vld [vmem:[#allocation2 + $0xe4] sm:$0xf] }
 0x5aa   : > { %v6204_v35 = vrot.slane %v6202_v12, 5 }
 0x5ab   : > { %v6347_v44 = vpack.c.b16 %v6326_v1, %v6325_v43  ;;  %v6216_v1 = vshll.u32 %v5907_v30, 16 }
 0x5ac   : > { %11052 = vmatmul.msk.bf16.gmra.mxu2 %vm1367_vm15, %v6346_v27  ;;  %v6194_v27 = vrot.slane %v6192_v54, 5  ;;  %v6210_v54 = vshll.u32 %v5906_v45, 16 }
 0x5ae   : > { %v6199_v47 = vor.u32 %v6198_v4, %v6194_v27 }
 0x5af   : > { %v6421_v6 = vpop.f32.mrf.mxu2 }
 0x5b0   : > { %v14830_v23 = vadd.f32 %v6421_v6, %v14590_v0  ;;  %v6189_v6 = vor.u32 %v6188_v16, %v6185_v51  ;;  %v6200_v38 = vrot.slane %v6199_v47, 4  ;;  %v14849_v51 = vpop.f32.mrf.mxu1  ;;  %v6218_v47 = vrot.slane %v6216_v1, 5 }
 0x5b2   : > { %v6190_v11 = vrot.slane %v6189_v6, 4  ;;  %v6205_v43 = vsel %vm13761_vm2, %v6200_v38, %v6204_v35  ;;  %v6212_v6 = vrot.slane %v6210_v54, 5 }
 0x5b3   : > { %v6328_v4 = vunpack.c.l.b16 %v6205_v43 }
 0x5b4   : > { %v6195_v58 = vsel %vm13761_vm2, %v6190_v11, %v6194_v27  ;;  %v14856_v11 = vpop.f32.mrf.mxu0 }
 0x5b5   : > { %v6327_v16 = vunpack.c.l.b16 %v6195_v58  ;;  %v7372_v58 = vld [vmem:[%s17116_s8 + $0x8] sm:$0xff] }
 0x5b6   : > { %7390 = vmatpush.msrb.mxu3 %v7372_v58  ;;  %7413 = vmatpush.msra.mxu1 %v7372_v58 }
 0x5b7   : > { %v6423_v14 = vpop.f32.mrf.mxu2  ;;  %v6348_v27 = vpack.c.b16 %v6328_v4, %v6327_v16  ;;  %v5910_v4 = vld [vmem:[#allocation2 + $0xf8] sm:$0xf] }
 0x5b8   : > { %v14837_v0 = vadd.f32 %v6423_v14, %v14603_v10  ;;  %v6207_v10 = vshrl.u32 %v5906_v45, 16  ;;  %v6220_v14 = vshrl.u32 %v5907_v30, 16  ;;  %v6244_v58 = vshrl.u32 %v5910_v4, 16 }
 0x5ba   : > { %v6222_v12 = vrot.slane %v6220_v14, 4  ;;  %v5909_v14 = vld [vmem:[#allocation2 + $0xf4] sm:$0xf]  ;;  %v6246_v60 = vrot.slane %v6244_v58, 4 }
 0x5bc   : > { %11053 = vmatmul.msk.bf16.gmra.mxu2 %vm1367_vm15, %v6347_v44  ;;  %v6209_v44 = vrot.slane %v6207_v10, 4  ;;  %v6223_v35 = vor.u32 %v6222_v12, %v6218_v47  ;;  %v14862_v10 = vpop.f32.mrf.mxu1 }
 0x5be   : > { %v6213_v38 = vor.u32 %v6212_v6, %v6209_v44  ;;  %v6231_v44 = vshrl.u32 %v5909_v14, 16  ;;  %v6234_v6 = vshll.u32 %v5909_v14, 16 }
 0x5bf   : > { %v6426_v17 = vpop.f32.mrf.mxu2 }
 0x5c0   : > { %v14841_v39 = vadd.f32 %v6426_v17, %v14608_v32  ;;  %v5908_v17 = vld [vmem:[#allocation2 + $0xec] sm:$0x1]  ;;  %v6214_v43 = vrot.slane %v6213_v38, 4  ;;  %v14873_v38 = vpop.f32.mrf.mxu0  ;;  %v6233_v25 = vrot.slane %v6231_v44, 4  ;;  %v6236_v41 = vrot.slane %v6234_v6, 5 }
 0x5c1   : > { %v6226_v30 = vshll.u32 %v5908_v17, 16 }
 0x5c2   : > { %v6219_v12 = vsel %vm13761_vm2, %v6214_v43, %v6218_v47 }
 0x5c3   : > { %v6228_v1 = vrot.slane %v6226_v30, 5 }
 0x5c4   : > { %v14879_v47 = vpop.f32.mrf.mxu1 }
 0x5c7   : > { %v6428_v32 = vpop.f32.mrf.mxu2 }
 0x5c8   : > { %v14854_v45 = vadd.f32 %v6428_v32, %v14621_v18  ;;  %v6224_v18 = vrot.slane %v6223_v35, 4  ;;  %v14867_v32 = vpop.f32.mrf.mxu3  ;;  %v6329_v35 = vunpack.c.l.b16 %v6219_v12 }
 0x5ca   : > { %v6229_v17 = vsel %vm13761_vm2, %v6224_v18, %v6228_v1 }
 0x5cb   : > { %v6330_v30 = vunpack.c.l.b16 %v6229_v17  ;;  %v6250_v17 = vshll.u32 %v5911_v63, 16  ;;  %v6264_v63 = vshll.u32 %v5913_v29, 16 }
 0x5cc   : > { %11054 = vmatmul.msk.bf16.gmra.mxu2 %vm1367_vm15, %v6348_v27  ;;  %v6240_v27 = vshll.u32 %v5910_v4, 16  ;;  %v6237_v4 = vor.u32 %v6236_v41, %v6233_v25  ;;  %v6268_v41 = vshrl.u32 %v5913_v29, 16  ;;  %v5590_v29 = vadd.f32 %v14661_v22, %v14669_v31 }
 0x5cd   : > { %v6349_v43 = vpack.c.b16 %v6330_v30, %v6329_v35  ;;  %v6252_v58 = vrot.slane %v6250_v17, 5 }
 0x5ce   : > { %v6242_v14 = vrot.slane %v6240_v27, 5  ;;  %v6238_v6 = vrot.slane %v6237_v4, 4 }
 0x5cf   : > { %v6431_v54 = vpop.f32.mrf.mxu2 }
 0x5d0   : > { %v14865_v16 = vadd.f32 %v6431_v54, %v14626_v46  ;;  %v4961_v46 = vadd.f32 %v14634_v48, %v14647_v34  ;;  %v14882_v1 = vpop.f32.mrf.mxu3  ;;  %v6247_v12 = vor.u32 %v6246_v60, %v6242_v14  ;;  %v14886_v34 = vpop.f32.mrf.mxu0  ;;  %v6243_v60 = vsel %vm13761_vm2, %v6238_v6, %v6242_v14  ;;  %v5914_v14 = vld [vmem:[#allocation2 + $0x10c] sm:$0x1] }
 0x5d2   : > { %v5588_v18 = vadd.f32 %v14639_v28, %v4961_v46  ;;  %v6248_v27 = vrot.slane %v6247_v12, 4  ;;  %v14890_v46 = vpop.f32.mrf.mxu1 }
 0x5d4   : > { %v5846_v48 = vadd.f32 %v14649_v56, %v5588_v18  ;;  %v6253_v56 = vsel %vm13761_vm2, %v6248_v27, %v6252_v58 }
 0x5d5   : > { %v6332_v18 = vunpack.c.l.b16 %v6253_v56  ;;  %v6274_v56 = vshll.u32 %v5914_v14, 16 }
 0x5d7   : > { %v14877_v54 = vpop.f32.mrf.mxu2 }
 0x5d8   : > { %17239 = vst [vmem:[#allocation13_spill] sm:$0xff] %v14877_v54  ;;  %v5912_v54 = vld [vmem:[#allocation2 + $0x104] sm:$0xf]  ;;  %v14896_v25 = vpop.f32.mrf.mxu3  ;;  %v14905_v6 = vpop.f32.mrf.mxu0 }
 0x5d9   : > { %v6255_v28 = vshrl.u32 %v5912_v54, 16  ;;  %v6258_v30 = vshll.u32 %v5912_v54, 16  ;;  %v6270_v54 = vrot.slane %v6268_v41, 4 }
 0x5db   : > { %v6257_v12 = vrot.slane %v6255_v28, 4  ;;  %v6260_v17 = vrot.slane %v6258_v30, 5  ;;  %v14914_v30 = vpop.f32.mrf.mxu1 }
 0x5dc   : > { %11055 = vmatmul.msk.bf16.gmra.mxu2 %vm1367_vm15, %v6349_v43  ;;  %v6331_v43 = vunpack.c.l.b16 %v6243_v60 }
 0x5dd   : > { %v6261_v58 = vor.u32 %v6260_v17, %v6257_v12 }
 0x5de   : > { %v6350_v27 = vpack.c.b16 %v6332_v18, %v6331_v43  ;;  %v6276_v18 = vrot.slane %v6274_v56, 5 }
 0x5df   : > { %v6436_v44 = vpop.f32.mrf.mxu2 }
 0x5e0   : > { %v14888_v35 = vadd.f32 %v6436_v44, %v5846_v48  ;;  %v6266_v48 = vrot.slane %v6264_v63, 5  ;;  %v14903_v44 = vld [vmem:[%s17115_s7 + $0x4] ss:$0 sm:$0xff]  ;;  %v5848_v63 = vadd.f32 %v14671_v7, %v5590_v29  ;;  %v4935_v41 = vpop.f32.mrf.mxu3  ;;  %v5562_v12 = vpop.f32.mrf.mxu0 }
 0x5e1   : > { %v14911_v28 = vadd.f32 %v14903_v44, %v14819_v55  ;;  %v14922_v55 = vadd.f32 %v14903_v44, %v14826_v33 }
 0x5e2   : > { %17240 = vst [vmem:[#allocation14_spill] sm:$0xff] %v14888_v35  ;;  %v6271_v60 = vor.u32 %v6270_v54, %v6266_v48  ;;  %v6262_v35 = vrot.slane %v6261_v58, 4  ;;  %v14930_v54 = vadd.f32 %v14903_v44, %v14830_v23  ;;  %v14942_v23 = vadd.f32 %v14903_v44, %v14837_v0 }
 0x5e3   : > { %v11059_v22 = vmul.f32 -1.442695, %v14911_v28  ;;  %v11060_v29 = vmul.f32 -1.442695, %v14922_v55  ;;  %v14954_v0 = vadd.f32 %v14903_v44, %v14841_v39  ;;  %v4975_v39 = vadd.f32 %v14867_v32, %v14764_v37 }
 0x5e4   : > { %v6272_v43 = vrot.slane %v6271_v60, 4  ;;  %v6267_v17 = vsel %vm13761_vm2, %v6262_v35, %v6266_v48  ;;  %v11061_v33 = vmul.f32 -1.442695, %v14930_v54  ;;  %v5592_v48 = vadd.f32 %v14683_v21, %v14691_v50 }
 0x5e5   : > { %11894 = vpow2.f32 %v11059_v22  ;;  %v6333_v14 = vunpack.c.l.b16 %v6267_v17  ;;  %v11062_v17 = vmul.f32 -1.442695, %v14942_v23  ;;  %v5598_v37 = vadd.f32 %v14738_v26, %v14740_v62 }
 0x5e6   : > { %v6277_v7 = vsel %vm13761_vm2, %v6272_v43, %v6276_v18  ;;  %11896 = vpow2.f32 %v11060_v29  ;;  %v5850_v18 = vadd.f32 %v14697_v52, %v5592_v48  ;;  %v11063_v52 = vmul.f32 -1.442695, %v14954_v0 }
 0x5e7   : > { %v14898_v4 = vpop.f32.mrf.mxu2  ;;  %11898 = vpow2.f32 %v11061_v33 }
 0x5e8   : > { %17241 = vst [vmem:[#allocation15_spill] sm:$0xff] %v14898_v4  ;;  %v4938_v60 = vpop.f32.mrf.mxu3 }
 0x5eb   : > { %v11895_v35 = vpop.eup %11894 }
 0x5ec   : > { %11056 = vmatmul.msk.bf16.gmra.mxu2 %vm1367_vm15, %v6350_v27  ;;  %v6334_v27 = vunpack.c.l.b16 %v6277_v7  ;;  %v14945_v43 = vadd.f32 1.0, %v11895_v35  ;;  %v11897_v21 = vpop.eup %11896  ;;  %v14963_v35 = vadd.f32 %v14903_v44, %v14854_v45  ;;  %v4979_v45 = vadd.f32 %v4938_v60, %v14786_v57 }
 0x5ed   : > { %v14956_v29 = vadd.f32 1.0, %v11897_v21  ;;  %v4978_v21 = vadd.f32 %v4935_v41, %v14782_v59 }
 0x5ee   : > { %v6351_v56 = vpack.c.b16 %v6334_v27, %v6333_v14  ;;  %11900 = vrcp.f32 %v14945_v43  ;;  %v11899_v14 = vpop.eup %11898  ;;  %v11064_v57 = vmul.f32 -1.442695, %v14963_v35  ;;  %vm6694_vm9 = vweird.f32 %v14945_v43 }
 0x5ef   : > { %v6441_v4 = vpop.f32.mrf.mxu2  ;;  %11902 = vpow2.f32 %v11062_v17  ;;  %v14958_v33 = vadd.f32 1.0, %v11899_v14  ;;  %v5594_v14 = vadd.f32 %v14703_v3, %v14709_v42  ;;  %v5602_v42 = vadd.f32 %v14873_v38, %v4975_v39 }
 0x5f0   : > { %v14918_v31 = vadd.f32 %v6441_v4, %v5848_v63  ;;  %v14932_v4 = vpop.f32.mrf.mxu1  ;;  %v5565_v63 = vpop.f32.mrf.mxu0  ;;  %11904 = vrcp.f32 %v14956_v29  ;;  %vm6709_vm13 = vweird.f32 %v14956_v29 }
 0x5f1   : > { %v4940_v27 = vpop.f32.mrf.mxu3  ;;  %11906 = vrcp.f32 %v14958_v33  ;;  %v5606_v32 = vadd.f32 %v5565_v63, %v4979_v45  ;;  %v5916_v63 = vld [vmem:[#allocation2 + $0x118] sm:$0xf]  ;;  %vm6724_vm1 = vweird.f32 %v14958_v33 }
 0x5f2   : > { %11908 = vpow2.f32 %v11063_v52 }
 0x5f3   : > { %11910 = vpow2.f32 %v11064_v57 }
 0x5f4   : > { %v14965_v48 = vpop.eup %11900 }
 0x5f5   : > { %v6690_v59 = vmul.f32 %v14965_v48, %v14945_v43  ;;  %vm6695_vm8 = vweird.f32 %v14965_v48 }
 0x5f6   : > { %vm15075_vm10 = vmor %vm6694_vm9, %vm6695_vm8 }
 0x5f7   : > { %v14935_v58 = vpop.f32.mrf.mxu2 }
 0x5f8   : > { %v5823_v50 = vpop.f32.mrf.mxu1  ;;  %v5567_v17 = vpop.f32.mrf.mxu0 }
 0x5f9   : > { %v4943_v38 = vpop.f32.mrf.mxu3  ;;  %v15029_v52 = vadd.f32 %v5823_v50, %v5606_v32 }
 0x5fa   : > { %v4981_v41 = vadd.f32 %v4943_v38, %v14797_v36 }
 0x5fc   : > { %11057 = vmatmul.msk.bf16.gmra.mxu2 %vm1367_vm15, %v6351_v56  ;;  %v4974_v56 = vadd.f32 %v14851_v9, %v14760_v61  ;;  %v5596_v61 = vadd.f32 %v14720_v5, %v14725_v40  ;;  %v5605_v9 = vadd.f32 %v5562_v12, %v4978_v21  ;;  %v6691_v12 = vsub.f32 1.0, %v6690_v59 }
 0x5fe   : > { %v5601_v3 = vadd.f32 %v14856_v11, %v4974_v56  ;;  %v15002_v11 = vadd.f32 %v14746_v15, %v5598_v37  ;;  %v15027_v36 = vadd.f32 %v14932_v4, %v5605_v9  ;;  %v6692_v4 = vmul.f32 %v14965_v48, %v6691_v12 }
 0x5ff   : > { %v6446_v22 = vpop.f32.mrf.mxu2 }
 0x600   : > { %v14949_v7 = vadd.f32 %v6446_v22, %v5850_v18  ;;  %v4976_v18 = vadd.f32 %v14882_v1, %v14771_v8  ;;  %v4977_v22 = vadd.f32 %v14896_v25, %v14775_v53  ;;  %v11903_v8 = vpop.eup %11902  ;;  %v5600_v53 = vadd.f32 %v14843_v2, %v14753_v20  ;;  %v5825_v26 = vpop.f32.mrf.mxu1 }
 0x601   : > { %v4980_v20 = vadd.f32 %v4940_v27, %v14793_v49  ;;  %v5852_v2 = vadd.f32 %v14715_v24, %v5594_v14  ;;  %v14999_v1 = vadd.f32 %v14731_v13, %v5596_v61  ;;  %v15004_v25 = vadd.f32 1.0, %v11903_v8 }
 0x602   : > { %v5603_v5 = vadd.f32 %v14886_v34, %v4976_v18  ;;  %v5604_v40 = vadd.f32 %v14905_v6, %v4977_v22  ;;  %v15006_v34 = vpop.eup %11904  ;;  %v15009_v6 = vadd.f32 %v14849_v51, %v5600_v53  ;;  %v15015_v24 = vadd.f32 %v14862_v10, %v5601_v3  ;;  %v5915_v51 = vld [vmem:[#allocation2 + $0x114] sm:$0xf] }
 0x603   : > { %v15012_v49 = vpop.eup %11906  ;;  %v15018_v13 = vadd.f32 %v14879_v47, %v5602_v42  ;;  %v5607_v56 = vadd.f32 %v5567_v17, %v4980_v20  ;;  %v15033_v10 = vadd.f32 %v14903_v44, %v14865_v16  ;;  %v5570_v47 = vpop.f32.mrf.mxu0  ;;  %11912 = vrcp.f32 %v15004_v25  ;;  %v17242_v42 = vld [vmem:[#allocation16_spill] sm:$0xff] }
 0x604   : > { %v15021_v15 = vadd.f32 %v14890_v46, %v5603_v5  ;;  %v15024_v60 = vadd.f32 %v14914_v30, %v5604_v40  ;;  %v11909_v27 = vpop.eup %11908  ;;  %v6705_v46 = vmul.f32 %v15006_v34, %v14956_v29  ;;  %v5917_v30 = vld [vmem:[#allocation2 + $0x11c] sm:$0x1]  ;;  %v6279_v39 = vshrl.u32 %v5915_v51, 16  ;;  %v17243_v5 = vld [vmem:[#allocation13_spill] sm:$0xff] }
 0x605   : > { %v6282_v18 = vshll.u32 %v5915_v51, 16  ;;  %v5608_v22 = vadd.f32 %v5570_v47, %v4981_v41  ;;  %v6720_v50 = vmul.f32 %v15012_v49, %v14958_v33  ;;  %v6288_v17 = vshll.u32 %v5916_v63, 16  ;;  %v11911_v61 = vpop.eup %11910 }
 0x606   : > { %v15041_v21 = vadd.f32 1.0, %v11909_v27  ;;  %v6281_v16 = vrot.slane %v6279_v39, 4  ;;  %v6292_v14 = vshrl.u32 %v5916_v63, 16  ;;  %v15043_v37 = vadd.f32 %v5825_v26, %v5607_v56  ;;  %v4945_v56 = vpop.f32.mrf.mxu3  ;;  %v17244_v39 = vld [vmem:[#allocation10_spill] sm:$0xff] }
 0x607   : > { %v14994_v62 = vpop.f32.mrf.mxu2  ;;  %v6284_v45 = vrot.slane %v6282_v18, 5  ;;  %v11065_v8 = vmul.f32 -1.442695, %v15033_v10  ;;  %v6290_v53 = vrot.slane %v6288_v17, 5  ;;  %v6298_v59 = vshll.u32 %v5917_v30, 16 }
 0x608   : > { %v5828_v57 = vpop.f32.mrf.mxu1  ;;  %v6706_v3 = vsub.f32 1.0, %v6705_v46  ;;  %v6503_v40 = vadd.f32 %v17243_v5, %v17242_v42  ;;  %v6294_v32 = vrot.slane %v6292_v14, 4  ;;  %v6693_v41 = vadd.f32 %v14965_v48, %v6692_v4 }
 0x609   : > { %v6285_v9 = vor.u32 %v6284_v45, %v6281_v16  ;;  %v15048_v38 = vadd.f32 %v5828_v57, %v5608_v22  ;;  %v6698_v26 = vand.u32 2147483647, %v14945_v43  ;;  %v15053_v12 = vpop.eup %11912  ;;  %v6721_v51 = vsub.f32 1.0, %v6720_v50 }
 0x60a   : > { %11914 = vrcp.f32 %v15041_v21  ;;  %v15056_v63 = vadd.f32 1.0, %v11911_v61  ;;  %v6295_v47 = vor.u32 %v6294_v32, %v6290_v53  ;;  %v6300_v46 = vrot.slane %v6298_v59, 5  ;;  %v17249_v61 = vld [vmem:[#allocation14_spill] sm:$0xff]  ;;  %v17251_v59 = vld [vmem:[#allocation15_spill] sm:$0xff] }
 0x60b   : > { %v6286_v27 = vrot.slane %v6285_v9, 4  ;;  %11916 = vpow2.f32 %v11065_v8  ;;  %v15061_v18 = vadd.f32 %v4945_v56, %v17244_v39  ;;  %v6707_v22 = vmul.f32 %v15006_v34, %v6706_v3  ;;  %v17250_v8 = vld [vmem:[#allocation17_spill] sm:$0xff] }
 0x60c   : > { %v15066_v4 = vadd.f32 %v14903_v44, %v6503_v40  ;;  %v6700_v50 = vand.u32 2147483648, %v14945_v43  ;;  %v6735_v17 = vmul.f32 %v15053_v12, %v15004_v25  ;;  %vm15079_vm11 = vcmp.eq.f32.partialorder %v6698_v26, 8.507059e+37 }
 0x60d   : > { %v6291_v16 = vsel %vm13761_vm2, %v6286_v27, %v6290_v53  ;;  %v15085_v43 = vadd.f32 %v14903_v44, %v17249_v61  ;;  %v6505_v57 = vadd.f32 %v17251_v59, %v17250_v8  ;;  %v6697_v53 = vsel %vm15075_vm10, %v14965_v48, %v6693_v41 }
 0x60e   : > { %v6335_v3 = vunpack.c.l.b16 %v6291_v16  ;;  %v6722_v42 = vmul.f32 %v15012_v49, %v6721_v51  ;;  %11918 = vrcp.f32 %v15056_v63  ;;  %v6708_v9 = vadd.f32 %v15006_v34, %v6707_v22 }
 0x60f   : > { %v6451_v20 = vpop.f32.mrf.mxu2  ;;  %vm6710_vm12 = vweird.f32 %v15006_v34  ;;  %v11066_v32 = vmul.f32 -1.442695, %v15066_v4  ;;  %v6701_v27 = vor.u32 1.1754944e-38, %v6700_v50  ;;  %v6715_v48 = vand.u32 2147483648, %v14956_v29 }
 0x610   : > { %v15058_v30 = vadd.f32 %v6451_v20, %v5852_v2  ;;  %v6296_v2 = vrot.slane %v6295_v47, 4  ;;  %v15096_v40 = vpop.eup %11914  ;;  %v6736_v41 = vsub.f32 1.0, %v6735_v17  ;;  %v6713_v51 = vand.u32 2147483647, %v14956_v29  ;;  %vm15110_vm14 = vmor %vm6709_vm13, %vm6710_vm12 }
 0x611   : > { %v11917_v26 = vpop.eup %11916  ;;  %v11067_v56 = vmul.f32 -1.442695, %v15085_v43  ;;  %v15106_v47 = vadd.f32 %v14903_v44, %v6505_v57  ;;  %v6702_v39 = vsel %vm15079_vm11, %v6701_v27, %v6697_v53  ;;  %v6723_v50 = vadd.f32 %v15012_v49, %v6722_v42 }
 0x612   : > { %v6301_v5 = vsel %vm13761_vm2, %v6296_v2, %v6300_v46  ;;  %vm6725_vm0 = vweird.f32 %v15012_v49  ;;  %v6750_v29 = vmul.f32 %v15096_v40, %v15041_v21  ;;  %v6712_v16 = vsel %vm15110_vm14, %v15006_v34, %v6708_v9 }
 0x613   : > { %v6336_v20 = vunpack.c.l.b16 %v6301_v5  ;;  %v6730_v2 = vand.u32 2147483648, %v14958_v33  ;;  %v15124_v45 = vadd.f32 1.0, %v11917_v26  ;;  %11920 = vpow2.f32 %v11066_v32  ;;  %vm15137_vm5 = vmor %vm6724_vm1, %vm6725_vm0  ;;  %v17256_v32 = vld [vmem:[#allocation18_spill] sm:$0xff] }
 0x614   : > { %v15127_v14 = vpop.eup %11918  ;;  %v6716_v61 = vor.u32 1.1754944e-38, %v6715_v48  ;;  %v6728_v8 = vand.u32 2147483647, %v14958_v33  ;;  %v6737_v59 = vmul.f32 %v15053_v12, %v6736_v41  ;;  %v15133_v57 = vmul.f32 %v6702_v39, %v14911_v28 }
 0x615   : > { %v6352_v46 = vpack.c.b16 %v6336_v20, %v6335_v3  ;;  %vm6714_vm4 = vcmp.eq.f32.partialorder %v6713_v51, 8.507059e+37  ;;  %11922 = vpow2.f32 %v11067_v56  ;;  %v11068_v3 = vmul.f32 -1.442695, %v15106_v47 }
 0x616   : > { %v6717_v53 = vsel %vm6714_vm4, %v6716_v61, %v6712_v16  ;;  %v6727_v33 = vsel %vm15137_vm5, %v15012_v49, %v6723_v50  ;;  %v6751_v42 = vsub.f32 1.0, %v6750_v29  ;;  %v15147_v28 = vadd.f32 %v14903_v44, %v14918_v31 }
 0x617   : > { %v15118_v17 = vpop.f32.mrf.mxu2  ;;  %11058 = vmatmul.msk.bf16.gmra.mxu2 %vm1367_vm15, %v6352_v46  ;;  %v6731_v5 = vor.u32 1.1754944e-38, %v6730_v2  ;;  %v6765_v9 = vmul.f32 %v15127_v14, %v15056_v63  ;;  %11924 = vrcp.f32 %v15124_v45  ;;  %v6507_v20 = vadd.f32 %v14935_v58, %v17256_v32 }
 0x618   : > { %vm6729_vm8 = vcmp.eq.f32.partialorder %v6728_v8, 8.507059e+37  ;;  %v6738_v26 = vadd.f32 %v15053_v12, %v6737_v59  ;;  %vm6740_vm9 = vweird.f32 %v15053_v12  ;;  %v6743_v49 = vand.u32 2147483647, %v15004_v25 }
 0x619   : > { %v11921_v27 = vpop.eup %11920  ;;  %v15158_v31 = vmul.f32 %v6717_v53, %v14922_v55  ;;  %v6732_v48 = vsel %vm6729_vm8, %v6731_v5, %v6727_v33  ;;  %v6745_v41 = vand.u32 2147483648, %v15004_v25  ;;  %11926 = vpow2.f32 %v11068_v3 }
 0x61a   : > { %v7201_v51 = vsel %vm1367_vm15, %v15133_v57, 0.0  ;;  %vm6739_vm10 = vweird.f32 %v15004_v25  ;;  %v6752_v58 = vmul.f32 %v15096_v40, %v6751_v42  ;;  %v11069_v56 = vmul.f32 -1.442695, %v15147_v28 }
 0x61b   : > { %v11923_v39 = vpop.eup %11922  ;;  %v7270_v22 = vmul.f32 %v15133_v57, %v15133_v57  ;;  %vm15168_vm11 = vmor %vm6739_vm10, %vm6740_vm9  ;;  %v6766_v50 = vsub.f32 1.0, %v6765_v9  ;;  %v15173_v29 = vadd.f32 %v14903_v44, %v6507_v20  ;;  %v15179_v25 = vmul.f32 %v6732_v48, %v14930_v54 }
 0x61c   : > { %v6742_v2 = vsel %vm15168_vm11, %v15053_v12, %v6738_v26  ;;  %vm6744_vm12 = vcmp.eq.f32.partialorder %v6743_v49, 8.507059e+37  ;;  %v15184_v61 = vadd.f32 1.0, %v11921_v27  ;;  %v7202_v59 = vsel %vm1367_vm15, %v15158_v31, 0.0 }
 0x61d   : > { %v15186_v8 = vpop.eup %11924  ;;  %v7271_v34 = vmul.f32 %v15158_v31, %v15158_v31  ;;  %vm6754_vm13 = vweird.f32 %v15041_v21  ;;  %v6753_v54 = vadd.f32 %v15096_v40, %v6752_v58  ;;  %vm6755_vm14 = vweird.f32 %v15096_v40 }
 0x61e   : > { %v15195_v3 = vadd.f32 1.0, %v11923_v39  ;;  %11928 = vpow2.f32 %v11069_v56  ;;  %v6760_v33 = vand.u32 2147483648, %v15041_v21  ;;  %v6767_v42 = vmul.f32 %v15127_v14, %v6766_v50  ;;  %vm15214_vm0 = vmor %vm6754_vm13, %vm6755_vm14 }
 0x61f   : > { %v6456_v46 = vpop.f32.mrf.mxu2  ;;  %v11927_v12 = vpop.eup %11926  ;;  %v11070_v5 = vmul.f32 -1.442695, %v15173_v29  ;;  %v7272_v9 = vmul.f32 %v15179_v25, %v15179_v25  ;;  %v6758_v32 = vand.u32 2147483647, %v15041_v21  ;;  %v6780_v20 = vmul.f32 %v15186_v8, %v15124_v45 }
 0x620   : > { %v15176_v16 = vadd.f32 %v6456_v46, %v14999_v1  ;;  %v6746_v1 = vor.u32 1.1754944e-38, %v6745_v41  ;;  %11930 = vrcp.f32 %v15184_v61  ;;  %v7302_v26 = vsel %vm1367_vm15, %v7270_v22, 0.0 }
 0x621   : > { %v7203_v49 = vadd.f32 %v7202_v59, %v7201_v51  ;;  %v7303_v27 = vsel %vm1367_vm15, %v7271_v34, 0.0  ;;  %v7204_v48 = vsel %vm1367_vm15, %v15179_v25, 0.0  ;;  %v6757_v51 = vsel %vm15214_vm0, %v15096_v40, %v6753_v54  ;;  %v5572_v40 = vpop.f32.mrf.mxu0  ;;  %v17261_v34 = vld [vmem:[#allocation19_spill] sm:$0xff] }
 0x622   : > { %v6747_v53 = vsel %vm6744_vm12, %v6746_v1, %v6742_v2  ;;  %11932 = vrcp.f32 %v15195_v3  ;;  %v15225_v56 = vadd.f32 1.0, %v11927_v12  ;;  %v6761_v39 = vor.u32 1.1754944e-38, %v6760_v33 }
 0x623   : > { %v15219_v58 = vmul.f32 %v6747_v53, %v14942_v23  ;;  %v6768_v21 = vadd.f32 %v15127_v14, %v6767_v42  ;;  %vm6770_vm1 = vweird.f32 %v15127_v14  ;;  %11934 = vpow2.f32 %v11070_v5 }
 0x624   : > { %v11929_v22 = vpop.eup %11928  ;;  %v7305_v23 = vsel %vm1367_vm15, %v7272_v9, 0.0  ;;  %vm6759_vm4 = vcmp.eq.f32.partialorder %v6758_v32, 8.507059e+37  ;;  %v6775_v55 = vand.u32 2147483648, %v15056_v63  ;;  %v6781_v50 = vsub.f32 1.0, %v6780_v20 }
 0x625   : > { %v6762_v2 = vsel %vm6759_vm4, %v6761_v39, %v6757_v51  ;;  %vm6769_vm5 = vweird.f32 %v15056_v63  ;;  %v6773_v59 = vand.u32 2147483647, %v15056_v63  ;;  %v6509_v1 = vadd.f32 %v14994_v62, %v17261_v34 }
 0x626   : > { %v15237_v54 = vpop.eup %11930  ;;  %v5609_v12 = vadd.f32 %v5572_v40, %v15061_v18  ;;  %v7304_v53 = vadd.f32 %v7303_v27, %v7302_v26  ;;  %v7273_v33 = vmul.f32 %v15219_v58, %v15219_v58  ;;  %vm15244_vm8 = vmor %vm6769_vm5, %vm6770_vm1  ;;  %11936 = vrcp.f32 %v15225_v56  ;;  %v5830_v40 = vpop.f32.mrf.mxu1 }
 0x627   : > { %v15227_v46 = vpop.f32.mrf.mxu2  ;;  %v7205_v63 = vadd.f32 %v7204_v48, %v7203_v49  ;;  %v6772_v62 = vsel %vm15244_vm8, %v15127_v14, %v6768_v21  ;;  %v15252_v5 = vadd.f32 1.0, %v11929_v22  ;;  %v15256_v18 = vadd.f32 %v14903_v44, %v14949_v7 }
 0x628   : > { %v15258_v9 = vpop.eup %11932  ;;  %v7306_v32 = vadd.f32 %v7305_v23, %v7304_v53  ;;  %v15261_v20 = vmul.f32 %v6762_v2, %v14954_v0  ;;  %v6776_v26 = vor.u32 1.1754944e-38, %v6775_v55  ;;  %v6782_v27 = vmul.f32 %v15186_v8, %v6781_v50 }
 0x629   : > { %v11935_v49 = vpop.eup %11934  ;;  %v7206_v48 = vsel %vm1367_vm15, %v15219_v58, 0.0  ;;  %vm6774_vm9 = vcmp.eq.f32.partialorder %v6773_v59, 8.507059e+37  ;;  %v6795_v14 = vmul.f32 %v15237_v54, %v15184_v61  ;;  %v15269_v7 = vadd.f32 %v14903_v44, %v6509_v1 }
 0x62a   : > { %v7307_v41 = vsel %vm1367_vm15, %v7273_v33, 0.0  ;;  %v6777_v51 = vsel %vm6774_vm9, %v6776_v26, %v6772_v62  ;;  %v6788_v0 = vand.u32 2147483647, %v15124_v45  ;;  %v6790_v39 = vand.u32 2147483648, %v15124_v45 }
 0x62b   : > { %v6810_v22 = vmul.f32 %v15258_v9, %v15195_v3  ;;  %11938 = vrcp.f32 %v15252_v5  ;;  %v11071_v23 = vmul.f32 -1.442695, %v15256_v18  ;;  %v7274_v2 = vmul.f32 %v15261_v20, %v15261_v20 }
 0x62c   : > { %v15281_v50 = vpop.eup %11936  ;;  %v6783_v59 = vadd.f32 %v15186_v8, %v6782_v27  ;;  %vm6785_vm10 = vweird.f32 %v15186_v8  ;;  %v15287_v34 = vadd.f32 1.0, %v11935_v49  ;;  %v15289_v1 = vadd.f32 %v5830_v40, %v5609_v12 }
 0x62d   : > { %v7207_v53 = vadd.f32 %v7206_v48, %v7205_v63  ;;  %v6796_v33 = vsub.f32 1.0, %v6795_v14  ;;  %v11072_v42 = vmul.f32 -1.442695, %v15269_v7  ;;  %v15293_v62 = vmul.f32 %v6777_v51, %v14963_v35  ;;  %v17268_v51 = vld [vmem:[#allocation20_spill] sm:$0xff] }
 0x62e   : > { %vm6784_vm11 = vweird.f32 %v15124_v45  ;;  %vm15296_vm12 = vcmp.eq.f32.partialorder %v6788_v0, 8.507059e+37  ;;  %v7208_v27 = vsel %vm1367_vm15, %v15261_v20, 0.0  ;;  %v6811_v63 = vsub.f32 1.0, %v6810_v22 }
 0x62f   : > { %v6461_v21 = vpop.f32.mrf.mxu2  ;;  %vm15302_vm13 = vmor %vm6784_vm11, %vm6785_vm10  ;;  %11940 = vpow2.f32 %v11071_v23  ;;  %v7309_v35 = vsel %vm1367_vm15, %v7274_v2, 0.0  ;;  %v6791_v49 = vor.u32 1.1754944e-38, %v6790_v39  ;;  %v6797_v14 = vmul.f32 %v15237_v54, %v6796_v33 }
 0x630   : > { %v15279_v55 = vadd.f32 %v6461_v21, %v15002_v11  ;;  %v7308_v11 = vadd.f32 %v7307_v41, %v7306_v32  ;;  %v6825_v32 = vmul.f32 %v15281_v50, %v15225_v56  ;;  %v6787_v45 = vsel %vm15302_vm13, %v15186_v8, %v6783_v59 }
 0x631   : > { %11942 = vrcp.f32 %v15287_v34  ;;  %v15313_v48 = vpop.eup %11938  ;;  %v15318_v41 = vadd.f32 %v14903_v44, %v15058_v30  ;;  %v6511_v0 = vadd.f32 %v15118_v17, %v17268_v51  ;;  %v7209_v21 = vadd.f32 %v7208_v27, %v7207_v53 }
 0x632   : > { %11944 = vpow2.f32 %v11072_v42  ;;  %v7275_v22 = vmul.f32 %v15293_v62, %v15293_v62  ;;  %v6803_v8 = vand.u32 2147483647, %v15184_v61  ;;  %v6805_v39 = vand.u32 2147483648, %v15184_v61 }
 0x633   : > { %v15326_v23 = vadd.f32 %v7309_v35, %v7308_v11  ;;  %v7210_v40 = vsel %vm1367_vm15, %v15293_v62, 0.0  ;;  %v6812_v2 = vmul.f32 %v15258_v9, %v6811_v63  ;;  %v6826_v30 = vsub.f32 1.0, %v6825_v32 }
 0x634   : > { %v6792_v17 = vsel %vm15296_vm12, %v6791_v49, %v6787_v45  ;;  %vm6799_vm14 = vweird.f32 %v15184_v61  ;;  %vm6800_vm0 = vweird.f32 %v15237_v54  ;;  %v6840_v53 = vmul.f32 %v15313_v48, %v15252_v5 }
 0x635   : > { %v11941_v33 = vpop.eup %11940  ;;  %v6798_v42 = vadd.f32 %v15237_v54, %v6797_v14  ;;  %v6820_v11 = vand.u32 2147483648, %v15195_v3  ;;  %v11073_v27 = vmul.f32 -1.442695, %v15318_v41  ;;  %v15343_v12 = vadd.f32 %v14903_v44, %v6511_v0  ;;  %vm15364_vm5 = vmor %vm6799_vm14, %vm6800_vm0 }
 0x636   : > { %v15347_v26 = vadd.f32 %v7210_v40, %v7209_v21  ;;  %v7311_v32 = vsel %vm1367_vm15, %v7275_v22, 0.0  ;;  %vm15350_vm1 = vcmp.eq.f32.partialorder %v6803_v8, 8.507059e+37  ;;  %v6806_v45 = vor.u32 1.1754944e-38, %v6805_v39 }
 0x637   : > { %v15331_v59 = vpop.f32.mrf.mxu2  ;;  %v15345_v63 = vpop.eup %11942  ;;  %v15355_v14 = vmul.f32 %v6792_v17, %v15033_v10  ;;  %v6813_v51 = vadd.f32 %v15258_v9, %v6812_v2  ;;  %vm6815_vm4 = vweird.f32 %v15258_v9  ;;  %v6827_v0 = vmul.f32 %v15281_v50, %v6826_v30 }
 0x638   : > { %v11945_v49 = vpop.eup %11944  ;;  %vm6814_vm8 = vweird.f32 %v15195_v3  ;;  %v6818_v22 = vand.u32 2147483647, %v15195_v3  ;;  %v6841_v10 = vsub.f32 1.0, %v6840_v53  ;;  %v15370_v8 = vadd.f32 1.0, %v11941_v33 }
 0x639   : > { %v6802_v39 = vsel %vm15364_vm5, %v15237_v54, %v6798_v42  ;;  %v6821_v40 = vor.u32 1.1754944e-38, %v6820_v11  ;;  %11946 = vpow2.f32 %v11073_v27  ;;  %v11074_v2 = vmul.f32 -1.442695, %v15343_v12  ;;  %vm15376_vm9 = vmor %vm6814_vm8, %vm6815_vm4 }
 0x63a   : > { %v6833_v30 = vand.u32 2147483647, %v15225_v56  ;;  %v6855_v3 = vmul.f32 %v15345_v63, %v15287_v34  ;;  %v15383_v17 = vadd.f32 1.0, %v11945_v49  ;;  %v15387_v53 = vadd.f32 %v14903_v44, %v15176_v16 }
 0x63b   : > { %v6817_v54 = vsel %vm15376_vm9, %v15258_v9, %v6813_v51  ;;  %v6828_v33 = vadd.f32 %v15281_v50, %v6827_v0  ;;  %vm6830_vm10 = vweird.f32 %v15281_v50  ;;  %v6835_v42 = vand.u32 2147483648, %v15225_v56 }
 0x63c   : > { %v6807_v27 = vsel %vm15350_vm1, %v6806_v45, %v6802_v39  ;;  %v6842_v49 = vmul.f32 %v15313_v48, %v6841_v10  ;;  %11948 = vrcp.f32 %v15370_v8  ;;  %v7212_v9 = vsel %vm1367_vm15, %v15355_v14, 0.0 }
 0x63d   : > { %vm6819_vm11 = vcmp.eq.f32.partialorder %v6818_v22, 8.507059e+37  ;;  %vm6829_vm12 = vweird.f32 %v15225_v56  ;;  %11950 = vpow2.f32 %v11074_v2  ;;  %v6856_v35 = vsub.f32 1.0, %v6855_v3  ;;  %v17277_v22 = vld [vmem:[#allocation21_spill] sm:$0xff] }
 0x63e   : > { %v6822_v51 = vsel %vm6819_vm11, %v6821_v40, %v6817_v54  ;;  %vm15405_vm13 = vmor %vm6829_vm12, %vm6830_vm10  ;;  %11952 = vrcp.f32 %v15383_v17  ;;  %v11075_v45 = vmul.f32 -1.442695, %v15387_v53  ;;  %v15414_v10 = vmul.f32 %v6807_v27, %v15066_v4 }
 0x63f   : > { %v6466_v11 = vpop.f32.mrf.mxu2  ;;  %v11947_v21 = vpop.eup %11946  ;;  %v6832_v56 = vsel %vm15405_vm13, %v15281_v50, %v6828_v33  ;;  %v6513_v39 = vadd.f32 %v15227_v46, %v17277_v22  ;;  %vm6834_vm14 = vcmp.eq.f32.partialorder %v6833_v30, 8.507059e+37  ;;  %v6836_v40 = vor.u32 1.1754944e-38, %v6835_v42 }
 0x640   : > { %v15400_v16 = vadd.f32 %v6466_v11, %v15009_v6  ;;  %v7276_v6 = vmul.f32 %v15355_v14, %v15355_v14  ;;  %v6843_v2 = vadd.f32 %v15313_v48, %v6842_v49  ;;  %vm6845_vm0 = vweird.f32 %v15313_v48  ;;  %v4948_v50 = vpop.f32.mrf.mxu3  ;;  %v17278_v11 = vld [vmem:[#allocation11_spill] sm:$0xff] }
 0x641   : > { %v15424_v61 = vmul.f32 %v6822_v51, %v15085_v43  ;;  %vm6844_vm1 = vweird.f32 %v15252_v5  ;;  %v6848_v4 = vand.u32 2147483647, %v15252_v5  ;;  %v6850_v3 = vand.u32 2147483648, %v15252_v5 }
 0x642   : > { %v15429_v54 = vpop.eup %11948  ;;  %v6837_v33 = vsel %vm6834_vm14, %v6836_v40, %v6832_v56  ;;  %v6857_v46 = vmul.f32 %v15345_v63, %v6856_v35  ;;  %v15432_v30 = vadd.f32 1.0, %v11947_v21  ;;  %11954 = vpow2.f32 %v11075_v45  ;;  %vm15441_vm4 = vmor %vm6844_vm1, %vm6845_vm0 }
 0x643   : > { %v11951_v42 = vpop.eup %11950  ;;  %v15435_v27 = vadd.f32 %v4948_v50, %v17278_v11  ;;  %v7312_v43 = vadd.f32 %v7311_v32, %v15326_v23  ;;  %v7213_v49 = vadd.f32 %v7212_v9, %v15347_v26  ;;  %v15446_v51 = vadd.f32 %v14903_v44, %v6513_v39  ;;  %v5575_v11 = vpop.f32.mrf.mxu0 }
 0x644   : > { %v15450_v35 = vpop.eup %11952  ;;  %v7313_v45 = vsel %vm1367_vm15, %v7276_v6, 0.0  ;;  %v7214_v23 = vsel %vm1367_vm15, %v15414_v10, 0.0  ;;  %v7277_v26 = vmul.f32 %v15414_v10, %v15414_v10  ;;  %v6847_v32 = vsel %vm15441_vm4, %v15313_v48, %v6843_v2 }
 0x645   : > { %v7278_v9 = vmul.f32 %v15424_v61, %v15424_v61  ;;  %v15463_v21 = vmul.f32 %v6837_v33, %v15106_v47  ;;  %vm6849_vm5 = vcmp.eq.f32.partialorder %v6848_v4, 8.507059e+37  ;;  %v6851_v56 = vor.u32 1.1754944e-38, %v6850_v3 }
 0x646   : > { %v6858_v6 = vadd.f32 %v15345_v63, %v6857_v46  ;;  %vm6860_vm8 = vweird.f32 %v15345_v63  ;;  %11956 = vrcp.f32 %v15432_v30  ;;  %v15468_v22 = vadd.f32 1.0, %v11951_v42 }
 0x647   : > { %v15448_v0 = vpop.f32.mrf.mxu2  ;;  %17281 = vst [vmem:[#allocation16_spill] sm:$0xff] %v15463_v21  ;;  %v6852_v39 = vsel %vm6849_vm5, %v6851_v56, %v6847_v32  ;;  %v6870_v48 = vmul.f32 %v15429_v54, %v15370_v8  ;;  %v6885_v40 = vmul.f32 %v15450_v35, %v15383_v17  ;;  %v11076_v47 = vmul.f32 -1.442695, %v15446_v51 }
 0x648   : > { %v11955_v2 = vpop.eup %11954  ;;  %v7314_v4 = vadd.f32 %v7313_v45, %v7312_v43  ;;  %v7215_v3 = vadd.f32 %v7214_v23, %v7213_v49  ;;  %vm6859_vm9 = vweird.f32 %v15287_v34  ;;  %v6865_v50 = vand.u32 2147483648, %v15287_v34  ;;  %v7371_v23 = vld [vmem:[%s17116_s8] sm:$0xff] }
 0x649   : > { %v7315_v33 = vsel %vm1367_vm15, %v7277_v26, 0.0  ;;  %v7216_v46 = vsel %vm1367_vm15, %v15424_v61, 0.0  ;;  %v7279_v42 = vmul.f32 %v15463_v21, %v15463_v21  ;;  %vm15484_vm10 = vmor %vm6859_vm9, %vm6860_vm8  ;;  %v6863_v43 = vand.u32 2147483647, %v15287_v34  ;;  %7391 = vmatpush.msrb.mxu3 %v7371_v23  ;;  %7414 = vmatpush.msra.mxu1 %v7371_v23 }
 0x64a   : > { %v7317_v49 = vsel %vm1367_vm15, %v7278_v9, 0.0  ;;  %v15491_v5 = vmul.f32 %v6852_v39, %v15147_v28  ;;  %v6862_v45 = vsel %vm15484_vm10, %v15345_v63, %v6858_v6  ;;  %11958 = vrcp.f32 %v15468_v22 }
 0x64b   : > { %v6871_v26 = vsub.f32 1.0, %v6870_v48  ;;  %v6886_v32 = vsub.f32 1.0, %v6885_v40  ;;  %v15500_v56 = vadd.f32 1.0, %v11955_v2  ;;  %11960 = vpow2.f32 %v11076_v47  ;;  %v17285_v47 = vld [vmem:[#allocation22_spill] sm:$0xff] }
 0x64c   : > { %17284 = vst [vmem:[#allocation13_spill] sm:$0xff] %v15491_v5  ;;  %v15504_v28 = vpop.eup %11956  ;;  %v7316_v9 = vadd.f32 %v7315_v33, %v7314_v4  ;;  %v7217_v39 = vadd.f32 %v7216_v46, %v7215_v3  ;;  %v6866_v63 = vor.u32 1.1754944e-38, %v6865_v50  ;;  %v15508_v6 = vadd.f32 %v14903_v44, %v15279_v55 }
 0x64d   : > { %v7218_v48 = vsel %vm1367_vm15, %v15463_v21, 0.0  ;;  %v7319_v40 = vsel %vm1367_vm15, %v7279_v42, 0.0  ;;  %vm6864_vm11 = vcmp.eq.f32.partialorder %v6863_v43, 8.507059e+37  ;;  %v6515_v2 = vadd.f32 %v15331_v59, %v17285_v47 }
 0x64e   : > { %v7318_v23 = vadd.f32 %v7317_v49, %v7316_v9  ;;  %v7280_v4 = vmul.f32 %v15491_v5, %v15491_v5  ;;  %v6867_v3 = vsel %vm6864_vm11, %v6866_v63, %v6862_v45  ;;  %v6878_v50 = vand.u32 2147483647, %v15370_v8 }
 0x64f   : > { %v15502_v34 = vpop.f32.mrf.mxu2  ;;  %v6872_v55 = vmul.f32 %v15429_v54, %v6871_v26  ;;  %v6887_v33 = vmul.f32 %v15450_v35, %v6886_v32  ;;  %v6900_v46 = vmul.f32 %v15504_v28, %v15432_v30  ;;  %11962 = vrcp.f32 %v15500_v56 }
 0x650   : > { %v15523_v42 = vpop.eup %11958  ;;  %v5610_v59 = vadd.f32 %v5575_v11, %v15435_v27  ;;  %v7219_v43 = vadd.f32 %v7218_v48, %v7217_v39  ;;  %v7320_v49 = vadd.f32 %v7319_v40, %v7318_v23  ;;  %v11077_v9 = vmul.f32 -1.442695, %v15508_v6 }
 0x651   : > { %v11961_v45 = vpop.eup %11960  ;;  %v15528_v63 = vmul.f32 %v6867_v3, %v15173_v29  ;;  %vm6874_vm12 = vweird.f32 %v15370_v8  ;;  %v6880_v26 = vand.u32 2147483648, %v15370_v8  ;;  %v15533_v32 = vadd.f32 %v14903_v44, %v6515_v2 }
 0x652   : > { %v7220_v47 = vsel %vm1367_vm15, %v15491_v5, 0.0  ;;  %v7321_v27 = vsel %vm1367_vm15, %v7280_v4, 0.0  ;;  %vm6875_vm13 = vweird.f32 %v15429_v54  ;;  %vm15539_vm14 = vcmp.eq.f32.partialorder %v6878_v50, 8.507059e+37 }
 0x653   : > { %v6873_v29 = vadd.f32 %v15429_v54, %v6872_v55  ;;  %v6888_v11 = vadd.f32 %v15450_v35, %v6887_v33  ;;  %vm6890_vm0 = vweird.f32 %v15450_v35  ;;  %v6901_v48 = vsub.f32 1.0, %v6900_v46  ;;  %vm15559_vm1 = vmor %vm6874_vm12, %vm6875_vm13 }
 0x654   : > { %v6895_v2 = vand.u32 2147483648, %v15383_v17  ;;  %v6915_v23 = vmul.f32 %v15523_v42, %v15468_v22  ;;  %v15551_v4 = vadd.f32 1.0, %v11961_v45  ;;  %11964 = vpow2.f32 %v11077_v9 }
 0x655   : > { %v15553_v3 = vpop.eup %11962  ;;  %v7281_v50 = vmul.f32 %v15528_v63, %v15528_v63  ;;  %vm6889_vm4 = vweird.f32 %v15383_v17  ;;  %v6893_v33 = vand.u32 2147483647, %v15383_v17  ;;  %v11078_v46 = vmul.f32 -1.442695, %v15533_v32 }
 0x656   : > { %v7221_v45 = vadd.f32 %v7220_v47, %v7219_v43  ;;  %v7322_v19 = vadd.f32 %v7321_v27, %v7320_v49  ;;  %v6881_v9 = vor.u32 1.1754944e-38, %v6880_v26  ;;  %vm15568_vm5 = vmor %vm6889_vm4, %vm6890_vm0  ;;  %v6517_v8 = vadd.f32 %v15448_v0, %v15015_v24  ;;  %v5833_v24 = vpop.f32.mrf.mxu1 }
 0x657   : > { %v15546_v40 = vpop.f32.mrf.mxu2  ;;  %v6877_v21 = vsel %vm15559_vm1, %v15429_v54, %v6873_v29  ;;  %v6892_v17 = vsel %vm15568_vm5, %v15450_v35, %v6888_v11  ;;  %v6902_v43 = vmul.f32 %v15504_v28, %v6901_v48  ;;  %v15583_v49 = vadd.f32 %v14903_v44, %v15400_v16  ;;  %v15597_v29 = vld [vmem:[%s17115_s7 + $0x4] ss:$0 sm:$0xff] }
 0x658   : > { %v6896_v26 = vor.u32 1.1754944e-38, %v6895_v2  ;;  %v6916_v47 = vsub.f32 1.0, %v6915_v23  ;;  %v6930_v27 = vmul.f32 %v15553_v3, %v15500_v56  ;;  %11966 = vrcp.f32 %v15551_v4 }
 0x659   : > { %v7222_v54 = vsel %vm1367_vm15, %v15528_v63, 0.0  ;;  %v7323_v0 = vsel %vm1367_vm15, %v7281_v50, 0.0  ;;  %vm6894_vm8 = vcmp.eq.f32.partialorder %v6893_v33, 8.507059e+37  ;;  %11968 = vpow2.f32 %v11078_v46 }
 0x65a   : > { %v11965_v35 = vpop.eup %11964  ;;  %v6882_v44 = vsel %vm15539_vm14, %v6881_v9, %v6877_v21  ;;  %v6897_v16 = vsel %vm6894_vm8, %v6896_v26, %v6892_v17  ;;  %v6908_v5 = vand.u32 2147483647, %v15432_v30  ;;  %v15600_v11 = vadd.f32 %v15597_v29, %v6517_v8 }
 0x65b   : > { %v6903_v48 = vadd.f32 %v15504_v28, %v6902_v43  ;;  %vm6905_vm9 = vweird.f32 %v15504_v28  ;;  %v6910_v2 = vand.u32 2147483648, %v15432_v30  ;;  %v11079_v39 = vmul.f32 -1.442695, %v15583_v49 }
 0x65c   : > { %v15608_v23 = vadd.f32 %v5833_v24, %v5610_v59  ;;  %v6917_v50 = vmul.f32 %v15523_v42, %v6916_v47  ;;  %v6931_v55 = vsub.f32 1.0, %v6930_v27  ;;  %v6518_v33 = vadd.f32 %v15502_v34, %v15018_v13 }
 0x65d   : > { %v7223_v46 = vadd.f32 %v7222_v54, %v7221_v45  ;;  %v7324_v9 = vadd.f32 %v7323_v0, %v7322_v19  ;;  %vm6904_vm10 = vweird.f32 %v15432_v30  ;;  %v15614_v8 = vadd.f32 1.0, %v11965_v35 }
 0x65e   : > { %v15616_v17 = vpop.eup %11966  ;;  %v15619_v43 = vmul.f32 %v6882_v44, %v15256_v18  ;;  %v15622_v59 = vmul.f32 %v6897_v16, %v15269_v7  ;;  %vm15626_vm11 = vmor %vm6904_vm10, %vm6905_vm9  ;;  %vm6909_vm12 = vcmp.eq.f32.partialorder %v6908_v5, 8.507059e+37  ;;  %v11080_v19 = vmul.f32 -1.442695, %v15600_v11 }
 0x65f   : > { %v15606_v21 = vpop.f32.mrf.mxu2  ;;  %v11969_v13 = vpop.eup %11968  ;;  %v6907_v30 = vsel %vm15626_vm11, %v15504_v28, %v6903_v48  ;;  %v6911_v34 = vor.u32 1.1754944e-38, %v6910_v2  ;;  %v6925_v18 = vand.u32 2147483648, %v15468_v22  ;;  %11970 = vpow2.f32 %v11079_v39 }
 0x660   : > { %v6918_v7 = vadd.f32 %v15523_v42, %v6917_v50  ;;  %vm6920_vm13 = vweird.f32 %v15523_v42  ;;  %v6932_v45 = vmul.f32 %v15553_v3, %v6931_v55  ;;  %v15639_v47 = vadd.f32 %v15597_v29, %v6518_v33 }
 0x661   : > { %vm6919_vm14 = vweird.f32 %v15468_v22  ;;  %v6945_v27 = vmul.f32 %v15616_v17, %v15551_v4  ;;  %11972 = vrcp.f32 %v15614_v8  ;;  %v6519_v28 = vadd.f32 %v15546_v40, %v15021_v15 }
 0x662   : > { %v6912_v24 = vsel %vm6909_vm12, %v6911_v34, %v6907_v30  ;;  %v6923_v54 = vand.u32 2147483647, %v15468_v22  ;;  %v15648_v0 = vadd.f32 1.0, %v11969_v13  ;;  %11974 = vpow2.f32 %v11080_v19  ;;  %vm15656_vm0 = vmor %vm6919_vm14, %vm6920_vm13 }
 0x663   : > { %v7224_v35 = vsel %vm1367_vm15, %v15619_v43, 0.0  ;;  %v7282_v44 = vmul.f32 %v15619_v43, %v15619_v43  ;;  %v7283_v16 = vmul.f32 %v15622_v59, %v15622_v59  ;;  %v6926_v15 = vor.u32 1.1754944e-38, %v6925_v18 }
 0x664   : > { %v6922_v22 = vsel %vm15656_vm0, %v15523_v42, %v6918_v7  ;;  %v6933_v40 = vadd.f32 %v15553_v3, %v6932_v45  ;;  %vm6935_vm1 = vweird.f32 %v15553_v3  ;;  %v11081_v48 = vmul.f32 -1.442695, %v15639_v47 }
 0x665   : > { %v11971_v39 = vpop.eup %11970  ;;  %v15667_v50 = vmul.f32 %v6912_v24, %v15318_v41  ;;  %v6940_v55 = vand.u32 2147483648, %v15500_v56  ;;  %v6946_v33 = vsub.f32 1.0, %v6945_v27  ;;  %v15671_v26 = vadd.f32 %v15597_v29, %v6519_v28  ;;  %v4950_v27 = vpop.f32.mrf.mxu3 }
 0x666   : > { %vm6924_vm4 = vcmp.eq.f32.partialorder %v6923_v54, 8.507059e+37  ;;  %vm6934_vm5 = vweird.f32 %v15500_v56  ;;  %v6938_v42 = vand.u32 2147483647, %v15500_v56  ;;  %11976 = vrcp.f32 %v15648_v0 }
 0x667   : > { %v6478_v2 = vpop.f32.mrf.mxu2  ;;  %v15676_v19 = vpop.eup %11972  ;;  %v7225_v13 = vadd.f32 %v7224_v35, %v7223_v46  ;;  %v7325_v30 = vsel %vm1367_vm15, %v7282_v44, 0.0  ;;  %v7226_v41 = vsel %vm1367_vm15, %v15622_v59, 0.0  ;;  %v6927_v34 = vsel %vm6924_vm4, %v6926_v15, %v6922_v22  ;;  %vm15683_vm8 = vmor %vm6934_vm5, %vm6935_vm1  ;;  %v17298_v44 = vld [vmem:[#allocation12_spill] sm:$0xff] }
 0x668   : > { %v11975_v7 = vpop.eup %11974  ;;  %v7327_v56 = vsel %vm1367_vm15, %v7283_v16, 0.0  ;;  %v6937_v45 = vsel %vm15683_vm8, %v15553_v3, %v6933_v40  ;;  %v15691_v46 = vadd.f32 1.0, %v11971_v39  ;;  %11978 = vpow2.f32 %v11081_v48  ;;  %v7435_v39 = vld [vmem:[%s17117_s9] sm:$0xff] }
 0x669   : > { %v7284_v28 = vmul.f32 %v15667_v50, %v15667_v50  ;;  %v6941_v24 = vor.u32 1.1754944e-38, %v6940_v55  ;;  %v6947_v54 = vmul.f32 %v15616_v17, %v6946_v33  ;;  %v11082_v35 = vmul.f32 -1.442695, %v15671_v26  ;;  %7477 = vmatpush.msrb.mxu0 %v7435_v39  ;;  %7454 = vmatpush.msra.mxu3 %v7435_v39 }
 0x66a   : > { %v4984_v5 = vadd.f32 %v4950_v27, %v17298_v44  ;;  %v7326_v15 = vadd.f32 %v7325_v30, %v7324_v9  ;;  %v15699_v16 = vmul.f32 %v6927_v34, %v15343_v12  ;;  %vm6939_vm9 = vcmp.eq.f32.partialorder %v6938_v42, 8.507059e+37 }
 0x66b   : > { %v7227_v3 = vadd.f32 %v7226_v41, %v7225_v13  ;;  %v6942_v22 = vsel %vm6939_vm9, %v6941_v24, %v6937_v45  ;;  %v6960_v40 = vmul.f32 %v15676_v19, %v15614_v8  ;;  %v15703_v48 = vadd.f32 1.0, %v11975_v7  ;;  %v5577_v13 = vpop.f32.mrf.mxu0 }
 0x66c   : > { %v15708_v55 = vpop.eup %11976  ;;  %v7328_v33 = vadd.f32 %v7327_v56, %v7326_v15  ;;  %v7228_v9 = vsel %vm1367_vm15, %v15667_v50, 0.0  ;;  %11980 = vrcp.f32 %v15691_v46  ;;  %v6520_v12 = vadd.f32 %v15606_v21, %v15024_v60 }
 0x66d   : > { %v7329_v30 = vsel %vm1367_vm15, %v7284_v28, 0.0  ;;  %v6948_v41 = vadd.f32 %v15616_v17, %v6947_v54  ;;  %vm6950_vm10 = vweird.f32 %v15616_v17  ;;  %11982 = vpow2.f32 %v11082_v35 }
 0x66e   : > { %v11979_v34 = vpop.eup %11978  ;;  %v7285_v18 = vmul.f32 %v15699_v16, %v15699_v16  ;;  %v15721_v7 = vmul.f32 %v6942_v22, %v15387_v53  ;;  %vm6949_vm11 = vweird.f32 %v15551_v4  ;;  %v6955_v60 = vand.u32 2147483648, %v15551_v4 }
 0x66f   : > { %v6481_v42 = vpop.f32.mrf.mxu2  ;;  %v6953_v21 = vand.u32 2147483647, %v15551_v4  ;;  %v6961_v56 = vsub.f32 1.0, %v6960_v40  ;;  %v6975_v45 = vmul.f32 %v15708_v55, %v15648_v0  ;;  %11984 = vrcp.f32 %v15703_v48  ;;  %vm15731_vm12 = vmor %vm6949_vm11, %vm6950_vm10  ;;  %v5835_v4 = vpop.f32.mrf.mxu1 }
 0x670   : > { %17299 = vst [vmem:[#allocation10_spill] sm:$0xff] %v15721_v7  ;;  %v5611_v27 = vadd.f32 %v5577_v13, %v4984_v5  ;;  %v7230_v28 = vsel %vm1367_vm15, %v15699_v16, 0.0  ;;  %v15736_v53 = vadd.f32 %v15597_v29, %v6520_v12  ;;  %v6521_v54 = vadd.f32 %v6478_v2, %v15027_v36 }
 0x671   : > { %v7229_v35 = vadd.f32 %v7228_v9, %v7227_v3  ;;  %v7330_v44 = vadd.f32 %v7329_v30, %v7328_v33  ;;  %v6952_v15 = vsel %vm15731_vm12, %v15616_v17, %v6948_v41  ;;  %v15742_v5 = vadd.f32 1.0, %v11979_v34 }
 0x672   : > { %v15744_v22 = vpop.eup %11980  ;;  %v7331_v40 = vsel %vm1367_vm15, %v7285_v18, 0.0  ;;  %v7232_v39 = vsel %vm1367_vm15, %v15721_v7, 0.0  ;;  %v7286_v12 = vmul.f32 %v15721_v7, %v15721_v7  ;;  %v6956_v36 = vor.u32 1.1754944e-38, %v6955_v60 }
 0x673   : > { %v11983_v2 = vpop.eup %11982  ;;  %v7231_v3 = vadd.f32 %v7230_v28, %v7229_v35  ;;  %vm6954_vm13 = vcmp.eq.f32.partialorder %v6953_v21, 8.507059e+37  ;;  %v6962_v33 = vmul.f32 %v15676_v19, %v6961_v56  ;;  %v6976_v9 = vsub.f32 1.0, %v6975_v45 }
 0x674   : > { %v15752_v17 = vadd.f32 %v5835_v4, %v5611_v27  ;;  %v6957_v13 = vsel %vm6954_vm13, %v6956_v36, %v6952_v15  ;;  %v11083_v30 = vmul.f32 -1.442695, %v15736_v53  ;;  %v15756_v41 = vadd.f32 %v15597_v29, %v6521_v54 }
 0x675   : > { %v15758_v18 = vpop.eup %11984  ;;  %v7332_v24 = vadd.f32 %v7331_v40, %v7330_v44  ;;  %v7233_v7 = vadd.f32 %v7232_v39, %v7231_v3  ;;  %vm6964_vm14 = vweird.f32 %v15614_v8  ;;  %11986 = vrcp.f32 %v15742_v5 }
 0x676   : > { %v7333_v60 = vsel %vm1367_vm15, %v7286_v12, 0.0  ;;  %v6990_v21 = vmul.f32 %v15744_v22, %v15691_v46  ;;  %v15765_v56 = vadd.f32 1.0, %v11983_v2  ;;  %v6522_v45 = vadd.f32 %v6481_v42, %v15029_v52 }
 0x677   : > { %v6483_v34 = vpop.f32.mrf.mxu2  ;;  %v15769_v27 = vmul.f32 %v6957_v13, %v15446_v51  ;;  %v6963_v28 = vadd.f32 %v15676_v19, %v6962_v33  ;;  %vm6965_vm0 = vweird.f32 %v15676_v19  ;;  %v6977_v54 = vmul.f32 %v15708_v55, %v6976_v9 }
 0x678   : > { %v7005_v4 = vmul.f32 %v15758_v18, %v15703_v48  ;;  %11988 = vpow2.f32 %v11083_v30  ;;  %v11084_v35 = vmul.f32 -1.442695, %v15756_v41  ;;  %v6523_v44 = vadd.f32 %v6483_v34, %v15043_v37  ;;  %vm15785_vm1 = vmor %vm6964_vm14, %vm6965_vm0 }
 0x679   : > { %v15778_v15 = vadd.f32 %v7333_v60, %v7332_v24  ;;  %v6968_v52 = vand.u32 2147483647, %v15614_v8  ;;  %v6970_v51 = vand.u32 2147483648, %v15614_v8  ;;  %v6983_v42 = vand.u32 2147483647, %v15648_v0 }
 0x67a   : > { %v6985_v39 = vand.u32 2147483648, %v15648_v0  ;;  %v6991_v12 = vsub.f32 1.0, %v6990_v21  ;;  %11990 = vrcp.f32 %v15765_v56  ;;  %v15792_v37 = vadd.f32 %v15597_v29, %v6522_v45 }
 0x67b   : > { %v15794_v36 = vpop.eup %11986  ;;  %v7234_v2 = vsel %vm1367_vm15, %v15769_v27, 0.0  ;;  %v7287_v8 = vmul.f32 %v15769_v27, %v15769_v27  ;;  %v6967_v3 = vsel %vm15785_vm1, %v15676_v19, %v6963_v28  ;;  %vm6980_vm4 = vweird.f32 %v15708_v55 }
 0x67c   : > { %v6978_v33 = vadd.f32 %v15708_v55, %v6977_v54  ;;  %v7006_v9 = vsub.f32 1.0, %v7005_v4  ;;  %11992 = vpow2.f32 %v11084_v35  ;;  %v15806_v13 = vadd.f32 %v15597_v29, %v6523_v44 }
 0x67d   : > { %vm6969_vm5 = vcmp.eq.f32.partialorder %v6968_v52, 8.507059e+37  ;;  %v6971_v34 = vor.u32 1.1754944e-38, %v6970_v51  ;;  %vm6979_vm8 = vweird.f32 %v15648_v0  ;;  %vm15809_vm9 = vcmp.eq.f32.partialorder %v6983_v42, 8.507059e+37 }
 0x67e   : > { %v11989_v60 = vpop.eup %11988  ;;  %v6992_v19 = vmul.f32 %v15744_v22, %v6991_v12  ;;  %v7020_v21 = vmul.f32 %v15794_v36, %v15742_v5  ;;  %v11085_v45 = vmul.f32 -1.442695, %v15792_v37  ;;  %v15818_v54 = vadd.f32 %v7234_v2, %v7233_v7  ;;  %vm15823_vm10 = vmor %vm6979_vm8, %vm6980_vm4 }
 0x67f   : > { %v6486_v30 = vpop.f32.mrf.mxu2  ;;  %v7335_v4 = vsel %vm1367_vm15, %v7287_v8, 0.0  ;;  %v6972_v35 = vsel %vm6969_vm5, %v6971_v34, %v6967_v3  ;;  %v6986_v44 = vor.u32 1.1754944e-38, %v6985_v39  ;;  %v6982_v51 = vsel %vm15823_vm10, %v15708_v55, %v6978_v33 }
 0x680   : > { %v6524_v28 = vadd.f32 %v6486_v30, %v15048_v38  ;;  %v15827_v52 = vpop.eup %11990  ;;  %v7007_v38 = vmul.f32 %v15758_v18, %v7006_v9  ;;  %v11086_v7 = vmul.f32 -1.442695, %v15806_v13  ;;  %vm6994_vm11 = vweird.f32 %v15691_v46 }
 0x681   : > { %vm6995_vm12 = vweird.f32 %v15744_v22  ;;  %v6998_v40 = vand.u32 2147483647, %v15691_v46  ;;  %v15840_v39 = vadd.f32 1.0, %v11989_v60  ;;  %v6993_v2 = vadd.f32 %v15744_v22, %v6992_v19 }
 0x682   : > { %v15835_v42 = vadd.f32 %v15597_v29, %v6524_v28  ;;  %v11993_v12 = vpop.eup %11992  ;;  %v7021_v8 = vsub.f32 1.0, %v7020_v21  ;;  %11994 = vpow2.f32 %v11085_v45  ;;  %v15845_v3 = vmul.f32 %v6972_v35, %v15508_v6  ;;  %vm15859_vm0 = vmor %vm6994_vm11, %vm6995_vm12 }
 0x683   : > { %v6987_v33 = vsel %vm15809_vm9, %v6986_v44, %v6982_v51  ;;  %v7000_v9 = vand.u32 2147483648, %v15691_v46  ;;  %v7035_v30 = vmul.f32 %v15827_v52, %v15765_v56  ;;  %v7008_v34 = vadd.f32 %v15758_v18, %v7007_v38 }
 0x684   : > { %v11087_v55 = vmul.f32 -1.442695, %v15835_v42  ;;  %vm7009_vm13 = vweird.f32 %v15703_v48  ;;  %vm7010_vm14 = vweird.f32 %v15758_v18  ;;  %11996 = vpow2.f32 %v11086_v7 }
 0x685   : > { %v7015_v24 = vand.u32 2147483648, %v15703_v48  ;;  %11998 = vrcp.f32 %v15840_v39  ;;  %v15865_v19 = vadd.f32 1.0, %v11993_v12  ;;  %v6997_v45 = vsel %vm15859_vm0, %v15744_v22, %v6993_v2  ;;  %vm15875_vm4 = vmor %vm7009_vm13, %vm7010_vm14 }
 0x686   : > { %v7013_v28 = vand.u32 2147483647, %v15703_v48  ;;  %v7022_v46 = vmul.f32 %v15794_v36, %v7021_v8  ;;  %12000 = vpow2.f32 %v11087_v55  ;;  %vm6999_vm1 = vcmp.eq.f32.partialorder %v6998_v40, 8.507059e+37 }
 0x687   : > { %v6488_v60 = vpop.f32.mrf.mxu2  ;;  %v7001_v35 = vor.u32 1.1754944e-38, %v7000_v9  ;;  %v7036_v44 = vsub.f32 1.0, %v7035_v30  ;;  %v7236_v22 = vsel %vm1367_vm15, %v15845_v3, 0.0  ;;  %v7288_v38 = vmul.f32 %v15845_v3, %v15845_v3 }
 0x688   : > { %v6525_v21 = vadd.f32 %v6488_v60, %v15289_v1  ;;  %v11995_v51 = vpop.eup %11994  ;;  %v15887_v7 = vmul.f32 %v6987_v33, %v15533_v32  ;;  %v7012_v48 = vsel %vm15875_vm4, %v15758_v18, %v7008_v34  ;;  %v7016_v12 = vor.u32 1.1754944e-38, %v7015_v24 }
 0x689   : > { %v7002_v40 = vsel %vm6999_vm1, %v7001_v35, %v6997_v45  ;;  %12002 = vrcp.f32 %v15865_v19  ;;  %vm7014_vm5 = vcmp.eq.f32.partialorder %v7013_v28, 8.507059e+37  ;;  %v7023_v55 = vadd.f32 %v15794_v36, %v7022_v46 }
 0x68a   : > { %v15880_v1 = vadd.f32 %v15597_v29, %v6525_v21  ;;  %17312 = vst [vmem:[#allocation14_spill] sm:$0xff] %v15887_v7  ;;  %v11997_v8 = vpop.eup %11996  ;;  %vm7025_vm8 = vweird.f32 %v15794_v36  ;;  %v7030_v9 = vand.u32 2147483648, %v15742_v5  ;;  %v7017_v33 = vsel %vm7014_vm5, %v7016_v12, %v7012_v48 }
 0x68b   : > { %v15897_v32 = vpop.eup %11998  ;;  %v7037_v30 = vmul.f32 %v15827_v52, %v7036_v44  ;;  %v15900_v18 = vadd.f32 1.0, %v11995_v51  ;;  %v7336_v60 = vadd.f32 %v7335_v4, %v15778_v15  ;;  %v15904_v6 = vmul.f32 %v7002_v40, %v15583_v49 }
 0x68c   : > { %v11088_v2 = vmul.f32 -1.442695, %v15880_v1  ;;  %v12001_v34 = vpop.eup %12000  ;;  %vm7024_vm9 = vweird.f32 %v15742_v5  ;;  %v7028_v24 = vand.u32 2147483647, %v15742_v5  ;;  %v7237_v21 = vadd.f32 %v7236_v22, %v15818_v54 }
 0x68d   : > { %v7337_v45 = vsel %vm1367_vm15, %v7288_v38, 0.0  ;;  %v7289_v28 = vmul.f32 %v15887_v7, %v15887_v7  ;;  %vm15914_vm10 = vmor %vm7024_vm9, %vm7025_vm8  ;;  %v15918_v15 = vadd.f32 1.0, %v11997_v8  ;;  %v15921_v49 = vmul.f32 %v7017_v33, %v15600_v11 }
 0x68e   : > { %12004 = vpow2.f32 %v11088_v2  ;;  %v7027_v5 = vsel %vm15914_vm10, %v15794_v36, %v7023_v55  ;;  %v7031_v54 = vor.u32 1.1754944e-38, %v7030_v9  ;;  %vm7040_vm11 = vweird.f32 %v15827_v52 }
 0x68f   : > { %v15927_v4 = vpop.eup %12002  ;;  %v7038_v35 = vadd.f32 %v15827_v52, %v7037_v30  ;;  %v7050_v0 = vmul.f32 %v15897_v32, %v15840_v39  ;;  %12006 = vrcp.f32 %v15900_v18  ;;  %v15933_v44 = vadd.f32 1.0, %v12001_v34 }
 0x690   : > { %v7238_v11 = vsel %vm1367_vm15, %v15887_v7, 0.0  ;;  %v7290_v36 = vmul.f32 %v15904_v6, %v15904_v6  ;;  %vm7029_vm12 = vcmp.eq.f32.partialorder %v7028_v24, 8.507059e+37  ;;  %v7045_v51 = vand.u32 2147483648, %v15765_v56 }
 0x691   : > { %v7032_v38 = vsel %vm7029_vm12, %v7031_v54, %v7027_v5  ;;  %vm7039_vm13 = vweird.f32 %v15765_v56  ;;  %v7043_v48 = vand.u32 2147483647, %v15765_v56  ;;  %12008 = vrcp.f32 %v15918_v15 }
 0x692   : > { %v7339_v40 = vsel %vm1367_vm15, %v7289_v28, 0.0  ;;  %v7291_v12 = vmul.f32 %v15921_v49, %v15921_v49  ;;  %vm15948_vm14 = vmor %vm7039_vm13, %vm7040_vm11  ;;  %v7065_v8 = vmul.f32 %v15927_v4, %v15865_v19  ;;  %v7338_v9 = vadd.f32 %v7337_v45, %v7336_v60 }
 0x693   : > { %v7042_v56 = vsel %vm15948_vm14, %v15827_v52, %v7038_v35  ;;  %v7051_v33 = vsub.f32 1.0, %v7050_v0  ;;  %12010 = vrcp.f32 %v15933_v44  ;;  %v7240_v30 = vsel %vm1367_vm15, %v15904_v6, 0.0 }
 0x694   : > { %v12005_v22 = vpop.eup %12004  ;;  %v7341_v34 = vsel %vm1367_vm15, %v7290_v36, 0.0  ;;  %v15964_v24 = vmul.f32 %v7032_v38, %v15639_v47  ;;  %v7046_v28 = vor.u32 1.1754944e-38, %v7045_v51  ;;  %v7239_v5 = vadd.f32 %v7238_v11, %v7237_v21 }
 0x695   : > { %v15954_v55 = vadd.f32 1.0, %v12005_v22  ;;  %v15966_v46 = vpop.eup %12006  ;;  %v7340_v60 = vadd.f32 %v7339_v40, %v7338_v9  ;;  %v7242_v45 = vsel %vm1367_vm15, %v15921_v49, 0.0  ;;  %vm7044_vm0 = vcmp.eq.f32.partialorder %v7043_v48, 8.507059e+37 }
 0x696   : > { %v7343_v52 = vsel %vm1367_vm15, %v7291_v12, 0.0  ;;  %v7047_v54 = vsel %vm7044_vm0, %v7046_v28, %v7042_v56  ;;  %v7066_v35 = vsub.f32 1.0, %v7065_v8  ;;  %v7241_v47 = vadd.f32 %v7240_v30, %v7239_v5 }
 0x697   : > { %12012 = vrcp.f32 %v15954_v55  ;;  %v15972_v36 = vpop.eup %12008  ;;  %v7342_v22 = vadd.f32 %v7341_v34, %v7340_v60  ;;  %v7052_v51 = vmul.f32 %v15897_v32, %v7051_v33  ;;  %v7244_v11 = vsel %vm1367_vm15, %v15964_v24, 0.0 }
 0x698   : > { %v7292_v38 = vmul.f32 %v15964_v24, %v15964_v24  ;;  %v7058_v48 = vand.u32 2147483647, %v15840_v39  ;;  %v7080_v40 = vmul.f32 %v15966_v46, %v15900_v18  ;;  %v7243_v2 = vadd.f32 %v7242_v45, %v7241_v47 }
 0x699   : > { %v15983_v12 = vpop.eup %12010  ;;  %v7344_v8 = vadd.f32 %v7343_v52, %v7342_v22  ;;  %v15986_v9 = vmul.f32 %v7047_v54, %v15671_v26  ;;  %vm7054_vm1 = vweird.f32 %v15840_v39  ;;  %v7060_v56 = vand.u32 2147483648, %v15840_v39 }
 0x69a   : > { %v6491_v0 = vpop.f32.mrf.mxu2  ;;  %v7067_v33 = vmul.f32 %v15927_v4, %v7066_v35  ;;  %v7095_v30 = vmul.f32 %v15972_v36, %v15918_v15  ;;  %v7245_v34 = vadd.f32 %v7244_v11, %v7243_v2  ;;  %v7053_v28 = vadd.f32 %v15897_v32, %v7052_v51 }
 0x69b   : > { %v6526_v21 = vadd.f32 %v6491_v0, %v15608_v23  ;;  %17317 = vst [vmem:[#allocation17_spill] sm:$0xff] %v15986_v9  ;;  %vm7055_vm4 = vweird.f32 %v15897_v32  ;;  %v7345_v60 = vsel %vm1367_vm15, %v7292_v38, 0.0  ;;  %vm16002_vm5 = vcmp.eq.f32.partialorder %v7058_v48, 8.507059e+37 }
 0x69c   : > { %v7081_v52 = vsub.f32 1.0, %v7080_v40  ;;  %v7110_v54 = vmul.f32 %v15983_v12, %v15933_v44  ;;  %v7246_v35 = vsel %vm1367_vm15, %v15986_v9, 0.0  ;;  %v7073_v0 = vand.u32 2147483647, %v15865_v19  ;;  %vm16016_vm8 = vmor %vm7054_vm1, %vm7055_vm4 }
 0x69d   : > { %v15989_v23 = vadd.f32 %v15597_v29, %v6526_v21  ;;  %v15999_v5 = vpop.eup %12012  ;;  %v7075_v47 = vand.u32 2147483648, %v15865_v19  ;;  %v7293_v22 = vmul.f32 %v15986_v9, %v15986_v9  ;;  %v7068_v21 = vadd.f32 %v15927_v4, %v7067_v33 }
 0x69e   : > { %vm7070_vm9 = vweird.f32 %v15927_v4  ;;  %v7096_v11 = vsub.f32 1.0, %v7095_v30  ;;  %v7057_v48 = vsel %vm16016_vm8, %v15897_v32, %v7053_v28  ;;  %v7061_v40 = vor.u32 1.1754944e-38, %v7060_v56 }
 0x69f   : > { %v11089_v26 = vmul.f32 -1.442695, %v15989_v23  ;;  %v7125_v2 = vmul.f32 %v15999_v5, %v15954_v55  ;;  %vm7069_vm10 = vweird.f32 %v15865_v19  ;;  %v7082_v7 = vmul.f32 %v15966_v46, %v7081_v52 }
 0x6a0   : > { %v7111_v33 = vsub.f32 1.0, %v7110_v54  ;;  %v16030_v9 = vadd.f32 %v7246_v35, %v7245_v34  ;;  %vm16032_vm11 = vmor %vm7069_vm10, %vm7070_vm9  ;;  %vm16036_vm12 = vcmp.eq.f32.partialorder %v7073_v0, 8.507059e+37  ;;  %v7076_v56 = vor.u32 1.1754944e-38, %v7075_v47 }
 0x6a1   : > { %12014 = vpow2.f32 %v11089_v26  ;;  %v7346_v26 = vadd.f32 %v7345_v60, %v7344_v8  ;;  %v7062_v19 = vsel %vm16002_vm5, %v7061_v40, %v7057_v48  ;;  %v7072_v8 = vsel %vm16032_vm11, %v15927_v4, %v7068_v21 }
 0x6a2   : > { %v6493_v38 = vpop.f32.mrf.mxu2  ;;  %v7097_v34 = vmul.f32 %v15972_v36, %v7096_v11  ;;  %vm7084_vm13 = vweird.f32 %v15900_v18  ;;  %v7088_v52 = vand.u32 2147483647, %v15900_v18  ;;  %v7126_v54 = vsub.f32 1.0, %v7125_v2 }
 0x6a3   : > { %v6527_v39 = vadd.f32 %v6493_v38, %v15752_v17  ;;  %v7347_v17 = vsel %vm1367_vm15, %v7293_v22, 0.0  ;;  %v7083_v35 = vadd.f32 %v15966_v46, %v7082_v7  ;;  %vm7085_vm14 = vweird.f32 %v15966_v46 }
 0x6a4   : > { %v7112_v45 = vmul.f32 %v15983_v12, %v7111_v33  ;;  %v16059_v4 = vmul.f32 %v7062_v19, %v15736_v53  ;;  %v7077_v47 = vsel %vm16036_vm12, %v7076_v56, %v7072_v8  ;;  %v7090_v22 = vand.u32 2147483648, %v15900_v18  ;;  %vm16070_vm1 = vmor %vm7084_vm13, %vm7085_vm14 }
 0x6a5   : > { %v16041_v28 = vadd.f32 %v15597_v29, %v6527_v39  ;;  %v7098_v51 = vadd.f32 %v15972_v36, %v7097_v34  ;;  %vm7100_vm0 = vweird.f32 %v15972_v36  ;;  %v7103_v7 = vand.u32 2147483647, %v15918_v15 }
 0x6a6   : > { %v7348_v21 = vadd.f32 %v7347_v17, %v7346_v26  ;;  %vm7099_vm4 = vweird.f32 %v15918_v15  ;;  %v7105_v11 = vand.u32 2147483648, %v15918_v15  ;;  %v7127_v38 = vmul.f32 %v15999_v5, %v7126_v54 }
 0x6a7   : > { %v12015_v60 = vpop.eup %12014  ;;  %v11090_v29 = vmul.f32 -1.442695, %v16041_v28  ;;  %v7087_v48 = vsel %vm16070_vm1, %v15966_v46, %v7083_v35  ;;  %v7113_v40 = vadd.f32 %v15983_v12, %v7112_v45  ;;  %vm7115_vm5 = vweird.f32 %v15983_v12  ;;  %vm16090_vm9 = vmor %vm7099_vm4, %vm7100_vm0 }
 0x6a8   : > { %v16056_v0 = vadd.f32 1.0, %v12015_v60  ;;  %v7120_v18 = vand.u32 2147483648, %v15933_v44  ;;  %v7294_v2 = vmul.f32 %v16059_v4, %v16059_v4  ;;  %v16086_v39 = vmul.f32 %v7077_v47, %v15756_v41 }
 0x6a9   : > { %12016 = vpow2.f32 %v11090_v29  ;;  %vm7089_vm8 = vcmp.eq.f32.partialorder %v7088_v52, 8.507059e+37  ;;  %v7091_v15 = vor.u32 1.1754944e-38, %v7090_v22  ;;  %v7102_v46 = vsel %vm16090_vm9, %v15972_v36, %v7098_v51 }
 0x6aa   : > { %12018 = vrcp.f32 %v16056_v0  ;;  %vm7104_vm10 = vcmp.eq.f32.partialorder %v7103_v7, 8.507059e+37  ;;  %vm7114_vm11 = vweird.f32 %v15933_v44  ;;  %v7118_v33 = vand.u32 2147483647, %v15933_v44 }
 0x6ab   : > { %v7092_v41 = vsel %vm7089_vm8, %v7091_v15, %v7087_v48  ;;  %v7106_v32 = vor.u32 1.1754944e-38, %v7105_v11  ;;  %vm16099_vm12 = vmor %vm7114_vm11, %vm7115_vm5  ;;  %v7128_v17 = vadd.f32 %v15999_v5, %v7127_v38  ;;  %vm7130_vm13 = vweird.f32 %v15999_v5 }
 0x6ac   : > { %v7117_v36 = vsel %vm16099_vm12, %v15983_v12, %v7113_v40  ;;  %v7121_v8 = vor.u32 1.1754944e-38, %v7120_v18  ;;  %v7135_v34 = vand.u32 2147483648, %v15954_v55  ;;  %vm7129_vm14 = vweird.f32 %v15954_v55 }
 0x6ad   : > { %v7107_v60 = vsel %vm7104_vm10, %v7106_v32, %v7102_v46  ;;  %v7133_v52 = vand.u32 2147483647, %v15954_v55  ;;  %v7248_v29 = vsel %vm1367_vm15, %v16059_v4, 0.0  ;;  %v7295_v35 = vmul.f32 %v16086_v39, %v16086_v39  ;;  %vm16118_vm1 = vmor %vm7129_vm14, %vm7130_vm13 }
 0x6ae   : > { %vm7119_vm0 = vcmp.eq.f32.partialorder %v7118_v33, 8.507059e+37  ;;  %v16124_v45 = vmul.f32 %v7092_v41, %v15792_v37  ;;  %v7132_v55 = vsel %vm16118_vm1, %v15999_v5, %v7128_v17  ;;  %v7349_v51 = vsel %vm1367_vm15, %v7294_v2, 0.0 }
 0x6af   : > { %v12017_v30 = vpop.eup %12016  ;;  %v7122_v47 = vsel %vm7119_vm0, %v7121_v8, %v7117_v36  ;;  %v16131_v7 = vmul.f32 %v7107_v60, %v15806_v13  ;;  %v7136_v53 = vor.u32 1.1754944e-38, %v7135_v34  ;;  %v7150_v11 = vand.u32 2147483648, %v16056_v0 }
 0x6b0   : > { %v12019_v19 = vpop.eup %12018  ;;  %v16109_v44 = vadd.f32 1.0, %v12017_v30  ;;  %vm7134_vm4 = vcmp.eq.f32.partialorder %v7133_v52, 8.507059e+37  ;;  %v7148_v37 = vand.u32 2147483647, %v16056_v0  ;;  %v7249_v48 = vadd.f32 %v7248_v29, %v16030_v9 }
 0x6b1   : > { %v7140_v54 = vmul.f32 %v12019_v19, %v16056_v0  ;;  %vm7145_vm5 = vweird.f32 %v12019_v19  ;;  %v7250_v40 = vsel %vm1367_vm15, %v16086_v39, 0.0  ;;  %v16139_v5 = vmul.f32 %v7122_v47, %v15835_v42 }
 0x6b2   : > { %12020 = vrcp.f32 %v16109_v44  ;;  %v7137_v18 = vsel %vm7134_vm4, %v7136_v53, %v7132_v55  ;;  %v7351_v13 = vsel %vm1367_vm15, %v7295_v35, 0.0  ;;  %v7296_v2 = vmul.f32 %v16124_v45, %v16124_v45 }
 0x6b3   : > { %v7141_v22 = vsub.f32 1.0, %v7140_v54  ;;  %vm7144_vm8 = vweird.f32 %v16056_v0  ;;  %v7350_v46 = vadd.f32 %v7349_v51, %v7348_v21  ;;  %v7252_v9 = vsel %vm1367_vm15, %v16124_v45, 0.0 }
 0x6b4   : > { %v7297_v33 = vmul.f32 %v16131_v7, %v16131_v7  ;;  %vm7146_vm9 = vmor %vm7144_vm8, %vm7145_vm5  ;;  %v7151_v42 = vor.u32 1.1754944e-38, %v7150_v11  ;;  %v16150_v30 = vmul.f32 %v7137_v18, %v15880_v1  ;;  %vm7149_vm10 = vcmp.eq.f32.partialorder %v7148_v37, 8.507059e+37 }
 0x6b5   : > { %v7142_v38 = vmul.f32 %v12019_v19, %v7141_v22  ;;  %v7251_v56 = vadd.f32 %v7250_v40, %v7249_v48  ;;  %v7352_v17 = vadd.f32 %v7351_v13, %v7350_v46  ;;  %v7298_v0 = vmul.f32 %v16139_v5, %v16139_v5 }
 0x6b6   : > { %v7353_v36 = vsel %vm1367_vm15, %v7296_v2, 0.0  ;;  %v7254_v8 = vsel %vm1367_vm15, %v16131_v7, 0.0  ;;  %v7256_v52 = vsel %vm1367_vm15, %v16139_v5, 0.0  ;;  %v7165_v54 = vand.u32 2147483648, %v16109_v44 }
 0x6b7   : > { %v7143_v15 = vadd.f32 %v12019_v19, %v7142_v38  ;;  %v7253_v60 = vadd.f32 %v7252_v9, %v7251_v56  ;;  %v7299_v29 = vmul.f32 %v16150_v30, %v16150_v30  ;;  %v7163_v12 = vand.u32 2147483647, %v16109_v44 }
 0x6b8   : > { %v12021_v26 = vpop.eup %12020  ;;  %v7354_v47 = vadd.f32 %v7353_v36, %v7352_v17  ;;  %v7258_v22 = vsel %vm1367_vm15, %v16150_v30, 0.0  ;;  %vm7159_vm12 = vweird.f32 %v16109_v44  ;;  %v7166_v37 = vor.u32 1.1754944e-38, %v7165_v54 }
 0x6b9   : > { %v7147_v41 = vsel %vm7146_vm9, %v12019_v19, %v7143_v15  ;;  %v7155_v32 = vmul.f32 %v12021_v26, %v16109_v44  ;;  %v7355_v19 = vsel %vm1367_vm15, %v7297_v33, 0.0  ;;  %vm7160_vm11 = vweird.f32 %v12021_v26 }
 0x6ba   : > { %v7152_v21 = vsel %vm7149_vm10, %v7151_v42, %v7147_v41  ;;  %v7255_v55 = vadd.f32 %v7254_v8, %v7253_v60  ;;  %v7356_v11 = vadd.f32 %v7355_v19, %v7354_v47  ;;  %vm7161_vm13 = vmor %vm7159_vm12, %vm7160_vm11  ;;  %v7359_v48 = vsel %vm1367_vm15, %v7299_v29, 0.0 }
 0x6bb   : > { %v16159_v34 = vmul.f32 %v7152_v21, %v15989_v23  ;;  %v7156_v1 = vsub.f32 1.0, %v7155_v32  ;;  %v7357_v23 = vsel %vm1367_vm15, %v7298_v0, 0.0  ;;  %vm7164_vm14 = vcmp.eq.f32.partialorder %v7163_v12, 8.507059e+37 }
 0x6bc   : > { %v7257_v38 = vadd.f32 %v7256_v52, %v7255_v55  ;;  %v7358_v13 = vadd.f32 %v7357_v23, %v7356_v11  ;;  %v17334_v55 = vld [vmem:[#allocation8_spill] sm:$0xff] }
 0x6bd   : > { %v7157_v35 = vmul.f32 %v12021_v26, %v7156_v1  ;;  %v7300_v51 = vmul.f32 %v16159_v34, %v16159_v34  ;;  %v7260_v40 = vsel %vm1367_vm15, %v16159_v34, 0.0 }
 0x6be   : > { %v7259_v2 = vadd.f32 %v7258_v22, %v7257_v38  ;;  %v7360_v44 = vadd.f32 %v7359_v48, %v7358_v13 }
 0x6bf   : > { %v7158_v53 = vadd.f32 %v12021_v26, %v7157_v35  ;;  %v7361_v46 = vsel %vm1367_vm15, %v7300_v51, 0.0 }
 0x6c0   : > { %v7261_v33 = vadd.f32 %v7260_v40, %v7259_v2  ;;  %v7362_v32 = vadd.f32 %v7361_v46, %v7360_v44 }
 0x6c1   : > { %v7162_v18 = vsel %vm7161_vm13, %v12021_v26, %v7158_v53 }
 0x6c2   : > { %v7167_v15 = vsel %vm7164_vm14, %v7166_v37, %v7162_v18 }
 0x6c3   : > { %v16179_v9 = vmul.f32 %v7167_v15, %v16041_v28 }
 0x6c5   : > { %v7262_v42 = vsel %vm1367_vm15, %v16179_v9, 0.0  ;;  %v7301_v41 = vmul.f32 %v16179_v9, %v16179_v9 }
 0x6c6   : > { %v7263_v56 = vadd.f32 %v7262_v42, %v7261_v33 }
 0x6c7   : > { %v7363_v26 = vsel %vm1367_vm15, %v7301_v41, 0.0 }
 0x6c8   : > { %v7264_v17 = vrot.slane %v7263_v56, 4  ;;  %v7364_v0 = vadd.f32 %v7363_v26, %v7362_v32 }
 0x6ca   : > { %v7265_v21 = vadd.f32 %v7264_v17, %v7263_v56  ;;  %v7365_v36 = vrot.slane %v7364_v0, 4 }
 0x6cc   : > { %v7266_v8 = vrot.slane %v7265_v21, 2  ;;  %v7366_v1 = vadd.f32 %v7365_v36, %v7364_v0  ;;  %v17335_v36 = vld [vmem:[#allocation16_spill] sm:$0xff] }
 0x6ce   : > { %v7267_v28 = vadd.f32 %v7266_v8, %v7265_v21  ;;  %v7367_v60 = vrot.slane %v7366_v1, 2 }
 0x6d0   : > { %v7268_v19 = vrot.slane %v7267_v28, 1  ;;  %v7368_v52 = vadd.f32 %v7367_v60, %v7366_v1  ;;  %v17336_v1 = vld [vmem:[#allocation13_spill] sm:$0xff] }
 0x6d2   : > { %v7269_v54 = vadd.f32 %v7268_v19, %v7267_v28  ;;  %v7369_v29 = vrot.slane %v7368_v52, 1 }
 0x6d4   : > { %11091 = vmatmul.msk.f32.vlgmr.msrb.gmra.mxu3 %vm1367_vm15, %v7269_v54  ;;  %v7370_v35 = vadd.f32 %v7369_v29, %v7368_v52 }
 0x6d6   : > { %11092 = vmatmul.msk.f32.vlgmr.msra.gmra.mxu1 %vm1367_vm15, %v7370_v35  ;;  %v17337_v35 = vld [vmem:[#allocation10_spill] sm:$0xff] }
 0x753   : > { %v7416_v12 = vpop.f32.mrf.mxu1 }
 0x754   : > { %v7420_v22 = vmul.f32 %v7416_v12, %v17334_v55 }
 0x757   : > { %v7393_v47 = vpop.f32.mrf.mxu3 }
 0x758   : > { %v7419_v23 = vmul.f32 %v7393_v47, %v17334_v55 }
 0x75a   : > { %v7421_v51 = vmul.f32 %v7419_v23, %v7419_v23  ;;  %11093 = vmatmul.msk.f32.vlgmr.msra.gmra.mxu3 %vm1610_vm7, %v7419_v23 }
 0x75c   : > { %v7422_v53 = vsub.f32 %v7420_v22, %v7421_v51 }
 0x75e   : > { %v7423_v11 = vmax.f32 %v7422_v53, 0.0 }
 0x760   : > { %v7424_v38 = vadd.f32 1e-05, %v7423_v11 }
 0x762   : > { %12022 = vrsqrt.f32 %v7424_v38  ;;  %vm7431_vm1 = vweird.f32 %v7424_v38 }
 0x768   : > { %v12023_v37 = vpop.eup %12022 }
 0x769   : > { %v7426_v48 = vmul.f32 %v12023_v37, %v7424_v38  ;;  %vm7432_vm0 = vweird.f32 %v12023_v37 }
 0x76a   : > { %vm7433_vm4 = vmor %vm7431_vm1, %vm7432_vm0 }
 0x76b   : > { %v7427_v40 = vmul.f32 %v12023_v37, %v7426_v48 }
 0x76d   : > { %v7428_v18 = vmul.f32 0.5, %v7427_v40 }
 0x76f   : > { %v7429_v13 = vsub.f32 1.5, %v7428_v18 }
 0x771   : > { %v7430_v2 = vmul.f32 %v12023_v37, %v7429_v13 }
 0x773   : > { %v7434_v15 = vsel %vm7433_vm4, %v12023_v37, %v7430_v2  ;;  %v16253_v37 = vld [vmem:[%s17115_s7 + $0x5] ss:$0 sm:$0xff] }
 0x774   : > { %11094 = vmatmul.msk.f32.vlgmr.msrb.gmra.mxu0 %vm1610_vm7, %v7434_v15 }
 0x7dd   : > { %v7456_v46 = vpop.f32.mrf.mxu3 }
 0x7de   : > { %v16192_v44 = vperm.slane %v7456_v46, 0 }
 0x7e0   : > { %v7483_v33 = vsub.f32 %v15133_v57, %v16192_v44  ;;  %v7484_v42 = vsub.f32 %v15158_v31, %v16192_v44  ;;  %v7485_v41 = vsub.f32 %v15179_v25, %v16192_v44  ;;  %v7486_v32 = vsub.f32 %v15219_v58, %v16192_v44 }
 0x7e1   : > { %v7487_v56 = vsub.f32 %v15261_v20, %v16192_v44  ;;  %v7488_v26 = vsub.f32 %v15293_v62, %v16192_v44  ;;  %v7489_v17 = vsub.f32 %v15355_v14, %v16192_v44  ;;  %v7490_v0 = vsub.f32 %v15414_v10, %v16192_v44 }
 0x7e2   : > { %v7491_v21 = vsub.f32 %v15424_v61, %v16192_v44  ;;  %v7492_v8 = vsub.f32 %v17335_v36, %v16192_v44  ;;  %v7493_v28 = vsub.f32 %v17336_v1, %v16192_v44  ;;  %v7494_v60 = vsub.f32 %v15528_v63, %v16192_v44 }
 0x7e3   : > { %v7495_v19 = vsub.f32 %v15619_v43, %v16192_v44  ;;  %v7496_v52 = vsub.f32 %v15622_v59, %v16192_v44  ;;  %v7497_v54 = vsub.f32 %v15667_v50, %v16192_v44  ;;  %v7498_v29 = vsub.f32 %v15699_v16, %v16192_v44  ;;  %v17338_v16 = vld [vmem:[#allocation17_spill] sm:$0xff] }
 0x7e4   : > { %v7499_v12 = vsub.f32 %v17337_v35, %v16192_v44  ;;  %v7500_v47 = vsub.f32 %v15769_v27, %v16192_v44  ;;  %v7501_v63 = vsub.f32 %v15845_v3, %v16192_v44  ;;  %v7503_v43 = vsub.f32 %v15904_v6, %v16192_v44  ;;  %v17339_v6 = vld [vmem:[#allocation14_spill] sm:$0xff]  ;;  %v11097_v27 = vld [vmem:[%s17113_s5] sm:$0xf] }
 0x7e5   : > { %v7504_v59 = vsub.f32 %v15921_v49, %v16192_v44  ;;  %v7505_v50 = vsub.f32 %v15964_v24, %v16192_v44  ;;  %v7506_v55 = vsub.f32 %v17338_v16, %v16192_v44  ;;  %v7507_v23 = vsub.f32 %v16059_v4, %v16192_v44 }
 0x7e6   : > { %v7508_v51 = vsub.f32 %v16086_v39, %v16192_v44  ;;  %v7513_v53 = vsub.f32 %v16159_v34, %v16192_v44  ;;  %v7514_v11 = vsub.f32 %v16179_v9, %v16192_v44  ;;  %v7509_v4 = vsub.f32 %v16124_v45, %v16192_v44  ;;  %v16270_v45 = vld [vmem:[%s17115_s7 + $0x6] ss:$0 sm:$0xff] }
 0x7e7   : > { %v7510_v48 = vsub.f32 %v16131_v7, %v16192_v44  ;;  %v7511_v39 = vsub.f32 %v16139_v5, %v16192_v44  ;;  %v7512_v34 = vsub.f32 %v16150_v30, %v16192_v44 }
 0x7f1   : > { %v7479_v22 = vpop.f32.mrf.mxu0 }
 0x7f2   : > { %v16248_v38 = vperm.slane %v7479_v22, 0 }
 0x7f4   : > { %v7530_v9 = vmul.f32 %v16248_v38, %v7497_v54  ;;  %v7531_v40 = vmul.f32 %v16248_v38, %v7498_v29  ;;  %v7546_v18 = vmul.f32 %v16248_v38, %v7513_v53  ;;  %v7547_v13 = vmul.f32 %v16248_v38, %v7514_v11 }
 0x7f5   : > { %v7528_v7 = vmul.f32 %v16248_v38, %v7495_v19  ;;  %v7529_v5 = vmul.f32 %v16248_v38, %v7496_v52  ;;  %v7544_v2 = vmul.f32 %v16248_v38, %v7511_v39  ;;  %v7545_v30 = vmul.f32 %v16248_v38, %v7512_v34 }
 0x7f6   : > { %v7563_v15 = vmul.f32 %v16253_v37, %v7530_v9  ;;  %v7564_v46 = vmul.f32 %v16253_v37, %v7531_v40  ;;  %v7579_v1 = vmul.f32 %v16253_v37, %v7546_v18  ;;  %v7580_v54 = vmul.f32 %v16253_v37, %v7547_v13 }
 0x7f7   : > { %v7561_v29 = vmul.f32 %v16253_v37, %v7528_v7  ;;  %v7562_v22 = vmul.f32 %v16253_v37, %v7529_v5  ;;  %v7577_v19 = vmul.f32 %v16253_v37, %v7544_v2  ;;  %v7578_v52 = vmul.f32 %v16253_v37, %v7545_v30 }
 0x7f8   : > { %v7596_v53 = vadd.f32 %v16270_v45, %v7563_v15  ;;  %v7597_v11 = vadd.f32 %v16270_v45, %v7564_v46  ;;  %v7612_v39 = vadd.f32 %v16270_v45, %v7579_v1  ;;  %v7613_v34 = vadd.f32 %v16270_v45, %v7580_v54 }
 0x7f9   : > { %v7594_v9 = vadd.f32 %v16270_v45, %v7561_v29  ;;  %v7595_v40 = vadd.f32 %v16270_v45, %v7562_v22  ;;  %v7610_v18 = vadd.f32 %v16270_v45, %v7577_v19  ;;  %v7611_v13 = vadd.f32 %v16270_v45, %v7578_v52 }
 0x7fa   : > { %v7653_v7 = vpack.c.bf16 %v7597_v11, %v7596_v53  ;;  %v7661_v5 = vpack.c.bf16 %v7613_v34, %v7612_v39  ;;  %v7526_v2 = vmul.f32 %v16248_v38, %v7493_v28  ;;  %v7527_v30 = vmul.f32 %v16248_v38, %v7494_v60 }
 0x7fb   : > { %v7652_v15 = vpack.c.bf16 %v7595_v40, %v7594_v9  ;;  %v7660_v46 = vpack.c.bf16 %v7611_v13, %v7610_v18  ;;  %v7542_v1 = vmul.f32 %v16248_v38, %v7509_v4  ;;  %v7543_v54 = vmul.f32 %v16248_v38, %v7510_v48 }
 0x7fc   : > { %7822 = vmatpush.bf16.msrb.mxu3 %v7653_v7  ;;  %7911 = vmatpush.bf16.msra.mxu0 %v7661_v5  ;;  %v7559_v29 = vmul.f32 %v16253_v37, %v7526_v2  ;;  %v7560_v22 = vmul.f32 %v16253_v37, %v7527_v30  ;;  %v7524_v19 = vmul.f32 %v16248_v38, %v7491_v21 }
 0x7fd   : > { %v7575_v28 = vmul.f32 %v16253_v37, %v7542_v1  ;;  %v7576_v60 = vmul.f32 %v16253_v37, %v7543_v54  ;;  %v7525_v4 = vmul.f32 %v16248_v38, %v7492_v8  ;;  %v7540_v48 = vmul.f32 %v16248_v38, %v7507_v23 }
 0x7fe   : > { %v7592_v52 = vadd.f32 %v16270_v45, %v7559_v29  ;;  %v7593_v53 = vadd.f32 %v16270_v45, %v7560_v22  ;;  %v7557_v11 = vmul.f32 %v16253_v37, %v7524_v19  ;;  %v7541_v61 = vmul.f32 %v16248_v38, %v7508_v51 }
 0x7ff   : > { %v7608_v21 = vadd.f32 %v16270_v45, %v7575_v28  ;;  %v7609_v39 = vadd.f32 %v16270_v45, %v7576_v60  ;;  %v7558_v34 = vmul.f32 %v16253_v37, %v7525_v4  ;;  %v7573_v36 = vmul.f32 %v16253_v37, %v7540_v48 }
 0x800   : > { %7823 = vmatpush.bf16.msrb.mxu3 %v7652_v15  ;;  %7912 = vmatpush.bf16.msra.mxu0 %v7660_v46  ;;  %v7651_v8 = vpack.c.bf16 %v7593_v53, %v7592_v52  ;;  %v7590_v23 = vadd.f32 %v16270_v45, %v7557_v11  ;;  %v7574_v9 = vmul.f32 %v16253_v37, %v7541_v61 }
 0x801   : > { %v7659_v40 = vpack.c.bf16 %v7609_v39, %v7608_v21  ;;  %v7591_v18 = vadd.f32 %v16270_v45, %v7558_v34  ;;  %v7606_v51 = vadd.f32 %v16270_v45, %v7573_v36  ;;  %v7522_v13 = vmul.f32 %v16248_v38, %v7489_v17 }
 0x802   : > { %v7607_v7 = vadd.f32 %v16270_v45, %v7574_v9  ;;  %v7523_v5 = vmul.f32 %v16248_v38, %v7490_v0  ;;  %v7538_v2 = vmul.f32 %v16248_v38, %v7505_v50  ;;  %v7539_v30 = vmul.f32 %v16248_v38, %v7506_v55 }
 0x803   : > { %v7650_v14 = vpack.c.bf16 %v7591_v18, %v7590_v23  ;;  %v7555_v17 = vmul.f32 %v16253_v37, %v7522_v13  ;;  %v7520_v10 = vmul.f32 %v16248_v38, %v7487_v56  ;;  %v7521_v24 = vmul.f32 %v16248_v38, %v7488_v26 }
 0x804   : > { %7824 = vmatpush.bf16.msrb.mxu3 %v7651_v8  ;;  %7913 = vmatpush.bf16.msra.mxu0 %v7659_v40  ;;  %v7658_v0 = vpack.c.bf16 %v7607_v7, %v7606_v51  ;;  %v7556_v50 = vmul.f32 %v16253_v37, %v7523_v5  ;;  %v7571_v16 = vmul.f32 %v16253_v37, %v7538_v2  ;;  %v11105_v2 = vld [vmem:[%s17113_s5 + $0x10] sm:$0xf] }
 0x805   : > { %v7588_v55 = vadd.f32 %v16270_v45, %v7555_v17  ;;  %v7572_v15 = vmul.f32 %v16253_v37, %v7539_v30  ;;  %v7553_v20 = vmul.f32 %v16253_v37, %v7520_v10  ;;  %v7554_v56 = vmul.f32 %v16253_v37, %v7521_v24  ;;  %v11629_v30 = vld [vmem:[%s17113_s5 + $0x14] sm:$0xf0]  ;;  %v11107_v17 = vld [vmem:[%s17113_s5 + $0x18] sm:$0xf0] }
 0x806   : > { %v7589_v46 = vadd.f32 %v16270_v45, %v7556_v50  ;;  %v7604_v62 = vadd.f32 %v16270_v45, %v7571_v16  ;;  %v7536_v26 = vmul.f32 %v16248_v38, %v7503_v43  ;;  %v7537_v1 = vmul.f32 %v16248_v38, %v7504_v59  ;;  %v11631_v50 = vld [vmem:[%s17113_s5 + $0x24] sm:$0xf0]  ;;  %v11630_v16 = vld [vmem:[%s17113_s5 + $0x24] sm:$0xf] }
 0x807   : > { %v7605_v54 = vadd.f32 %v16270_v45, %v7572_v15  ;;  %v7586_v29 = vadd.f32 %v16270_v45, %v7553_v20  ;;  %v7587_v22 = vadd.f32 %v16270_v45, %v7554_v56  ;;  %v7518_v19 = vmul.f32 %v16248_v38, %v7485_v41  ;;  %v11121_v56 = vld [vmem:[%s17113_s5 + $0x30] sm:$0xf] }
 0x808   : > { %v7502_v28 = vsub.f32 %v17339_v6, %v16192_v44  ;;  %7825 = vmatpush.bf16.msrb.mxu3 %v7650_v14  ;;  %7914 = vmatpush.bf16.msra.mxu0 %v7658_v0  ;;  %v7569_v49 = vmul.f32 %v16253_v37, %v7536_v26  ;;  %v7570_v43 = vmul.f32 %v16253_v37, %v7537_v1  ;;  %v11627_v44 = vld [vmem:[%s17113_s5 + $0x4] sm:$0xf0]  ;;  %v11628_v14 = vld [vmem:[%s17113_s5 + $0x14] sm:$0xf]  ;;  %v11113_v0 = vld [vmem:[%s17113_s5 + $0x20] sm:$0xf] }
 0x809   : > { %v7649_v59 = vpack.c.bf16 %v7589_v46, %v7588_v55  ;;  %v7657_v60 = vpack.c.bf16 %v7605_v54, %v7604_v62  ;;  %v7519_v4 = vmul.f32 %v16248_v38, %v7486_v32  ;;  %v7551_v25 = vmul.f32 %v16253_v37, %v7518_v19  ;;  %v11115_v55 = vld [vmem:[%s17113_s5 + $0x28] sm:$0xf0]  ;;  %v11633_v46 = vld [vmem:[%s17113_s5 + $0x34] sm:$0xf0]  ;;  %v11632_v62 = vld [vmem:[%s17113_s5 + $0x34] sm:$0xf] }
 0x80a   : > { %v7602_v41 = vadd.f32 %v16270_v45, %v7569_v49  ;;  %v7603_v48 = vadd.f32 %v16270_v45, %v7570_v43  ;;  %v7534_v52 = vmul.f32 %v16248_v38, %v7501_v63  ;;  %v7535_v53 = vmul.f32 %v16248_v38, %v7502_v28  ;;  %v11123_v26 = vld [vmem:[%s17113_s5 + $0x38] sm:$0xf0]  ;;  %v11129_v19 = vld [vmem:[%s17113_s5 + $0x40] sm:$0xf]  ;;  %v11635_v6 = vld [vmem:[%s17113_s5 + $0x44] sm:$0xf0] }
 0x80b   : > { %v7648_v11 = vpack.c.bf16 %v7587_v22, %v7586_v29  ;;  %v7552_v61 = vmul.f32 %v16253_v37, %v7519_v4  ;;  %v7516_v58 = vmul.f32 %v16248_v38, %v7483_v33  ;;  %v7517_v32 = vmul.f32 %v16248_v38, %v7484_v42  ;;  %v11662_v29 = vld [vmem:[%s17114_s6] sm:$0xff]  ;;  %v11668_v22 = vld [vmem:[%s17114_s6 + $0x10] sm:$0xff]  ;;  %v11131_v49 = vld [vmem:[%s17113_s5 + $0x48] sm:$0xf0] }
 0x80c   : > { %7826 = vmatpush.bf16.msrb.mxu3 %v7649_v59  ;;  %7915 = vmatpush.bf16.msra.mxu0 %v7657_v60  ;;  %v7584_v3 = vadd.f32 %v16270_v45, %v7551_v25  ;;  %v7567_v63 = vmul.f32 %v16253_v37, %v7534_v52  ;;  %v7568_v21 = vmul.f32 %v16253_v37, %v7535_v53  ;;  %v11634_v28 = vld [vmem:[%s17113_s5 + $0x44] sm:$0xf]  ;;  %v11669_v60 = vld [vmem:[%s17114_s6 + $0x18] sm:$0xff]  ;;  %v11137_v4 = vld [vmem:[%s17113_s5 + $0x50] sm:$0xf] }
 0x80d   : > { %v7656_v39 = vpack.c.bf16 %v7603_v48, %v7602_v41  ;;  %v7585_v34 = vadd.f32 %v16270_v45, %v7552_v61  ;;  %v7549_v57 = vmul.f32 %v16253_v37, %v7516_v58  ;;  %v7532_v31 = vmul.f32 %v16248_v38, %v7499_v12  ;;  %8414 = vmatpush.bf16.msra.mxu2 %v11662_v29  ;;  %v11637_v25 = vld [vmem:[%s17113_s5 + $0x54] sm:$0xf0]  ;;  %v11636_v41 = vld [vmem:[%s17113_s5 + $0x54] sm:$0xf]  ;;  %v11139_v48 = vld [vmem:[%s17113_s5 + $0x58] sm:$0xf0] }
 0x80e   : > { %v7600_v33 = vadd.f32 %v16270_v45, %v7567_v63  ;;  %v7601_v42 = vadd.f32 %v16270_v45, %v7568_v21  ;;  %v7550_v36 = vmul.f32 %v16253_v37, %v7517_v32  ;;  %v7533_v8 = vmul.f32 %v16248_v38, %v7500_v47  ;;  %v11626_v47 = vld [vmem:[%s17113_s5 + $0x4] sm:$0xf]  ;;  %v11099_v38 = vld [vmem:[%s17113_s5 + $0x8] sm:$0xf0]  ;;  %v11639_v61 = vld [vmem:[%s17113_s5 + $0x64] sm:$0xf0] }
 0x80f   : > { %v7565_v23 = vmul.f32 %v16253_v37, %v7532_v31  ;;  %v7647_v35 = vpack.c.bf16 %v7585_v34, %v7584_v3  ;;  %v7582_v12 = vadd.f32 %v16270_v45, %v7549_v57  ;;  %v11098_v7 = vor.u32 %v11627_v44, %v11097_v27  ;;  %v11638_v58 = vld [vmem:[%s17113_s5 + $0x64] sm:$0xf]  ;;  %v11147_v32 = vld [vmem:[%s17113_s5 + $0x68] sm:$0xf0]  ;;  %v11153_v21 = vld [vmem:[%s17113_s5 + $0x70] sm:$0xf] }
 0x810   : > { %7827 = vmatpush.bf16.msrb.mxu3 %v7648_v11  ;;  %7916 = vmatpush.bf16.msra.mxu0 %v7656_v39  ;;  %v7566_v9 = vmul.f32 %v16253_v37, %v7533_v8  ;;  %v7655_v40 = vpack.c.bf16 %v7601_v42, %v7600_v33  ;;  %v7583_v18 = vadd.f32 %v16270_v45, %v7550_v36  ;;  %v11145_v11 = vld [vmem:[%s17113_s5 + $0x60] sm:$0xf]  ;;  %v11641_v39 = vld [vmem:[%s17113_s5 + $0x74] sm:$0xf0]  ;;  %v11640_v34 = vld [vmem:[%s17113_s5 + $0x74] sm:$0xf] }
 0x811   : > { %v7598_v51 = vadd.f32 %v16270_v45, %v7565_v23  ;;  %v11102_v5 = vor.u32 %v11626_v47, %v11099_v38  ;;  %v11106_v10 = vor.u32 %v11629_v30, %v11105_v2  ;;  %v11110_v24 = vor.u32 %v11628_v14, %v11107_v17  ;;  %v11155_v57 = vld [vmem:[%s17113_s5 + $0x78] sm:$0xf0]  ;;  %v11161_v42 = vld [vmem:[%s17113_s5 + $0x80] sm:$0xf]  ;;  %v11643_v36 = vld [vmem:[%s17113_s5 + $0x84] sm:$0xf0] }
 0x812   : > { %v7599_v13 = vadd.f32 %v16270_v45, %v7566_v9  ;;  %v7646_v37 = vpack.c.bf16 %v7583_v18, %v7582_v12  ;;  %v11114_v15 = vor.u32 %v11631_v50, %v11113_v0  ;;  %v11118_v20 = vor.u32 %v11630_v16, %v11115_v55  ;;  %v11642_v8 = vld [vmem:[%s17113_s5 + $0x84] sm:$0xf]  ;;  %v11163_v23 = vld [vmem:[%s17113_s5 + $0x88] sm:$0xf0]  ;;  %v11169_v27 = vld [vmem:[%s17113_s5 + $0x90] sm:$0xf] }
 0x813   : > { %v11122_v1 = vor.u32 %v11633_v46, %v11121_v56  ;;  %v11126_v54 = vor.u32 %v11632_v62, %v11123_v26  ;;  %v11130_v43 = vor.u32 %v11635_v6, %v11129_v19  ;;  %v11134_v59 = vor.u32 %v11634_v28, %v11131_v49  ;;  %v11645_v44 = vld [vmem:[%s17113_s5 + $0x94] sm:$0xf0]  ;;  %v11644_v47 = vld [vmem:[%s17113_s5 + $0x94] sm:$0xf]  ;;  %v11171_v38 = vld [vmem:[%s17113_s5 + $0x98] sm:$0xf0] }
 0x814   : > { %7828 = vmatpush.bf16.msrb.mxu3 %v7647_v35  ;;  %7917 = vmatpush.bf16.msra.mxu0 %v7655_v40  ;;  %v7654_v45 = vpack.c.bf16 %v7599_v13, %v7598_v51  ;;  %v11138_v52 = vor.u32 %v11637_v25, %v11137_v4  ;;  %v11142_v53 = vor.u32 %v11636_v41, %v11139_v48  ;;  %v11177_v0 = vld [vmem:[%s17113_s5 + $0xa0] sm:$0xf]  ;;  %v11647_v50 = vld [vmem:[%s17113_s5 + $0xa4] sm:$0xf0]  ;;  %v11646_v16 = vld [vmem:[%s17113_s5 + $0xa4] sm:$0xf] }
 0x815   : > { %v11146_v3 = vor.u32 %v11639_v61, %v11145_v11  ;;  %v11150_v63 = vor.u32 %v11638_v58, %v11147_v32  ;;  %v11154_v31 = vor.u32 %v11641_v39, %v11153_v21  ;;  %v11158_v33 = vor.u32 %v11640_v34, %v11155_v57  ;;  %v11179_v55 = vld [vmem:[%s17113_s5 + $0xa8] sm:$0xf0]  ;;  %v11185_v19 = vld [vmem:[%s17113_s5 + $0xb0] sm:$0xf]  ;;  %v11649_v6 = vld [vmem:[%s17113_s5 + $0xb4] sm:$0xf0] }
 0x816   : > { %v11162_v9 = vor.u32 %v11643_v36, %v11161_v42  ;;  %v11166_v35 = vor.u32 %v11642_v8, %v11163_v23  ;;  %v11178_v56 = vor.u32 %v11647_v50, %v11177_v0  ;;  %v11182_v46 = vor.u32 %v11646_v16, %v11179_v55  ;;  %v11648_v28 = vld [vmem:[%s17113_s5 + $0xb4] sm:$0xf]  ;;  %v11187_v49 = vld [vmem:[%s17113_s5 + $0xb8] sm:$0xf0]  ;;  %v11193_v61 = vld [vmem:[%s17113_s5 + $0xc0] sm:$0xf] }
 0x817   : > { %v11190_v4 = vor.u32 %v11648_v28, %v11187_v49  ;;  %v11651_v58 = vld [vmem:[%s17113_s5 + $0xc4] sm:$0xf0]  ;;  %v11650_v32 = vld [vmem:[%s17113_s5 + $0xc4] sm:$0xf]  ;;  %v11201_v23 = vld [vmem:[%s17113_s5 + $0xd0] sm:$0xf] }
 0x818   : > { %7829 = vmatpush.bf16.msrb.mxu3 %v7646_v37  ;;  %7918 = vmatpush.bf16.msra.mxu0 %v7654_v45  ;;  %v11194_v39 = vor.u32 %v11651_v58, %v11193_v61  ;;  %v11667_v28 = vld [vmem:[%s17114_s6 + $0x8] sm:$0xff] }
 0x819   : > { %8355 = vmatpush.bf16.msrb.mxu1 %v11667_v28 }
 0x81b   : > { %7830 = vmatmul.bf16.vlgmr.msrb.gmra.mxu3 %v11098_v7  ;;  %7919 = vmatmul.bf16.vlgmr.msra.gmra.mxu0 %v11102_v5  ;;  %v11170_v7 = vor.u32 %v11645_v44, %v11169_v27  ;;  %v11174_v5 = vor.u32 %v11644_v47, %v11171_v38 }
 0x81c   : > { %8484 = vmatpush.bf16.msra.mxu3 %v11668_v22  ;;  %8682 = vmatpush.bf16.msrb.mxu0 %v11669_v60  ;;  %v11186_v60 = vor.u32 %v11649_v6, %v11185_v19 }
 0x82b   : > { %7835 = vmatmul.bf16.gmra.mxu3 %v11106_v10  ;;  %7924 = vmatmul.bf16.gmra.mxu0 %v11110_v24 }
 0x83b   : > { %7840 = vmatmul.bf16.gmra.mxu3 %v11114_v15  ;;  %7929 = vmatmul.bf16.gmra.mxu0 %v11118_v20 }
 0x84b   : > { %7845 = vmatmul.bf16.gmra.mxu3 %v11122_v1  ;;  %7934 = vmatmul.bf16.gmra.mxu0 %v11126_v54 }
 0x85b   : > { %7850 = vmatmul.bf16.gmra.mxu3 %v11130_v43  ;;  %7939 = vmatmul.bf16.gmra.mxu0 %v11134_v59 }
 0x86b   : > { %7855 = vmatmul.bf16.gmra.mxu3 %v11138_v52  ;;  %7944 = vmatmul.bf16.gmra.mxu0 %v11142_v53 }
 0x87b   : > { %7860 = vmatmul.bf16.gmra.mxu3 %v11146_v3  ;;  %7949 = vmatmul.bf16.gmra.mxu0 %v11150_v63  ;;  %v11195_v3 = vld [vmem:[%s17113_s5 + $0xc8] sm:$0xf0] }
 0x87c   : > { %v11198_v34 = vor.u32 %v11650_v32, %v11195_v3 }
 0x88b   : > { %7865 = vmatmul.bf16.gmra.mxu3 %v11154_v31  ;;  %7954 = vmatmul.bf16.gmra.mxu0 %v11158_v33 }
 0x898   : > { %v7920_v12 = vpop.f32.mrf.mxu0 }
 0x89b   : > { %7870 = vmatmul.bf16.gmra.mxu3 %v11162_v9  ;;  %7959 = vmatmul.bf16.gmra.mxu0 %v11166_v35  ;;  %v11653_v9 = vld [vmem:[%s17113_s5 + $0xd4] sm:$0xf0]  ;;  %v11652_v35 = vld [vmem:[%s17113_s5 + $0xd4] sm:$0xf] }
 0x89e   : > { %v7831_v40 = vpop.f32.mrf.mxu3 }
 0x89f   : > { %v7921_v18 = vadd.f32 %v7920_v12, %v7831_v40  ;;  %v11203_v12 = vld [vmem:[%s17113_s5 + $0xd8] sm:$0xf0] }
 0x8a0   : > { %v7922_v51 = vpop.f32.mrf.mxu0 }
 0x8a1   : > { %v8000_v13 = vpack.c.bf16 %v7921_v18, %v7921_v18 }
 0x8a3   : > { %8141 = vst.msk [vmem:[#allocation3 + $0x148] sm:$0xf] %vm1822_vm3, %v8000_v13  ;;  %v11206_v13 = vor.u32 %v11652_v35, %v11203_v12 }
 0x8a6   : > { %v7833_v37 = vpop.f32.mrf.mxu3 }
 0x8a7   : > { %v7923_v45 = vadd.f32 %v7922_v51, %v7833_v37  ;;  %v11202_v51 = vor.u32 %v11653_v9, %v11201_v23 }
 0x8a8   : > { %v7925_v2 = vpop.f32.mrf.mxu0 }
 0x8a9   : > { %v8001_v30 = vpack.c.bf16 %v7923_v45, %v7923_v45 }
 0x8ab   : > { %8142 = vst.msk [vmem:[#allocation3 + $0x154] sm:$0xf] %vm1822_vm3, %v8001_v30  ;;  %7875 = vmatmul.bf16.gmra.mxu3 %v11170_v7  ;;  %7964 = vmatmul.bf16.gmra.mxu0 %v11174_v5  ;;  %v11209_v7 = vld [vmem:[%s17113_s5 + $0xe0] sm:$0xf]  ;;  %v11655_v5 = vld [vmem:[%s17113_s5 + $0xe4] sm:$0xf0] }
 0x8ac   : > { %v11211_v30 = vld [vmem:[%s17113_s5 + $0xe8] sm:$0xf0] }
 0x8ae   : > { %v7836_v14 = vpop.f32.mrf.mxu3 }
 0x8af   : > { %v7926_v17 = vadd.f32 %v7925_v2, %v7836_v14  ;;  %v11654_v2 = vld [vmem:[%s17113_s5 + $0xe4] sm:$0xf] }
 0x8b0   : > { %v7927_v10 = vpop.f32.mrf.mxu0 }
 0x8b1   : > { %v8002_v24 = vpack.c.bf16 %v7926_v17, %v7926_v17 }
 0x8b3   : > { %8143 = vst.msk [vmem:[#allocation3 + $0x160] sm:$0xf] %vm1822_vm3, %v8002_v24  ;;  %v11214_v24 = vor.u32 %v11654_v2, %v11211_v30 }
 0x8b6   : > { %v7838_v15 = vpop.f32.mrf.mxu3 }
 0x8b7   : > { %v7928_v20 = vadd.f32 %v7927_v10, %v7838_v15  ;;  %v11210_v10 = vor.u32 %v11655_v5, %v11209_v7 }
 0x8b8   : > { %v7930_v62 = vpop.f32.mrf.mxu0 }
 0x8b9   : > { %v8003_v26 = vpack.c.bf16 %v7928_v20, %v7928_v20 }
 0x8bb   : > { %8144 = vst.msk [vmem:[#allocation3 + $0x16c] sm:$0xf] %vm1822_vm3, %v8003_v26  ;;  %7880 = vmatmul.bf16.gmra.mxu3 %v11178_v56  ;;  %7969 = vmatmul.bf16.gmra.mxu0 %v11182_v46  ;;  %v11217_v56 = vld [vmem:[%s17113_s5 + $0xf0] sm:$0xf]  ;;  %v11657_v46 = vld [vmem:[%s17113_s5 + $0xf4] sm:$0xf0] }
 0x8bc   : > { %v11219_v26 = vld [vmem:[%s17113_s5 + $0xf8] sm:$0xf0] }
 0x8be   : > { %v7841_v1 = vpop.f32.mrf.mxu3 }
 0x8bf   : > { %v7931_v54 = vadd.f32 %v7930_v62, %v7841_v1  ;;  %v11656_v62 = vld [vmem:[%s17113_s5 + $0xf4] sm:$0xf] }
 0x8c0   : > { %v7932_v29 = vpop.f32.mrf.mxu0 }
 0x8c1   : > { %v8004_v22 = vpack.c.bf16 %v7931_v54, %v7931_v54 }
 0x8c3   : > { %8145 = vst.msk [vmem:[#allocation3 + $0x178] sm:$0xf] %vm1822_vm3, %v8004_v22  ;;  %v11222_v22 = vor.u32 %v11656_v62, %v11219_v26  ;;  %v8519_v62 = vld [vmem:[#allocation3 + $0x8c] sm:$0x1] }
 0x8c6   : > { %v7843_v43 = vpop.f32.mrf.mxu3 }
 0x8c7   : > { %v7933_v59 = vadd.f32 %v7932_v29, %v7843_v43  ;;  %v11218_v29 = vor.u32 %v11657_v46, %v11217_v56 }
 0x8c8   : > { %v7935_v25 = vpop.f32.mrf.mxu0 }
 0x8c9   : > { %v8005_v41 = vpack.c.bf16 %v7933_v59, %v7933_v59 }
 0x8cb   : > { %8146 = vst.msk [vmem:[#allocation3 + $0x184] sm:$0xf] %vm1822_vm3, %v8005_v41  ;;  %7885 = vmatmul.bf16.gmra.mxu3 %v11186_v60  ;;  %7974 = vmatmul.bf16.gmra.mxu0 %v11190_v4 }
 0x8ce   : > { %v7846_v48 = vpop.f32.mrf.mxu3 }
 0x8cf   : > { %v7936_v52 = vadd.f32 %v7935_v25, %v7846_v48 }
 0x8d0   : > { %v7937_v53 = vpop.f32.mrf.mxu0 }
 0x8d1   : > { %v8006_v11 = vpack.c.bf16 %v7936_v52, %v7936_v52  ;;  %v8514_v52 = vld [vmem:[#allocation3 + $0x70] sm:$0xf] }
 0x8d2   : > { %v8531_v61 = vshrl.u32 %v8514_v52, 16  ;;  %v8534_v58 = vshll.u32 %v8514_v52, 16 }
 0x8d3   : > { %8147 = vst.msk [vmem:[#allocation3 + $0x190] sm:$0xf] %vm1822_vm3, %v8006_v11 }
 0x8d6   : > { %v7848_v63 = vpop.f32.mrf.mxu3 }
 0x8d7   : > { %v7938_v21 = vadd.f32 %v7937_v53, %v7848_v63  ;;  %v8515_v63 = vld [vmem:[#allocation3 + $0x74] sm:$0x1] }
 0x8d8   : > { %v7940_v57 = vpop.f32.mrf.mxu0 }
 0x8d9   : > { %v8007_v31 = vpack.c.bf16 %v7938_v21, %v7938_v21  ;;  %v8533_v21 = vrot.slane %v8531_v61, 4 }
 0x8db   : > { %8148 = vst.msk [vmem:[#allocation3 + $0x19c] sm:$0xf] %vm1822_vm3, %v8007_v31  ;;  %7890 = vmatmul.bf16.gmra.mxu3 %v11194_v39  ;;  %7979 = vmatmul.bf16.gmra.mxu0 %v11198_v34  ;;  %v8536_v39 = vrot.slane %v8534_v58, 5 }
 0x8de   : > { %v7851_v33 = vpop.f32.mrf.mxu3 }
 0x8df   : > { %v7941_v42 = vadd.f32 %v7940_v57, %v7851_v33  ;;  %v8540_v57 = vshll.u32 %v8515_v63, 16  ;;  %v8517_v33 = vld [vmem:[#allocation3 + $0x80] sm:$0x1] }
 0x8e0   : > { %v7942_v36 = vpop.f32.mrf.mxu0 }
 0x8e1   : > { %v8008_v8 = vpack.c.bf16 %v7941_v42, %v7941_v42  ;;  %v8537_v42 = vor.u32 %v8536_v39, %v8533_v21  ;;  %v8542_v12 = vrot.slane %v8540_v57, 5 }
 0x8e3   : > { %8150 = vst.msk [vmem:[#allocation3 + $0xdc] sm:$0xf] %vm1822_vm3, %v8008_v8  ;;  %v11235_v8 = vld [vmem:[#allocation3 + $0x70] sm:$0xf] }
 0x8e6   : > { %v7853_v40 = vpop.f32.mrf.mxu3 }
 0x8e7   : > { %v7943_v18 = vadd.f32 %v7942_v36, %v7853_v40  ;;  %v8554_v40 = vshll.u32 %v8517_v33, 16 }
 0x8e8   : > { %v7945_v27 = vpop.f32.mrf.mxu0 }
 0x8e9   : > { %v8009_v44 = vpack.c.bf16 %v7943_v18, %v7943_v18  ;;  %v8556_v2 = vrot.slane %v8554_v40, 5 }
 0x8eb   : > { %8151 = vst.msk [vmem:[#allocation3 + $0xe8] sm:$0xf] %vm1822_vm3, %v8009_v44  ;;  %7895 = vmatmul.bf16.gmra.mxu3 %v11202_v51  ;;  %7984 = vmatmul.bf16.gmra.mxu0 %v11206_v13  ;;  %v8538_v51 = vrot.slane %v8537_v42, 4 }
 0x8ed   : > { %v8543_v7 = vsel %vm13761_vm2, %v8538_v51, %v8542_v12 }
 0x8ee   : > { %v7856_v47 = vpop.f32.mrf.mxu3 }
 0x8ef   : > { %v7946_v38 = vadd.f32 %v7945_v27, %v7856_v47 }
 0x8f0   : > { %v7947_v37 = vpop.f32.mrf.mxu0 }
 0x8f1   : > { %v8010_v45 = vpack.c.bf16 %v7946_v38, %v7946_v38 }
 0x8f3   : > { %8152 = vst.msk [vmem:[#allocation3 + $0xf4] sm:$0xf] %vm1822_vm3, %v8010_v45 }
 0x8f6   : > { %v7858_v14 = vpop.f32.mrf.mxu3 }
 0x8f7   : > { %v7948_v17 = vadd.f32 %v7947_v37, %v7858_v14 }
 0x8f8   : > { %v7950_v0 = vpop.f32.mrf.mxu0 }
 0x8f9   : > { %v8011_v50 = vpack.c.bf16 %v7948_v17, %v7948_v17 }
 0x8fb   : > { %8153 = vst.msk [vmem:[#allocation3 + $0x100] sm:$0xf] %vm1822_vm3, %v8011_v50  ;;  %7900 = vmatmul.bf16.gmra.mxu3 %v11210_v10  ;;  %7989 = vmatmul.bf16.gmra.mxu0 %v11214_v24  ;;  %v8645_v10 = vunpack.c.l.b16 %v8543_v7 }
 0x8fe   : > { %v7861_v16 = vpop.f32.mrf.mxu3 }
 0x8ff   : > { %v7951_v55 = vadd.f32 %v7950_v0, %v7861_v16 }
 0x900   : > { %v7952_v15 = vpop.f32.mrf.mxu0 }
 0x901   : > { %v8012_v20 = vpack.c.bf16 %v7951_v55, %v7951_v55 }
 0x903   : > { %8154 = vst.msk [vmem:[#allocation3 + $0x10c] sm:$0xf] %vm1822_vm3, %v8012_v20 }
 0x906   : > { %v7863_v1 = vpop.f32.mrf.mxu3 }
 0x907   : > { %v7953_v54 = vadd.f32 %v7952_v15, %v7863_v1 }
 0x908   : > { %v7955_v19 = vpop.f32.mrf.mxu0 }
 0x909   : > { %v8013_v6 = vpack.c.bf16 %v7953_v54, %v7953_v54  ;;  %v8521_v54 = vld [vmem:[#allocation3 + $0x98] sm:$0x1] }
 0x90b   : > { %8155 = vst.msk [vmem:[#allocation3 + $0x118] sm:$0xf] %vm1822_vm3, %v8013_v6  ;;  %7905 = vmatmul.bf16.gmra.mxu3 %v11218_v29  ;;  %7994 = vmatmul.bf16.gmra.mxu0 %v11222_v22 }
 0x90e   : > { %v7866_v49 = vpop.f32.mrf.mxu3 }
 0x90f   : > { %v7956_v43 = vadd.f32 %v7955_v19, %v7866_v49  ;;  %v8568_v19 = vshll.u32 %v8519_v62, 16  ;;  %v8527_v62 = vld [vmem:[#allocation3 + $0xbc] sm:$0x1] }
 0x910   : > { %v7957_v59 = vpop.f32.mrf.mxu0 }
 0x911   : > { %v8014_v60 = vpack.c.bf16 %v7956_v43, %v7956_v43 }
 0x913   : > { %8156 = vst.msk [vmem:[#allocation3 + $0x124] sm:$0xf] %vm1822_vm3, %v8014_v60 }
 0x916   : > { %v7868_v4 = vpop.f32.mrf.mxu3 }
 0x917   : > { %v7958_v25 = vadd.f32 %v7957_v59, %v7868_v4  ;;  %v8582_v4 = vshll.u32 %v8521_v54, 16 }
 0x918   : > { %v7960_v41 = vpop.f32.mrf.mxu0 }
 0x919   : > { %v8015_v48 = vpack.c.bf16 %v7958_v25, %v7958_v25  ;;  %v8584_v58 = vrot.slane %v8582_v4, 5 }
 0x91b   : > { %8157 = vst.msk [vmem:[#allocation3 + $0x130] sm:$0xf] %vm1822_vm3, %v8015_v48 }
 0x91e   : > { %v7871_v53 = vpop.f32.mrf.mxu3 }
 0x91f   : > { %v7961_v11 = vadd.f32 %v7960_v41, %v7871_v53  ;;  %v8570_v41 = vrot.slane %v8568_v19, 5  ;;  %v11681_v19 = vld [vmem:[%s17114_s6 + $0x38] sm:$0xff] }
 0x920   : > { %v7962_v32 = vpop.f32.mrf.mxu0  ;;  %9234 = vmatpush.bf16.msra.mxu0 %v11681_v19 }
 0x921   : > { %v8016_v3 = vpack.c.bf16 %v7961_v11, %v7961_v11 }
 0x923   : > { %8159 = vst.msk [vmem:[#allocation3 + $0x7c] sm:$0xf] %vm1822_vm3, %v8016_v3 }
 0x926   : > { %v7873_v34 = vpop.f32.mrf.mxu3 }
 0x927   : > { %v7963_v31 = vadd.f32 %v7962_v32, %v7873_v34 }
 0x928   : > { %v7965_v36 = vpop.f32.mrf.mxu0 }
 0x929   : > { %v8017_v23 = vpack.c.bf16 %v7963_v31, %v7963_v31 }
 0x92a   : > { %v11663_v9 = vld [vmem:[#allocation3 + $0x78] sm:$0xf0] }
 0x92b   : > { %v8516_v35 = vld [vmem:[#allocation3 + $0x7c] sm:$0xf]  ;;  %8160 = vst.msk [vmem:[#allocation3 + $0x88] sm:$0xf] %vm1822_vm3, %v8017_v23  ;;  %v11236_v18 = vor.u32 %v11663_v9, %v11235_v8 }
 0x92c   : > { %v8545_v13 = vshrl.u32 %v8516_v35, 16  ;;  %v8548_v27 = vshll.u32 %v8516_v35, 16  ;;  %v8523_v35 = vld [vmem:[#allocation3 + $0xa4] sm:$0x1] }
 0x92d   : > { %11253 = vmatmul.msk.bf16.vlgmr.msrb.gmra.mxu1 %vm1367_vm15, %v11236_v18  ;;  %v8525_v18 = vld [vmem:[#allocation3 + $0xb0] sm:$0x1] }
 0x92e   : > { %v8547_v44 = vrot.slane %v8545_v13, 4  ;;  %v8550_v47 = vrot.slane %v8548_v27, 5  ;;  %v7876_v38 = vpop.f32.mrf.mxu3  ;;  %v8596_v27 = vshll.u32 %v8523_v35, 16 }
 0x92f   : > { %v7966_v37 = vadd.f32 %v7965_v36, %v7876_v38 }
 0x930   : > { %v8551_v5 = vor.u32 %v8550_v47, %v8547_v44  ;;  %v7967_v30 = vpop.f32.mrf.mxu0 }
 0x931   : > { %v8018_v14 = vpack.c.bf16 %v7966_v37, %v7966_v37 }
 0x932   : > { %v8552_v17 = vrot.slane %v8551_v5, 4  ;;  %v8518_v24 = vld [vmem:[#allocation3 + $0x88] sm:$0xf] }
 0x933   : > { %8161 = vst.msk [vmem:[#allocation3 + $0x94] sm:$0xf] %vm1822_vm3, %v8018_v14  ;;  %v8559_v50 = vshrl.u32 %v8518_v24, 16  ;;  %v8562_v16 = vshll.u32 %v8518_v24, 16  ;;  %v11239_v6 = vld [vmem:[#allocation3 + $0x88] sm:$0xf] }
 0x934   : > { %v8557_v0 = vsel %vm13761_vm2, %v8552_v17, %v8556_v2  ;;  %v8610_v2 = vshll.u32 %v8525_v18, 16  ;;  %v8598_v17 = vrot.slane %v8596_v27, 5  ;;  %v8177_v18 = vld [vmem:[#allocation3 + $0x4] sm:$0xf] }
 0x935   : > { %v8646_v55 = vunpack.c.l.b16 %v8557_v0  ;;  %v8561_v15 = vrot.slane %v8559_v50, 4  ;;  %v8564_v20 = vrot.slane %v8562_v16, 5 }
 0x936   : > { %v7878_v56 = vpop.f32.mrf.mxu3 }
 0x937   : > { %v8653_v46 = vpack.c.b16 %v8646_v55, %v8645_v10  ;;  %v7968_v26 = vadd.f32 %v7967_v30, %v7878_v56  ;;  %v8565_v22 = vor.u32 %v8564_v20, %v8561_v15  ;;  %v11674_v30 = vld [vmem:[%s17114_s6 + $0x20] sm:$0xff]  ;;  %v8612_v55 = vrot.slane %v8610_v2, 5 }
 0x938   : > { %v7970_v1 = vpop.f32.mrf.mxu0  ;;  %8872 = vmatpush.bf16.msra.mxu1 %v11674_v30 }
 0x939   : > { %11297 = vmatmul.msk.bf16.vlgmr.msrb.gmra.mxu0 %vm1367_vm15, %v8653_v46  ;;  %v8019_v29 = vpack.c.bf16 %v7968_v26, %v7968_v26  ;;  %v8566_v25 = vrot.slane %v8565_v22, 4 }
 0x93a   : > { %v11664_v28 = vld [vmem:[#allocation3 + $0x90] sm:$0xf0] }
 0x93b   : > { %v8520_v49 = vld [vmem:[#allocation3 + $0x94] sm:$0xf]  ;;  %8162 = vst.msk [vmem:[#allocation3 + $0xa0] sm:$0xf] %vm1822_vm3, %v8019_v29  ;;  %v11240_v43 = vor.u32 %v11664_v28, %v11239_v6  ;;  %v8571_v63 = vsel %vm13761_vm2, %v8566_v25, %v8570_v41 }
 0x93c   : > { %v8573_v59 = vshrl.u32 %v8520_v49, 16  ;;  %v8576_v60 = vshll.u32 %v8520_v49, 16  ;;  %v8647_v33 = vunpack.c.l.b16 %v8571_v63  ;;  %v8624_v49 = vshll.u32 %v8527_v62, 16 }
 0x93d   : > { %11254 = vmatmul.msk.bf16.gmra.mxu1 %vm1367_vm15, %v11240_v43  ;;  %v8715_v43 = vld [vmem:[#allocation3 + $0xe8] sm:$0xf] }
 0x93e   : > { %v8575_v48 = vrot.slane %v8573_v59, 4  ;;  %v8578_v52 = vrot.slane %v8576_v60, 5  ;;  %v7881_v53 = vpop.f32.mrf.mxu3  ;;  %v8529_v59 = vld [vmem:[#allocation3 + $0xc8] sm:$0x1] }
 0x93f   : > { %v7971_v11 = vadd.f32 %v7970_v1, %v7881_v53  ;;  %v8713_v1 = vld [vmem:[#allocation3 + $0xdc] sm:$0xf]  ;;  %v8714_v53 = vld [vmem:[#allocation3 + $0xe4] sm:$0x8]  ;;  %v8638_v63 = vshll.u32 %v8529_v59, 16 }
 0x940   : > { %v8579_v61 = vor.u32 %v8578_v52, %v8575_v48  ;;  %v7972_v32 = vpop.f32.mrf.mxu0  ;;  %v8734_v25 = vshrl.u32 %v8713_v1, 16  ;;  %v8712_v52 = vld [vmem:[#allocation3 + $0xd8] sm:$0x8] }
 0x941   : > { %v8020_v3 = vpack.c.bf16 %v7971_v11, %v7971_v11 }
 0x942   : > { %v8580_v21 = vrot.slane %v8579_v61, 4  ;;  %v8522_v39 = vld [vmem:[#allocation3 + $0xa0] sm:$0xf]  ;;  %v8747_v61 = vshrl.u32 %v8715_v43, 16 }
 0x943   : > { %8163 = vst.msk [vmem:[#allocation3 + $0xac] sm:$0xf] %vm1822_vm3, %v8020_v3  ;;  %v8587_v57 = vshrl.u32 %v8522_v39, 16  ;;  %v8590_v31 = vshll.u32 %v8522_v39, 16  ;;  %v11243_v44 = vld [vmem:[#allocation3 + $0xa0] sm:$0xf] }
 0x944   : > { %v8585_v34 = vsel %vm13761_vm2, %v8580_v21, %v8584_v58  ;;  %v8626_v3 = vrot.slane %v8624_v49, 5  ;;  %v8729_v39 = vshrl.u32 %v8712_v52, 16  ;;  %v8719_v52 = vld [vmem:[#allocation3 + $0x100] sm:$0xf] }
 0x945   : > { %v8648_v42 = vunpack.c.l.b16 %v8585_v34  ;;  %v8589_v36 = vrot.slane %v8587_v57, 4  ;;  %v8592_v8 = vrot.slane %v8590_v31, 5  ;;  %v8736_v34 = vrot.slane %v8734_v25, 7 }
 0x946   : > { %v7883_v23 = vpop.f32.mrf.mxu3  ;;  %v8742_v57 = vshrl.u32 %v8714_v53, 16 }
 0x947   : > { %v8654_v9 = vpack.c.b16 %v8648_v42, %v8647_v33  ;;  %v7973_v12 = vadd.f32 %v7972_v32, %v7883_v23  ;;  %v8593_v13 = vor.u32 %v8592_v8, %v8589_v36 }
 0x948   : > { %v7975_v40 = vpop.f32.mrf.mxu0  ;;  %v11302_v30 = vrot.slane %v8742_v57, 11 }
 0x949   : > { %11298 = vmatmul.msk.bf16.gmra.mxu0 %vm1367_vm15, %v8654_v9  ;;  %v8021_v51 = vpack.c.bf16 %v7973_v12, %v7973_v12  ;;  %v8594_v14 = vrot.slane %v8593_v13, 4  ;;  %v8749_v9 = vrot.slane %v8747_v61, 7  ;;  %v8737_v12 = vshll.u32 %v8713_v1, 16 }
 0x94a   : > { %v11665_v47 = vld [vmem:[#allocation3 + $0xa8] sm:$0xf0]  ;;  %v8201_v1 = vshll.u32 %v8177_v18, 16 }
 0x94b   : > { %v8524_v38 = vld [vmem:[#allocation3 + $0xac] sm:$0xf]  ;;  %8164 = vst.msk [vmem:[#allocation3 + $0xb8] sm:$0xf] %vm1822_vm3, %v8021_v51  ;;  %v11244_v37 = vor.u32 %v11665_v47, %v11243_v44  ;;  %v8599_v56 = vsel %vm13761_vm2, %v8594_v14, %v8598_v17  ;;  %v8176_v44 = vld [vmem:[#allocation3] sm:$0x8]  ;;  %v8739_v2 = vor.u32 %v8737_v12, %v8736_v34 }
 0x94c   : > { %v8601_v7 = vshrl.u32 %v8524_v38, 16  ;;  %v8604_v5 = vshll.u32 %v8524_v38, 16  ;;  %v8649_v6 = vunpack.c.l.b16 %v8599_v56  ;;  %v11679_v51 = vld [vmem:[%s17114_s6 + $0x28] sm:$0xff]  ;;  %v8198_v47 = vshrl.u32 %v8177_v18, 16  ;;  %v11680_v38 = vld [vmem:[%s17114_s6 + $0x30] sm:$0xff] }
 0x94d   : > { %11255 = vmatmul.msk.bf16.gmra.mxu1 %vm1367_vm15, %v11244_v37  ;;  %8958 = vmatpush.bf16.msrb.mxu2 %v11679_v51  ;;  %v9066_v14 = vld [vmem:[#allocation3 + $0x148] sm:$0xf]  ;;  %v8716_v51 = vld [vmem:[#allocation3 + $0xf0] sm:$0x8] }
 0x94e   : > { %v8603_v10 = vrot.slane %v8601_v7, 4  ;;  %v8606_v24 = vrot.slane %v8604_v5, 5  ;;  %v7886_v0 = vpop.f32.mrf.mxu3  ;;  %v8640_v7 = vrot.slane %v8638_v63, 5  ;;  %v11301_v5 = vrot.slane %v8729_v39, 11  ;;  %9036 = vmatpush.bf16.msrb.mxu3 %v11680_v38 }
 0x94f   : > { %v7976_v50 = vadd.f32 %v7975_v40, %v7886_v0  ;;  %v8750_v40 = vshll.u32 %v8715_v43, 16  ;;  %v9068_v0 = vld [vmem:[#allocation3 + $0x154] sm:$0xf] }
 0x950   : > { %v8607_v16 = vor.u32 %v8606_v24, %v8603_v10  ;;  %v7977_v15 = vpop.f32.mrf.mxu0  ;;  %v9097_v56 = vshrl.u32 %v9068_v0, 16  ;;  %v8740_v25 = vsel %vm13962_vm6, %v11301_v5, %v8739_v2 }
 0x951   : > { %v8022_v20 = vpack.c.bf16 %v7976_v50, %v7976_v50  ;;  %v8752_v24 = vor.u32 %v8750_v40, %v8749_v9  ;;  %v9083_v50 = vshrl.u32 %v9066_v14, 16 }
 0x952   : > { %v8608_v46 = vrot.slane %v8607_v16, 4  ;;  %v8526_v26 = vld [vmem:[#allocation3 + $0xb8] sm:$0xf]  ;;  %v9099_v59 = vrot.slane %v9097_v56, 4 }
 0x953   : > { %8165 = vst.msk [vmem:[#allocation3 + $0xc4] sm:$0xf] %vm1822_vm3, %v8022_v20  ;;  %v8615_v29 = vshrl.u32 %v8526_v26, 16  ;;  %v8618_v22 = vshll.u32 %v8526_v26, 16  ;;  %v11247_v31 = vld [vmem:[#allocation3 + $0xb8] sm:$0xf]  ;;  %v8753_v43 = vsel %vm13962_vm6, %v11302_v30, %v8752_v24 }
 0x954   : > { %v8613_v54 = vsel %vm13761_vm2, %v8608_v46, %v8612_v55  ;;  %v9086_v20 = vshll.u32 %v9066_v14, 16  ;;  %v8200_v26 = vrot.slane %v8198_v47, 7  ;;  %v9070_v24 = vld [vmem:[#allocation3 + $0x160] sm:$0xf] }
 0x955   : > { %v8650_v28 = vunpack.c.l.b16 %v8613_v54  ;;  %v8617_v60 = vrot.slane %v8615_v29, 4  ;;  %v8620_v4 = vrot.slane %v8618_v22, 5  ;;  %v9067_v54 = vld [vmem:[#allocation3 + $0x14c] sm:$0x1]  ;;  %v9069_v29 = vld [vmem:[#allocation3 + $0x158] sm:$0x1] }
 0x956   : > { %v7888_v41 = vpop.f32.mrf.mxu3  ;;  %v9085_v22 = vrot.slane %v9083_v50, 4  ;;  %v9088_v19 = vrot.slane %v9086_v20, 5  ;;  %v9092_v61 = vshll.u32 %v9067_v54, 16 }
 0x957   : > { %v8655_v48 = vpack.c.b16 %v8650_v28, %v8649_v6  ;;  %v7978_v11 = vadd.f32 %v7977_v15, %v7888_v41  ;;  %v8621_v32 = vor.u32 %v8620_v4, %v8617_v60  ;;  %v8193_v15 = vshrl.u32 %v8176_v44, 16  ;;  %v8178_v41 = vld [vmem:[#allocation3 + $0xc] sm:$0x8] }
 0x958   : > { %v7980_v58 = vpop.f32.mrf.mxu0  ;;  %v9100_v6 = vshll.u32 %v9068_v0, 16  ;;  %v9089_v39 = vor.u32 %v9088_v19, %v9085_v22  ;;  %v9094_v40 = vrot.slane %v9092_v61, 5 }
 0x959   : > { %11299 = vmatmul.msk.bf16.gmra.mxu0 %vm1367_vm15, %v8655_v48  ;;  %v8023_v21 = vpack.c.bf16 %v7978_v11, %v7978_v11  ;;  %v8622_v35 = vrot.slane %v8621_v32, 4  ;;  %v11223_v53 = vrot.slane %v8193_v15, 11  ;;  %v8203_v11 = vor.u32 %v8201_v1, %v8200_v26  ;;  %v8717_v32 = vld [vmem:[#allocation3 + $0xf4] sm:$0xf]  ;;  %v9072_v15 = vld [vmem:[#allocation3 + $0x16c] sm:$0xf] }
 0x95a   : > { %v11666_v33 = vld [vmem:[#allocation3 + $0xc0] sm:$0xf0]  ;;  %v9102_v48 = vrot.slane %v9100_v6, 5  ;;  %v8760_v9 = vshrl.u32 %v8717_v32, 16  ;;  %v9090_v47 = vrot.slane %v9089_v39, 4  ;;  %v9114_v26 = vshll.u32 %v9070_v24, 16 }
 0x95b   : > { %v8528_v42 = vld [vmem:[#allocation3 + $0xc4] sm:$0xf]  ;;  %8166 = vst.msk [vmem:[#allocation3 + $0xd0] sm:$0xf] %vm1822_vm3, %v8023_v21  ;;  %v11248_v36 = vor.u32 %v11666_v33, %v11247_v31  ;;  %v8627_v55 = vsel %vm13761_vm2, %v8622_v35, %v8626_v3  ;;  %v8836_v21 = vunpack.c.l.b16 %v8753_v43  ;;  %v8718_v31 = vld [vmem:[#allocation3 + $0xfc] sm:$0x8]  ;;  %v8204_v12 = vsel %vm13962_vm6, %v11223_v53, %v8203_v11 }
 0x95c   : > { %v8629_v8 = vshrl.u32 %v8528_v42, 16  ;;  %v8632_v23 = vshll.u32 %v8528_v42, 16  ;;  %v8651_v60 = vunpack.c.l.b16 %v8627_v55  ;;  %v9103_v57 = vor.u32 %v9102_v48, %v9099_v59 }
 0x95d   : > { %11256 = vmatmul.msk.bf16.gmra.mxu1 %vm1367_vm15, %v11248_v36  ;;  %v8773_v33 = vshrl.u32 %v8719_v52, 16  ;;  %v11269_v36 = vld [vmem:[#allocation3 + $0x4] sm:$0xf]  ;;  %v8768_v38 = vshrl.u32 %v8718_v31, 16  ;;  %v8377_v14 = vunpack.c.l.b16 %v8204_v12  ;;  %v8776_v55 = vshll.u32 %v8719_v52, 16 }
 0x95e   : > { %v8631_v13 = vrot.slane %v8629_v8, 4  ;;  %v8634_v27 = vrot.slane %v8632_v23, 5  ;;  %v7891_v37 = vpop.f32.mrf.mxu3  ;;  %v8835_v8 = vunpack.c.l.b16 %v8740_v25  ;;  %v8206_v23 = vshrl.u32 %v8178_v41, 16  ;;  %v8180_v25 = vld [vmem:[#allocation3 + $0x18] sm:$0x8] }
 0x95f   : > { %v7981_v17 = vadd.f32 %v7980_v58, %v7891_v37  ;;  %v9106_v58 = vshll.u32 %v9069_v29, 16  ;;  %v9104_v5 = vrot.slane %v9103_v57, 4  ;;  %v8775_v2 = vrot.slane %v8773_v33, 7  ;;  %v9071_v41 = vld [vmem:[#allocation3 + $0x164] sm:$0x1] }
 0x960   : > { %v8635_v10 = vor.u32 %v8634_v27, %v8631_v13  ;;  %v7982_v16 = vpop.f32.mrf.mxu0  ;;  %v8843_v27 = vpack.c.b16 %v8836_v21, %v8835_v8  ;;  %v11224_v30 = vrot.slane %v8206_v23, 11  ;;  %v9095_v56 = vsel %vm13761_vm2, %v9090_v47, %v9094_v40  ;;  %v8723_v23 = vld [vmem:[#allocation3 + $0x118] sm:$0xf] }
 0x961   : > { %v8024_v46 = vpack.c.bf16 %v7981_v17, %v7981_v17  ;;  %v9108_v18 = vrot.slane %v9106_v58, 5  ;;  %v8755_v17 = vshrl.u32 %v8716_v51, 16  ;;  %v8778_v22 = vor.u32 %v8776_v55, %v8775_v2  ;;  %v8722_v2 = vld [vmem:[#allocation3 + $0x114] sm:$0x8] }
 0x962   : > { %v8636_v62 = vrot.slane %v8635_v10, 4  ;;  %v8762_v10 = vrot.slane %v8760_v9, 7  ;;  %v9125_v59 = vshrl.u32 %v9072_v15, 16  ;;  %v9116_v48 = vrot.slane %v9114_v26, 5 }
 0x963   : > { %8168 = vst.msk [vmem:[#allocation3 + $0x10] sm:$0xf] %vm1822_vm3, %v8024_v46  ;;  %v11304_v46 = vrot.slane %v8768_v38, 11  ;;  %v9109_v29 = vsel %vm13761_vm2, %v9104_v5, %v9108_v18  ;;  %v11303_v6 = vrot.slane %v8755_v17, 11  ;;  %v9128_v52 = vshll.u32 %v9072_v15, 16 }
 0x964   : > { %v8641_v28 = vsel %vm13761_vm2, %v8636_v62, %v8640_v7  ;;  %v9111_v62 = vshrl.u32 %v9070_v24, 16  ;;  %v9197_v11 = vunpack.c.l.b16 %v9095_v56  ;;  %v9198_v61 = vunpack.c.l.b16 %v9109_v29  ;;  %v8720_v18 = vld [vmem:[#allocation3 + $0x108] sm:$0x8] }
 0x965   : > { %v8652_v4 = vunpack.c.l.b16 %v8641_v28  ;;  %v9127_v39 = vrot.slane %v9125_v59, 4  ;;  %v8219_v33 = vshrl.u32 %v8180_v25, 16  ;;  %v8794_v29 = vshrl.u32 %v8722_v2, 16 }
 0x966   : > { %v7893_v3 = vpop.f32.mrf.mxu3  ;;  %v9113_v43 = vrot.slane %v9111_v62, 4 }
 0x967   : > { %v8656_v63 = vpack.c.b16 %v8652_v4, %v8651_v60  ;;  %v7983_v34 = vadd.f32 %v7982_v16, %v7893_v3  ;;  %v8763_v16 = vshll.u32 %v8717_v32, 16  ;;  %v9073_v32 = vld [vmem:[#allocation3 + $0x170] sm:$0x1]  ;;  %v8721_v3 = vld [vmem:[#allocation3 + $0x10c] sm:$0xf] }
 0x968   : > { %v7985_v42 = vpop.f32.mrf.mxu0  ;;  %v9117_v8 = vor.u32 %v9116_v48, %v9113_v43  ;;  %v9134_v40 = vshll.u32 %v9073_v32, 16  ;;  %v8786_v51 = vshrl.u32 %v8721_v3, 16  ;;  %v11306_v32 = vrot.slane %v8794_v29, 11 }
 0x969   : > { %11300 = vmatmul.msk.bf16.gmra.mxu0 %vm1367_vm15, %v8656_v63  ;;  %v8025_v35 = vpack.c.bf16 %v7983_v34, %v7983_v34  ;;  %v8765_v28 = vor.u32 %v8763_v16, %v8762_v10  ;;  %v8779_v63 = vsel %vm13962_vm6, %v11304_v46, %v8778_v22  ;;  %v9130_v34 = vrot.slane %v9128_v52, 5 }
 0x96a   : > { %v11658_v13 = vld [vmem:[#allocation3 + $0xc] sm:$0xf0]  ;;  %v8838_v12 = vunpack.c.l.b16 %v8779_v63  ;;  %v9118_v24 = vrot.slane %v9117_v8, 4  ;;  %v9136_v15 = vrot.slane %v9134_v40, 5  ;;  %v8186_v40 = vld [vmem:[#allocation3 + $0x3c] sm:$0x8] }
 0x96b   : > { %v8179_v44 = vld [vmem:[#allocation3 + $0x10] sm:$0xf]  ;;  %8169 = vst.msk [vmem:[#allocation3 + $0x1c] sm:$0xf] %vm1822_vm3, %v8025_v35  ;;  %v11270_v37 = vor.u32 %v11658_v13, %v11269_v36  ;;  %v8766_v31 = vsel %vm13962_vm6, %v11303_v6, %v8765_v28  ;;  %v8182_v36 = vld [vmem:[#allocation3 + $0x24] sm:$0x8]  ;;  %v9205_v35 = vpack.c.b16 %v9198_v61, %v9197_v11  ;;  %v9131_v47 = vor.u32 %v9130_v34, %v9127_v39 }
 0x96c   : > { %v8211_v7 = vshrl.u32 %v8179_v44, 16  ;;  %v8214_v50 = vshll.u32 %v8179_v44, 16 }
 0x96d   : > { %11287 = vmatmul.msk.bf16.vlgmr.msra.gmra.mxu3 %vm1367_vm15, %v11270_v37  ;;  %11315 = vmatmul.msk.bf16.vlgmr.msra.gmra.mxu1 %vm1367_vm15, %v8843_v27  ;;  %v8837_v27 = vunpack.c.l.b16 %v8766_v31  ;;  %v11225_v37 = vrot.slane %v8219_v33, 11  ;;  %v9132_v26 = vrot.slane %v9131_v47, 4  ;;  %v9075_v31 = vld [vmem:[#allocation3 + $0x17c] sm:$0x1] }
 0x96e   : > { %v8213_v0 = vrot.slane %v8211_v7, 7  ;;  %v7896_v20 = vpop.f32.mrf.mxu3  ;;  %v8232_v7 = vshrl.u32 %v8182_v36, 16 }
 0x96f   : > { %v7986_v1 = vadd.f32 %v7985_v42, %v7896_v20  ;;  %v9120_v42 = vshll.u32 %v9071_v41, 16  ;;  %v8844_v16 = vpack.c.b16 %v8838_v12, %v8837_v27  ;;  %v8788_v20 = vrot.slane %v8786_v51, 7 }
 0x970   : > { %v8216_v54 = vor.u32 %v8214_v50, %v8213_v0  ;;  %v7987_v19 = vpop.f32.mrf.mxu0  ;;  %v8781_v0 = vshrl.u32 %v8720_v18, 16  ;;  %v8802_v41 = vshll.u32 %v8723_v23, 16  ;;  %v9077_v18 = vld [vmem:[#allocation3 + $0x188] sm:$0x1] }
 0x971   : > { %v8026_v60 = vpack.c.bf16 %v7986_v1, %v7986_v1  ;;  %v9122_v5 = vrot.slane %v9120_v42, 5  ;;  %v11226_v1 = vrot.slane %v8232_v7, 11  ;;  %v9148_v7 = vshll.u32 %v9075_v31, 16 }
 0x972   : > { %v8217_v4 = vsel %vm13962_vm6, %v11224_v30, %v8216_v54  ;;  %v8181_v58 = vld [vmem:[#allocation3 + $0x1c] sm:$0xf]  ;;  %v8799_v30 = vshrl.u32 %v8723_v23, 16  ;;  %v8789_v54 = vshll.u32 %v8721_v3, 16  ;;  %v11305_v59 = vrot.slane %v8781_v0, 11 }
 0x973   : > { %v8378_v53 = vunpack.c.l.b16 %v8217_v4  ;;  %8170 = vst.msk [vmem:[#allocation3 + $0x28] sm:$0xf] %vm1822_vm3, %v8026_v60  ;;  %v8224_v21 = vshrl.u32 %v8181_v58, 16  ;;  %v11273_v17 = vld [vmem:[#allocation3 + $0x1c] sm:$0xf]  ;;  %v8227_v10 = vshll.u32 %v8181_v58, 16  ;;  %v9123_v43 = vsel %vm13761_vm2, %v9118_v24, %v9122_v5 }
 0x974   : > { %v8801_v22 = vrot.slane %v8799_v30, 7  ;;  %v9076_v60 = vld [vmem:[#allocation3 + $0x184] sm:$0xf]  ;;  %v8791_v25 = vor.u32 %v8789_v54, %v8788_v20  ;;  %v9137_v58 = vsel %vm13761_vm2, %v9132_v26, %v9136_v15  ;;  %v8258_v0 = vshrl.u32 %v8186_v40, 16 }
 0x975   : > { %v8385_v57 = vpack.c.b16 %v8378_v53, %v8377_v14  ;;  %v8226_v44 = vrot.slane %v8224_v21, 7  ;;  %v9153_v21 = vshrl.u32 %v9076_v60, 16  ;;  %v9156_v42 = vshll.u32 %v9076_v60, 16  ;;  %v8725_v30 = vld [vmem:[#allocation3 + $0x124] sm:$0xf] }
 0x976   : > { %v7898_v9 = vpop.f32.mrf.mxu3  ;;  %v8804_v3 = vor.u32 %v8802_v41, %v8801_v22  ;;  %v8792_v51 = vsel %vm13962_vm6, %v11305_v59, %v8791_v25  ;;  %v8812_v26 = vshrl.u32 %v8725_v30, 16 }
 0x977   : > { %11261 = vmatmul.msk.bf16.vlgmr.msra.gmra.mxu2 %vm1367_vm15, %v8385_v57  ;;  %v7988_v13 = vadd.f32 %v7987_v19, %v7898_v9  ;;  %v8229_v46 = vor.u32 %v8227_v10, %v8226_v44  ;;  %v9074_v19 = vld [vmem:[#allocation3 + $0x178] sm:$0xf]  ;;  %v8184_v57 = vld [vmem:[#allocation3 + $0x30] sm:$0x8]  ;;  %v9199_v9 = vunpack.c.l.b16 %v9123_v43  ;;  %v9155_v27 = vrot.slane %v9153_v21, 4 }
 0x978   : > { %v7990_v38 = vpop.f32.mrf.mxu0  ;;  %v9139_v48 = vshrl.u32 %v9074_v19, 16  ;;  %v9142_v52 = vshll.u32 %v9074_v19, 16  ;;  %v9158_v44 = vrot.slane %v9156_v42, 5  ;;  %v8839_v24 = vunpack.c.l.b16 %v8792_v51  ;;  %v9078_v42 = vld [vmem:[#allocation3 + $0x190] sm:$0xf] }
 0x979   : > { %11377 = vmatmul.msk.bf16.vlgmr.msra.gmra.mxu0 %vm1367_vm15, %v9205_v35  ;;  %v8027_v14 = vpack.c.bf16 %v7988_v13, %v7988_v13  ;;  %v8230_v11 = vsel %vm13962_vm6, %v11225_v37, %v8229_v46  ;;  %v9200_v35 = vunpack.c.l.b16 %v9137_v58  ;;  %v8245_v37 = vshrl.u32 %v8184_v57, 16 }
 0x97a   : > { %v11659_v50 = vld [vmem:[#allocation3 + $0x24] sm:$0xf0]  ;;  %v9141_v63 = vrot.slane %v9139_v48, 4  ;;  %v9144_v33 = vrot.slane %v9142_v52, 5  ;;  %v8379_v8 = vunpack.c.l.b16 %v8230_v11  ;;  %v8814_v58 = vrot.slane %v8812_v26, 7 }
 0x97b   : > { %v8183_v55 = vld [vmem:[#allocation3 + $0x28] sm:$0xf]  ;;  %8171 = vst.msk [vmem:[#allocation3 + $0x34] sm:$0xf] %vm1822_vm3, %v8027_v14  ;;  %v11274_v56 = vor.u32 %v11659_v50, %v11273_v17  ;;  %v8727_v14 = vld [vmem:[#allocation3 + $0x130] sm:$0xf]  ;;  %v9206_v10 = vpack.c.b16 %v9200_v35, %v9199_v9 }
 0x97c   : > { %v8237_v62 = vshrl.u32 %v8183_v55, 16  ;;  %v8240_v28 = vshll.u32 %v8183_v55, 16  ;;  %v9145_v2 = vor.u32 %v9144_v33, %v9141_v63  ;;  %v9162_v50 = vshll.u32 %v9077_v18, 16  ;;  %v9267_v26 = vld [vmem:[#allocation3 + $0x1c] sm:$0xf] }
 0x97d   : > { %11288 = vmatmul.msk.bf16.gmra.mxu3 %vm1367_vm15, %v11274_v56  ;;  %11316 = vmatmul.msk.bf16.gmra.mxu1 %vm1367_vm15, %v8844_v16  ;;  %v8724_v16 = vld [vmem:[#allocation3 + $0x120] sm:$0x8]  ;;  %v9159_v56 = vor.u32 %v9158_v44, %v9155_v27  ;;  %v11227_v46 = vrot.slane %v8245_v37, 11  ;;  %v8828_v33 = vshll.u32 %v8727_v14, 16  ;;  %v9170_v37 = vshll.u32 %v9078_v42, 16 }
 0x97e   : > { %v8239_v6 = vrot.slane %v8237_v62, 7  ;;  %v7901_v4 = vpop.f32.mrf.mxu3  ;;  %v9150_v62 = vrot.slane %v9148_v7, 5  ;;  %v9146_v19 = vrot.slane %v9145_v2, 4  ;;  %v9164_v60 = vrot.slane %v9162_v50, 5 }
 0x97f   : > { %v7991_v53 = vadd.f32 %v7990_v38, %v7901_v4  ;;  %v8805_v38 = vsel %vm13962_vm6, %v11306_v32, %v8804_v3  ;;  %v11686_v4 = vld [vmem:[%s17114_s6 + $0x40] sm:$0xff]  ;;  %v9160_v52 = vrot.slane %v9159_v56, 4 }
 0x980   : > { %v8242_v61 = vor.u32 %v8240_v28, %v8239_v6  ;;  %v7992_v36 = vpop.f32.mrf.mxu0  ;;  %v8840_v15 = vunpack.c.l.b16 %v8805_v38  ;;  %v8726_v6 = vld [vmem:[#allocation3 + $0x12c] sm:$0x8]  ;;  %v8807_v28 = vshrl.u32 %v8724_v16, 16  ;;  %9424 = vmatpush.bf16.msrb.mxu1 %v11686_v4  ;;  %v9151_v31 = vsel %vm13761_vm2, %v9146_v19, %v9150_v62 }
 0x981   : > { %v8028_v39 = vpack.c.bf16 %v7991_v53, %v7991_v53  ;;  %v9080_v53 = vld [vmem:[#allocation3 + $0x19c] sm:$0xf]  ;;  %v8820_v32 = vshrl.u32 %v8726_v6, 16  ;;  %v9165_v35 = vsel %vm13761_vm2, %v9160_v52, %v9164_v60  ;;  %v9167_v38 = vshrl.u32 %v9078_v42, 16  ;;  %v9265_v60 = vld [vmem:[#allocation3 + $0x10] sm:$0xf] }
 0x982   : > { %v8243_v34 = vsel %vm13962_vm6, %v11226_v1, %v8242_v61  ;;  %v8185_v12 = vld [vmem:[#allocation3 + $0x34] sm:$0xf]  ;;  %v8825_v1 = vshrl.u32 %v8727_v14, 16  ;;  %v8845_v41 = vpack.c.b16 %v8840_v15, %v8839_v24  ;;  %v11228_v61 = vrot.slane %v8258_v0, 11  ;;  %v11691_v4 = vld [vmem:[%s17114_s6 + $0x48] sm:$0xff] }
 0x983   : > { %v8380_v23 = vunpack.c.l.b16 %v8243_v34  ;;  %8172 = vst.msk [vmem:[#allocation3 + $0x40] sm:$0xf] %vm1822_vm3, %v8028_v39  ;;  %v8250_v13 = vshrl.u32 %v8185_v12, 16  ;;  %v8253_v20 = vshll.u32 %v8185_v12, 16  ;;  %v11277_v29 = vld [vmem:[#allocation3 + $0x34] sm:$0xf]  ;;  %9510 = vmatpush.bf16.msra.mxu2 %v11691_v4 }
 0x984   : > { %v8827_v3 = vrot.slane %v8825_v1, 7  ;;  %v8815_v34 = vshll.u32 %v8725_v30, 16  ;;  %v11307_v12 = vrot.slane %v8807_v28, 11  ;;  %v11308_v51 = vrot.slane %v8820_v32, 11  ;;  %v9081_v30 = vld [vmem:[#allocation3 + $0x1a0] sm:$0x1] }
 0x985   : > { %v8386_v47 = vpack.c.b16 %v8380_v23, %v8379_v8  ;;  %v8252_v5 = vrot.slane %v8250_v13, 7  ;;  %v9184_v8 = vshll.u32 %v9080_v53, 16  ;;  %v9169_v56 = vrot.slane %v9167_v38, 4  ;;  %v11693_v1 = vld [vmem:[%s17114_s6 + $0x58] sm:$0xff] }
 0x986   : > { %v7903_v17 = vpop.f32.mrf.mxu3  ;;  %v8817_v18 = vor.u32 %v8815_v34, %v8814_v58  ;;  %v8830_v13 = vor.u32 %v8828_v33, %v8827_v3  ;;  %v9190_v62 = vshll.u32 %v9081_v30, 16  ;;  %9786 = vmatpush.bf16.msrb.mxu0 %v11693_v1  ;;  %v9302_v38 = vshll.u32 %v9267_v26, 16 }
 0x987   : > { %11262 = vmatmul.msk.bf16.gmra.mxu2 %vm1367_vm15, %v8386_v47  ;;  %v7993_v55 = vadd.f32 %v7992_v36, %v7903_v17  ;;  %v8255_v22 = vor.u32 %v8253_v20, %v8252_v5  ;;  %v9181_v36 = vshrl.u32 %v9080_v53, 16  ;;  %v8188_v47 = vld [vmem:[#allocation3 + $0x48] sm:$0x8]  ;;  %v9202_v5 = vunpack.c.l.b16 %v9165_v35  ;;  %v9079_v20 = vld [vmem:[#allocation3 + $0x194] sm:$0x1] }
 0x988   : > { %v7995_v11 = vpop.f32.mrf.mxu0  ;;  %v9186_v17 = vrot.slane %v9184_v8, 5  ;;  %v8818_v50 = vsel %vm13962_vm6, %v11307_v12, %v8817_v18  ;;  %v8831_v16 = vsel %vm13962_vm6, %v11308_v51, %v8830_v13  ;;  %v8271_v15 = vshrl.u32 %v8188_v47, 16  ;;  %v9264_v53 = vld [vmem:[#allocation3 + $0xc] sm:$0x8] }
 0x989   : > { %11378 = vmatmul.msk.bf16.gmra.mxu0 %vm1367_vm15, %v9206_v10  ;;  %v8029_v54 = vpack.c.bf16 %v7993_v55, %v7993_v55  ;;  %v8256_v63 = vsel %vm13962_vm6, %v11227_v46, %v8255_v22  ;;  %v9183_v14 = vrot.slane %v9181_v36, 4  ;;  %v9201_v10 = vunpack.c.l.b16 %v9151_v31  ;;  %v8190_v55 = vld [vmem:[#allocation3 + $0x54] sm:$0x8] }
 0x98a   : > { %v11660_v43 = vld [vmem:[#allocation3 + $0x3c] sm:$0xf0]  ;;  %v8381_v40 = vunpack.c.l.b16 %v8256_v63  ;;  %v9172_v46 = vrot.slane %v9170_v37, 5  ;;  %v8841_v28 = vunpack.c.l.b16 %v8818_v50  ;;  %v9176_v52 = vshll.u32 %v9079_v20, 16  ;;  %v9618_v37 = vld [vmem:[#allocation3 + $0x7c] sm:$0xf] }
 0x98b   : > { %v8187_v59 = vld [vmem:[#allocation3 + $0x40] sm:$0xf]  ;;  %8173 = vst.msk [vmem:[#allocation3 + $0x4c] sm:$0xf] %vm1822_vm3, %v8029_v54  ;;  %v11278_v25 = vor.u32 %v11660_v43, %v11277_v29  ;;  %v9207_v22 = vpack.c.b16 %v9202_v5, %v9201_v10  ;;  %v9187_v19 = vor.u32 %v9186_v17, %v9183_v14  ;;  %v8842_v43 = vunpack.c.l.b16 %v8831_v16 }
 0x98c   : > { %v8263_v48 = vshrl.u32 %v8187_v59, 16  ;;  %v8266_v39 = vshll.u32 %v8187_v59, 16  ;;  %v9173_v3 = vor.u32 %v9172_v46, %v9169_v56  ;;  %v9192_v63 = vrot.slane %v9190_v62, 5 }
 0x98d   : > { %11289 = vmatmul.msk.bf16.gmra.mxu3 %vm1367_vm15, %v11278_v25  ;;  %11317 = vmatmul.msk.bf16.gmra.mxu1 %vm1367_vm15, %v8845_v41  ;;  %v11692_v25 = vld [vmem:[%s17114_s6 + $0x50] sm:$0xff]  ;;  %v11229_v41 = vrot.slane %v8271_v15, 11  ;;  %v9286_v31 = vshrl.u32 %v9265_v60, 16  ;;  %v8846_v42 = vpack.c.b16 %v8842_v43, %v8841_v28  ;;  %v9289_v17 = vshll.u32 %v9265_v60, 16  ;;  %v9619_v60 = vld [vmem:[#allocation3 + $0x80] sm:$0x1] }
 0x98e   : > { %v8265_v21 = vrot.slane %v8263_v48, 7  ;;  %v7906_v57 = vpop.f32.mrf.mxu3  ;;  %v8284_v48 = vshrl.u32 %v8190_v55, 16  ;;  %9588 = vmatpush.bf16.msra.mxu3 %v11692_v25  ;;  %v9174_v13 = vrot.slane %v9173_v3, 4  ;;  %v9635_v16 = vshrl.u32 %v9618_v37, 16  ;;  %v9271_v28 = vld [vmem:[#allocation3 + $0x34] sm:$0xf] }
 0x98f   : > { %v7996_v23 = vadd.f32 %v7995_v11, %v7906_v57  ;;  %v9299_v11 = vshrl.u32 %v9267_v26, 16  ;;  %v9188_v57 = vrot.slane %v9187_v19, 4  ;;  %v9288_v47 = vrot.slane %v9286_v31, 7  ;;  %v11349_v3 = vld [vmem:[#allocation3 + $0xdc] sm:$0xf] }
 0x990   : > { %v8268_v9 = vor.u32 %v8266_v39, %v8265_v21  ;;  %v7997_v54 = vpop.f32.mrf.mxu0  ;;  %v9266_v21 = vld [vmem:[#allocation3 + $0x18] sm:$0x8]  ;;  %v9638_v55 = vshll.u32 %v9618_v37, 16  ;;  %v9637_v19 = vrot.slane %v9635_v16, 4  ;;  %v9268_v31 = vld [vmem:[#allocation3 + $0x24] sm:$0x8] }
 0x991   : > { %v8030_v27 = vpack.c.bf16 %v7996_v23, %v7996_v23  ;;  %v11230_v23 = vrot.slane %v8284_v48, 11  ;;  %v9294_v35 = vshrl.u32 %v9266_v21, 16  ;;  %v9301_v12 = vrot.slane %v9299_v11, 7  ;;  %v9269_v48 = vld [vmem:[#allocation3 + $0x28] sm:$0xf] }
 0x992   : > { %v8269_v44 = vsel %vm13962_vm6, %v11228_v61, %v8268_v9  ;;  %v8189_v2 = vld [vmem:[#allocation3 + $0x4c] sm:$0xf]  ;;  %v9281_v9 = vshrl.u32 %v9264_v53, 16  ;;  %v9291_v46 = vor.u32 %v9289_v17, %v9288_v47  ;;  %v9325_v53 = vshrl.u32 %v9271_v28, 16  ;;  %v11323_v17 = vld [vmem:[#allocation3 + $0x148] sm:$0xf] }
 0x993   : > { %v8382_v7 = vunpack.c.l.b16 %v8269_v44  ;;  %8174 = vst.msk [vmem:[#allocation3 + $0x58] sm:$0xf] %vm1822_vm3, %v8030_v27  ;;  %v8276_v24 = vshrl.u32 %v8189_v2, 16  ;;  %v11281_v58 = vld [vmem:[#allocation3 + $0x4c] sm:$0xf]  ;;  %v8279_v32 = vshll.u32 %v8189_v2, 16  ;;  %v9193_v44 = vsel %vm13761_vm2, %v9188_v57, %v9192_v63 }
 0x994   : > { %v9178_v27 = vrot.slane %v9176_v52, 5  ;;  %v11381_v14 = vrot.slane %v9281_v9, 11  ;;  %v11382_v10 = vrot.slane %v9294_v35, 11  ;;  %v9204_v56 = vunpack.c.l.b16 %v9193_v44  ;;  %v11670_v52 = vld [vmem:[#allocation3 + $0xe4] sm:$0xf0] }
 0x995   : > { %v8387_v0 = vpack.c.b16 %v8382_v7, %v8381_v40  ;;  %v8278_v59 = vrot.slane %v8276_v24, 7  ;;  %v9620_v40 = vld [vmem:[#allocation3 + $0x88] sm:$0xf]  ;;  %v9304_v24 = vor.u32 %v9302_v38, %v9301_v12  ;;  %v9312_v63 = vshrl.u32 %v9269_v48, 16  ;;  %v11675_v38 = vld [vmem:[#allocation3 + $0x150] sm:$0xf0] }
 0x996   : > { %v7908_v29 = vpop.f32.mrf.mxu3  ;;  %v9649_v2 = vshrl.u32 %v9620_v40, 16  ;;  %v9652_v30 = vshll.u32 %v9620_v40, 16  ;;  %v9179_v50 = vsel %vm13761_vm2, %v9174_v13, %v9178_v27  ;;  %v11350_v21 = vor.u32 %v11670_v52, %v11349_v3  ;;  %v9622_v40 = vld [vmem:[#allocation3 + $0x94] sm:$0xf]  ;;  %v9628_v3 = vld [vmem:[#allocation3 + $0xb8] sm:$0xf] }
 0x997   : > { %11263 = vmatmul.msk.bf16.gmra.mxu2 %vm1367_vm15, %v8387_v0  ;;  %v7998_v6 = vadd.f32 %v7997_v54, %v7908_v29  ;;  %v8281_v36 = vor.u32 %v8279_v32, %v8278_v59  ;;  %v9203_v54 = vunpack.c.l.b16 %v9179_v50  ;;  %v9305_v29 = vsel %vm13962_vm6, %v11382_v10, %v9304_v24  ;;  %v9270_v32 = vld [vmem:[#allocation3 + $0x30] sm:$0x8] }
 0x998   : > { %v9651_v62 = vrot.slane %v9649_v2, 4  ;;  %v9654_v26 = vrot.slane %v9652_v30, 5  ;;  %v9292_v59 = vsel %vm13962_vm6, %v11381_v14, %v9291_v46  ;;  %v9388_v4 = vunpack.c.l.b16 %v9305_v29 }
 0x999   : > { %11379 = vmatmul.msk.bf16.gmra.mxu0 %vm1367_vm15, %v9207_v22  ;;  %v8031_v61 = vpack.c.bf16 %v7998_v6, %v7998_v6  ;;  %v8282_v7 = vsel %vm13962_vm6, %v11229_v41, %v8281_v36  ;;  %v9621_v22 = vld [vmem:[#allocation3 + $0x8c] sm:$0x1]  ;;  %v9640_v6 = vrot.slane %v9638_v55, 5  ;;  %v9208_v43 = vpack.c.b16 %v9204_v56, %v9203_v54  ;;  %v9624_v36 = vld [vmem:[#allocation3 + $0xa0] sm:$0xf] }
 0x99a   : > { %v11661_v39 = vld [vmem:[#allocation3 + $0x54] sm:$0xf0]  ;;  %v8383_v15 = vunpack.c.l.b16 %v8282_v7  ;;  %v9655_v25 = vor.u32 %v9654_v26, %v9651_v62  ;;  %v9658_v41 = vshll.u32 %v9621_v22, 16  ;;  %v9387_v11 = vunpack.c.l.b16 %v9292_v59  ;;  %v9625_v55 = vld [vmem:[#allocation3 + $0xa4] sm:$0x1] }
 0x99b   : > { %v8191_v34 = vld [vmem:[#allocation3 + $0x58] sm:$0xf]  ;;  %8175 = vst.msk [vmem:[#allocation3 + $0x64] sm:$0xf] %vm1822_vm3, %v8031_v61  ;;  %v11282_v33 = vor.u32 %v11661_v39, %v11281_v58  ;;  %v9641_v61 = vor.u32 %v9640_v6, %v9637_v19  ;;  %v9644_v58 = vshll.u32 %v9619_v60, 16  ;;  %v9307_v9 = vshrl.u32 %v9268_v31, 16 }
 0x99c   : > { %v8289_v8 = vshrl.u32 %v8191_v34, 16  ;;  %v8292_v51 = vshll.u32 %v8191_v34, 16  ;;  %v9395_v39 = vpack.c.b16 %v9388_v4, %v9387_v11  ;;  %v9656_v34 = vrot.slane %v9655_v25, 4  ;;  %v9275_v56 = vld [vmem:[#allocation3 + $0x4c] sm:$0xf] }
 0x99d   : > { %11290 = vmatmul.msk.bf16.gmra.mxu3 %vm1367_vm15, %v11282_v33  ;;  %11318 = vmatmul.msk.bf16.gmra.mxu1 %vm1367_vm15, %v8846_v42  ;;  %v9660_v57 = vrot.slane %v9658_v41, 5  ;;  %v9320_v33 = vshrl.u32 %v9270_v32, 16  ;;  %v9327_v42 = vrot.slane %v9325_v53, 7  ;;  %v9314_v35 = vrot.slane %v9312_v63, 7  ;;  %v9623_v26 = vld [vmem:[#allocation3 + $0x98] sm:$0x1] }
 0x99e   : > { %v8291_v18 = vrot.slane %v8289_v8, 7  ;;  %v9642_v8 = vrot.slane %v9641_v61, 4  ;;  %v9328_v12 = vshll.u32 %v9271_v28, 16  ;;  %v9680_v13 = vshll.u32 %v9624_v36, 16  ;;  %v9273_v22 = vld [vmem:[#allocation3 + $0x40] sm:$0xf] }
 0x99f   : > { %v9315_v27 = vshll.u32 %v9269_v48, 16  ;;  %v11384_v44 = vrot.slane %v9320_v33, 11  ;;  %v9663_v7 = vshrl.u32 %v9622_v40, 16  ;;  %v11383_v30 = vrot.slane %v9307_v9, 11  ;;  %v11671_v19 = vld [vmem:[#allocation3 + $0xfc] sm:$0xf0] }
 0x9a0   : > { %v8294_v5 = vor.u32 %v8292_v51, %v8291_v18  ;;  %v9661_v18 = vsel %vm13761_vm2, %v9656_v34, %v9660_v57  ;;  %v9677_v51 = vshrl.u32 %v9624_v36, 16  ;;  %v9330_v47 = vor.u32 %v9328_v12, %v9327_v42  ;;  %v9274_v4 = vld [vmem:[#allocation3 + $0x48] sm:$0x8]  ;;  %v11353_v25 = vld [vmem:[#allocation3 + $0xf4] sm:$0xf] }
 0x9a1   : > { %v9750_v2 = vunpack.c.l.b16 %v9661_v18  ;;  %v9317_v14 = vor.u32 %v9315_v27, %v9314_v35  ;;  %v9682_v24 = vrot.slane %v9680_v13, 5  ;;  %v9686_v29 = vshll.u32 %v9625_v55, 16  ;;  %v9272_v61 = vld [vmem:[#allocation3 + $0x3c] sm:$0x8]  ;;  %v9626_v31 = vld [vmem:[#allocation3 + $0xac] sm:$0xf] }
 0x9a2   : > { %v8295_v0 = vsel %vm13962_vm6, %v11230_v23, %v8294_v5  ;;  %v9646_v23 = vrot.slane %v9644_v58, 5  ;;  %v9666_v5 = vshll.u32 %v9622_v40, 16  ;;  %v9679_v10 = vrot.slane %v9677_v51, 4  ;;  %v11676_v12 = vld [vmem:[#allocation3 + $0x168] sm:$0xf0] }
 0x9a3   : > { %v8384_v20 = vunpack.c.l.b16 %v8295_v0  ;;  %v11324_v0 = vor.u32 %v11675_v38, %v11323_v17  ;;  %v9331_v16 = vsel %vm13962_vm6, %v11384_v44, %v9330_v47  ;;  %v9318_v62 = vsel %vm13962_vm6, %v11383_v30, %v9317_v14  ;;  %v11327_v38 = vld [vmem:[#allocation3 + $0x160] sm:$0xf]  ;;  %v9629_v14 = vld [vmem:[#allocation3 + $0xbc] sm:$0x1] }
 0x9a4   : > { %v9647_v37 = vsel %vm13761_vm2, %v9642_v8, %v9646_v23  ;;  %v9683_v54 = vor.u32 %v9682_v24, %v9679_v10  ;;  %v9351_v6 = vshrl.u32 %v9275_v56, 16  ;;  %v9672_v60 = vshll.u32 %v9623_v26, 16  ;;  %v9279_v24 = vld [vmem:[#allocation3 + $0x64] sm:$0xf] }
 0x9a5   : > { %v8388_v1 = vpack.c.b16 %v8384_v20, %v8383_v15  ;;  %v9749_v50 = vunpack.c.l.b16 %v9647_v37  ;;  %v9665_v15 = vrot.slane %v9663_v7, 4  ;;  %v9668_v20 = vrot.slane %v9666_v5, 5 }
 0x9a6   : > { %v9338_v41 = vshrl.u32 %v9273_v22, 16  ;;  %v11354_v48 = vor.u32 %v11671_v19, %v11353_v25  ;;  %v9684_v53 = vrot.slane %v9683_v54, 4  ;;  %v9688_v11 = vrot.slane %v9686_v29, 5  ;;  %v11357_v19 = vld [vmem:[#allocation3 + $0x10c] sm:$0xf] }
 0x9a7   : > { %11264 = vmatmul.msk.bf16.gmra.mxu2 %vm1367_vm15, %v8388_v1  ;;  %v9757_v46 = vpack.c.b16 %v9750_v2, %v9749_v50  ;;  %v9390_v1 = vunpack.c.l.b16 %v9331_v16  ;;  %v9669_v59 = vor.u32 %v9668_v20, %v9665_v15  ;;  %v9346_v58 = vshrl.u32 %v9274_v4, 16  ;;  %v9627_v16 = vld [vmem:[#allocation3 + $0xb0] sm:$0x1] }
 0x9a8   : > { %v9353_v32 = vrot.slane %v9351_v6, 7  ;;  %v9340_v34 = vrot.slane %v9338_v41, 7  ;;  %v9354_v57 = vshll.u32 %v9275_v56, 16  ;;  %v9689_v42 = vsel %vm13761_vm2, %v9684_v53, %v9688_v11  ;;  %v9277_v56 = vld [vmem:[#allocation3 + $0x58] sm:$0xf] }
 0x9a9   : > { %11380 = vmatmul.msk.bf16.gmra.mxu0 %vm1367_vm15, %v9208_v43  ;;  %v9389_v43 = vunpack.c.l.b16 %v9318_v62  ;;  %v9670_v63 = vrot.slane %v9669_v59, 4  ;;  %v9705_v36 = vshrl.u32 %v9628_v3, 16  ;;  %v9708_v8 = vshll.u32 %v9628_v3, 16  ;;  %v11698_v59 = vld [vmem:[%s17114_s6 + $0x60] sm:$0xff] }
 0x9aa   : > { %v16781_v28 = vpop.f32.mrf.mxu1  ;;  %v9341_v23 = vshll.u32 %v9273_v22, 16  ;;  %v11386_v9 = vrot.slane %v9346_v58, 11  ;;  %v9356_v35 = vor.u32 %v9354_v57, %v9353_v32  ;;  %v9691_v18 = vshrl.u32 %v9626_v31, 16  ;;  %v9278_v22 = vld [vmem:[#allocation3 + $0x60] sm:$0x8]  ;;  %9977 = vmatpush.bf16.msra.mxu1 %v11698_v59 }
 0x9ab   : > { %v9396_v52 = vpack.c.b16 %v9390_v1, %v9389_v43  ;;  %v9694_v51 = vshll.u32 %v9626_v31, 16  ;;  %v9752_v13 = vunpack.c.l.b16 %v9689_v42  ;;  %v9707_v37 = vrot.slane %v9705_v36, 4  ;;  %v9632_v43 = vld [vmem:[#allocation3 + $0xd0] sm:$0xf]  ;;  %v9630_v32 = vld [vmem:[#allocation3 + $0xc4] sm:$0xf] }
 0x9ac   : > { %v9343_v44 = vor.u32 %v9341_v23, %v9340_v34  ;;  %v9710_v7 = vrot.slane %v9708_v8, 5  ;;  %v11328_v5 = vor.u32 %v11676_v12, %v11327_v38  ;;  %v9357_v30 = vsel %vm13962_vm6, %v11386_v9, %v9356_v35  ;;  %v11677_v42 = vld [vmem:[#allocation3 + $0x180] sm:$0xf0] }
 0x9ad   : > { %11367 = vmatmul.msk.bf16.vlgmr.msrb.gmra.mxu3 %vm1367_vm15, %v11350_v21  ;;  %11395 = vmatmul.msk.bf16.vlgmr.msrb.gmra.mxu1 %vm1367_vm15, %v9395_v39  ;;  %v9674_v21 = vrot.slane %v9672_v60, 5  ;;  %v9333_v39 = vshrl.u32 %v9272_v61, 16  ;;  %v9693_v17 = vrot.slane %v9691_v18, 4  ;;  %v9696_v10 = vrot.slane %v9694_v51, 5  ;;  %v11331_v18 = vld [vmem:[#allocation3 + $0x178] sm:$0xf] }
 0x9ae   : > { %v9392_v55 = vunpack.c.l.b16 %v9357_v30  ;;  %v9711_v15 = vor.u32 %v9710_v7, %v9707_v37  ;;  %v9714_v20 = vshll.u32 %v9629_v14, 16  ;;  %v9377_v62 = vshrl.u32 %v9279_v24, 16  ;;  %v9631_v14 = vld [vmem:[#allocation3 + $0xc8] sm:$0x1]  ;;  %v11361_v59 = vld [vmem:[#allocation3 + $0x124] sm:$0xf] }
 0x9af   : > { %v9675_v40 = vsel %vm13761_vm2, %v9670_v63, %v9674_v21  ;;  %v11385_v27 = vrot.slane %v9333_v39, 11  ;;  %v9697_v54 = vor.u32 %v9696_v10, %v9693_v17  ;;  %v9700_v29 = vshll.u32 %v9627_v16, 16 }
 0x9b0   : > { %v9751_v2 = vunpack.c.l.b16 %v9675_v40  ;;  %v9364_v6 = vshrl.u32 %v9277_v56, 16  ;;  %v9712_v25 = vrot.slane %v9711_v15, 4  ;;  %v9716_v41 = vrot.slane %v9714_v20, 5 }
 0x9b1   : > { %v9344_v50 = vsel %vm13962_vm6, %v11385_v27, %v9343_v44  ;;  %v9379_v53 = vrot.slane %v9377_v62, 7  ;;  %v9698_v61 = vrot.slane %v9697_v54, 4  ;;  %v9702_v58 = vrot.slane %v9700_v29, 5  ;;  %v9633_v44 = vld [vmem:[#allocation3 + $0xd4] sm:$0x1] }
 0x9b2   : > { %v16791_v47 = vpop.f32.mrf.mxu1  ;;  %v9391_v1 = vunpack.c.l.b16 %v9344_v50  ;;  %v9733_v3 = vshrl.u32 %v9632_v43, 16  ;;  %v9736_v63 = vshll.u32 %v9632_v43, 16  ;;  %v9366_v39 = vrot.slane %v9364_v6, 7  ;;  %v11704_v29 = vld [vmem:[%s17114_s6 + $0x70] sm:$0xff] }
 0x9b3   : > { %v9380_v34 = vshll.u32 %v9279_v24, 16  ;;  %v9717_v57 = vsel %vm13761_vm2, %v9712_v25, %v9716_v41  ;;  %v9367_v31 = vshll.u32 %v9277_v56, 16  ;;  %v9719_v23 = vshrl.u32 %v9630_v32, 16  ;;  %v9820_v24 = vld [vmem:[#allocation3 + $0xf4] sm:$0xf]  ;;  %10142 = vmatpush.bf16.msrb.mxu3 %v11704_v29 }
 0x9b4   : > { %v9397_v4 = vpack.c.b16 %v9392_v55, %v9391_v1  ;;  %v9722_v9 = vshll.u32 %v9630_v32, 16  ;;  %v9703_v35 = vsel %vm13761_vm2, %v9698_v61, %v9702_v58  ;;  %v9735_v12 = vrot.slane %v9733_v3, 4  ;;  %v11703_v55 = vld [vmem:[%s17114_s6 + $0x68] sm:$0xff]  ;;  %v9819_v43 = vld [vmem:[#allocation3 + $0xf0] sm:$0x8] }
 0x9b5   : > { %v9382_v8 = vor.u32 %v9380_v34, %v9379_v53  ;;  %v9738_v40 = vrot.slane %v9736_v63, 5  ;;  %v9754_v51 = vunpack.c.l.b16 %v9717_v57  ;;  %v9369_v27 = vor.u32 %v9367_v31, %v9366_v39  ;;  %v9818_v56 = vld [vmem:[#allocation3 + $0xe8] sm:$0xf]  ;;  %v10172_v34 = vld [vmem:[#allocation3 + $0x154] sm:$0xf] }
 0x9b6   : > { %v16785_v33 = vpop.f32.mrf.mxu0  ;;  %v11332_v37 = vor.u32 %v11677_v42, %v11331_v18  ;;  %v9753_v7 = vunpack.c.l.b16 %v9703_v35  ;;  %v9724_v30 = vrot.slane %v9722_v9, 5  ;;  %v9742_v10 = vshll.u32 %v9633_v44, 16  ;;  %v11678_v35 = vld [vmem:[#allocation3 + $0x198] sm:$0xf0]  ;;  %v11429_v29 = vld [vmem:[#allocation3 + $0x10] sm:$0xf] }
 0x9b7   : > { %11341 = vmatmul.msk.bf16.vlgmr.msrb.gmra.mxu2 %vm1367_vm15, %v11324_v0  ;;  %v9758_v0 = vpack.c.b16 %v9752_v13, %v9751_v2  ;;  %v9721_v2 = vrot.slane %v9719_v23, 4  ;;  %v9739_v17 = vor.u32 %v9738_v40, %v9735_v12  ;;  %v9728_v1 = vshll.u32 %v9631_v14, 16 }
 0x9b8   : > { %v9759_v50 = vpack.c.b16 %v9754_v51, %v9753_v7  ;;  %v9852_v54 = vshrl.u32 %v9820_v24, 16  ;;  %10064 = vmatpush.bf16.msrb.mxu2 %v11703_v55  ;;  %v9744_v6 = vrot.slane %v9742_v10, 5  ;;  %v9847_v61 = vshrl.u32 %v9819_v43, 16 }
 0x9b9   : > { %11457 = vmatmul.msk.bf16.vlgmr.msrb.gmra.mxu0 %vm1367_vm15, %v9757_v46  ;;  %v11672_v46 = vld [vmem:[#allocation3 + $0x114] sm:$0xf0]  ;;  %v9725_v62 = vor.u32 %v9724_v30, %v9721_v2  ;;  %v9730_v53 = vrot.slane %v9728_v1, 5  ;;  %v9855_v39 = vshll.u32 %v9820_v24, 16  ;;  %v10189_v40 = vshrl.u32 %v10172_v34, 16 }
 0x9ba   : > { %v11358_v60 = vor.u32 %v11672_v46, %v11357_v19  ;;  %v16804_v11 = vpop.f32.mrf.mxu1  ;;  %v11673_v46 = vld [vmem:[#allocation3 + $0x12c] sm:$0xf0]  ;;  %v9740_v19 = vrot.slane %v9739_v17, 4  ;;  %v9854_v58 = vrot.slane %v9852_v54, 7  ;;  %v10192_v18 = vshll.u32 %v10172_v34, 16 }
 0x9bb   : > { %v11362_v25 = vor.u32 %v11673_v46, %v11361_v59  ;;  %v9824_v2 = vld [vmem:[#allocation3 + $0x10c] sm:$0xf]  ;;  %v10191_v10 = vrot.slane %v10189_v40, 4  ;;  %v9823_v1 = vld [vmem:[#allocation3 + $0x108] sm:$0x8] }
 0x9bc   : > { %v9745_v3 = vsel %vm13761_vm2, %v9740_v19, %v9744_v6  ;;  %v9857_v23 = vor.u32 %v9855_v39, %v9854_v58  ;;  %v10194_v24 = vrot.slane %v10192_v18, 5  ;;  %v11682_v54 = vld [vmem:[#allocation3 + $0x18] sm:$0xf0]  ;;  %v10176_v58 = vld [vmem:[#allocation3 + $0x16c] sm:$0xf] }
 0x9bd   : > { %11368 = vmatmul.msk.bf16.gmra.mxu3 %vm1367_vm15, %v11354_v48  ;;  %11396 = vmatmul.msk.bf16.gmra.mxu1 %vm1367_vm15, %v9396_v52  ;;  %v9276_v48 = vld [vmem:[#allocation3 + $0x54] sm:$0x8]  ;;  %v9372_v52 = vshrl.u32 %v9278_v22, 16  ;;  %v9756_v12 = vunpack.c.l.b16 %v9745_v3  ;;  %v10178_v3 = vld [vmem:[#allocation3 + $0x178] sm:$0xf] }
 0x9be   : > { %v16799_v26 = vpop.f32.mrf.mxu0  ;;  %v9359_v21 = vshrl.u32 %v9276_v48, 16  ;;  %v10174_v48 = vld [vmem:[#allocation3 + $0x160] sm:$0xf]  ;;  %v10195_v19 = vor.u32 %v10194_v24, %v10191_v10 }
 0x9bf   : > { %v11388_v36 = vrot.slane %v9372_v52, 11  ;;  %v9726_v52 = vrot.slane %v9725_v62, 4  ;;  %v10203_v57 = vshrl.u32 %v10174_v48, 16  ;;  %v10206_v31 = vshll.u32 %v10174_v48, 16 }
 0x9c0   : > { %v11387_v13 = vrot.slane %v9359_v21, 11 }
 0x9c1   : > { %v9731_v42 = vsel %vm13761_vm2, %v9726_v52, %v9730_v53  ;;  %v10208_v44 = vrot.slane %v10206_v31, 5  ;;  %v11430_v52 = vor.u32 %v11682_v54, %v11429_v29  ;;  %v11683_v29 = vld [vmem:[#allocation3 + $0x30] sm:$0xf0] }
 0x9c2   : > { %v9370_v16 = vsel %vm13962_vm6, %v11387_v13, %v9369_v27  ;;  %v16825_v15 = vpop.f32.mrf.mxu1  ;;  %v10205_v27 = vrot.slane %v10203_v57, 4  ;;  %v9755_v7 = vunpack.c.l.b16 %v9731_v42 }
 0x9c3   : > { %v9393_v22 = vunpack.c.l.b16 %v9370_v16 }
 0x9c4   : > { %v9760_v17 = vpack.c.b16 %v9756_v12, %v9755_v7  ;;  %v10209_v16 = vor.u32 %v10208_v44, %v10205_v27  ;;  %v10234_v12 = vshll.u32 %v10178_v3, 16 }
 0x9c6   : > { %v16812_v38 = vpop.f32.mrf.mxu0  ;;  %v10210_v59 = vrot.slane %v10209_v16, 4  ;;  %v10236_v10 = vrot.slane %v10234_v12, 5 }
 0x9c7   : > { %11342 = vmatmul.msk.bf16.gmra.mxu2 %vm1367_vm15, %v11328_v5  ;;  %v9383_v5 = vsel %vm13962_vm6, %v11388_v36, %v9382_v8  ;;  %v9842_v36 = vshll.u32 %v9818_v56, 16  ;;  %v11462_v8 = vrot.slane %v9847_v61, 11  ;;  %v9881_v61 = vshll.u32 %v9824_v2, 16 }
 0x9c8   : > { %v9394_v20 = vunpack.c.l.b16 %v9383_v5  ;;  %v10175_v5 = vld [vmem:[#allocation3 + $0x164] sm:$0x1] }
 0x9c9   : > { %11458 = vmatmul.msk.bf16.gmra.mxu0 %vm1367_vm15, %v9758_v0  ;;  %v11705_v0 = vld [vmem:[%s17114_s6 + $0x78] sm:$0xff]  ;;  %v9858_v14 = vsel %vm13962_vm6, %v11462_v8, %v9857_v23  ;;  %v10212_v55 = vshll.u32 %v10175_v5, 16  ;;  %v10217_v8 = vshrl.u32 %v10176_v58, 16  ;;  %v10220_v23 = vshll.u32 %v10176_v58, 16 }
 0x9ca   : > { %10340 = vmatpush.bf16.msra.mxu0 %v11705_v0  ;;  %v9398_v41 = vpack.c.b16 %v9394_v20, %v9393_v22  ;;  %v16839_v9 = vpop.f32.mrf.mxu1  ;;  %v9822_v20 = vld [vmem:[#allocation3 + $0x100] sm:$0xf]  ;;  %v9941_v62 = vunpack.c.l.b16 %v9858_v14 }
 0x9cb   : > { %v9865_v43 = vshrl.u32 %v9822_v20, 16  ;;  %v9868_v31 = vshll.u32 %v9822_v20, 16  ;;  %v10222_v14 = vrot.slane %v10220_v23, 5  ;;  %v9826_v20 = vld [vmem:[#allocation3 + $0x118] sm:$0xf] }
 0x9cd   : > { %11369 = vmatmul.msk.bf16.gmra.mxu3 %vm1367_vm15, %v11358_v60  ;;  %11397 = vmatmul.msk.bf16.gmra.mxu1 %vm1367_vm15, %v9397_v4  ;;  %v9817_v60 = vld [vmem:[#allocation3 + $0xe4] sm:$0x8]  ;;  %v9839_v4 = vshrl.u32 %v9818_v56, 16  ;;  %v9878_v56 = vshrl.u32 %v9824_v2, 16  ;;  %v9867_v34 = vrot.slane %v9865_v43, 7 }
 0x9ce   : > { %v16831_v32 = vpop.f32.mrf.mxu0  ;;  %v9834_v63 = vshrl.u32 %v9817_v60, 16  ;;  %v10214_v60 = vrot.slane %v10212_v55, 5  ;;  %v10177_v2 = vld [vmem:[#allocation3 + $0x170] sm:$0x1] }
 0x9cf   : > { %v9841_v21 = vrot.slane %v9839_v4, 7  ;;  %v9821_v4 = vld [vmem:[#allocation3 + $0xfc] sm:$0x8]  ;;  %v9870_v44 = vor.u32 %v9868_v31, %v9867_v34  ;;  %v10226_v54 = vshll.u32 %v10177_v2, 16 }
 0x9d0   : > { %v11461_v51 = vrot.slane %v9834_v63, 11  ;;  %v10196_v63 = vrot.slane %v10195_v19, 4  ;;  %v9860_v39 = vshrl.u32 %v9821_v4, 16  ;;  %v10215_v57 = vsel %vm13761_vm2, %v10210_v59, %v10214_v60  ;;  %v9825_v60 = vld [vmem:[#allocation3 + $0x114] sm:$0x8] }
 0x9d1   : > { %v9844_v13 = vor.u32 %v9842_v36, %v9841_v21  ;;  %v10304_v7 = vunpack.c.l.b16 %v10215_v57  ;;  %v9891_v4 = vshrl.u32 %v9826_v20, 16 }
 0x9d2   : > { %v16849_v48 = vpop.f32.mrf.mxu1  ;;  %v11463_v27 = vrot.slane %v9860_v39, 11 }
 0x9d3   : > { %v9845_v0 = vsel %vm13962_vm6, %v11461_v51, %v9844_v13  ;;  %v11687_v51 = vld [vmem:[#allocation3 + $0x84] sm:$0xf0] }
 0x9d4   : > { %v9940_v22 = vunpack.c.l.b16 %v9845_v0  ;;  %v9871_v55 = vsel %vm13962_vm6, %v11463_v27, %v9870_v44  ;;  %v10180_v27 = vld [vmem:[#allocation3 + $0x184] sm:$0xf] }
 0x9d5   : > { %v9942_v59 = vunpack.c.l.b16 %v9871_v55 }
 0x9d6   : > { %v16846_v46 = vpop.f32.mrf.mxu0  ;;  %v9948_v53 = vpack.c.b16 %v9941_v62, %v9940_v22 }
 0x9d7   : > { %11343 = vmatmul.msk.bf16.gmra.mxu2 %vm1367_vm15, %v11332_v37  ;;  %v11335_v37 = vld [vmem:[#allocation3 + $0x190] sm:$0xf] }
 0x9d8   : > { %v11336_v30 = vor.u32 %v11678_v35, %v11335_v37  ;;  %v10231_v35 = vshrl.u32 %v10178_v3, 16  ;;  %v11403_v37 = vld [vmem:[#allocation3 + $0x7c] sm:$0xf] }
 0x9d9   : > { %11459 = vmatmul.msk.bf16.gmra.mxu0 %vm1367_vm15, %v9759_v50  ;;  %v10173_v50 = vld [vmem:[#allocation3 + $0x158] sm:$0x1]  ;;  %v11404_v24 = vor.u32 %v11687_v51, %v11403_v37  ;;  %v9894_v51 = vshll.u32 %v9826_v20, 16 }
 0x9da   : > { %v10198_v6 = vshll.u32 %v10173_v50, 16  ;;  %v10179_v50 = vld [vmem:[#allocation3 + $0x17c] sm:$0x1]  ;;  %v16861_v16 = vpop.f32.mrf.mxu1 }
 0x9dc   : > { %v10200_v21 = vrot.slane %v10198_v6, 5  ;;  %v10240_v6 = vshll.u32 %v10179_v50, 16  ;;  %v10248_v50 = vshll.u32 %v10180_v27, 16 }
 0x9dd   : > { %11370 = vmatmul.msk.bf16.gmra.mxu3 %vm1367_vm15, %v11362_v25  ;;  %11398 = vmatmul.msk.bf16.gmra.mxu1 %vm1367_vm15, %v9398_v41  ;;  %v9873_v25 = vshrl.u32 %v9823_v1, 16  ;;  %v9880_v41 = vrot.slane %v9878_v56, 7  ;;  %v9828_v56 = vld [vmem:[#allocation3 + $0x124] sm:$0xf] }
 0x9de   : > { %v16855_v18 = vpop.f32.mrf.mxu0  ;;  %v10201_v13 = vsel %vm13761_vm2, %v10196_v63, %v10200_v21  ;;  %v10228_v63 = vrot.slane %v10226_v54, 5  ;;  %v10182_v21 = vld [vmem:[#allocation3 + $0x190] sm:$0xf]  ;;  %v10242_v31 = vrot.slane %v10240_v6, 5 }
 0x9df   : > { %v11464_v42 = vrot.slane %v9873_v25, 11  ;;  %v9883_v36 = vor.u32 %v9881_v61, %v9880_v41  ;;  %v10303_v0 = vunpack.c.l.b16 %v10201_v13  ;;  %v9904_v25 = vshrl.u32 %v9828_v56, 16 }
 0x9e0   : > { %v10262_v12 = vshll.u32 %v10182_v21, 16  ;;  %v9907_v13 = vshll.u32 %v9828_v56, 16 }
 0x9e1   : > { %v9884_v5 = vsel %vm13962_vm6, %v11464_v42, %v9883_v36  ;;  %v10311_v62 = vpack.c.b16 %v10304_v7, %v10303_v0  ;;  %v9886_v42 = vshrl.u32 %v9825_v60, 16  ;;  %v10245_v0 = vshrl.u32 %v10180_v27, 16 }
 0x9e2   : > { %v9943_v1 = vunpack.c.l.b16 %v9884_v5  ;;  %v16874_v44 = vpop.f32.mrf.mxu1  ;;  %v11688_v5 = vld [vmem:[#allocation3 + $0x9c] sm:$0xf0]  ;;  %v10264_v20 = vrot.slane %v10262_v12, 5 }
 0x9e3   : > { %v11465_v2 = vrot.slane %v9886_v42, 11 }
 0x9e4   : > { %v9949_v3 = vpack.c.b16 %v9943_v1, %v9942_v59 }
 0x9e6   : > { %v16868_v39 = vpop.f32.mrf.mxu0 }
 0x9e7   : > { %11344 = vmatmul.msk.bf16.gmra.mxu2 %vm1367_vm15, %v11336_v30  ;;  %v10219_v30 = vrot.slane %v10217_v8, 4  ;;  %v9893_v8 = vrot.slane %v9891_v4, 7 }
 0x9e9   : > { %11460 = vmatmul.msk.bf16.gmra.mxu0 %vm1367_vm15, %v9760_v17  ;;  %v10233_v17 = vrot.slane %v10231_v35, 4  ;;  %v10223_v22 = vor.u32 %v10222_v14, %v10219_v30  ;;  %v9906_v35 = vrot.slane %v9904_v25, 7  ;;  %v9896_v30 = vor.u32 %v9894_v51, %v9893_v8 }
 0x9eb   : > { %v10237_v19 = vor.u32 %v10236_v10, %v10233_v17  ;;  %v10224_v34 = vrot.slane %v10223_v22, 4  ;;  %v9909_v17 = vor.u32 %v9907_v13, %v9906_v35  ;;  %v9832_v22 = vld [vmem:[#allocation3 + $0x13c] sm:$0xf]  ;;  %v9897_v25 = vsel %vm13962_vm6, %v11465_v2, %v9896_v30 }
 0x9ec   : > { %v9933_v2 = vshll.u32 %v9832_v22, 16 }
 0x9ed   : > { %11447 = vmatmul.msk.bf16.vlgmr.msra.gmra.mxu3 %vm1367_vm15, %v11430_v52  ;;  %11475 = vmatmul.msk.bf16.vlgmr.msra.gmra.mxu1 %vm1367_vm15, %v9948_v53  ;;  %v11433_v52 = vld [vmem:[#allocation3 + $0x28] sm:$0xf]  ;;  %v9827_v53 = vld [vmem:[#allocation3 + $0x120] sm:$0x8]  ;;  %v10238_v57 = vrot.slane %v10237_v19, 4  ;;  %v10229_v37 = vsel %vm13761_vm2, %v10224_v34, %v10228_v63  ;;  %v9930_v63 = vshrl.u32 %v9832_v22, 16 }
 0x9ee   : > { %v11434_v58 = vor.u32 %v11683_v29, %v11433_v52  ;;  %v9899_v23 = vshrl.u32 %v9827_v53, 16  ;;  %v9830_v29 = vld [vmem:[#allocation3 + $0x130] sm:$0xf]  ;;  %v10305_v6 = vunpack.c.l.b16 %v10229_v37  ;;  %v16885_v4 = vpop.f32.mrf.mxu0  ;;  %v10247_v52 = vrot.slane %v10245_v0, 4  ;;  %v11437_v37 = vld [vmem:[#allocation3 + $0x40] sm:$0xf] }
 0x9ef   : > { %v10186_v0 = vld [vmem:[#allocation3 + $0x1a8] sm:$0xf] }
 0x9f0   : > { %v8486_v40 = vpop.f32.mrf.mxu3  ;;  %v11466_v14 = vrot.slane %v9899_v23, 11  ;;  %v16891_v23 = vpop.f32.mrf.mxu1 }
 0x9f2   : > { %v9910_v59 = vsel %vm13962_vm6, %v11466_v14, %v9909_v17 }
 0x9f7   : > { %11421 = vmatmul.msk.bf16.vlgmr.msra.gmra.mxu2 %vm1367_vm15, %v11404_v24  ;;  %v10183_v24 = vld [vmem:[#allocation3 + $0x194] sm:$0x1] }
 0x9f8   : > { %v8488_v43 = vpop.f32.mrf.mxu3  ;;  %v10268_v60 = vshll.u32 %v10183_v24, 16  ;;  %v10184_v24 = vld [vmem:[#allocation3 + $0x19c] sm:$0xf] }
 0x9f9   : > { %11537 = vmatmul.msk.bf16.vlgmr.msra.gmra.mxu0 %vm1367_vm15, %v10311_v62  ;;  %v11407_v62 = vld [vmem:[#allocation3 + $0x94] sm:$0xf]  ;;  %v10276_v22 = vshll.u32 %v10184_v24, 16 }
 0x9fa   : > { %v8416_v41 = vpop.f32.mrf.mxu2  ;;  %v11408_v54 = vor.u32 %v11688_v5, %v11407_v62  ;;  %v10270_v8 = vrot.slane %v10268_v60, 5  ;;  %v9932_v5 = vrot.slane %v9930_v63, 7 }
 0x9fb   : > { %v8417_v61 = vadd.f32 %v8416_v41, %v16781_v28  ;;  %v10259_v28 = vshrl.u32 %v10182_v21, 16  ;;  %v10181_v41 = vld [vmem:[#allocation3 + $0x188] sm:$0x1]  ;;  %v9945_v21 = vunpack.c.l.b16 %v9910_v59  ;;  %v10278_v63 = vrot.slane %v10276_v22, 5  ;;  %v11690_v22 = vld [vmem:[#allocation3 + $0xcc] sm:$0xf0] }
 0x9fc   : > { %v10254_v42 = vshll.u32 %v10181_v41, 16 }
 0x9fd   : > { %v16870_v36 = vadd.f32 %v8486_v40, %v8417_v61  ;;  %11448 = vmatmul.msk.bf16.gmra.mxu3 %vm1367_vm15, %v11434_v58  ;;  %11476 = vmatmul.msk.bf16.gmra.mxu1 %vm1367_vm15, %v9949_v3  ;;  %v10243_v40 = vsel %vm13761_vm2, %v10238_v57, %v10242_v31  ;;  %v10261_v55 = vrot.slane %v10259_v28, 4  ;;  %v9829_v58 = vld [vmem:[#allocation3 + $0x12c] sm:$0x8]  ;;  %v9917_v3 = vshrl.u32 %v9830_v29, 16 }
 0x9fe   : > { %v10306_v1 = vunpack.c.l.b16 %v10243_v40  ;;  %v11684_v57 = vld [vmem:[#allocation3 + $0x48] sm:$0xf0]  ;;  %v9944_v31 = vunpack.c.l.b16 %v9897_v25  ;;  %v9912_v51 = vshrl.u32 %v9829_v58, 16  ;;  %v11689_v25 = vld [vmem:[#allocation3 + $0xb4] sm:$0xf0]  ;;  %v8876_v58 = vpop.f32.mrf.mxu1 }
 0x9ff   : > { %v10265_v53 = vor.u32 %v10264_v20, %v10261_v55  ;;  %v9919_v40 = vrot.slane %v9917_v3, 7  ;;  %v11438_v30 = vor.u32 %v11684_v57, %v11437_v37  ;;  %v10256_v55 = vrot.slane %v10254_v42, 5 }
 0xa00   : > { %v8491_v7 = vpop.f32.mrf.mxu3  ;;  %v10312_v61 = vpack.c.b16 %v10306_v1, %v10305_v6  ;;  %v9950_v14 = vpack.c.b16 %v9945_v21, %v9944_v31  ;;  %v11467_v20 = vrot.slane %v9912_v51, 11  ;;  %v9935_v1 = vor.u32 %v9933_v2, %v9932_v5 }
 0xa01   : > { %v10266_v12 = vrot.slane %v10265_v53, 4  ;;  %v10290_v6 = vshll.u32 %v10186_v0, 16 }
 0xa02   : > { %v8418_v10 = vpop.f32.mrf.mxu2 }
 0xa03   : > { %v8419_v56 = vadd.f32 %v8418_v10, %v16791_v47  ;;  %v10250_v47 = vrot.slane %v10248_v50, 5  ;;  %v9920_v10 = vshll.u32 %v9830_v29, 16  ;;  %v10287_v29 = vshrl.u32 %v10186_v0, 16 }
 0xa04   : > { %v10292_v57 = vrot.slane %v10290_v6, 5 }
 0xa05   : > { %v16881_v19 = vadd.f32 %v8488_v43, %v8419_v56  ;;  %v9831_v43 = vld [vmem:[#allocation3 + $0x138] sm:$0x8]  ;;  %v10251_v28 = vor.u32 %v10250_v47, %v10247_v52  ;;  %v9922_v56 = vor.u32 %v9920_v10, %v9919_v40  ;;  %v10289_v21 = vrot.slane %v10287_v29, 4 }
 0xa06   : > { %v9925_v13 = vshrl.u32 %v9831_v43, 16  ;;  %v11411_v43 = vld [vmem:[#allocation3 + $0xac] sm:$0xf] }
 0xa07   : > { %11422 = vmatmul.msk.bf16.gmra.mxu2 %vm1367_vm15, %v11408_v54  ;;  %v10252_v50 = vrot.slane %v10251_v28, 4  ;;  %v16900_v54 = vpop.f32.mrf.mxu0  ;;  %v9923_v53 = vsel %vm13962_vm6, %v11467_v20, %v9922_v56  ;;  %v11412_v42 = vor.u32 %v11689_v25, %v11411_v43  ;;  %v10187_v28 = vld [vmem:[#allocation3 + $0x1ac] sm:$0x1]  ;;  %v10293_v37 = vor.u32 %v10292_v57, %v10289_v21 }
 0xa08   : > { %v8493_v34 = vpop.f32.mrf.mxu3  ;;  %v11468_v62 = vrot.slane %v9925_v13, 11  ;;  %v11685_v13 = vld [vmem:[#allocation3 + $0x60] sm:$0xf0]  ;;  %v10296_v40 = vshll.u32 %v10187_v28, 16 }
 0xa09   : > { %11538 = vmatmul.msk.bf16.gmra.mxu0 %vm1367_vm15, %v10312_v61  ;;  %v10257_v41 = vsel %vm13761_vm2, %v10252_v50, %v10256_v55 }
 0xa0a   : > { %v8421_v35 = vpop.f32.mrf.mxu2  ;;  %v9936_v61 = vsel %vm13962_vm6, %v11468_v62, %v9935_v1  ;;  %v10298_v56 = vrot.slane %v10296_v40, 5  ;;  %v8879_v1 = vpop.f32.mrf.mxu1 }
 0xa0b   : > { %v8422_v27 = vadd.f32 %v8421_v35, %v16804_v11  ;;  %v10271_v11 = vsel %vm13761_vm2, %v10266_v12, %v10270_v8  ;;  %v10307_v8 = vunpack.c.l.b16 %v10257_v41  ;;  %v10185_v35 = vld [vmem:[#allocation3 + $0x1a0] sm:$0x1]  ;;  %v9946_v12 = vunpack.c.l.b16 %v9923_v53  ;;  %v11415_v41 = vld [vmem:[#allocation3 + $0xc4] sm:$0xf] }
 0xa0c   : > { %v10308_v47 = vunpack.c.l.b16 %v10271_v11  ;;  %v9947_v51 = vunpack.c.l.b16 %v9936_v61  ;;  %v10282_v49 = vshll.u32 %v10185_v35, 16  ;;  %v10294_v11 = vrot.slane %v10293_v37, 4 }
 0xa0d   : > { %v16894_v17 = vadd.f32 %v8491_v7, %v8422_v27  ;;  %11449 = vmatmul.msk.bf16.gmra.mxu3 %vm1367_vm15, %v11438_v30  ;;  %11477 = vmatmul.msk.bf16.gmra.mxu1 %vm1367_vm15, %v9950_v14  ;;  %v10273_v7 = vshrl.u32 %v10184_v24, 16  ;;  %v11441_v14 = vld [vmem:[#allocation3 + $0x58] sm:$0xf] }
 0xa0e   : > { %v11442_v24 = vor.u32 %v11685_v13, %v11441_v14  ;;  %v9951_v0 = vpack.c.b16 %v9947_v51, %v9946_v12  ;;  %v10284_v20 = vrot.slane %v10282_v49, 5  ;;  %v11695_v49 = vld [vmem:[#allocation3 + $0x108] sm:$0xf0] }
 0xa0f   : > { %v10275_v3 = vrot.slane %v10273_v7, 4  ;;  %v16913_v2 = vpop.f32.mrf.mxu0 }
 0xa10   : > { %v8496_v59 = vpop.f32.mrf.mxu3 }
 0xa11   : > { %v10279_v27 = vor.u32 %v10278_v63, %v10275_v3 }
 0xa12   : > { %v8423_v60 = vpop.f32.mrf.mxu2  ;;  %v8881_v53 = vpop.f32.mrf.mxu1 }
 0xa13   : > { %v8424_v52 = vadd.f32 %v8423_v60, %v16825_v15  ;;  %v10313_v15 = vpack.c.b16 %v10308_v47, %v10307_v8  ;;  %v10280_v55 = vrot.slane %v10279_v27, 4  ;;  %v11416_v47 = vor.u32 %v11690_v22, %v11415_v41 }
 0xa15   : > { %v8509_v31 = vadd.f32 %v8493_v34, %v8424_v52  ;;  %v8704_v34 = vadd.f32 %v16785_v33, %v16870_v36  ;;  %v10285_v33 = vsel %vm13761_vm2, %v10280_v55, %v10284_v20  ;;  %v11700_v55 = vld [vmem:[#allocation3 + $0x174] sm:$0xf0] }
 0xa16   : > { %v10309_v6 = vunpack.c.l.b16 %v10285_v33  ;;  %v11696_v33 = vld [vmem:[#allocation3 + $0x120] sm:$0xf0] }
 0xa17   : > { %11423 = vmatmul.msk.bf16.gmra.mxu2 %vm1367_vm15, %v11412_v42  ;;  %v8894_v50 = vadd.f32 %v16891_v23, %v8704_v34  ;;  %v8705_v23 = vadd.f32 %v16799_v26, %v16881_v19  ;;  %v16926_v25 = vpop.f32.mrf.mxu0  ;;  %v11694_v26 = vld [vmem:[#allocation3 + $0xf0] sm:$0xf0]  ;;  %v8706_v19 = vadd.f32 %v16812_v38, %v16894_v17  ;;  %v8707_v8 = vadd.f32 %v16831_v32, %v8509_v31  ;;  %v11513_v32 = vld [vmem:[#allocation3 + $0x100] sm:$0xf] }
 0xa18   : > { %v8498_v5 = vpop.f32.mrf.mxu3  ;;  %v11483_v17 = vld [vmem:[#allocation3 + $0x154] sm:$0xf] }
 0xa19   : > { %11539 = vmatmul.msk.bf16.gmra.mxu0 %vm1367_vm15, %v10313_v15  ;;  %v8895_v60 = vadd.f32 %v8876_v58, %v8705_v23  ;;  %v11509_v58 = vld [vmem:[#allocation3 + $0xe8] sm:$0xf]  ;;  %v8896_v3 = vadd.f32 %v8879_v1, %v8706_v19  ;;  %v11699_v15 = vld [vmem:[#allocation3 + $0x15c] sm:$0xf0]  ;;  %v8897_v38 = vadd.f32 %v8881_v53, %v8707_v8 }
 0xa1a   : > { %v8426_v30 = vpop.f32.mrf.mxu2  ;;  %v11510_v63 = vor.u32 %v11694_v26, %v11509_v58  ;;  %v8884_v35 = vpop.f32.mrf.mxu1  ;;  %v11697_v58 = vld [vmem:[#allocation3 + $0x138] sm:$0xf0] }
 0xa1b   : > { %v8427_v10 = vadd.f32 %v8426_v30, %v16839_v9  ;;  %v10299_v9 = vsel %vm13761_vm2, %v10294_v11, %v10298_v56  ;;  %v11514_v30 = vor.u32 %v11695_v49, %v11513_v32 }
 0xa1d   : > { %v8510_v62 = vadd.f32 %v8496_v59, %v8427_v10  ;;  %11450 = vmatmul.msk.bf16.gmra.mxu3 %vm1367_vm15, %v11442_v24  ;;  %11478 = vmatmul.msk.bf16.gmra.mxu1 %vm1367_vm15, %v9951_v0  ;;  %v10310_v59 = vunpack.c.l.b16 %v10299_v9 }
 0xa1f   : > { %v10314_v45 = vpack.c.b16 %v10310_v59, %v10309_v6  ;;  %v16933_v57 = vpop.f32.mrf.mxu0  ;;  %v8708_v37 = vadd.f32 %v16846_v46, %v8510_v62  ;;  %v11487_v46 = vld [vmem:[#allocation3 + $0x16c] sm:$0xf] }
 0xa20   : > { %v8501_v36 = vpop.f32.mrf.mxu3 }
 0xa21   : > { %v8898_v31 = vadd.f32 %v8884_v35, %v8708_v37 }
 0xa22   : > { %v8428_v7 = vpop.f32.mrf.mxu2  ;;  %v8886_v34 = vpop.f32.mrf.mxu1 }
 0xa23   : > { %v8429_v29 = vadd.f32 %v8428_v7, %v16849_v48 }
 0xa25   : > { %v8511_v52 = vadd.f32 %v8498_v5, %v8429_v29 }
 0xa27   : > { %11424 = vmatmul.msk.bf16.gmra.mxu2 %vm1367_vm15, %v11416_v47  ;;  %v16939_v13 = vpop.f32.mrf.mxu0  ;;  %v8709_v10 = vadd.f32 %v16855_v18, %v8511_v52  ;;  %v11517_v18 = vld [vmem:[#allocation3 + $0x118] sm:$0xf]  ;;  %v11701_v47 = vld [vmem:[#allocation3 + $0x18c] sm:$0xf0] }
 0xa28   : > { %v8503_v61 = vpop.f32.mrf.mxu3  ;;  %v11518_v29 = vor.u32 %v11696_v33, %v11517_v18 }
 0xa29   : > { %11540 = vmatmul.msk.bf16.gmra.mxu0 %vm1367_vm15, %v10314_v45  ;;  %v8899_v11 = vadd.f32 %v8886_v34, %v8709_v10 }
 0xa2a   : > { %v8431_v48 = vpop.f32.mrf.mxu2  ;;  %v8889_v62 = vpop.f32.mrf.mxu1 }
 0xa2b   : > { %v8432_v43 = vadd.f32 %v8431_v48, %v16861_v16  ;;  %v11484_v16 = vor.u32 %v11699_v15, %v11483_v17  ;;  %v11495_v15 = vld [vmem:[#allocation3 + $0x19c] sm:$0xf] }
 0xa2d   : > { %v8512_v21 = vadd.f32 %v8501_v36, %v8432_v43  ;;  %11527 = vmatmul.msk.bf16.vlgmr.msrb.gmra.mxu3 %vm1367_vm15, %v11510_v63  ;;  %v11521_v43 = vld [vmem:[#allocation3 + $0x130] sm:$0xf] }
 0xa2f   : > { %v16946_v24 = vpop.f32.mrf.mxu0  ;;  %v8710_v9 = vadd.f32 %v16868_v39, %v8512_v21  ;;  %v11491_v39 = vld [vmem:[#allocation3 + $0x184] sm:$0xf] }
 0xa30   : > { %v9038_v42 = vpop.f32.mrf.mxu3  ;;  %v11492_v26 = vor.u32 %v11701_v47, %v11491_v39 }
 0xa31   : > { %v8900_v7 = vadd.f32 %v8889_v62, %v8710_v9 }
 0xa32   : > { %v8433_v28 = vpop.f32.mrf.mxu2  ;;  %v8891_v59 = vpop.f32.mrf.mxu1 }
 0xa33   : > { %v8434_v12 = vadd.f32 %v8433_v28, %v16874_v44 }
 0xa35   : > { %v8513_v51 = vadd.f32 %v8503_v61, %v8434_v12  ;;  %v11702_v12 = vld [vmem:[#allocation3 + $0x1a4] sm:$0xf0] }
 0xa37   : > { %11501 = vmatmul.msk.bf16.vlgmr.msrb.gmra.mxu2 %vm1367_vm15, %v11484_v16  ;;  %v16952_v22 = vpop.f32.mrf.mxu0  ;;  %v8711_v41 = vadd.f32 %v16885_v4, %v8513_v51  ;;  %v11496_v16 = vor.u32 %v11702_v12, %v11495_v15 }
 0xa38   : > { %v9040_v27 = vpop.f32.mrf.mxu3 }
 0xa39   : > { %v8901_v53 = vadd.f32 %v8891_v59, %v8711_v41 }
 0xa3a   : > { %v8960_v40 = vpop.f32.mrf.mxu2 }
 0xa3b   : > { %v8980_v5 = vadd.f32 %v8960_v40, %v8894_v50  ;;  %v11488_v50 = vor.u32 %v11700_v55, %v11487_v46 }
 0xa3d   : > { %v16942_v14 = vadd.f32 %v9038_v42, %v8980_v5  ;;  %11528 = vmatmul.msk.bf16.gmra.mxu3 %vm1367_vm15, %v11514_v30  ;;  %v11522_v42 = vor.u32 %v11697_v58, %v11521_v43 }
 0xa3f   : > { %v16960_v19 = vpop.f32.mrf.mxu0  ;;  %v9256_v39 = vadd.f32 %v16900_v54, %v16942_v14 }
 0xa40   : > { %v9043_v44 = vpop.f32.mrf.mxu3 }
 0xa42   : > { %v8962_v0 = vpop.f32.mrf.mxu2 }
 0xa43   : > { %v8981_v20 = vadd.f32 %v8962_v0, %v8895_v60 }
 0xa45   : > { %v16948_v56 = vadd.f32 %v9040_v27, %v8981_v20 }
 0xa47   : > { %11502 = vmatmul.msk.bf16.gmra.mxu2 %vm1367_vm15, %v11488_v50  ;;  %v9788_v8 = vpop.f32.mrf.mxu0 }
 0xa48   : > { %v9045_v1 = vpop.f32.mrf.mxu3 }
 0xa4a   : > { %v8965_v36 = vpop.f32.mrf.mxu2 }
 0xa4b   : > { %v8982_v23 = vadd.f32 %v8965_v36, %v8896_v3  ;;  %v9426_v3 = vpop.f32.mrf.mxu1 }
 0xa4c   : > { %v9446_v58 = vadd.f32 %v9426_v3, %v9256_v39 }
 0xa4d   : > { %v16954_v6 = vadd.f32 %v9043_v44, %v8982_v23  ;;  %11529 = vmatmul.msk.bf16.gmra.mxu3 %vm1367_vm15, %v11518_v29 }
 0xa4f   : > { %v9790_v49 = vpop.f32.mrf.mxu0 }
 0xa50   : > { %v9048_v60 = vpop.f32.mrf.mxu3 }
 0xa52   : > { %v8967_v52 = vpop.f32.mrf.mxu2 }
 0xa53   : > { %v8983_v45 = vadd.f32 %v8967_v52, %v8897_v38  ;;  %v9428_v17 = vpop.f32.mrf.mxu1 }
 0xa55   : > { %v16958_v61 = vadd.f32 %v9045_v1, %v8983_v45 }
 0xa57   : > { %11503 = vmatmul.msk.bf16.gmra.mxu2 %vm1367_vm15, %v11492_v26  ;;  %v16971_v44 = vpop.f32.mrf.mxu0 }
 0xa58   : > { %v9050_v48 = vpop.f32.mrf.mxu3 }
 0xa5a   : > { %v8970_v63 = vpop.f32.mrf.mxu2 }
 0xa5b   : > { %v8984_v21 = vadd.f32 %v8970_v63, %v8898_v31  ;;  %v9431_v32 = vpop.f32.mrf.mxu1 }
 0xa5d   : > { %v16963_v4 = vadd.f32 %v9048_v60, %v8984_v21  ;;  %11530 = vmatmul.msk.bf16.gmra.mxu3 %vm1367_vm15, %v11522_v42  ;;  %v9257_v21 = vadd.f32 %v16913_v2, %v16948_v56 }
 0xa5f   : > { %v9447_v12 = vadd.f32 %v9428_v17, %v9257_v21  ;;  %v17019_v17 = vld [vmem:[%s17115_s7 + $0x7] ss:$0 sm:$0xff] }
 0xa60   : > { %v9053_v35 = vpop.f32.mrf.mxu3 }
 0xa62   : > { %v8972_v28 = vpop.f32.mrf.mxu2 }
 0xa63   : > { %v8985_v38 = vadd.f32 %v8972_v28, %v8899_v11  ;;  %v9433_v0 = vpop.f32.mrf.mxu1  ;;  %v16975_v11 = vpop.f32.mrf.mxu0 }
 0xa65   : > { %v16966_v51 = vadd.f32 %v9050_v48, %v8985_v38 }
 0xa67   : > { %11504 = vmatmul.msk.bf16.gmra.mxu2 %vm1367_vm15, %v11496_v16  ;;  %v9258_v16 = vadd.f32 %v16926_v25, %v16954_v6  ;;  %v9259_v25 = vadd.f32 %v16933_v57, %v16958_v61  ;;  %v9260_v61 = vadd.f32 %v16939_v13, %v16963_v4  ;;  %v9261_v13 = vadd.f32 %v16946_v24, %v16966_v51 }
 0xa68   : > { %v9055_v27 = vpop.f32.mrf.mxu3 }
 0xa69   : > { %v9448_v2 = vadd.f32 %v9431_v32, %v9258_v16 }
 0xa6a   : > { %v8975_v37 = vpop.f32.mrf.mxu2 }
 0xa6b   : > { %v8986_v40 = vadd.f32 %v8975_v37, %v8900_v7  ;;  %v16977_v50 = vpop.f32.mrf.mxu1  ;;  %v16979_v1 = vpop.f32.mrf.mxu0 }
 0xa6d   : > { %v16969_v5 = vadd.f32 %v9053_v35, %v8986_v40 }
 0xa6f   : > { %v9262_v51 = vadd.f32 %v16952_v22, %v16969_v5 }
 0xa70   : > { %v9590_v31 = vpop.f32.mrf.mxu3 }
 0xa72   : > { %v8977_v34 = vpop.f32.mrf.mxu2 }
 0xa73   : > { %v8987_v30 = vadd.f32 %v8977_v34, %v8901_v53  ;;  %v16981_v36 = vpop.f32.mrf.mxu1  ;;  %v16985_v18 = vpop.f32.mrf.mxu0 }
 0xa75   : > { %v16973_v10 = vadd.f32 %v9055_v27, %v8987_v30 }
 0xa77   : > { %v9263_v5 = vadd.f32 %v16960_v19, %v16973_v10 }
 0xa78   : > { %v9592_v55 = vpop.f32.mrf.mxu3 }
 0xa7a   : > { %v9512_v20 = vpop.f32.mrf.mxu2 }
 0xa7b   : > { %v16987_v29 = vpop.f32.mrf.mxu1  ;;  %v16991_v41 = vpop.f32.mrf.mxu0  ;;  %v9532_v63 = vadd.f32 %v9512_v20, %v9446_v58 }
 0xa7d   : > { %v9610_v35 = vadd.f32 %v9590_v31, %v9532_v63 }
 0xa7f   : > { %v9808_v14 = vadd.f32 %v9788_v8, %v9610_v35 }
 0xa80   : > { %v9595_v46 = vpop.f32.mrf.mxu3 }
 0xa82   : > { %v9514_v62 = vpop.f32.mrf.mxu2 }
 0xa83   : > { %v16993_v52 = vpop.f32.mrf.mxu1  ;;  %v16999_v53 = vpop.f32.mrf.mxu0  ;;  %v9533_v54 = vadd.f32 %v9514_v62, %v9447_v12 }
 0xa85   : > { %v9611_v27 = vadd.f32 %v9592_v55, %v9533_v54 }
 0xa87   : > { %v9809_v8 = vadd.f32 %v9790_v49, %v9611_v27 }
 0xa88   : > { %v9597_v33 = vpop.f32.mrf.mxu3 }
 0xa8a   : > { %v9517_v9 = vpop.f32.mrf.mxu2 }
 0xa8b   : > { %v9979_v48 = vpop.f32.mrf.mxu1  ;;  %v10342_v42 = vpop.f32.mrf.mxu0  ;;  %v9534_v31 = vadd.f32 %v9517_v9, %v9448_v2 }
 0xa8c   : > { %v9999_v37 = vadd.f32 %v9979_v48, %v9808_v14  ;;  %v9449_v48 = vadd.f32 %v9433_v0, %v9259_v25  ;;  %v9452_v25 = vadd.f32 %v16987_v29, %v9262_v51 }
 0xa8d   : > { %v9612_v55 = vadd.f32 %v9595_v46, %v9534_v31 }
 0xa8f   : > { %v9810_v57 = vadd.f32 %v16971_v44, %v9612_v55 }
 0xa90   : > { %v16983_v23 = vpop.f32.mrf.mxu3 }
 0xa92   : > { %v9519_v7 = vpop.f32.mrf.mxu2 }
 0xa93   : > { %v9981_v38 = vpop.f32.mrf.mxu1  ;;  %v10344_v40 = vpop.f32.mrf.mxu0  ;;  %v9535_v63 = vadd.f32 %v9519_v7, %v9449_v48 }
 0xa94   : > { %v10000_v32 = vadd.f32 %v9981_v38, %v9809_v8  ;;  %v9450_v38 = vadd.f32 %v16977_v50, %v9260_v61 }
 0xa95   : > { %v9613_v35 = vadd.f32 %v9597_v33, %v9535_v63 }
 0xa97   : > { %v9811_v44 = vadd.f32 %v16975_v11, %v9613_v35 }
 0xa98   : > { %v16989_v59 = vpop.f32.mrf.mxu3 }
 0xa9a   : > { %v9522_v60 = vpop.f32.mrf.mxu2 }
 0xa9b   : > { %v9984_v20 = vpop.f32.mrf.mxu1  ;;  %v10347_v49 = vpop.f32.mrf.mxu0  ;;  %v9536_v14 = vadd.f32 %v9522_v60, %v9450_v38 }
 0xa9d   : > { %v9614_v33 = vadd.f32 %v16983_v23, %v9536_v14 }
 0xaa0   : > { %v16995_v47 = vpop.f32.mrf.mxu3 }
 0xaa2   : > { %v16997_v45 = vpop.f32.mrf.mxu2 }
 0xaa3   : > { %v10349_v27 = vpop.f32.mrf.mxu0 }
 0xaa8   : > { %v17003_v26 = vpop.f32.mrf.mxu3 }
 0xaaa   : > { %v17005_v43 = vpop.f32.mrf.mxu2 }
 0xaab   : > { %v10352_v31 = vpop.f32.mrf.mxu0 }
 0xab0   : > { %v10144_v28 = vpop.f32.mrf.mxu3 }
 0xab2   : > { %v17009_v15 = vpop.f32.mrf.mxu2 }
 0xab8   : > { %v10146_v3 = vpop.f32.mrf.mxu3 }
 0xaba   : > { %v10066_v34 = vpop.f32.mrf.mxu2 }
 0xabb   : > { %v10086_v56 = vadd.f32 %v10066_v34, %v9999_v37  ;;  %v9451_v34 = vadd.f32 %v16981_v36, %v9261_v13 }
 0xabd   : > { %v10164_v30 = vadd.f32 %v10144_v28, %v10086_v56  ;;  %v10001_v28 = vadd.f32 %v9984_v20, %v9810_v57  ;;  %v9537_v11 = vadd.f32 %v16997_v45, %v9451_v34  ;;  %v9812_v56 = vadd.f32 %v16979_v1, %v9614_v33 }
 0xabe   : > { %v9538_v1 = vadd.f32 %v17005_v43, %v9452_v25 }
 0xabf   : > { %v10362_v6 = vadd.f32 %v10342_v42, %v10164_v30  ;;  %v9986_v42 = vpop.f32.mrf.mxu1  ;;  %v9615_v30 = vadd.f32 %v16989_v59, %v9537_v11 }
 0xac0   : > { %v10149_v39 = vpop.f32.mrf.mxu3  ;;  %v10002_v37 = vadd.f32 %v9986_v42, %v9811_v44 }
 0xac1   : > { %v10371_v62 = vadd.f32 %v17019_v17, %v10362_v6  ;;  %v9813_v22 = vadd.f32 %v16985_v18, %v9615_v30 }
 0xac2   : > { %v10068_v9 = vpop.f32.mrf.mxu2 }
 0xac3   : > { %10379 = vst.msk [vmem:[%s17024_s28] sm:$0xff] %vm1367_vm15, %v10371_v62  ;;  %v10087_v58 = vadd.f32 %v10068_v9, %v10000_v32  ;;  %v9616_v32 = vadd.f32 %v16995_v47, %v9538_v1  ;;  %v10354_v9 = vpop.f32.mrf.mxu0 }
 0xac5   : > { %v10165_v21 = vadd.f32 %v10146_v3, %v10087_v58  ;;  %v9453_v58 = vadd.f32 %v16993_v52, %v9263_v5  ;;  %v9814_v19 = vadd.f32 %v16991_v41, %v9616_v32 }
 0xac7   : > { %v10363_v46 = vadd.f32 %v10344_v40, %v10165_v21  ;;  %v9989_v50 = vpop.f32.mrf.mxu1  ;;  %v9539_v18 = vadd.f32 %v17009_v15, %v9453_v58 }
 0xac8   : > { %v10151_v7 = vpop.f32.mrf.mxu3  ;;  %v10003_v20 = vadd.f32 %v9989_v50, %v9812_v56 }
 0xac9   : > { %v10372_v0 = vadd.f32 %v17019_v17, %v10363_v46  ;;  %v9617_v47 = vadd.f32 %v17003_v26, %v9539_v18 }
 0xaca   : > { %v10071_v12 = vpop.f32.mrf.mxu2 }
 0xacb   : > { %10380 = vst.msk [vmem:[%s17024_s28 + $0x8] sm:$0xff] %vm1367_vm15, %v10372_v0  ;;  %v10088_v54 = vadd.f32 %v10071_v12, %v10001_v28  ;;  %v10357_v42 = vpop.f32.mrf.mxu0  ;;  %v9815_v35 = vadd.f32 %v16999_v53, %v9617_v47 }
 0xacd   : > { %v10166_v16 = vadd.f32 %v10149_v39, %v10088_v54 }
 0xacf   : > { %v10364_v4 = vadd.f32 %v10347_v49, %v10166_v16  ;;  %v9991_v6 = vpop.f32.mrf.mxu1 }
 0xad0   : > { %v10154_v24 = vpop.f32.mrf.mxu3  ;;  %v10004_v29 = vadd.f32 %v9991_v6, %v9813_v22 }
 0xad1   : > { %v10373_v3 = vadd.f32 %v17019_v17, %v10364_v4 }
 0xad2   : > { %v10073_v40 = vpop.f32.mrf.mxu2 }
 0xad3   : > { %10381 = vst.msk [vmem:[%s17024_s28 + $0x10] sm:$0xff] %vm1367_vm15, %v10373_v3  ;;  %v10089_v60 = vadd.f32 %v10073_v40, %v10002_v37  ;;  %v10359_v53 = vpop.f32.mrf.mxu0 }
 0xad5   : > { %v10167_v2 = vadd.f32 %v10151_v7, %v10089_v60 }
 0xad7   : > { %v10365_v23 = vadd.f32 %v10349_v27, %v10167_v2  ;;  %v9994_v10 = vpop.f32.mrf.mxu1 }
 0xad8   : > { %v10156_v62 = vpop.f32.mrf.mxu3  ;;  %v10005_v57 = vadd.f32 %v9994_v10, %v9814_v19 }
 0xad9   : > { %v10374_v8 = vadd.f32 %v17019_v17, %v10365_v23 }
 0xada   : > { %v10076_v36 = vpop.f32.mrf.mxu2 }
 0xadb   : > { %10382 = vst.msk [vmem:[%s17024_s28 + $0x18] sm:$0xff] %vm1367_vm15, %v10374_v8  ;;  %v10090_v45 = vadd.f32 %v10076_v36, %v10003_v20 }
 0xadd   : > { %v10168_v55 = vadd.f32 %v10154_v24, %v10090_v45 }
 0xadf   : > { %v10366_v59 = vadd.f32 %v10352_v31, %v10168_v55  ;;  %v9996_v41 = vpop.f32.mrf.mxu1 }
 0xae0   : > { %v10159_v61 = vpop.f32.mrf.mxu3  ;;  %v10006_v28 = vadd.f32 %v9996_v41, %v9815_v35 }
 0xae1   : > { %v10375_v39 = vadd.f32 %v17019_v17, %v10366_v59 }
 0xae2   : > { %v10078_v48 = vpop.f32.mrf.mxu2 }
 0xae3   : > { %10383 = vst.msk [vmem:[%s17024_s28 + $0x20] sm:$0xff] %vm1367_vm15, %v10375_v39  ;;  %v10091_v43 = vadd.f32 %v10078_v48, %v10004_v29 }
 0xae5   : > { %v10169_v49 = vadd.f32 %v10156_v62, %v10091_v43 }
 0xae7   : > { %v10367_v63 = vadd.f32 %v10354_v9, %v10169_v49 }
 0xae8   : > { %v10161_v54 = vpop.f32.mrf.mxu3 }
 0xae9   : > { %v10376_v21 = vadd.f32 %v17019_v17, %v10367_v63 }
 0xaea   : > { %v10081_v46 = vpop.f32.mrf.mxu2 }
 0xaeb   : > { %10384 = vst.msk [vmem:[%s17024_s28 + $0x28] sm:$0xff] %vm1367_vm15, %v10376_v21  ;;  %v10092_v52 = vadd.f32 %v10081_v46, %v10005_v57 }
 0xaed   : > { %v10170_v15 = vadd.f32 %v10159_v61, %v10092_v52 }
 0xaef   : > { %v10368_v0 = vadd.f32 %v10357_v42, %v10170_v15 }
 0xaf1   : > { %v10377_v26 = vadd.f32 %v17019_v17, %v10368_v0 }
 0xaf2   : > { %v10083_v12 = vpop.f32.mrf.mxu2 }
 0xaf3   : > { %10385 = vst.msk [vmem:[%s17024_s28 + $0x30] sm:$0xff] %vm1367_vm15, %v10377_v26  ;;  %v10093_v38 = vadd.f32 %v10083_v12, %v10006_v28 }
 0xaf5   : > { %v10171_v7 = vadd.f32 %v10161_v54, %v10093_v38 }
 0xaf7   : > { %v10369_v14 = vadd.f32 %v10359_v53, %v10171_v7 }
 0xaf9   : > { %v10378_v16 = vadd.f32 %v17019_v17, %v10369_v14 }
 0xafb   : > { %10386 = vst.msk [vmem:[%s17024_s28 + $0x38] sm:$0xff] %vm1367_vm15, %v10378_v16 }
 0xafc   : > { %12053 = shalt.err (!%p12050_p3)
}
 0xafd   : > { %s12092_s25 = smov 128   ;;  %s12093_s28 = smov 8  }
 0xafe   : > { %11708 = dma.vmem_to_hbm [thread:$0]  (%p12187_p5), %s10401_s20, 1024, %s10403_s21, %s10388_s17, %s12092_s25, %s12092_s25, %s12093_s28  }
 0xaff PF: > { %p11714_p4 = scmp.ge.s32.totalorder %s12088_s16, 2  ;;  %s10417_s27 = sand.u32 1, %s12076_s13  }
 0xb00   : > { %s10418_s29 = scalar_lea.sflag [#allocation5], %s10417_s27 }
 0xb01   : > { %p11711_p7 = pnand %p11714_p4, %p12191_p6 }
 0xb03   : > { %p11712_p8 = pneg %p11711_p7 }
 0xb05   : > { %12071 = dma.done.wait (%p11712_p8), %s10418_s29, 1024  }
 0xb06   : > { %12073 = vsyncadd (%p11712_p8), %s10418_s29, 4294966272  ;;  %p20_p9 = scmp.ge.s32.totalorder %s12174_s19, 4   ;;  %s17342_s13 = smov %s12080_s14 }
 0xb07   : > { %s17343_s14 = smov %s12084_s15  ;;  %s17344_s15 = smov %s12185_s22 }
 0xb08   : > { %s17345_s16 = smov %s12174_s19  ;;  %22 = sbr.rel (!%p20_p9) target bundleno = 3 (0x3), region = 130 }
 0xb0d   :  { %10424 = vsyncpa [#allocation5], 1 }
 0xb0e   :  { %10426 = vsyncpa [#allocation5 + $0x1], 1 }

</bundles_post_ra>
